<compile_context>
chip_gen: v6e
topology: v6e:2x2x1
jax: 0.10.0
libtpu: 0.0.40
codegen_flags: <defaults>
</compile_context>

<pallas_src>
import jax
import jax.numpy as jnp
from jax.experimental import pallas as pl
from jax.experimental.pallas import tpu as pltpu


def _scale_matmul_kernel(x_ref, s_ref, w_ref, o_ref):
    # x_ref: (C_in, M)  f32   s_ref: (C_in, 1) f32
    # w_ref: (C_out, C_in) bf16
    # o_ref: (C_out, M) f32
    # Broadcast scale multiply in f32 (VPU), cast to bf16 for the MXU RHS.
    xs = (x_ref[...] * s_ref[...]).astype(jnp.bfloat16)
    o_ref[...] = jnp.dot(w_ref[...], xs, preferred_element_type=jnp.float32)


def prepare_conv1x1_weight(weight_oihw):
    """One-time parameter prep (do OUTSIDE the per-step jit).

    (C_out, C_in, 1, 1) f32 -> (C_out, C_in) bf16. Native PyTorch layout:
    no transpose, half the HBM weight traffic."""
    c_out, c_in = weight_oihw.shape[:2]
    return jnp.asarray(weight_oihw.reshape(c_out, c_in), dtype=jnp.bfloat16)


def fused_mul_conv1x1(x_nchw, scale_nc11, w_oc):
    """Conv2d_1x1(x * scale), no bias.

    x_nchw:     (N, C_in, H, W)  float32
    scale_nc11: (1, C_in, 1, 1)  float32
    w_oc:       (C_out, C_in)    bfloat16  (from prepare_conv1x1_weight)
    returns:    (N, C_out, H, W) float32
    """
    N, C_in, H, W = x_nchw.shape
    C_out, K = w_oc.shape
    assert K == C_in
    M = H * W

    # Glue is reshape-only (free views on contiguous NCHW data).
    x3d = x_nchw.reshape(N, C_in, M)
    s2d = scale_nc11.reshape(C_in, 1)

    out3d = pl.pallas_call(
        _scale_matmul_kernel,
        out_shape=jax.ShapeDtypeStruct((N, C_out, M), jnp.float32),
        grid_spec=pltpu.PrefetchScalarGridSpec(
            num_scalar_prefetch=0,
            grid=(N,),
            in_specs=[
                pl.BlockSpec((None, C_in, M), lambda n: (n, 0, 0)),   # x[n]
                pl.BlockSpec((C_in, 1), lambda n: (0, 0)),            # scale
                pl.BlockSpec((C_out, C_in), lambda n: (0, 0)),        # weight
            ],
            out_specs=pl.BlockSpec((None, C_out, M), lambda n: (n, 0, 0)),
        ),
        compiler_params=pltpu.CompilerParams(
            dimension_semantics=("arbitrary",),
            vmem_limit_bytes=32 << 20,   # working set ~9 MB incl. lane padding
        ),
    )(x3d, s2d, w_oc)

    # Free reshape back to NCHW.
    return out3d.reshape(N, C_out, H, W)


if __name__ == "__main__":
    # Shapes implied by the module's forward.
    N, C_in, H, W = 1, 2304, 7, 7
    C_out = 384

    key = jax.random.PRNGKey(0)
    kx, ks, kw = jax.random.split(key, 3)

    x640 = jax.random.normal(kx, (N, C_in, H, W), dtype=jnp.float32)
    x645 = jax.random.normal(ks, (1, C_in, 1, 1), dtype=jnp.float32)
    # Deterministic synthetic conv weight (Conv2d(2304, 384, 1, bias=False)).
    conv_w = jax.random.normal(kw, (C_out, C_in, 1, 1), dtype=jnp.float32) * 0.02

    # One-time parameter prep (outside the jitted forward).
    w_oc = prepare_conv1x1_weight(conv_w)

    fwd = jax.jit(fused_mul_conv1x1)
    out = jax.block_until_ready(fwd(x640, x645, w_oc))

    # Reference check (exact f32). bf16 weights / bf16 MXU RHS with f32
    # accumulation -> loosened tolerance.
    ref = jnp.einsum("nchw,oc->nohw", x640 * x645,
                     conv_w.reshape(C_out, C_in),
                     precision=jax.lax.Precision.HIGHEST)
    assert out.shape == (N, C_out, H, W)
    assert out.dtype == jnp.float32
    assert jnp.allclose(out, ref, atol=5e-2, rtol=5e-2), \
        float(jnp.max(jnp.abs(out - ref)))

    print("KERNEL_OK")
</pallas_src>

<mosaic_0001>
module attributes {stable_mosaic.version = 11 : i64} {
  func.func @_scale_matmul_kernel(%arg0: i32, %arg1: memref<1x2304x49xf32, #tpu.memory_space<vmem>>, %arg2: memref<2304x1xf32, #tpu.memory_space<vmem>>, %arg3: memref<384x2304xbf16, #tpu.memory_space<vmem>>, %arg4: memref<1x384x49xf32, #tpu.memory_space<vmem>>) attributes {dimension_semantics = [#tpu.dimension_semantics<arbitrary>], iteration_bounds = array<i64: 1>, scalar_prefetch = 0 : i64, scratch_operands = 0 : i64, tpu.core_type = #tpu.core_type<tc>, window_params = [{transform_indices = @transform_0, window_bounds = array<i64: 1, 2304, 49>}, {pipeline_mode = #tpu.pipeline_mode<synchronous>, transform_indices = @transform_1, window_bounds = array<i64: 2304, 1>}, {pipeline_mode = #tpu.pipeline_mode<synchronous>, transform_indices = @transform_2, window_bounds = array<i64: 384, 2304>}, {transform_indices = @transform_3, window_bounds = array<i64: 1, 384, 49>}]} {
    %c0 = arith.constant 0 : index
    %c0_0 = arith.constant 0 : index
    %c0_1 = arith.constant 0 : index
    %0 = vector.load %arg1[%c0, %c0_0, %c0_1] : memref<1x2304x49xf32, #tpu.memory_space<vmem>>, vector<1x2304x49xf32>
    %1 = vector.shape_cast %0 : vector<1x2304x49xf32> to vector<2304x49xf32>
    %c0_2 = arith.constant 0 : index
    %c0_3 = arith.constant 0 : index
    %2 = vector.load %arg2[%c0_2, %c0_3] : memref<2304x1xf32, #tpu.memory_space<vmem>>, vector<2304x1xf32>
    %3 = vector.broadcast %2 : vector<2304x1xf32> to vector<2304x49xf32>
    %4 = arith.mulf %1, %3 : vector<2304x49xf32>
    %5 = arith.truncf %4 : vector<2304x49xf32> to vector<2304x49xbf16>
    %c0_4 = arith.constant 0 : index
    %c0_5 = arith.constant 0 : index
    %6 = vector.load %arg3[%c0_4, %c0_5] : memref<384x2304xbf16, #tpu.memory_space<vmem>>, vector<384x2304xbf16>
    %cst = arith.constant dense<0.000000e+00> : vector<384x49xf32>
    %7 = tpu.matmul %6, %5, %cst {dimension_numbers = #tpu.dot_dimension_numbers<[1], [0], [0], [1], [0, 0, 1, 1], [], []>} : vector<384x2304xbf16>, vector<2304x49xbf16>, vector<384x49xf32> -> vector<384x49xf32>
    %c0_6 = arith.constant 0 : index
    %c0_7 = arith.constant 0 : index
    %c0_8 = arith.constant 0 : index
    %8 = vector.load %arg4[%c0_6, %c0_7, %c0_8] : memref<1x384x49xf32, #tpu.memory_space<vmem>>, vector<1x384x49xf32>
    %9 = vector.shape_cast %8 : vector<1x384x49xf32> to vector<384x49xf32>
    %10 = vector.shape_cast %7 : vector<384x49xf32> to vector<1x384x49xf32>
    tpu.vector_store %arg4[%c0_6, %c0_7, %c0_8], %10 {strides = array<i32>} : memref<1x384x49xf32, #tpu.memory_space<vmem>>, vector<1x384x49xf32>,
    return
  }
  func.func @transform_0(%arg0: i32) -> (i32, i32, i32) {
    %c0_i32 = arith.constant 0 : i32
    %c0_i32_0 = arith.constant 0 : i32
    %c0_i32_1 = arith.constant 0 : i32
    return %arg0, %c0_i32, %c0_i32_0 : i32, i32, i32
  }
  func.func @transform_1(%arg0: i32) -> (i32, i32) {
    %c0_i32 = arith.constant 0 : i32
    %c0_i32_0 = arith.constant 0 : i32
    %c0_i32_1 = arith.constant 0 : i32
    return %c0_i32, %c0_i32_0 : i32, i32
  }
  func.func @transform_2(%arg0: i32) -> (i32, i32) {
    %c0_i32 = arith.constant 0 : i32
    %c0_i32_0 = arith.constant 0 : i32
    %c0_i32_1 = arith.constant 0 : i32
    return %c0_i32, %c0_i32_0 : i32, i32
  }
  func.func @transform_3(%arg0: i32) -> (i32, i32, i32) {
    %c0_i32 = arith.constant 0 : i32
    %c0_i32_0 = arith.constant 0 : i32
    %c0_i32_1 = arith.constant 0 : i32
    return %arg0, %c0_i32, %c0_i32_0 : i32, i32, i32
  }
}

</mosaic_0001>

<bundles_post_ra>
// kernel: fused_mul_conv1x1.1
= control target key start
LH: loop header
LB: loop body
LE: loop exit
PB: predicated region body
PF: predicated region fallthrough
CT: control target
= control target key end

     0   :  { %v12593_v0 = vmov 0   ;;  %vm7080_vm0 = vcmask 400384   ;;  %s12589_s1 = inlined_call_operand.vmem [shape: f32[2304,1], index: 1, kind: input, shape index: {}]   ;;  %s12590_s2 = inlined_call_operand.vmem [shape: bf16[384,2304], index: 2, kind: input, shape index: {}]   ;;  %s12591_s0 = inlined_call_operand.vmem [shape: f32[1,2304,49], index: 0, kind: input, shape index: {}]   ;;  %s12592_s3 = inlined_call_operand.vmem [shape: f32[1,384,49], index: 3, kind: output, shape index: {}]  }
   0x1   :  { %7599 = vset.pattern.permute.xlu1 %v12593_v0  ;;  %7598 = vset.pattern.permute.xlu0 %v12593_v0  ;;  %v317_v1 = vld [vmem:[%s12589_s1 + $0x70] sm:$0xff]  ;;  %v315_v2 = vld [vmem:[%s12589_s1 + $0x60] sm:$0xff]  ;;  %v318_v3 = vld [vmem:[%s12589_s1 + $0x78] sm:$0xff] }
   0x2   :  { %663 = vperm.xlu0 %7598, %v317_v1   ;;  %653 = vperm.xlu1 %7599, %v315_v2   ;;  %v316_v4 = vld [vmem:[%s12589_s1 + $0x68] sm:$0xff]  ;;  %v314_v5 = vld [vmem:[%s12589_s1 + $0x58] sm:$0xff]  ;;  %v313_v6 = vld [vmem:[%s12589_s1 + $0x50] sm:$0xff] }
   0x3   :  { %5055 = vmatprep.subr.bf16.mxu0 %v12593_v0  ;;  %7565 = vmatprep.subr.bf16.mxu1 %v12593_v0  ;;  %v312_v7 = vld [vmem:[%s12589_s1 + $0x48] sm:$0xff]  ;;  %v311_v8 = vld [vmem:[%s12589_s1 + $0x40] sm:$0xff]  ;;  %v310_v9 = vld [vmem:[%s12589_s1 + $0x38] sm:$0xff] }
   0x4   :  { %v309_v10 = vld [vmem:[%s12589_s1 + $0x30] sm:$0xff]  ;;  %v308_v11 = vld [vmem:[%s12589_s1 + $0x28] sm:$0xff]  ;;  %v307_v12 = vld [vmem:[%s12589_s1 + $0x20] sm:$0xff] }
   0x5   :  { %v306_v13 = vld [vmem:[%s12589_s1 + $0x18] sm:$0xff]  ;;  %v305_v14 = vld [vmem:[%s12589_s1 + $0x10] sm:$0xff]  ;;  %v304_v15 = vld [vmem:[%s12589_s1 + $0x8] sm:$0xff] }
   0x6   :  { %668 = vperm.xlu0 %7598, %v318_v3   ;;  %658 = vperm.xlu1 %7599, %v316_v4   ;;  %v303_v16 = vld [vmem:[%s12589_s1] sm:$0xff]  ;;  %v334_v17 = vld [vmem:[%s12589_s1 + $0xf8] sm:$0xff]  ;;  %v333_v18 = vld [vmem:[%s12589_s1 + $0xf0] sm:$0xff] }
   0x7   :  { %v332_v19 = vld [vmem:[%s12589_s1 + $0xe8] sm:$0xff]  ;;  %v331_v20 = vld [vmem:[%s12589_s1 + $0xe0] sm:$0xff]  ;;  %v330_v21 = vld [vmem:[%s12589_s1 + $0xd8] sm:$0xff] }
   0x8   :  { %v329_v22 = vld [vmem:[%s12589_s1 + $0xd0] sm:$0xff]  ;;  %v328_v23 = vld [vmem:[%s12589_s1 + $0xc8] sm:$0xff]  ;;  %v327_v24 = vld [vmem:[%s12589_s1 + $0xc0] sm:$0xff] }
   0x9   :  { %v326_v25 = vld [vmem:[%s12589_s1 + $0xb8] sm:$0xff]  ;;  %v325_v26 = vld [vmem:[%s12589_s1 + $0xb0] sm:$0xff]  ;;  %v324_v27 = vld [vmem:[%s12589_s1 + $0xa8] sm:$0xff] }
   0xa   :  { %648 = vperm.xlu1 %7599, %v314_v5   ;;  %643 = vperm.xlu0 %7598, %v313_v6   ;;  %v323_v28 = vld [vmem:[%s12589_s1 + $0xa0] sm:$0xff]  ;;  %v322_v29 = vld [vmem:[%s12589_s1 + $0x98] sm:$0xff]  ;;  %v321_v30 = vld [vmem:[%s12589_s1 + $0x90] sm:$0xff] }
   0xb   :  { %v320_v31 = vld [vmem:[%s12589_s1 + $0x88] sm:$0xff]  ;;  %v319_v32 = vld [vmem:[%s12589_s1 + $0x80] sm:$0xff]  ;;  %v350_v33 = vld [vmem:[%s12589_s1 + $0x178] sm:$0xff] }
   0xc   :  { %v349_v34 = vld [vmem:[%s12589_s1 + $0x170] sm:$0xff]  ;;  %v382_v35 = vld [vmem:[%s12589_s1 + $0x278] sm:$0xff]  ;;  %v7602_v37 = vld [vmem:[%s12590_s2 + $0x4] ss:$72 sps:$4 sm:$0xff]  }
   0xd   :  { %v381_v36 = vld [vmem:[%s12589_s1 + $0x270] sm:$0xff]  ;;  %v7605_v38 = vld [vmem:[%s12590_s2 + $0x6c4] ss:$72 sps:$4 sm:$0xff]   ;;  %5087 = vmatprep.mubr.bf16.mxu0 %v7602_v37  ;;  %v346_v43 = vld [vmem:[%s12589_s1 + $0x158] sm:$0xff] }
   0xe   :  { %638 = vperm.xlu1 %7599, %v312_v7   ;;  %633 = vperm.xlu0 %7598, %v311_v8   ;;  %v348_v39 = vld [vmem:[%s12589_s1 + $0x168] sm:$0xff]  ;;  %v347_v40 = vld [vmem:[%s12589_s1 + $0x160] sm:$0xff]  ;;  %v345_v44 = vld [vmem:[%s12589_s1 + $0x150] sm:$0xff] }
   0xf   :  { %5183 = vmatprep.mubr.bf16.mxu1 %v7605_v38  ;;  %v380_v41 = vld [vmem:[%s12589_s1 + $0x268] sm:$0xff]  ;;  %v379_v42 = vld [vmem:[%s12589_s1 + $0x260] sm:$0xff]  ;;  %v378_v45 = vld [vmem:[%s12589_s1 + $0x258] sm:$0xff] }
  0x10   :  { %v377_v46 = vld [vmem:[%s12589_s1 + $0x250] sm:$0xff]  ;;  %v344_v47 = vld [vmem:[%s12589_s1 + $0x148] sm:$0xff]  ;;  %v343_v48 = vld [vmem:[%s12589_s1 + $0x140] sm:$0xff] }
  0x11   :  { %v376_v49 = vld [vmem:[%s12589_s1 + $0x248] sm:$0xff]  ;;  %v375_v50 = vld [vmem:[%s12589_s1 + $0x240] sm:$0xff]  ;;  %v342_v51 = vld [vmem:[%s12589_s1 + $0x138] sm:$0xff] }
  0x12   :  { %628 = vperm.xlu1 %7599, %v310_v9   ;;  %623 = vperm.xlu0 %7598, %v309_v10   ;;  %v341_v52 = vld [vmem:[%s12589_s1 + $0x130] sm:$0xff]  ;;  %v374_v53 = vld [vmem:[%s12589_s1 + $0x238] sm:$0xff]  ;;  %v340_v55 = vld [vmem:[%s12589_s1 + $0x128] sm:$0xff] }
  0x13   :  { %v373_v54 = vld [vmem:[%s12589_s1 + $0x230] sm:$0xff]  ;;  %v339_v56 = vld [vmem:[%s12589_s1 + $0x120] sm:$0xff]  ;;  %v372_v57 = vld [vmem:[%s12589_s1 + $0x228] sm:$0xff] }
  0x14   :  { %v371_v58 = vld [vmem:[%s12589_s1 + $0x220] sm:$0xff]  ;;  %v338_v59 = vld [vmem:[%s12589_s1 + $0x118] sm:$0xff]  ;;  %v337_v60 = vld [vmem:[%s12589_s1 + $0x110] sm:$0xff] }
  0x15   :  { %v370_v61 = vld [vmem:[%s12589_s1 + $0x218] sm:$0xff]  ;;  %v369_v62 = vld [vmem:[%s12589_s1 + $0x210] sm:$0xff]  ;;  %v336_v63 = vld [vmem:[%s12589_s1 + $0x108] sm:$0xff] }
  0x16   :  { %618 = vperm.xlu1 %7599, %v308_v11   ;;  %613 = vperm.xlu0 %7598, %v307_v12   ;;  %v335_v1 = vld [vmem:[%s12589_s1 + $0x100] sm:$0xff]  ;;  %v368_v2 = vld [vmem:[%s12589_s1 + $0x208] sm:$0xff]  ;;  %v29_v5 = vld [vmem:[%s12591_s0 + $0x70] sm:$0xff] }
  0x17   :  { %v367_v3 = vld [vmem:[%s12589_s1 + $0x200] sm:$0xff]  ;;  %v30_v7 = vld [vmem:[%s12591_s0 + $0x78] sm:$0xff]  ;;  %v365_v9 = vld [vmem:[%s12589_s1 + $0x1f0] sm:$0xff] }
  0x18   :  { %v366_v8 = vld [vmem:[%s12589_s1 + $0x1f8] sm:$0xff] }
  0x1a   :  { %608 = vperm.xlu1 %7599, %v306_v13   ;;  %603 = vperm.xlu0 %7598, %v305_v14   ;;  %v28_v14 = vld [vmem:[%s12591_s0 + $0x68] sm:$0xff] }
  0x1e   :  { %598 = vperm.xlu1 %7599, %v304_v15   ;;  %593 = vperm.xlu0 %7598, %v303_v16   ;;  %v27_v15 = vld [vmem:[%s12591_s0 + $0x60] sm:$0xff]  ;;  %v398_v16 = vld [vmem:[%s12589_s1 + $0x2f8] sm:$0xff] }
  0x22   :  { %748 = vperm.xlu1 %7599, %v334_v17   ;;  %743 = vperm.xlu0 %7598, %v333_v18   ;;  %v397_v17 = vld [vmem:[%s12589_s1 + $0x2f0] sm:$0xff] }
  0x26   :  { %738 = vperm.xlu1 %7599, %v332_v19   ;;  %733 = vperm.xlu0 %7598, %v331_v20  }
  0x2a   :  { %728 = vperm.xlu1 %7599, %v330_v21   ;;  %723 = vperm.xlu0 %7598, %v329_v22   ;;  %v26_v21 = vld [vmem:[%s12591_s0 + $0x58] sm:$0xff] }
  0x2e   :  { %718 = vperm.xlu1 %7599, %v328_v23   ;;  %713 = vperm.xlu0 %7598, %v327_v24   ;;  %v25_v23 = vld [vmem:[%s12591_s0 + $0x50] sm:$0xff] }
  0x32   :  { %708 = vperm.xlu1 %7599, %v326_v25   ;;  %703 = vperm.xlu0 %7598, %v325_v26   ;;  %v364_v25 = vld [vmem:[%s12589_s1 + $0x1e8] sm:$0xff]  ;;  %v363_v26 = vld [vmem:[%s12589_s1 + $0x1e0] sm:$0xff] }
  0x36   :  { %698 = vperm.xlu1 %7599, %v324_v27   ;;  %693 = vperm.xlu0 %7598, %v323_v28  }
  0x3a   :  { %688 = vperm.xlu1 %7599, %v322_v29   ;;  %683 = vperm.xlu0 %7598, %v321_v30  }
  0x3e   :  { %678 = vperm.xlu1 %7599, %v320_v31   ;;  %673 = vperm.xlu0 %7598, %v319_v32   ;;  %v24_v32 = vld [vmem:[%s12591_s0 + $0x48] sm:$0xff] }
  0x42   :  { %828 = vperm.xlu1 %7599, %v350_v33   ;;  %823 = vperm.xlu0 %7598, %v349_v34   ;;  %v23_v33 = vld [vmem:[%s12591_s0 + $0x40] sm:$0xff]  ;;  %v396_v34 = vld [vmem:[%s12589_s1 + $0x2e8] sm:$0xff] }
  0x46   :  { %988 = vperm.xlu1 %7599, %v382_v35   ;;  %983 = vperm.xlu0 %7598, %v381_v36   ;;  %v395_v35 = vld [vmem:[%s12589_s1 + $0x2e0] sm:$0xff] }
  0x4a   :  { %818 = vperm.xlu1 %7599, %v348_v39   ;;  %813 = vperm.xlu0 %7598, %v347_v40   ;;  %v22_v40 = vld [vmem:[%s12591_s0 + $0x38] sm:$0xff] }
  0x4e   :  { %978 = vperm.xlu1 %7599, %v380_v41   ;;  %973 = vperm.xlu0 %7598, %v379_v42   ;;  %v21_v42 = vld [vmem:[%s12591_s0 + $0x30] sm:$0xff] }
  0x52   :  { %808 = vperm.xlu1 %7599, %v346_v43   ;;  %803 = vperm.xlu0 %7598, %v345_v44   ;;  %v362_v43 = vld [vmem:[%s12589_s1 + $0x1d8] sm:$0xff]  ;;  %v361_v44 = vld [vmem:[%s12589_s1 + $0x1d0] sm:$0xff] }
  0x56   :  { %968 = vperm.xlu1 %7599, %v378_v45   ;;  %963 = vperm.xlu0 %7598, %v377_v46  }
  0x5a   :  { %798 = vperm.xlu1 %7599, %v344_v47   ;;  %793 = vperm.xlu0 %7598, %v343_v48  }
  0x5e   :  { %958 = vperm.xlu1 %7599, %v376_v49   ;;  %953 = vperm.xlu0 %7598, %v375_v50   ;;  %v20_v50 = vld [vmem:[%s12591_s0 + $0x28] sm:$0xff] }
  0x62   :  { %788 = vperm.xlu1 %7599, %v342_v51   ;;  %783 = vperm.xlu0 %7598, %v341_v52   ;;  %v19_v51 = vld [vmem:[%s12591_s0 + $0x20] sm:$0xff]  ;;  %v394_v52 = vld [vmem:[%s12589_s1 + $0x2d8] sm:$0xff] }
  0x66   :  { %948 = vperm.xlu1 %7599, %v374_v53   ;;  %943 = vperm.xlu0 %7598, %v373_v54   ;;  %v393_v53 = vld [vmem:[%s12589_s1 + $0x2d0] sm:$0xff] }
  0x6a   :  { %778 = vperm.xlu1 %7599, %v340_v55   ;;  %773 = vperm.xlu0 %7598, %v339_v56  }
  0x6e   :  { %938 = vperm.xlu1 %7599, %v372_v57   ;;  %933 = vperm.xlu0 %7598, %v371_v58   ;;  %v18_v58 = vld [vmem:[%s12591_s0 + $0x18] sm:$0xff] }
  0x72   :  { %768 = vperm.xlu1 %7599, %v338_v59   ;;  %763 = vperm.xlu0 %7598, %v337_v60   ;;  %v17_v60 = vld [vmem:[%s12591_s0 + $0x10] sm:$0xff] }
  0x76   :  { %928 = vperm.xlu1 %7599, %v370_v61   ;;  %923 = vperm.xlu0 %7598, %v369_v62   ;;  %v360_v61 = vld [vmem:[%s12589_s1 + $0x1c8] sm:$0xff]  ;;  %v359_v62 = vld [vmem:[%s12589_s1 + $0x1c0] sm:$0xff] }
  0x7a   :  { %758 = vperm.xlu1 %7599, %v336_v63   ;;  %753 = vperm.xlu0 %7598, %v335_v1  }
  0x7d   :  { %v664_v4 = vpop.permute.xlu0 %663  ;;  %v654_v6 = vpop.permute.xlu1 %653 }
  0x7e   :  { %918 = vperm.xlu1 %7599, %v368_v2   ;;  %913 = vperm.xlu0 %7598, %v367_v3   ;;  %v2045_v12 = vmul.f32 %v664_v4, %v29_v5  ;;  %v2043_v24 = vmul.f32 %v654_v6, %v27_v15  ;;  %v16_v5 = vld [vmem:[%s12591_s0 + $0x8] sm:$0xff]  ;;  %v15_v6 = vld [vmem:[%s12591_s0] sm:$0xff]  ;;  %v45_v15 = vld [vmem:[%s12591_s0 + $0xf0] sm:$0xff] }
  0x81   :  { %v669_v10 = vpop.permute.xlu0 %668  ;;  %v659_v11 = vpop.permute.xlu1 %658 }
  0x82   :  { %v2046_v13 = vmul.f32 %v669_v10, %v30_v7  ;;  %908 = vperm.xlu1 %7599, %v366_v8   ;;  %903 = vperm.xlu0 %7598, %v365_v9   ;;  %v2044_v19 = vmul.f32 %v659_v11, %v28_v14  ;;  %v392_v7 = vld [vmem:[%s12589_s1 + $0x2c8] sm:$0xff]  ;;  %v391_v8 = vld [vmem:[%s12589_s1 + $0x2c0] sm:$0xff] }
  0x84   :  { %v2326_v18 = vpack.c.bf16 %v2046_v13, %v2045_v12  ;;  %v2325_v27 = vpack.c.bf16 %v2044_v19, %v2043_v24  ;;  %v46_v13 = vld [vmem:[%s12591_s0 + $0xf8] sm:$0xff]  ;;  %v43_v24 = vld [vmem:[%s12591_s0 + $0xe0] sm:$0xff] }
  0x85   :  { %v649_v20 = vpop.permute.xlu1 %648  ;;  %v644_v22 = vpop.permute.xlu0 %643 }
  0x86   :  { %1068 = vperm.xlu1 %7599, %v398_v16   ;;  %1063 = vperm.xlu0 %7598, %v397_v17   ;;  %v2042_v28 = vmul.f32 %v649_v20, %v26_v21  ;;  %v2041_v29 = vmul.f32 %v644_v22, %v25_v23  ;;  %v358_v16 = vld [vmem:[%s12589_s1 + $0x1b8] sm:$0xff]  ;;  %v357_v17 = vld [vmem:[%s12589_s1 + $0x1b0] sm:$0xff]  ;;  %v44_v23 = vld [vmem:[%s12591_s0 + $0xe8] sm:$0xff] }
  0x87   :  { %5056 = vmatpush1.bf16.msra.mxu0 %v2326_v18  ;;  %7581 = vmatpush1.bf16.msra.mxu1 %v2326_v18 }
  0x88   :  { %5057 = vmatprep.subr.bf16.mxu0 %v12593_v0  ;;  %7566 = vmatprep.subr.bf16.mxu1 %v12593_v0  ;;  %v2324_v36 = vpack.c.bf16 %v2042_v28, %v2041_v29 }
  0x89   :  { %v639_v30 = vpop.permute.xlu1 %638  ;;  %v634_v31 = vpop.permute.xlu0 %633 }
  0x8a   :  { %898 = vperm.xlu1 %7599, %v364_v25   ;;  %893 = vperm.xlu0 %7598, %v363_v26   ;;  %v2040_v37 = vmul.f32 %v639_v30, %v24_v32  ;;  %v2039_v38 = vmul.f32 %v634_v31, %v23_v33  ;;  %v390_v25 = vld [vmem:[%s12589_s1 + $0x2b8] sm:$0xff]  ;;  %v389_v26 = vld [vmem:[%s12589_s1 + $0x2b0] sm:$0xff] }
  0x8b   :  { %5058 = vmatpush1.bf16.msra.mxu0 %v2325_v27  ;;  %7582 = vmatpush1.bf16.msra.mxu1 %v2325_v27  ;;  %v42_v31 = vld [vmem:[%s12591_s0 + $0xd8] sm:$0xff]  ;;  %v41_v33 = vld [vmem:[%s12591_s0 + $0xd0] sm:$0xff] }
  0x8c   :  { %5059 = vmatprep.subr.bf16.mxu0 %v12593_v0  ;;  %7567 = vmatprep.subr.bf16.mxu1 %v12593_v0  ;;  %v2323_v45 = vpack.c.bf16 %v2040_v37, %v2039_v38 }
  0x8d   :  { %v629_v39 = vpop.permute.xlu1 %628  ;;  %v624_v41 = vpop.permute.xlu0 %623 }
  0x8e   :  { %1058 = vperm.xlu1 %7599, %v396_v34   ;;  %1053 = vperm.xlu0 %7598, %v395_v35   ;;  %v2038_v46 = vmul.f32 %v629_v39, %v22_v40  ;;  %v2037_v47 = vmul.f32 %v624_v41, %v21_v42  ;;  %v356_v34 = vld [vmem:[%s12589_s1 + $0x1a8] sm:$0xff]  ;;  %v355_v35 = vld [vmem:[%s12589_s1 + $0x1a0] sm:$0xff] }
  0x8f   :  { %5060 = vmatpush1.bf16.msra.mxu0 %v2324_v36  ;;  %7583 = vmatpush1.bf16.msra.mxu1 %v2324_v36  ;;  %v40_v41 = vld [vmem:[%s12591_s0 + $0xc8] sm:$0xff]  ;;  %v39_v42 = vld [vmem:[%s12591_s0 + $0xc0] sm:$0xff] }
  0x90   :  { %5061 = vmatprep.subr.bf16.mxu0 %v12593_v0  ;;  %7568 = vmatprep.subr.bf16.mxu1 %v12593_v0  ;;  %v2322_v54 = vpack.c.bf16 %v2038_v46, %v2037_v47 }
  0x91   :  { %v619_v48 = vpop.permute.xlu1 %618  ;;  %v614_v49 = vpop.permute.xlu0 %613 }
  0x92   :  { %888 = vperm.xlu1 %7599, %v362_v43   ;;  %883 = vperm.xlu0 %7598, %v361_v44   ;;  %v2036_v55 = vmul.f32 %v619_v48, %v20_v50  ;;  %v2035_v56 = vmul.f32 %v614_v49, %v19_v51  ;;  %v388_v43 = vld [vmem:[%s12589_s1 + $0x2a8] sm:$0xff]  ;;  %v387_v44 = vld [vmem:[%s12589_s1 + $0x2a0] sm:$0xff]  ;;  %v38_v49 = vld [vmem:[%s12591_s0 + $0xb8] sm:$0xff] }
  0x93   :  { %5062 = vmatpush1.bf16.msra.mxu0 %v2323_v45  ;;  %7584 = vmatpush1.bf16.msra.mxu1 %v2323_v45  ;;  %v37_v51 = vld [vmem:[%s12591_s0 + $0xb0] sm:$0xff] }
  0x94   :  { %5063 = vmatprep.subr.bf16.mxu0 %v12593_v0  ;;  %7569 = vmatprep.subr.bf16.mxu1 %v12593_v0  ;;  %v2321_v63 = vpack.c.bf16 %v2036_v55, %v2035_v56 }
  0x95   :  { %v609_v57 = vpop.permute.xlu1 %608  ;;  %v604_v59 = vpop.permute.xlu0 %603 }
  0x96   :  { %1048 = vperm.xlu1 %7599, %v394_v52   ;;  %1043 = vperm.xlu0 %7598, %v393_v53   ;;  %v2034_v1 = vmul.f32 %v609_v57, %v18_v58  ;;  %v2033_v2 = vmul.f32 %v604_v59, %v17_v60  ;;  %v354_v52 = vld [vmem:[%s12589_s1 + $0x198] sm:$0xff]  ;;  %v353_v53 = vld [vmem:[%s12589_s1 + $0x190] sm:$0xff]  ;;  %v36_v59 = vld [vmem:[%s12591_s0 + $0xa8] sm:$0xff] }
  0x97   :  { %5064 = vmatpush1.bf16.msra.mxu0 %v2322_v54  ;;  %7585 = vmatpush1.bf16.msra.mxu1 %v2322_v54  ;;  %v35_v60 = vld [vmem:[%s12591_s0 + $0xa0] sm:$0xff] }
  0x98   :  { %5065 = vmatprep.subr.bf16.mxu0 %v12593_v0  ;;  %7570 = vmatprep.subr.bf16.mxu1 %v12593_v0  ;;  %v2320_v9 = vpack.c.bf16 %v2034_v1, %v2033_v2 }
  0x99   :  { %v599_v3 = vpop.permute.xlu1 %598  ;;  %v594_v4 = vpop.permute.xlu0 %593 }
  0x9a   :  { %878 = vperm.xlu1 %7599, %v360_v61   ;;  %873 = vperm.xlu0 %7598, %v359_v62   ;;  %v2032_v10 = vmul.f32 %v599_v3, %v16_v5  ;;  %v2031_v11 = vmul.f32 %v594_v4, %v15_v6  ;;  %v386_v61 = vld [vmem:[%s12589_s1 + $0x298] sm:$0xff]  ;;  %v385_v62 = vld [vmem:[%s12589_s1 + $0x290] sm:$0xff] }
  0x9b   :  { %5066 = vmatpush1.bf16.msra.mxu0 %v2321_v63  ;;  %7586 = vmatpush1.bf16.msra.mxu1 %v2321_v63  ;;  %v34_v4 = vld [vmem:[%s12591_s0 + $0x98] sm:$0xff]  ;;  %v33_v6 = vld [vmem:[%s12591_s0 + $0x90] sm:$0xff] }
  0x9c   :  { %5067 = vmatprep.subr.bf16.mxu0 %v12593_v0  ;;  %7571 = vmatprep.subr.bf16.mxu1 %v12593_v0  ;;  %v2319_v18 = vpack.c.bf16 %v2032_v10, %v2031_v11 }
  0x9d   :  { %v749_v12 = vpop.permute.xlu1 %748  ;;  %v744_v14 = vpop.permute.xlu0 %743 }
  0x9e   :  { %1038 = vperm.xlu1 %7599, %v392_v7   ;;  %1033 = vperm.xlu0 %7598, %v391_v8   ;;  %v2062_v19 = vmul.f32 %v749_v12, %v46_v13  ;;  %v2061_v20 = vmul.f32 %v744_v14, %v45_v15  ;;  %v352_v7 = vld [vmem:[%s12589_s1 + $0x188] sm:$0xff]  ;;  %v351_v8 = vld [vmem:[%s12589_s1 + $0x180] sm:$0xff] }
  0x9f   :  { %5068 = vmatpush1.bf16.msra.mxu0 %v2320_v9  ;;  %7587 = vmatpush1.bf16.msra.mxu1 %v2320_v9  ;;  %v32_v13 = vld [vmem:[%s12591_s0 + $0x88] sm:$0xff]  ;;  %v31_v15 = vld [vmem:[%s12591_s0 + $0x80] sm:$0xff] }
  0xa0   :  { %5069 = vmatprep.subr.bf16.mxu0 %v12593_v0  ;;  %7572 = vmatprep.subr.bf16.mxu1 %v12593_v0  ;;  %v2334_v27 = vpack.c.bf16 %v2062_v19, %v2061_v20 }
  0xa1   :  { %v739_v21 = vpop.permute.xlu1 %738  ;;  %v734_v22 = vpop.permute.xlu0 %733 }
  0xa2   :  { %868 = vperm.xlu1 %7599, %v358_v16   ;;  %863 = vperm.xlu0 %7598, %v357_v17   ;;  %v2060_v28 = vmul.f32 %v739_v21, %v44_v23  ;;  %v2059_v29 = vmul.f32 %v734_v22, %v43_v24  ;;  %v384_v16 = vld [vmem:[%s12589_s1 + $0x288] sm:$0xff]  ;;  %v383_v17 = vld [vmem:[%s12589_s1 + $0x280] sm:$0xff]  ;;  %v61_v24 = vld [vmem:[%s12591_s0 + $0x170] sm:$0xff] }
  0xa3   :  { %5070 = vmatpush1.bf16.msra.mxu0 %v2319_v18  ;;  %7588 = vmatpush1.bf16.msra.mxu1 %v2319_v18  ;;  %v62_v18 = vld [vmem:[%s12591_s0 + $0x178] sm:$0xff] }
  0xa4   :  { %5071 = vmatprep.subr.bf16.mxu0 %v12593_v0  ;;  %7573 = vmatprep.subr.bf16.mxu1 %v12593_v0  ;;  %v2333_v36 = vpack.c.bf16 %v2060_v28, %v2059_v29  ;;  %v413_v28 = vld [vmem:[%s12589_s1 + $0x370] sm:$0xff] }
  0xa5   :  { %v729_v30 = vpop.permute.xlu1 %728  ;;  %v724_v32 = vpop.permute.xlu0 %723 }
  0xa6   :  { %1028 = vperm.xlu1 %7599, %v390_v25   ;;  %1023 = vperm.xlu0 %7598, %v389_v26   ;;  %v2058_v37 = vmul.f32 %v729_v30, %v42_v31  ;;  %v2057_v38 = vmul.f32 %v724_v32, %v41_v33  ;;  %v94_v25 = vld [vmem:[%s12591_s0 + $0x278] sm:$0xff]  ;;  %v93_v26 = vld [vmem:[%s12591_s0 + $0x270] sm:$0xff]  ;;  %v7600_v33 = vld [vmem:[%s12590_s2] ss:$72 sps:$4 sm:$0xff]  }
  0xa7   :  { %5072 = vmatpush2.bf16.msra.mxu0 %v2334_v27  ;;  %7589 = vmatpush2.bf16.msra.mxu1 %v2334_v27  ;;  %v414_v27 = vld [vmem:[%s12589_s1 + $0x378] sm:$0xff] }
  0xa8   :  { %5073 = vmatprep.subr.bf16.mxu0 %v12593_v0  ;;  %7574 = vmatprep.subr.bf16.mxu1 %v12593_v0  ;;  %v2332_v45 = vpack.c.bf16 %v2058_v37, %v2057_v38 }
  0xa9   :  { %v719_v39 = vpop.permute.xlu1 %718  ;;  %v714_v40 = vpop.permute.xlu0 %713 }
  0xaa   :  { %858 = vperm.xlu1 %7599, %v356_v34   ;;  %853 = vperm.xlu0 %7598, %v355_v35   ;;  %v2056_v46 = vmul.f32 %v719_v39, %v40_v41  ;;  %v2055_v47 = vmul.f32 %v714_v40, %v39_v42  ;;  %v7603_v34 = vld [vmem:[%s12590_s2 + $0x6c0] ss:$72 sps:$4 sm:$0xff]   ;;  %v446_v40 = vld [vmem:[%s12589_s1 + $0x478] sm:$0xff]  ;;  %v445_v41 = vld [vmem:[%s12589_s1 + $0x470] sm:$0xff] }
  0xab   :  { %5074 = vmatpush2.bf16.msra.mxu0 %v2333_v36  ;;  %7590 = vmatpush2.bf16.msra.mxu1 %v2333_v36  ;;  %v60_v35 = vld [vmem:[%s12591_s0 + $0x168] sm:$0xff]  ;;  %v59_v39 = vld [vmem:[%s12591_s0 + $0x160] sm:$0xff] }
  0xac   :  { %5075 = vmatprep.subr.bf16.mxu0 %v12593_v0  ;;  %7575 = vmatprep.subr.bf16.mxu1 %v12593_v0  ;;  %v2331_v54 = vpack.c.bf16 %v2056_v46, %v2055_v47  ;;  %v91_v46 = vld [vmem:[%s12591_s0 + $0x260] sm:$0xff]  ;;  %v412_v47 = vld [vmem:[%s12589_s1 + $0x368] sm:$0xff] }
  0xad   :  { %v709_v48 = vpop.permute.xlu1 %708  ;;  %v704_v50 = vpop.permute.xlu0 %703 }
  0xae   :  { %1018 = vperm.xlu1 %7599, %v388_v43   ;;  %1013 = vperm.xlu0 %7598, %v387_v44   ;;  %v2054_v55 = vmul.f32 %v709_v48, %v38_v49  ;;  %v2053_v56 = vmul.f32 %v704_v50, %v37_v51  ;;  %v411_v51 = vld [vmem:[%s12589_s1 + $0x360] sm:$0xff] }
  0xaf   :  { %5076 = vmatpush2.bf16.msra.mxu0 %v2332_v45  ;;  %7591 = vmatpush2.bf16.msra.mxu1 %v2332_v45  ;;  %v92_v45 = vld [vmem:[%s12591_s0 + $0x268] sm:$0xff] }
  0xb0   :  { %5077 = vmatprep.subr.bf16.mxu0 %v12593_v0  ;;  %7576 = vmatprep.subr.bf16.mxu1 %v12593_v0  ;;  %v2330_v63 = vpack.c.bf16 %v2054_v55, %v2053_v56 }
  0xb1   :  { %v699_v57 = vpop.permute.xlu1 %698  ;;  %v694_v58 = vpop.permute.xlu0 %693 }
  0xb2   :  { %848 = vperm.xlu1 %7599, %v354_v52   ;;  %843 = vperm.xlu0 %7598, %v353_v53   ;;  %v2052_v1 = vmul.f32 %v699_v57, %v36_v59  ;;  %v2051_v2 = vmul.f32 %v694_v58, %v35_v60  ;;  %v7606_v52 = vld [vmem:[%s12590_s2 + $0x754] ss:$72 sps:$4 sm:$0xff]  }
  0xb3   :  { %5078 = vmatpush2.bf16.msra.mxu0 %v2331_v54  ;;  %7592 = vmatpush2.bf16.msra.mxu1 %v2331_v54  ;;  %v7609_v53 = vld [vmem:[%s12590_s2 + $0x94] ss:$72 sps:$4 sm:$0xff]  }
  0xb4   :  { %5079 = vmatprep.subr.bf16.mxu0 %v12593_v0  ;;  %7577 = vmatprep.subr.bf16.mxu1 %v12593_v0  ;;  %v2329_v9 = vpack.c.bf16 %v2052_v1, %v2051_v2  ;;  %v58_v57 = vld [vmem:[%s12591_s0 + $0x158] sm:$0xff]  ;;  %v57_v58 = vld [vmem:[%s12591_s0 + $0x150] sm:$0xff] }
  0xb5   :  { %v689_v3 = vpop.permute.xlu1 %688  ;;  %v684_v5 = vpop.permute.xlu0 %683  ;;  %v7611_v2 = vld [vmem:[%s12590_s2 + $0x90] ss:$72 sps:$4 sm:$0xff]  }
  0xb6   :  { %1008 = vperm.xlu1 %7599, %v386_v61   ;;  %1003 = vperm.xlu0 %7598, %v385_v62   ;;  %v2050_v10 = vmul.f32 %v689_v3, %v34_v4  ;;  %v2049_v11 = vmul.f32 %v684_v5, %v33_v6  ;;  %v444_v61 = vld [vmem:[%s12589_s1 + $0x468] sm:$0xff]  ;;  %v443_v62 = vld [vmem:[%s12589_s1 + $0x460] sm:$0xff]  ;;  %v90_v5 = vld [vmem:[%s12591_s0 + $0x258] sm:$0xff] }
  0xb7   :  { %5080 = vmatpush2.bf16.msra.mxu0 %v2330_v63  ;;  %7593 = vmatpush2.bf16.msra.mxu1 %v2330_v63  ;;  %v7608_v63 = vld [vmem:[%s12590_s2 + $0x750] ss:$72 sps:$4 sm:$0xff]   ;;  %v7612_v6 = vld [vmem:[%s12590_s2 + $0x7e4] ss:$72 sps:$4 sm:$0xff]  }
  0xb8   :  { %5081 = vmatprep.subr.bf16.mxu0 %v12593_v0  ;;  %7578 = vmatprep.subr.bf16.mxu1 %v12593_v0  ;;  %v2328_v19 = vpack.c.bf16 %v2050_v10, %v2049_v11  ;;  %v89_v10 = vld [vmem:[%s12591_s0 + $0x250] sm:$0xff]  ;;  %v410_v11 = vld [vmem:[%s12589_s1 + $0x358] sm:$0xff] }
  0xb9   :  { %v679_v12 = vpop.permute.xlu1 %678  ;;  %v674_v14 = vpop.permute.xlu0 %673 }
  0xba   :  { %838 = vperm.xlu1 %7599, %v352_v7   ;;  %833 = vperm.xlu0 %7598, %v351_v8   ;;  %v2048_v20 = vmul.f32 %v679_v12, %v32_v13  ;;  %v2047_v21 = vmul.f32 %v674_v14, %v31_v15  ;;  %v7615_v7 = vld [vmem:[%s12590_s2 + $0x124] ss:$72 sps:$4 sm:$0xff]   ;;  %v409_v12 = vld [vmem:[%s12589_s1 + $0x350] sm:$0xff] }
  0xbb   :  { %5082 = vmatpush2.bf16.msra.mxu0 %v2329_v9  ;;  %7594 = vmatpush2.bf16.msra.mxu1 %v2329_v9 }
  0xbc   :  { %5083 = vmatprep.subr.bf16.mxu0 %v12593_v0  ;;  %7579 = vmatprep.subr.bf16.mxu1 %v12593_v0  ;;  %v2327_v29 = vpack.c.bf16 %v2048_v20, %v2047_v21  ;;  %v442_v20 = vld [vmem:[%s12589_s1 + $0x458] sm:$0xff]  ;;  %v441_v21 = vld [vmem:[%s12589_s1 + $0x450] sm:$0xff] }
  0xbd   :  { %v829_v22 = vpop.permute.xlu1 %828  ;;  %v824_v23 = vpop.permute.xlu0 %823 }
  0xbe   :  { %998 = vperm.xlu1 %7599, %v384_v16   ;;  %993 = vperm.xlu0 %7598, %v383_v17   ;;  %v2078_v30 = vmul.f32 %v829_v22, %v62_v18  ;;  %v2077_v36 = vmul.f32 %v824_v23, %v61_v24  ;;  %v56_v16 = vld [vmem:[%s12591_s0 + $0x148] sm:$0xff]  ;;  %v55_v17 = vld [vmem:[%s12591_s0 + $0x140] sm:$0xff] }
  0xbf   :  { %5084 = vmatpush2.bf16.msra.mxu0 %v2328_v19  ;;  %7595 = vmatpush2.bf16.msra.mxu1 %v2328_v19  ;;  %v7614_v22 = vld [vmem:[%s12590_s2 + $0x7e0] ss:$72 sps:$4 sm:$0xff]  }
  0xc0   :  { %5085 = vmatprep.subr.bf16.mxu0 %v12593_v0  ;;  %7580 = vmatprep.subr.bf16.mxu1 %v12593_v0  ;;  %v2342_v48 = vpack.c.bf16 %v2078_v30, %v2077_v36  ;;  %v7617_v24 = vld [vmem:[%s12590_s2 + $0x120] ss:$72 sps:$4 sm:$0xff]  }
  0xc1   :  { %v989_v31 = vpop.permute.xlu1 %988  ;;  %v984_v32 = vpop.permute.xlu0 %983 }
  0xc2   :  { %v2110_v37 = vmul.f32 %v989_v31, %v94_v25  ;;  %v2109_v38 = vmul.f32 %v984_v32, %v93_v26  ;;  %1148 = vperm.xlu1 %7599, %v414_v27   ;;  %1143 = vperm.xlu0 %7598, %v413_v28   ;;  %v88_v27 = vld [vmem:[%s12591_s0 + $0x248] sm:$0xff]  ;;  %v7618_v28 = vld [vmem:[%s12590_s2 + $0x874] ss:$72 sps:$4 sm:$0xff]   ;;  %v87_v32 = vld [vmem:[%s12591_s0 + $0x240] sm:$0xff] }
  0xc3   :  { %5086 = vmatpush2.bf16.msra.mxu0 %v2327_v29  ;;  %7596 = vmatpush2.bf16.msra.mxu1 %v2327_v29  ;;  %v7621_v29 = vld [vmem:[%s12590_s2 + $0x1b4] ss:$72 sps:$4 sm:$0xff]  }
  0xc4   :  { %v2358_v42 = vpack.c.bf16 %v2110_v37, %v2109_v38  ;;  %5280 = vmatprep.subr.bf16.mxu1 %v12593_v0  ;;  %5505 = vmatprep.subr.bf16.mxu0 %v12593_v0  ;;  %v54_v38 = vld [vmem:[%s12591_s0 + $0x138] sm:$0xff] }
  0xc5   :  { %v819_v43 = vpop.permute.xlu1 %818  ;;  %v814_v44 = vpop.permute.xlu0 %813 }
  0xc6   :  { %v2076_v49 = vmul.f32 %v819_v43, %v60_v35  ;;  %v2075_v50 = vmul.f32 %v814_v44, %v59_v39  ;;  %1308 = vperm.xlu1 %7599, %v446_v40   ;;  %1303 = vperm.xlu0 %7598, %v445_v41   ;;  %v53_v39 = vld [vmem:[%s12591_s0 + $0x130] sm:$0xff]  ;;  %v439_v43 = vld [vmem:[%s12589_s1 + $0x440] sm:$0xff] }
  0xc7   :  { %5088 = vmatmul.mubr.bf16.vlgmr.msra.gmra.mxu0 %v7600_v33  ;;  %5184 = vmatmul.mubr.bf16.vlgmr.msra.gmra.mxu1 %v7603_v34  ;;  %v408_v33 = vld [vmem:[%s12589_s1 + $0x348] sm:$0xff]  ;;  %v407_v34 = vld [vmem:[%s12589_s1 + $0x340] sm:$0xff]  ;;  %v7620_v44 = vld [vmem:[%s12590_s2 + $0x870] ss:$72 sps:$4 sm:$0xff]  }
  0xc8   :  { %v2341_v54 = vpack.c.bf16 %v2076_v49, %v2075_v50  ;;  %5281 = vmatpush1.bf16.msra.mxu1 %v2342_v48  ;;  %5506 = vmatpush1.bf16.msra.mxu0 %v2358_v42  ;;  %v440_v42 = vld [vmem:[%s12589_s1 + $0x448] sm:$0xff]  ;;  %v86_v49 = vld [vmem:[%s12591_s0 + $0x238] sm:$0xff] }
  0xc9   :  { %v979_v55 = vpop.permute.xlu1 %978  ;;  %v974_v56 = vpop.permute.xlu0 %973  ;;  %5282 = vmatprep.subr.bf16.mxu1 %v12593_v0  ;;  %5507 = vmatprep.subr.bf16.mxu0 %v12593_v0  ;;  %v7624_v50 = vld [vmem:[%s12590_s2 + $0x904] ss:$72 sps:$4 sm:$0xff]  }
  0xca   :  { %v2108_v59 = vmul.f32 %v979_v55, %v92_v45  ;;  %v2107_v60 = vmul.f32 %v974_v56, %v91_v46  ;;  %1138 = vperm.xlu1 %7599, %v412_v47   ;;  %1133 = vperm.xlu0 %7598, %v411_v51   ;;  %v7623_v46 = vld [vmem:[%s12590_s2 + $0x1b0] ss:$72 sps:$4 sm:$0xff]   ;;  %v7627_v51 = vld [vmem:[%s12590_s2 + $0x244] ss:$72 sps:$4 sm:$0xff]  }
  0xcb   :  { %5191 = vmatprep.mubr.bf16.mxu1 %v7606_v52  ;;  %5095 = vmatprep.mubr.bf16.mxu0 %v7609_v53  ;;  %v406_v55 = vld [vmem:[%s12589_s1 + $0x338] sm:$0xff]  ;;  %v405_v56 = vld [vmem:[%s12589_s1 + $0x330] sm:$0xff] }
  0xcc   :  { %v2357_v1 = vpack.c.bf16 %v2108_v59, %v2107_v60  ;;  %5283 = vmatpush1.bf16.msra.mxu1 %v2341_v54  ;;  %v85_v54 = vld [vmem:[%s12591_s0 + $0x230] sm:$0xff]  ;;  %v52_v60 = vld [vmem:[%s12591_s0 + $0x128] sm:$0xff] }
  0xcd   :  { %v809_v3 = vpop.permute.xlu1 %808  ;;  %v804_v4 = vpop.permute.xlu0 %803  ;;  %5284 = vmatprep.subr.bf16.mxu1 %v12593_v0 }
  0xce   :  { %v2074_v8 = vmul.f32 %v809_v3, %v58_v57  ;;  %v2073_v9 = vmul.f32 %v804_v4, %v57_v58  ;;  %1298 = vperm.xlu1 %7599, %v444_v61   ;;  %1293 = vperm.xlu0 %7598, %v443_v62   ;;  %v51_v61 = vld [vmem:[%s12591_s0 + $0x120] sm:$0xff] }
  0xcf   :  { %5508 = vmatpush1.bf16.msra.mxu0 %v2357_v1  ;;  %5192 = vmatmul.mubr.bf16.gmra.mxu1 %v7608_v63  ;;  %v438_v1 = vld [vmem:[%s12589_s1 + $0x438] sm:$0xff]  ;;  %v7626_v3 = vld [vmem:[%s12590_s2 + $0x900] ss:$72 sps:$4 sm:$0xff]  }
  0xd0   :  { %v2340_v13 = vpack.c.bf16 %v2074_v8, %v2073_v9  ;;  %5509 = vmatprep.subr.bf16.mxu0 %v12593_v0  ;;  %5096 = vmatmul.mubr.bf16.gmra.mxu0 %v7611_v2  ;;  %v437_v2 = vld [vmem:[%s12589_s1 + $0x430] sm:$0xff]  ;;  %v84_v8 = vld [vmem:[%s12591_s0 + $0x228] sm:$0xff] }
  0xd1   :  { %v969_v14 = vpop.permute.xlu1 %968  ;;  %v964_v15 = vpop.permute.xlu0 %963  ;;  %5199 = vmatprep.mubr.bf16.mxu1 %v7612_v6  ;;  %5103 = vmatprep.mubr.bf16.mxu0 %v7615_v7  ;;  %v7630_v9 = vld [vmem:[%s12590_s2 + $0x994] ss:$72 sps:$4 sm:$0xff]  }
  0xd2   :  { %v2106_v18 = vmul.f32 %v969_v14, %v90_v5  ;;  %v2105_v19 = vmul.f32 %v964_v15, %v89_v10  ;;  %1128 = vperm.xlu1 %7599, %v410_v11   ;;  %1123 = vperm.xlu0 %7598, %v409_v12   ;;  %v7629_v5 = vld [vmem:[%s12590_s2 + $0x240] ss:$72 sps:$4 sm:$0xff]   ;;  %v7633_v10 = vld [vmem:[%s12590_s2 + $0x2d4] ss:$72 sps:$4 sm:$0xff]  }
  0xd3   :  { %5285 = vmatpush1.bf16.msra.mxu1 %v2340_v13  ;;  %v83_v13 = vld [vmem:[%s12591_s0 + $0x220] sm:$0xff]  ;;  %v404_v14 = vld [vmem:[%s12589_s1 + $0x328] sm:$0xff] }
  0xd4   :  { %v2356_v23 = vpack.c.bf16 %v2106_v18, %v2105_v19  ;;  %5286 = vmatprep.subr.bf16.mxu1 %v12593_v0  ;;  %v403_v15 = vld [vmem:[%s12589_s1 + $0x320] sm:$0xff]  ;;  %v50_v19 = vld [vmem:[%s12591_s0 + $0x118] sm:$0xff] }
  0xd5   :  { %v799_v25 = vpop.permute.xlu1 %798  ;;  %v794_v26 = vpop.permute.xlu0 %793 }
  0xd6   :  { %v2072_v30 = vmul.f32 %v799_v25, %v56_v16  ;;  %v2071_v31 = vmul.f32 %v794_v26, %v55_v17  ;;  %1288 = vperm.xlu1 %7599, %v442_v20   ;;  %1283 = vperm.xlu0 %7598, %v441_v21   ;;  %v49_v20 = vld [vmem:[%s12591_s0 + $0x110] sm:$0xff] }
  0xd7   :  { %5510 = vmatpush1.bf16.msra.mxu0 %v2356_v23  ;;  %5200 = vmatmul.mubr.bf16.gmra.mxu1 %v7614_v22  ;;  %v436_v23 = vld [vmem:[%s12589_s1 + $0x428] sm:$0xff]  ;;  %v7632_v25 = vld [vmem:[%s12590_s2 + $0x990] ss:$72 sps:$4 sm:$0xff]  }
  0xd8   :  { %v2339_v35 = vpack.c.bf16 %v2072_v30, %v2071_v31  ;;  %5511 = vmatprep.subr.bf16.mxu0 %v12593_v0  ;;  %5104 = vmatmul.mubr.bf16.gmra.mxu0 %v7617_v24  ;;  %v435_v24 = vld [vmem:[%s12589_s1 + $0x420] sm:$0xff]  ;;  %v82_v30 = vld [vmem:[%s12591_s0 + $0x218] sm:$0xff] }
  0xd9   :  { %v959_v36 = vpop.permute.xlu1 %958  ;;  %v954_v37 = vpop.permute.xlu0 %953  ;;  %5207 = vmatprep.mubr.bf16.mxu1 %v7618_v28  ;;  %5111 = vmatprep.mubr.bf16.mxu0 %v7621_v29  ;;  %v7636_v31 = vld [vmem:[%s12590_s2 + $0xa24] ss:$72 sps:$4 sm:$0xff]  }
  0xda   :  { %v2104_v40 = vmul.f32 %v959_v36, %v88_v27  ;;  %v2103_v41 = vmul.f32 %v954_v37, %v87_v32  ;;  %1118 = vperm.xlu1 %7599, %v408_v33   ;;  %1113 = vperm.xlu0 %7598, %v407_v34   ;;  %v7635_v27 = vld [vmem:[%s12590_s2 + $0x2d0] ss:$72 sps:$4 sm:$0xff]   ;;  %v7639_v32 = vld [vmem:[%s12590_s2 + $0x364] ss:$72 sps:$4 sm:$0xff]  }
  0xdb   :  { %5287 = vmatpush1.bf16.msra.mxu1 %v2339_v35  ;;  %v81_v35 = vld [vmem:[%s12591_s0 + $0x210] sm:$0xff]  ;;  %v402_v36 = vld [vmem:[%s12589_s1 + $0x318] sm:$0xff] }
  0xdc   :  { %v2355_v45 = vpack.c.bf16 %v2104_v40, %v2103_v41  ;;  %5288 = vmatprep.subr.bf16.mxu1 %v12593_v0  ;;  %v401_v37 = vld [vmem:[%s12589_s1 + $0x310] sm:$0xff]  ;;  %v48_v41 = vld [vmem:[%s12591_s0 + $0x108] sm:$0xff] }
  0xdd   :  { %v789_v47 = vpop.permute.xlu1 %788  ;;  %v784_v48 = vpop.permute.xlu0 %783 }
  0xde   :  { %v2070_v52 = vmul.f32 %v789_v47, %v54_v38  ;;  %v2069_v53 = vmul.f32 %v784_v48, %v53_v39  ;;  %1278 = vperm.xlu1 %7599, %v440_v42   ;;  %1273 = vperm.xlu0 %7598, %v439_v43   ;;  %v47_v42 = vld [vmem:[%s12591_s0 + $0x100] sm:$0xff] }
  0xdf   :  { %5512 = vmatpush1.bf16.msra.mxu0 %v2355_v45  ;;  %5208 = vmatmul.mubr.bf16.gmra.mxu1 %v7620_v44  ;;  %v434_v45 = vld [vmem:[%s12589_s1 + $0x418] sm:$0xff]  ;;  %v7638_v47 = vld [vmem:[%s12590_s2 + $0xa20] ss:$72 sps:$4 sm:$0xff]  }
  0xe0   :  { %v2338_v57 = vpack.c.bf16 %v2070_v52, %v2069_v53  ;;  %5513 = vmatprep.subr.bf16.mxu0 %v12593_v0  ;;  %5112 = vmatmul.mubr.bf16.gmra.mxu0 %v7623_v46  ;;  %v433_v46 = vld [vmem:[%s12589_s1 + $0x410] sm:$0xff]  ;;  %v80_v52 = vld [vmem:[%s12591_s0 + $0x208] sm:$0xff] }
  0xe1   :  { %v949_v58 = vpop.permute.xlu1 %948  ;;  %v944_v59 = vpop.permute.xlu0 %943  ;;  %5215 = vmatprep.mubr.bf16.mxu1 %v7624_v50  ;;  %5119 = vmatprep.mubr.bf16.mxu0 %v7627_v51  ;;  %v7642_v53 = vld [vmem:[%s12590_s2 + $0xab4] ss:$72 sps:$4 sm:$0xff]  }
  0xe2   :  { %v2102_v62 = vmul.f32 %v949_v58, %v86_v49  ;;  %v2101_v63 = vmul.f32 %v944_v59, %v85_v54  ;;  %1108 = vperm.xlu1 %7599, %v406_v55   ;;  %1103 = vperm.xlu0 %7598, %v405_v56   ;;  %v7641_v49 = vld [vmem:[%s12590_s2 + $0x360] ss:$72 sps:$4 sm:$0xff]   ;;  %v7645_v54 = vld [vmem:[%s12590_s2 + $0x3f4] ss:$72 sps:$4 sm:$0xff]  }
  0xe3   :  { %5289 = vmatpush1.bf16.msra.mxu1 %v2338_v57  ;;  %v79_v57 = vld [vmem:[%s12591_s0 + $0x200] sm:$0xff]  ;;  %v400_v58 = vld [vmem:[%s12589_s1 + $0x308] sm:$0xff] }
  0xe4   :  { %v2354_v4 = vpack.c.bf16 %v2102_v62, %v2101_v63  ;;  %5290 = vmatprep.subr.bf16.mxu1 %v12593_v0  ;;  %v399_v59 = vld [vmem:[%s12589_s1 + $0x300] sm:$0xff]  ;;  %v78_v63 = vld [vmem:[%s12591_s0 + $0x1f8] sm:$0xff] }
  0xe5   :  { %v779_v6 = vpop.permute.xlu1 %778  ;;  %v774_v7 = vpop.permute.xlu0 %773 }
  0xe6   :  { %v2068_v11 = vmul.f32 %v779_v6, %v52_v60  ;;  %v2067_v12 = vmul.f32 %v774_v7, %v51_v61  ;;  %1268 = vperm.xlu1 %7599, %v438_v1   ;;  %1263 = vperm.xlu0 %7598, %v437_v2   ;;  %v77_v1 = vld [vmem:[%s12591_s0 + $0x1f0] sm:$0xff] }
  0xe7   :  { %5514 = vmatpush1.bf16.msra.mxu0 %v2354_v4  ;;  %5216 = vmatmul.mubr.bf16.gmra.mxu1 %v7626_v3  ;;  %v432_v4 = vld [vmem:[%s12589_s1 + $0x408] sm:$0xff]  ;;  %v7644_v6 = vld [vmem:[%s12590_s2 + $0xab0] ss:$72 sps:$4 sm:$0xff]  }
  0xe8   :  { %v2337_v16 = vpack.c.bf16 %v2068_v11, %v2067_v12  ;;  %5515 = vmatprep.subr.bf16.mxu0 %v12593_v0  ;;  %5120 = vmatmul.mubr.bf16.gmra.mxu0 %v7629_v5  ;;  %v431_v5 = vld [vmem:[%s12589_s1 + $0x400] sm:$0xff]  ;;  %v110_v11 = vld [vmem:[%s12591_s0 + $0x2f8] sm:$0xff] }
  0xe9   :  { %v939_v17 = vpop.permute.xlu1 %938  ;;  %v934_v18 = vpop.permute.xlu0 %933  ;;  %5223 = vmatprep.mubr.bf16.mxu1 %v7630_v9  ;;  %5127 = vmatprep.mubr.bf16.mxu0 %v7633_v10  ;;  %v7648_v12 = vld [vmem:[%s12590_s2 + $0xb44] ss:$72 sps:$4 sm:$0xff]  }
  0xea   :  { %v2100_v21 = vmul.f32 %v939_v17, %v84_v8  ;;  %v2099_v22 = vmul.f32 %v934_v18, %v83_v13  ;;  %1098 = vperm.xlu1 %7599, %v404_v14   ;;  %1093 = vperm.xlu0 %7598, %v403_v15   ;;  %v7647_v8 = vld [vmem:[%s12590_s2 + $0x3f0] ss:$72 sps:$4 sm:$0xff]   ;;  %v7651_v13 = vld [vmem:[%s12590_s2 + $0x484] ss:$72 sps:$4 sm:$0xff]  }
  0xeb   :  { %5291 = vmatpush1.bf16.msra.mxu1 %v2337_v16  ;;  %v109_v16 = vld [vmem:[%s12591_s0 + $0x2f0] sm:$0xff]  ;;  %v430_v17 = vld [vmem:[%s12589_s1 + $0x3f8] sm:$0xff] }
  0xec   :  { %v2353_v26 = vpack.c.bf16 %v2100_v21, %v2099_v22  ;;  %5292 = vmatprep.subr.bf16.mxu1 %v12593_v0  ;;  %v429_v18 = vld [vmem:[%s12589_s1 + $0x3f0] sm:$0xff]  ;;  %v76_v22 = vld [vmem:[%s12591_s0 + $0x1e8] sm:$0xff] }
  0xed   :  { %v769_v28 = vpop.permute.xlu1 %768  ;;  %v764_v29 = vpop.permute.xlu0 %763 }
  0xee   :  { %v2066_v33 = vmul.f32 %v769_v28, %v50_v19  ;;  %v2065_v34 = vmul.f32 %v764_v29, %v49_v20  ;;  %1258 = vperm.xlu1 %7599, %v436_v23   ;;  %1253 = vperm.xlu0 %7598, %v435_v24   ;;  %v75_v23 = vld [vmem:[%s12591_s0 + $0x1e0] sm:$0xff] }
  0xef   :  { %5516 = vmatpush1.bf16.msra.mxu0 %v2353_v26  ;;  %5224 = vmatmul.mubr.bf16.gmra.mxu1 %v7632_v25  ;;  %v462_v26 = vld [vmem:[%s12589_s1 + $0x4f8] sm:$0xff]  ;;  %v7650_v28 = vld [vmem:[%s12590_s2 + $0xb40] ss:$72 sps:$4 sm:$0xff]  }
  0xf0   :  { %v2336_v38 = vpack.c.bf16 %v2066_v33, %v2065_v34  ;;  %5517 = vmatprep.subr.bf16.mxu0 %v12593_v0  ;;  %5128 = vmatmul.mubr.bf16.gmra.mxu0 %v7635_v27  ;;  %v461_v27 = vld [vmem:[%s12589_s1 + $0x4f0] sm:$0xff]  ;;  %v108_v33 = vld [vmem:[%s12591_s0 + $0x2e8] sm:$0xff] }
  0xf1   :  { %v929_v39 = vpop.permute.xlu1 %928  ;;  %v924_v40 = vpop.permute.xlu0 %923  ;;  %5231 = vmatprep.mubr.bf16.mxu1 %v7636_v31  ;;  %5135 = vmatprep.mubr.bf16.mxu0 %v7639_v32  ;;  %v7654_v34 = vld [vmem:[%s12590_s2 + $0xbd4] ss:$72 sps:$4 sm:$0xff]  }
  0xf2   :  { %v2098_v43 = vmul.f32 %v929_v39, %v82_v30  ;;  %v2097_v44 = vmul.f32 %v924_v40, %v81_v35  ;;  %1088 = vperm.xlu1 %7599, %v402_v36   ;;  %1083 = vperm.xlu0 %7598, %v401_v37   ;;  %v7653_v30 = vld [vmem:[%s12590_s2 + $0x480] ss:$72 sps:$4 sm:$0xff]   ;;  %v7657_v35 = vld [vmem:[%s12590_s2 + $0x514] ss:$72 sps:$4 sm:$0xff]  }
  0xf3   :  { %5293 = vmatpush1.bf16.msra.mxu1 %v2336_v38  ;;  %v107_v38 = vld [vmem:[%s12591_s0 + $0x2e0] sm:$0xff]  ;;  %v428_v39 = vld [vmem:[%s12589_s1 + $0x3e8] sm:$0xff] }
  0xf4   :  { %v2352_v48 = vpack.c.bf16 %v2098_v43, %v2097_v44  ;;  %5294 = vmatprep.subr.bf16.mxu1 %v12593_v0  ;;  %v427_v40 = vld [vmem:[%s12589_s1 + $0x3e0] sm:$0xff]  ;;  %v74_v44 = vld [vmem:[%s12591_s0 + $0x1d8] sm:$0xff] }
  0xf5   :  { %v759_v50 = vpop.permute.xlu1 %758  ;;  %v754_v51 = vpop.permute.xlu0 %753 }
  0xf6   :  { %v2064_v55 = vmul.f32 %v759_v50, %v48_v41  ;;  %v2063_v56 = vmul.f32 %v754_v51, %v47_v42  ;;  %1248 = vperm.xlu1 %7599, %v434_v45   ;;  %1243 = vperm.xlu0 %7598, %v433_v46   ;;  %v73_v45 = vld [vmem:[%s12591_s0 + $0x1d0] sm:$0xff] }
  0xf7   :  { %5518 = vmatpush1.bf16.msra.mxu0 %v2352_v48  ;;  %5232 = vmatmul.mubr.bf16.gmra.mxu1 %v7638_v47  ;;  %v460_v48 = vld [vmem:[%s12589_s1 + $0x4e8] sm:$0xff]  ;;  %v7656_v50 = vld [vmem:[%s12590_s2 + $0xbd0] ss:$72 sps:$4 sm:$0xff]  }
  0xf8   :  { %v2335_v60 = vpack.c.bf16 %v2064_v55, %v2063_v56  ;;  %5519 = vmatprep.subr.bf16.mxu0 %v12593_v0  ;;  %5136 = vmatmul.mubr.bf16.gmra.mxu0 %v7641_v49  ;;  %v459_v49 = vld [vmem:[%s12589_s1 + $0x4e0] sm:$0xff]  ;;  %v106_v55 = vld [vmem:[%s12591_s0 + $0x2d8] sm:$0xff] }
  0xf9   :  { %v919_v61 = vpop.permute.xlu1 %918  ;;  %v914_v62 = vpop.permute.xlu0 %913  ;;  %5239 = vmatprep.mubr.bf16.mxu1 %v7642_v53  ;;  %5143 = vmatprep.mubr.bf16.mxu0 %v7645_v54  ;;  %v7660_v56 = vld [vmem:[%s12590_s2 + $0xc64] ss:$72 sps:$4 sm:$0xff]  }
  0xfa   :  { %v2096_v2 = vmul.f32 %v919_v61, %v80_v52  ;;  %v2095_v3 = vmul.f32 %v914_v62, %v79_v57  ;;  %1078 = vperm.xlu1 %7599, %v400_v58   ;;  %1073 = vperm.xlu0 %7598, %v399_v59   ;;  %v7659_v52 = vld [vmem:[%s12590_s2 + $0x510] ss:$72 sps:$4 sm:$0xff]   ;;  %v7663_v57 = vld [vmem:[%s12590_s2 + $0x5a4] ss:$72 sps:$4 sm:$0xff]  }
  0xfb   :  { %5295 = vmatpush1.bf16.msra.mxu1 %v2335_v60  ;;  %v105_v60 = vld [vmem:[%s12591_s0 + $0x2d0] sm:$0xff]  ;;  %v426_v61 = vld [vmem:[%s12589_s1 + $0x3d8] sm:$0xff] }
  0xfc   :  { %v2351_v7 = vpack.c.bf16 %v2096_v2, %v2095_v3  ;;  %5296 = vmatprep.subr.bf16.mxu1 %v12593_v0  ;;  %v425_v62 = vld [vmem:[%s12589_s1 + $0x3d0] sm:$0xff]  ;;  %v72_v3 = vld [vmem:[%s12591_s0 + $0x1c8] sm:$0xff] }
  0xfd   :  { %v909_v9 = vpop.permute.xlu1 %908  ;;  %v904_v10 = vpop.permute.xlu0 %903 }
  0xfe   :  { %v2094_v14 = vmul.f32 %v909_v9, %v78_v63  ;;  %v2093_v15 = vmul.f32 %v904_v10, %v77_v1  ;;  %1238 = vperm.xlu1 %7599, %v432_v4   ;;  %1233 = vperm.xlu0 %7598, %v431_v5   ;;  %v71_v4 = vld [vmem:[%s12591_s0 + $0x1c0] sm:$0xff] }
  0xff   :  { %5520 = vmatpush1.bf16.msra.mxu0 %v2351_v7  ;;  %5240 = vmatmul.mubr.bf16.gmra.mxu1 %v7644_v6  ;;  %v458_v7 = vld [vmem:[%s12589_s1 + $0x4d8] sm:$0xff]  ;;  %v7662_v9 = vld [vmem:[%s12590_s2 + $0xc60] ss:$72 sps:$4 sm:$0xff]  }
 0x100   :  { %v2350_v19 = vpack.c.bf16 %v2094_v14, %v2093_v15  ;;  %5521 = vmatprep.subr.bf16.mxu0 %v12593_v0  ;;  %5144 = vmatmul.mubr.bf16.gmra.mxu0 %v7647_v8  ;;  %v457_v8 = vld [vmem:[%s12589_s1 + $0x4d0] sm:$0xff]  ;;  %v104_v14 = vld [vmem:[%s12591_s0 + $0x2c8] sm:$0xff] }
 0x101   :  { %v1069_v20 = vpop.permute.xlu1 %1068  ;;  %v1064_v21 = vpop.permute.xlu0 %1063  ;;  %5247 = vmatprep.mubr.bf16.mxu1 %v7648_v12  ;;  %5151 = vmatprep.mubr.bf16.mxu0 %v7651_v13  ;;  %v7666_v15 = vld [vmem:[%s12590_s2 + $0xcf4] ss:$72 sps:$4 sm:$0xff]  }
 0x102   :  { %v2126_v24 = vmul.f32 %v1069_v20, %v110_v11  ;;  %v2125_v25 = vmul.f32 %v1064_v21, %v109_v16  ;;  %1228 = vperm.xlu1 %7599, %v430_v17   ;;  %1223 = vperm.xlu0 %7598, %v429_v18   ;;  %v7665_v11 = vld [vmem:[%s12590_s2 + $0x5a0] ss:$72 sps:$4 sm:$0xff]   ;;  %v7669_v16 = vld [vmem:[%s12590_s2 + $0x634] ss:$72 sps:$4 sm:$0xff]  }
 0x103   :  { %5297 = vmatpush2.bf16.msra.mxu1 %v2350_v19  ;;  %v103_v19 = vld [vmem:[%s12591_s0 + $0x2c0] sm:$0xff]  ;;  %v424_v20 = vld [vmem:[%s12589_s1 + $0x3c8] sm:$0xff] }
 0x104   :  { %v2366_v29 = vpack.c.bf16 %v2126_v24, %v2125_v25  ;;  %5298 = vmatprep.subr.bf16.mxu1 %v12593_v0  ;;  %v423_v21 = vld [vmem:[%s12589_s1 + $0x3c0] sm:$0xff]  ;;  %v70_v25 = vld [vmem:[%s12591_s0 + $0x1b8] sm:$0xff] }
 0x105   :  { %v899_v31 = vpop.permute.xlu1 %898  ;;  %v894_v32 = vpop.permute.xlu0 %893 }
 0x106   :  { %v2092_v36 = vmul.f32 %v899_v31, %v76_v22  ;;  %v2091_v37 = vmul.f32 %v894_v32, %v75_v23  ;;  %1388 = vperm.xlu1 %7599, %v462_v26   ;;  %1383 = vperm.xlu0 %7598, %v461_v27   ;;  %v69_v26 = vld [vmem:[%s12591_s0 + $0x1b0] sm:$0xff] }
 0x107   :  { %5522 = vmatpush2.bf16.msra.mxu0 %v2366_v29  ;;  %5248 = vmatmul.mubr.bf16.gmra.mxu1 %v7650_v28  ;;  %v456_v29 = vld [vmem:[%s12589_s1 + $0x4c8] sm:$0xff]  ;;  %v7668_v31 = vld [vmem:[%s12590_s2 + $0xcf0] ss:$72 sps:$4 sm:$0xff]  }
 0x108   :  { %v2349_v41 = vpack.c.bf16 %v2092_v36, %v2091_v37  ;;  %5523 = vmatprep.subr.bf16.mxu0 %v12593_v0  ;;  %5152 = vmatmul.mubr.bf16.gmra.mxu0 %v7653_v30  ;;  %v455_v30 = vld [vmem:[%s12589_s1 + $0x4c0] sm:$0xff]  ;;  %v102_v36 = vld [vmem:[%s12591_s0 + $0x2b8] sm:$0xff]  ;;  %v7674_v37 = vld [vmem:[%s12590_s2 + $0xc] ss:$72 sps:$4 sm:$0xff]  }
 0x109   :  { %v1059_v42 = vpop.permute.xlu1 %1058  ;;  %v1054_v43 = vpop.permute.xlu0 %1053  ;;  %5255 = vmatprep.mubr.bf16.mxu1 %v7654_v34  ;;  %5159 = vmatprep.mubr.bf16.mxu0 %v7657_v35 }
 0x10a   :  { %v2124_v46 = vmul.f32 %v1059_v42, %v108_v33  ;;  %v2123_v47 = vmul.f32 %v1054_v43, %v107_v38  ;;  %1218 = vperm.xlu1 %7599, %v428_v39   ;;  %1213 = vperm.xlu0 %7598, %v427_v40   ;;  %v7671_v33 = vld [vmem:[%s12590_s2 + $0x630] ss:$72 sps:$4 sm:$0xff]   ;;  %v7677_v38 = vld [vmem:[%s12590_s2 + $0x14] ss:$72 sps:$4 sm:$0xff]  }
 0x10b   :  { %5299 = vmatpush2.bf16.msra.mxu1 %v2349_v41  ;;  %v101_v41 = vld [vmem:[%s12591_s0 + $0x2b0] sm:$0xff]  ;;  %v422_v42 = vld [vmem:[%s12589_s1 + $0x3b8] sm:$0xff] }
 0x10c   :  { %v2365_v51 = vpack.c.bf16 %v2124_v46, %v2123_v47  ;;  %5300 = vmatprep.subr.bf16.mxu1 %v12593_v0  ;;  %v421_v43 = vld [vmem:[%s12589_s1 + $0x3b0] sm:$0xff]  ;;  %v68_v47 = vld [vmem:[%s12591_s0 + $0x1a8] sm:$0xff] }
 0x10d   :  { %v889_v53 = vpop.permute.xlu1 %888  ;;  %v884_v54 = vpop.permute.xlu0 %883 }
 0x10e   :  { %v2090_v58 = vmul.f32 %v889_v53, %v74_v44  ;;  %v2089_v59 = vmul.f32 %v884_v54, %v73_v45  ;;  %1378 = vperm.xlu1 %7599, %v460_v48   ;;  %1373 = vperm.xlu0 %7598, %v459_v49  }
 0x10f   :  { %5524 = vmatpush2.bf16.msra.mxu0 %v2365_v51  ;;  %5256 = vmatmul.mubr.bf16.gmra.mxu1 %v7656_v50  ;;  %v67_v50 = vld [vmem:[%s12591_s0 + $0x1a0] sm:$0xff]  ;;  %v454_v51 = vld [vmem:[%s12589_s1 + $0x4b8] sm:$0xff] }
 0x110   :  { %v2348_v63 = vpack.c.bf16 %v2090_v58, %v2089_v59  ;;  %5525 = vmatprep.subr.bf16.mxu0 %v12593_v0  ;;  %5160 = vmatmul.mubr.bf16.gmra.mxu0 %v7659_v52  ;;  %v453_v52 = vld [vmem:[%s12589_s1 + $0x4b0] sm:$0xff]  ;;  %v99_v59 = vld [vmem:[%s12591_s0 + $0x2a0] sm:$0xff] }
 0x111   :  { %v1049_v1 = vpop.permute.xlu1 %1048  ;;  %v1044_v2 = vpop.permute.xlu0 %1043  ;;  %5263 = vmatprep.mubr.bf16.mxu1 %v7660_v56  ;;  %5167 = vmatprep.mubr.bf16.mxu0 %v7663_v57  ;;  %v100_v56 = vld [vmem:[%s12591_s0 + $0x2a8] sm:$0xff] }
 0x112   :  { %v2122_v5 = vmul.f32 %v1049_v1, %v106_v55  ;;  %v2121_v6 = vmul.f32 %v1044_v2, %v105_v60  ;;  %1208 = vperm.xlu1 %7599, %v426_v61   ;;  %1203 = vperm.xlu0 %7598, %v425_v62   ;;  %v420_v60 = vld [vmem:[%s12589_s1 + $0x3a8] sm:$0xff]  ;;  %v419_v61 = vld [vmem:[%s12589_s1 + $0x3a0] sm:$0xff]  ;;  %v66_v2 = vld [vmem:[%s12591_s0 + $0x198] sm:$0xff] }
 0x113   :  { %5301 = vmatpush2.bf16.msra.mxu1 %v2348_v63 }
 0x114   :  { %v2364_v10 = vpack.c.bf16 %v2122_v5, %v2121_v6  ;;  %5302 = vmatprep.subr.bf16.mxu1 %v12593_v0  ;;  %v65_v5 = vld [vmem:[%s12591_s0 + $0x190] sm:$0xff]  ;;  %v452_v6 = vld [vmem:[%s12589_s1 + $0x4a8] sm:$0xff] }
 0x115   :  { %v879_v12 = vpop.permute.xlu1 %878  ;;  %v874_v13 = vpop.permute.xlu0 %873 }
 0x116   :  { %v2088_v17 = vmul.f32 %v879_v12, %v72_v3  ;;  %v2087_v18 = vmul.f32 %v874_v13, %v71_v4  ;;  %1368 = vperm.xlu1 %7599, %v458_v7   ;;  %1363 = vperm.xlu0 %7598, %v457_v8   ;;  %v451_v7 = vld [vmem:[%s12589_s1 + $0x4a0] sm:$0xff] }
 0x117   :  { %5526 = vmatpush2.bf16.msra.mxu0 %v2364_v10  ;;  %5264 = vmatmul.mubr.bf16.gmra.mxu1 %v7662_v9 }
 0x118   :  { %v2347_v22 = vpack.c.bf16 %v2088_v17, %v2087_v18  ;;  %5527 = vmatprep.subr.bf16.mxu0 %v12593_v0  ;;  %5168 = vmatmul.mubr.bf16.gmra.mxu0 %v7665_v11  ;;  %v98_v11 = vld [vmem:[%s12591_s0 + $0x298] sm:$0xff] }
 0x119   :  { %v1039_v23 = vpop.permute.xlu1 %1038  ;;  %v1034_v24 = vpop.permute.xlu0 %1033  ;;  %5271 = vmatprep.mubr.bf16.mxu1 %v7666_v15  ;;  %5175 = vmatprep.mubr.bf16.mxu0 %v7669_v16  ;;  %v418_v15 = vld [vmem:[%s12589_s1 + $0x398] sm:$0xff]  ;;  %v417_v16 = vld [vmem:[%s12589_s1 + $0x390] sm:$0xff] }
 0x11a   :  { %v2120_v27 = vmul.f32 %v1039_v23, %v104_v14  ;;  %v2119_v28 = vmul.f32 %v1034_v24, %v103_v19  ;;  %1198 = vperm.xlu1 %7599, %v424_v20   ;;  %1193 = vperm.xlu0 %7598, %v423_v21   ;;  %v97_v14 = vld [vmem:[%s12591_s0 + $0x290] sm:$0xff]  ;;  %v64_v20 = vld [vmem:[%s12591_s0 + $0x188] sm:$0xff]  ;;  %v63_v23 = vld [vmem:[%s12591_s0 + $0x180] sm:$0xff] }
 0x11b   :  { %5303 = vmatpush2.bf16.msra.mxu1 %v2347_v22  ;;  %v450_v24 = vld [vmem:[%s12589_s1 + $0x498] sm:$0xff] }
 0x11c   :  { %v2363_v32 = vpack.c.bf16 %v2120_v27, %v2119_v28  ;;  %5304 = vmatprep.subr.bf16.mxu1 %v12593_v0 }
 0x11d   :  { %v869_v34 = vpop.permute.xlu1 %868  ;;  %v864_v35 = vpop.permute.xlu0 %863 }
 0x11e   :  { %v2086_v39 = vmul.f32 %v869_v34, %v70_v25  ;;  %v2085_v40 = vmul.f32 %v864_v35, %v69_v26  ;;  %1358 = vperm.xlu1 %7599, %v456_v29   ;;  %1353 = vperm.xlu0 %7598, %v455_v30   ;;  %v449_v25 = vld [vmem:[%s12589_s1 + $0x490] sm:$0xff]  ;;  %v96_v29 = vld [vmem:[%s12591_s0 + $0x288] sm:$0xff]  ;;  %v415_v34 = vld [vmem:[%s12589_s1 + $0x380] sm:$0xff] }
 0x11f   :  { %5528 = vmatpush2.bf16.msra.mxu0 %v2363_v32  ;;  %5272 = vmatmul.mubr.bf16.gmra.mxu1 %v7668_v31  ;;  %v95_v32 = vld [vmem:[%s12591_s0 + $0x280] sm:$0xff] }
 0x120   :  { %v2346_v44 = vpack.c.bf16 %v2086_v39, %v2085_v40  ;;  %5529 = vmatprep.subr.bf16.mxu0 %v12593_v0  ;;  %5176 = vmatmul.mubr.bf16.gmra.mxu0 %v7671_v33  ;;  %v416_v33 = vld [vmem:[%s12589_s1 + $0x388] sm:$0xff]  ;;  %v126_v39 = vld [vmem:[%s12591_s0 + $0x378] sm:$0xff] }
 0x121   :  { %v1029_v45 = vpop.permute.xlu1 %1028  ;;  %v1024_v46 = vpop.permute.xlu0 %1023  ;;  %5312 = vmatprep.mubr.bf16.mxu1 %v7674_v37  ;;  %5537 = vmatprep.mubr.bf16.mxu0 %v7677_v38  ;;  %v7672_v38 = vld [vmem:[%s12590_s2 + $0x8] ss:$72 sps:$4 sm:$0xff]  }
 0x122   :  { %v2118_v48 = vmul.f32 %v1029_v45, %v102_v36  ;;  %v2117_v49 = vmul.f32 %v1024_v46, %v101_v41  ;;  %1188 = vperm.xlu1 %7599, %v422_v42   ;;  %1183 = vperm.xlu0 %7598, %v421_v43   ;;  %v125_v42 = vld [vmem:[%s12591_s0 + $0x370] sm:$0xff]  ;;  %v448_v43 = vld [vmem:[%s12589_s1 + $0x488] sm:$0xff]  ;;  %v7678_v46 = vld [vmem:[%s12590_s2 + $0x9c] ss:$72 sps:$4 sm:$0xff]  }
 0x123   :  { %5305 = vmatpush2.bf16.msra.mxu1 %v2346_v44  ;;  %v447_v44 = vld [vmem:[%s12589_s1 + $0x480] sm:$0xff] }
 0x124   :  { %v2362_v53 = vpack.c.bf16 %v2118_v48, %v2117_v49  ;;  %5306 = vmatprep.subr.bf16.mxu1 %v12593_v0  ;;  %v7675_v49 = vld [vmem:[%s12590_s2 + $0x10] ss:$72 sps:$4 sm:$0xff]  }
 0x125   :  { %v859_v54 = vpop.permute.xlu1 %858  ;;  %v854_v55 = vpop.permute.xlu0 %853 }
 0x126   :  { %v2084_v57 = vmul.f32 %v859_v54, %v68_v47  ;;  %v2083_v58 = vmul.f32 %v854_v55, %v67_v50  ;;  %1348 = vperm.xlu1 %7599, %v454_v51   ;;  %1343 = vperm.xlu0 %7598, %v453_v52   ;;  %v158_v50 = vld [vmem:[%s12591_s0 + $0x478] sm:$0xff]  ;;  %v477_v55 = vld [vmem:[%s12589_s1 + $0x570] sm:$0xff] }
 0x127   :  { %5530 = vmatpush2.bf16.msra.mxu0 %v2362_v53  ;;  %v157_v53 = vld [vmem:[%s12591_s0 + $0x470] sm:$0xff]  ;;  %v478_v54 = vld [vmem:[%s12589_s1 + $0x578] sm:$0xff] }
 0x128   :  { %v2345_v62 = vpack.c.bf16 %v2084_v57, %v2083_v58  ;;  %5531 = vmatprep.subr.bf16.mxu0 %v12593_v0  ;;  %v7681_v57 = vld [vmem:[%s12590_s2 + $0xa4] ss:$72 sps:$4 sm:$0xff]  }
 0x129   :  { %v1019_v63 = vpop.permute.xlu1 %1018  ;;  %v1014_v1 = vpop.permute.xlu0 %1013 }
 0x12a   :  { %v2116_v3 = vmul.f32 %v1019_v63, %v100_v56  ;;  %v2115_v4 = vmul.f32 %v1014_v1, %v99_v59  ;;  %1178 = vperm.xlu1 %7599, %v420_v60   ;;  %1173 = vperm.xlu0 %7598, %v419_v61   ;;  %v124_v60 = vld [vmem:[%s12591_s0 + $0x368] sm:$0xff]  ;;  %v7680_v61 = vld [vmem:[%s12590_s2 + $0x98] ss:$72 sps:$4 sm:$0xff]  }
 0x12b   :  { %5307 = vmatpush2.bf16.msra.mxu1 %v2345_v62  ;;  %v123_v1 = vld [vmem:[%s12591_s0 + $0x360] sm:$0xff] }
 0x12c   :  { %v2361_v8 = vpack.c.bf16 %v2116_v3, %v2115_v4  ;;  %5308 = vmatprep.subr.bf16.mxu1 %v12593_v0  ;;  %v509_v3 = vld [vmem:[%s12589_s1 + $0x670] sm:$0xff] }
 0x12d   :  { %v849_v9 = vpop.permute.xlu1 %848  ;;  %v844_v10 = vpop.permute.xlu0 %843 }
 0x12e   :  { %v2082_v12 = vmul.f32 %v849_v9, %v66_v2  ;;  %v2081_v13 = vmul.f32 %v844_v10, %v65_v5  ;;  %1338 = vperm.xlu1 %7599, %v452_v6   ;;  %1333 = vperm.xlu0 %7598, %v451_v7   ;;  %v510_v2 = vld [vmem:[%s12589_s1 + $0x678] sm:$0xff]  ;;  %v7684_v5 = vld [vmem:[%s12590_s2 + $0x12c] ss:$72 sps:$4 sm:$0xff]   ;;  %v7683_v9 = vld [vmem:[%s12590_s2 + $0xa0] ss:$72 sps:$4 sm:$0xff]  }
 0x12f   :  { %5532 = vmatpush2.bf16.msra.mxu0 %v2361_v8  ;;  %v156_v8 = vld [vmem:[%s12591_s0 + $0x468] sm:$0xff] }
 0x130   :  { %v2344_v17 = vpack.c.bf16 %v2082_v12, %v2081_v13  ;;  %5533 = vmatprep.subr.bf16.mxu0 %v12593_v0  ;;  %v155_v12 = vld [vmem:[%s12591_s0 + $0x460] sm:$0xff]  ;;  %v476_v13 = vld [vmem:[%s12589_s1 + $0x568] sm:$0xff] }
 0x131   :  { %v1009_v18 = vpop.permute.xlu1 %1008  ;;  %v1004_v19 = vpop.permute.xlu0 %1003 }
 0x132   :  { %v2114_v21 = vmul.f32 %v1009_v18, %v98_v11  ;;  %v2113_v22 = vmul.f32 %v1004_v19, %v97_v14  ;;  %1168 = vperm.xlu1 %7599, %v418_v15   ;;  %1163 = vperm.xlu0 %7598, %v417_v16   ;;  %v475_v14 = vld [vmem:[%s12589_s1 + $0x560] sm:$0xff]  ;;  %v7687_v16 = vld [vmem:[%s12590_s2 + $0x134] ss:$72 sps:$4 sm:$0xff]  }
 0x133   :  { %5309 = vmatpush2.bf16.msra.mxu1 %v2344_v17  ;;  %v122_v19 = vld [vmem:[%s12591_s0 + $0x358] sm:$0xff] }
 0x134   :  { %v2360_v26 = vpack.c.bf16 %v2114_v21, %v2113_v22  ;;  %5310 = vmatprep.subr.bf16.mxu1 %v12593_v0 }
 0x135   :  { %v839_v27 = vpop.permute.xlu1 %838  ;;  %v834_v28 = vpop.permute.xlu0 %833 }
 0x136   :  { %v2080_v30 = vmul.f32 %v839_v27, %v64_v20  ;;  %v2079_v31 = vmul.f32 %v834_v28, %v63_v23  ;;  %1328 = vperm.xlu1 %7599, %v450_v24   ;;  %1323 = vperm.xlu0 %7598, %v449_v25   ;;  %v7686_v20 = vld [vmem:[%s12590_s2 + $0x128] ss:$72 sps:$4 sm:$0xff]   ;;  %v507_v25 = vld [vmem:[%s12589_s1 + $0x660] sm:$0xff] }
 0x137   :  { %5534 = vmatpush2.bf16.msra.mxu0 %v2360_v26  ;;  %v121_v23 = vld [vmem:[%s12591_s0 + $0x350] sm:$0xff]  ;;  %v508_v24 = vld [vmem:[%s12589_s1 + $0x668] sm:$0xff]  ;;  %v7690_v27 = vld [vmem:[%s12590_s2 + $0x1bc] ss:$72 sps:$4 sm:$0xff]  }
 0x138   :  { %v2343_v35 = vpack.c.bf16 %v2080_v30, %v2079_v31  ;;  %5535 = vmatprep.subr.bf16.mxu0 %v12593_v0  ;;  %v154_v30 = vld [vmem:[%s12591_s0 + $0x458] sm:$0xff] }
 0x139   :  { %v999_v36 = vpop.permute.xlu1 %998  ;;  %v994_v37 = vpop.permute.xlu0 %993  ;;  %v7689_v31 = vld [vmem:[%s12590_s2 + $0x130] ss:$72 sps:$4 sm:$0xff]  }
 0x13a   :  { %v2112_v40 = vmul.f32 %v999_v36, %v96_v29  ;;  %v2111_v41 = vmul.f32 %v994_v37, %v95_v32  ;;  %1158 = vperm.xlu1 %7599, %v416_v33   ;;  %1153 = vperm.xlu0 %7598, %v415_v34   ;;  %v153_v34 = vld [vmem:[%s12591_s0 + $0x450] sm:$0xff] }
 0x13b   :  { %5311 = vmatpush2.bf16.msra.mxu1 %v2343_v35  ;;  %v474_v35 = vld [vmem:[%s12589_s1 + $0x558] sm:$0xff]  ;;  %v473_v36 = vld [vmem:[%s12589_s1 + $0x550] sm:$0xff] }
 0x13c   :  { %v2359_v45 = vpack.c.bf16 %v2112_v40, %v2111_v41  ;;  %5730 = vmatprep.subr.bf16.mxu1 %v12593_v0  ;;  %v120_v41 = vld [vmem:[%s12591_s0 + $0x348] sm:$0xff] }
 0x13d   :  { %v1149_v47 = vpop.permute.xlu1 %1148  ;;  %v1144_v48 = vpop.permute.xlu0 %1143 }
 0x13e   :  { %v2142_v51 = vmul.f32 %v1149_v47, %v126_v39  ;;  %v2141_v52 = vmul.f32 %v1144_v48, %v125_v42  ;;  %5313 = vmatmul.mubr.bf16.vlgmr.msra.gmra.mxu1 %v7672_v38  ;;  %1318 = vperm.xlu1 %7599, %v448_v43   ;;  %v7693_v38 = vld [vmem:[%s12590_s2 + $0x1c4] ss:$72 sps:$4 sm:$0xff]   ;;  %v7692_v42 = vld [vmem:[%s12590_s2 + $0x1b8] ss:$72 sps:$4 sm:$0xff]   ;;  %v505_v47 = vld [vmem:[%s12589_s1 + $0x650] sm:$0xff] }
 0x13f   :  { %1313 = vperm.xlu0 %7598, %v447_v44   ;;  %5536 = vmatpush2.bf16.msra.mxu0 %v2359_v45  ;;  %v119_v45 = vld [vmem:[%s12591_s0 + $0x340] sm:$0xff] }
 0x140   :  { %v2374_v56 = vpack.c.bf16 %v2142_v51, %v2141_v52  ;;  %5320 = vmatprep.mubr.bf16.mxu1 %v7678_v46  ;;  %5955 = vmatprep.subr.bf16.mxu0 %v12593_v0  ;;  %v506_v46 = vld [vmem:[%s12589_s1 + $0x658] sm:$0xff]  ;;  %v152_v52 = vld [vmem:[%s12591_s0 + $0x448] sm:$0xff] }
 0x141   :  { %v1309_v58 = vpop.permute.xlu1 %1308  ;;  %v1304_v59 = vpop.permute.xlu0 %1303 }
 0x142   :  { %v2174_v62 = vmul.f32 %v1309_v58, %v158_v50  ;;  %v2173_v63 = vmul.f32 %v1304_v59, %v157_v53  ;;  %5538 = vmatmul.mubr.bf16.vlgmr.msra.gmra.mxu0 %v7675_v49  ;;  %1468 = vperm.xlu1 %7599, %v478_v54   ;;  %v7696_v49 = vld [vmem:[%s12590_s2 + $0x24c] ss:$72 sps:$4 sm:$0xff]   ;;  %v7695_v53 = vld [vmem:[%s12590_s2 + $0x1c0] ss:$72 sps:$4 sm:$0xff]  }
 0x143   :  { %1463 = vperm.xlu0 %7598, %v477_v55   ;;  %5731 = vmatpush1.bf16.msra.mxu1 %v2374_v56  ;;  %v151_v56 = vld [vmem:[%s12591_s0 + $0x440] sm:$0xff] }
 0x144   :  { %v2390_v4 = vpack.c.bf16 %v2174_v62, %v2173_v63  ;;  %5545 = vmatprep.mubr.bf16.mxu0 %v7681_v57  ;;  %5732 = vmatprep.subr.bf16.mxu1 %v12593_v0  ;;  %v472_v57 = vld [vmem:[%s12589_s1 + $0x548] sm:$0xff]  ;;  %v471_v58 = vld [vmem:[%s12589_s1 + $0x540] sm:$0xff]  ;;  %v118_v63 = vld [vmem:[%s12591_s0 + $0x338] sm:$0xff] }
 0x145   :  { %v1139_v6 = vpop.permute.xlu1 %1138  ;;  %v1134_v7 = vpop.permute.xlu0 %1133 }
 0x146   :  { %v2140_v10 = vmul.f32 %v1139_v6, %v124_v60  ;;  %v2139_v11 = vmul.f32 %v1134_v7, %v123_v1  ;;  %5321 = vmatmul.mubr.bf16.gmra.mxu1 %v7680_v61  ;;  %1628 = vperm.xlu1 %7599, %v510_v2   ;;  %v7699_v60 = vld [vmem:[%s12590_s2 + $0x254] ss:$72 sps:$4 sm:$0xff]   ;;  %v503_v7 = vld [vmem:[%s12589_s1 + $0x640] sm:$0xff] }
 0x147   :  { %1623 = vperm.xlu0 %7598, %v509_v3   ;;  %5956 = vmatpush1.bf16.msra.mxu0 %v2390_v4  ;;  %v7698_v3 = vld [vmem:[%s12590_s2 + $0x248] ss:$72 sps:$4 sm:$0xff]  }
 0x148   :  { %v2373_v15 = vpack.c.bf16 %v2140_v10, %v2139_v11  ;;  %5328 = vmatprep.mubr.bf16.mxu1 %v7684_v5  ;;  %5957 = vmatprep.subr.bf16.mxu0 %v12593_v0  ;;  %v117_v4 = vld [vmem:[%s12591_s0 + $0x330] sm:$0xff]  ;;  %v504_v5 = vld [vmem:[%s12589_s1 + $0x648] sm:$0xff] }
 0x149   :  { %v1299_v17 = vpop.permute.xlu1 %1298  ;;  %v1294_v18 = vpop.permute.xlu0 %1293 }
 0x14a   :  { %v2172_v21 = vmul.f32 %v1299_v17, %v156_v8  ;;  %v2171_v22 = vmul.f32 %v1294_v18, %v155_v12  ;;  %5546 = vmatmul.mubr.bf16.gmra.mxu0 %v7683_v9  ;;  %1458 = vperm.xlu1 %7599, %v476_v13   ;;  %v7702_v8 = vld [vmem:[%s12590_s2 + $0x2dc] ss:$72 sps:$4 sm:$0xff]   ;;  %v7701_v13 = vld [vmem:[%s12590_s2 + $0x250] ss:$72 sps:$4 sm:$0xff]  }
 0x14b   :  { %1453 = vperm.xlu0 %7598, %v475_v14   ;;  %5733 = vmatpush1.bf16.msra.mxu1 %v2373_v15  ;;  %v150_v14 = vld [vmem:[%s12591_s0 + $0x438] sm:$0xff]  ;;  %v149_v15 = vld [vmem:[%s12591_s0 + $0x430] sm:$0xff] }
 0x14c   :  { %v2389_v26 = vpack.c.bf16 %v2172_v21, %v2171_v22  ;;  %5553 = vmatprep.mubr.bf16.mxu0 %v7687_v16  ;;  %5734 = vmatprep.subr.bf16.mxu1 %v12593_v0  ;;  %v470_v16 = vld [vmem:[%s12589_s1 + $0x538] sm:$0xff]  ;;  %v469_v18 = vld [vmem:[%s12589_s1 + $0x530] sm:$0xff] }
 0x14d   :  { %v1129_v28 = vpop.permute.xlu1 %1128  ;;  %v1124_v29 = vpop.permute.xlu0 %1123 }
 0x14e   :  { %v2138_v32 = vmul.f32 %v1129_v28, %v122_v19  ;;  %v2137_v33 = vmul.f32 %v1124_v29, %v121_v23  ;;  %5329 = vmatmul.mubr.bf16.gmra.mxu1 %v7686_v20  ;;  %1618 = vperm.xlu1 %7599, %v508_v24   ;;  %v7705_v19 = vld [vmem:[%s12590_s2 + $0x2e4] ss:$72 sps:$4 sm:$0xff]   ;;  %v7704_v24 = vld [vmem:[%s12590_s2 + $0x2d8] ss:$72 sps:$4 sm:$0xff]   ;;  %v501_v29 = vld [vmem:[%s12589_s1 + $0x630] sm:$0xff] }
 0x14f   :  { %1613 = vperm.xlu0 %7598, %v507_v25   ;;  %5958 = vmatpush1.bf16.msra.mxu0 %v2389_v26  ;;  %v116_v25 = vld [vmem:[%s12591_s0 + $0x328] sm:$0xff]  ;;  %v115_v26 = vld [vmem:[%s12591_s0 + $0x320] sm:$0xff] }
 0x150   :  { %v2372_v37 = vpack.c.bf16 %v2138_v32, %v2137_v33  ;;  %5336 = vmatprep.mubr.bf16.mxu1 %v7690_v27  ;;  %5959 = vmatprep.subr.bf16.mxu0 %v12593_v0  ;;  %v502_v27 = vld [vmem:[%s12589_s1 + $0x638] sm:$0xff] }
 0x151   :  { %v1289_v39 = vpop.permute.xlu1 %1288  ;;  %v1284_v40 = vpop.permute.xlu0 %1283 }
 0x152   :  { %v2170_v43 = vmul.f32 %v1289_v39, %v154_v30  ;;  %v2169_v44 = vmul.f32 %v1284_v40, %v153_v34  ;;  %5554 = vmatmul.mubr.bf16.gmra.mxu0 %v7689_v31  ;;  %1448 = vperm.xlu1 %7599, %v474_v35   ;;  %v7708_v30 = vld [vmem:[%s12590_s2 + $0x36c] ss:$72 sps:$4 sm:$0xff]   ;;  %v7707_v35 = vld [vmem:[%s12590_s2 + $0x2e0] ss:$72 sps:$4 sm:$0xff]  }
 0x153   :  { %1443 = vperm.xlu0 %7598, %v473_v36   ;;  %5735 = vmatpush1.bf16.msra.mxu1 %v2372_v37  ;;  %v148_v36 = vld [vmem:[%s12591_s0 + $0x428] sm:$0xff]  ;;  %v147_v37 = vld [vmem:[%s12591_s0 + $0x420] sm:$0xff] }
 0x154   :  { %v2388_v48 = vpack.c.bf16 %v2170_v43, %v2169_v44  ;;  %5561 = vmatprep.mubr.bf16.mxu0 %v7693_v38  ;;  %5736 = vmatprep.subr.bf16.mxu1 %v12593_v0  ;;  %v468_v38 = vld [vmem:[%s12589_s1 + $0x528] sm:$0xff]  ;;  %v467_v40 = vld [vmem:[%s12589_s1 + $0x520] sm:$0xff] }
 0x155   :  { %v1119_v50 = vpop.permute.xlu1 %1118  ;;  %v1114_v51 = vpop.permute.xlu0 %1113 }
 0x156   :  { %v2136_v54 = vmul.f32 %v1119_v50, %v120_v41  ;;  %v2135_v55 = vmul.f32 %v1114_v51, %v119_v45  ;;  %5337 = vmatmul.mubr.bf16.gmra.mxu1 %v7692_v42  ;;  %1608 = vperm.xlu1 %7599, %v506_v46   ;;  %v7711_v41 = vld [vmem:[%s12590_s2 + $0x374] ss:$72 sps:$4 sm:$0xff]   ;;  %v7710_v46 = vld [vmem:[%s12590_s2 + $0x368] ss:$72 sps:$4 sm:$0xff]   ;;  %v499_v51 = vld [vmem:[%s12589_s1 + $0x620] sm:$0xff] }
 0x157   :  { %1603 = vperm.xlu0 %7598, %v505_v47   ;;  %5960 = vmatpush1.bf16.msra.mxu0 %v2388_v48  ;;  %v114_v47 = vld [vmem:[%s12591_s0 + $0x318] sm:$0xff]  ;;  %v113_v48 = vld [vmem:[%s12591_s0 + $0x310] sm:$0xff] }
 0x158   :  { %v2371_v59 = vpack.c.bf16 %v2136_v54, %v2135_v55  ;;  %5344 = vmatprep.mubr.bf16.mxu1 %v7696_v49  ;;  %5961 = vmatprep.subr.bf16.mxu0 %v12593_v0  ;;  %v500_v49 = vld [vmem:[%s12589_s1 + $0x628] sm:$0xff] }
 0x159   :  { %v1279_v61 = vpop.permute.xlu1 %1278  ;;  %v1274_v62 = vpop.permute.xlu0 %1273 }
 0x15a   :  { %v2168_v1 = vmul.f32 %v1279_v61, %v152_v52  ;;  %v2167_v2 = vmul.f32 %v1274_v62, %v151_v56  ;;  %5562 = vmatmul.mubr.bf16.gmra.mxu0 %v7695_v53  ;;  %1438 = vperm.xlu1 %7599, %v472_v57   ;;  %v7714_v52 = vld [vmem:[%s12590_s2 + $0x3fc] ss:$72 sps:$4 sm:$0xff]   ;;  %v7713_v57 = vld [vmem:[%s12590_s2 + $0x370] ss:$72 sps:$4 sm:$0xff]  }
 0x15b   :  { %1433 = vperm.xlu0 %7598, %v471_v58   ;;  %5737 = vmatpush1.bf16.msra.mxu1 %v2371_v59  ;;  %v146_v58 = vld [vmem:[%s12591_s0 + $0x418] sm:$0xff]  ;;  %v145_v59 = vld [vmem:[%s12591_s0 + $0x410] sm:$0xff] }
 0x15c   :  { %v2387_v6 = vpack.c.bf16 %v2168_v1, %v2167_v2  ;;  %5569 = vmatprep.mubr.bf16.mxu0 %v7699_v60  ;;  %5738 = vmatprep.subr.bf16.mxu1 %v12593_v0  ;;  %v466_v60 = vld [vmem:[%s12589_s1 + $0x518] sm:$0xff]  ;;  %v465_v62 = vld [vmem:[%s12589_s1 + $0x510] sm:$0xff] }
 0x15d   :  { %v1109_v9 = vpop.permute.xlu1 %1108  ;;  %v1104_v10 = vpop.permute.xlu0 %1103 }
 0x15e   :  { %v2134_v11 = vmul.f32 %v1109_v9, %v118_v63  ;;  %v2133_v12 = vmul.f32 %v1104_v10, %v117_v4  ;;  %5345 = vmatmul.mubr.bf16.gmra.mxu1 %v7698_v3  ;;  %1598 = vperm.xlu1 %7599, %v504_v5   ;;  %v7717_v63 = vld [vmem:[%s12590_s2 + $0x404] ss:$72 sps:$4 sm:$0xff]   ;;  %v7716_v5 = vld [vmem:[%s12590_s2 + $0x3f8] ss:$72 sps:$4 sm:$0xff]   ;;  %v497_v10 = vld [vmem:[%s12589_s1 + $0x610] sm:$0xff] }
 0x15f   :  { %1593 = vperm.xlu0 %7598, %v503_v7   ;;  %5962 = vmatpush1.bf16.msra.mxu0 %v2387_v6  ;;  %v112_v6 = vld [vmem:[%s12591_s0 + $0x308] sm:$0xff]  ;;  %v111_v7 = vld [vmem:[%s12591_s0 + $0x300] sm:$0xff] }
 0x160   :  { %v2370_v17 = vpack.c.bf16 %v2134_v11, %v2133_v12  ;;  %5352 = vmatprep.mubr.bf16.mxu1 %v7702_v8  ;;  %5963 = vmatprep.subr.bf16.mxu0 %v12593_v0  ;;  %v498_v8 = vld [vmem:[%s12589_s1 + $0x618] sm:$0xff]  ;;  %v7720_v11 = vld [vmem:[%s12590_s2 + $0x48c] ss:$72 sps:$4 sm:$0xff]  }
 0x161   :  { %v1269_v20 = vpop.permute.xlu1 %1268  ;;  %v1264_v21 = vpop.permute.xlu0 %1263 }
 0x162   :  { %v2166_v22 = vmul.f32 %v1269_v20, %v150_v14  ;;  %v2165_v23 = vmul.f32 %v1264_v21, %v149_v15  ;;  %5570 = vmatmul.mubr.bf16.gmra.mxu0 %v7701_v13  ;;  %1428 = vperm.xlu1 %7599, %v470_v16   ;;  %v7719_v16 = vld [vmem:[%s12590_s2 + $0x400] ss:$72 sps:$4 sm:$0xff]  }
 0x163   :  { %1423 = vperm.xlu0 %7598, %v469_v18   ;;  %5739 = vmatpush1.bf16.msra.mxu1 %v2370_v17  ;;  %v144_v17 = vld [vmem:[%s12591_s0 + $0x408] sm:$0xff]  ;;  %v143_v18 = vld [vmem:[%s12591_s0 + $0x400] sm:$0xff] }
 0x164   :  { %v2386_v28 = vpack.c.bf16 %v2166_v22, %v2165_v23  ;;  %5577 = vmatprep.mubr.bf16.mxu0 %v7705_v19  ;;  %5740 = vmatprep.subr.bf16.mxu1 %v12593_v0  ;;  %v464_v19 = vld [vmem:[%s12589_s1 + $0x508] sm:$0xff]  ;;  %v463_v21 = vld [vmem:[%s12589_s1 + $0x500] sm:$0xff]  ;;  %v7723_v22 = vld [vmem:[%s12590_s2 + $0x494] ss:$72 sps:$4 sm:$0xff]  }
 0x165   :  { %v1099_v31 = vpop.permute.xlu1 %1098  ;;  %v1094_v32 = vpop.permute.xlu0 %1093 }
 0x166   :  { %v2132_v33 = vmul.f32 %v1099_v31, %v116_v25  ;;  %v2131_v34 = vmul.f32 %v1094_v32, %v115_v26  ;;  %5353 = vmatmul.mubr.bf16.gmra.mxu1 %v7704_v24  ;;  %1588 = vperm.xlu1 %7599, %v502_v27   ;;  %v7722_v27 = vld [vmem:[%s12590_s2 + $0x488] ss:$72 sps:$4 sm:$0xff]   ;;  %v495_v32 = vld [vmem:[%s12589_s1 + $0x600] sm:$0xff] }
 0x167   :  { %1583 = vperm.xlu0 %7598, %v501_v29   ;;  %5964 = vmatpush1.bf16.msra.mxu0 %v2386_v28  ;;  %v142_v28 = vld [vmem:[%s12591_s0 + $0x3f8] sm:$0xff]  ;;  %v141_v29 = vld [vmem:[%s12591_s0 + $0x3f0] sm:$0xff] }
 0x168   :  { %v2369_v39 = vpack.c.bf16 %v2132_v33, %v2131_v34  ;;  %5360 = vmatprep.mubr.bf16.mxu1 %v7708_v30  ;;  %5965 = vmatprep.subr.bf16.mxu0 %v12593_v0  ;;  %v496_v30 = vld [vmem:[%s12589_s1 + $0x608] sm:$0xff]  ;;  %v7726_v33 = vld [vmem:[%s12590_s2 + $0x51c] ss:$72 sps:$4 sm:$0xff]  }
 0x169   :  { %v1259_v42 = vpop.permute.xlu1 %1258  ;;  %v1254_v43 = vpop.permute.xlu0 %1253 }
 0x16a   :  { %v2164_v44 = vmul.f32 %v1259_v42, %v148_v36  ;;  %v2163_v45 = vmul.f32 %v1254_v43, %v147_v37  ;;  %5578 = vmatmul.mubr.bf16.gmra.mxu0 %v7707_v35  ;;  %1418 = vperm.xlu1 %7599, %v468_v38   ;;  %v7725_v38 = vld [vmem:[%s12590_s2 + $0x490] ss:$72 sps:$4 sm:$0xff]  }
 0x16b   :  { %1413 = vperm.xlu0 %7598, %v467_v40   ;;  %5741 = vmatpush1.bf16.msra.mxu1 %v2369_v39  ;;  %v174_v39 = vld [vmem:[%s12591_s0 + $0x4f8] sm:$0xff]  ;;  %v173_v40 = vld [vmem:[%s12591_s0 + $0x4f0] sm:$0xff] }
 0x16c   :  { %v2385_v50 = vpack.c.bf16 %v2164_v44, %v2163_v45  ;;  %5585 = vmatprep.mubr.bf16.mxu0 %v7711_v41  ;;  %5742 = vmatprep.subr.bf16.mxu1 %v12593_v0  ;;  %v494_v41 = vld [vmem:[%s12589_s1 + $0x5f8] sm:$0xff]  ;;  %v493_v43 = vld [vmem:[%s12589_s1 + $0x5f0] sm:$0xff]  ;;  %v7729_v44 = vld [vmem:[%s12590_s2 + $0x524] ss:$72 sps:$4 sm:$0xff]  }
 0x16d   :  { %v1089_v53 = vpop.permute.xlu1 %1088  ;;  %v1084_v54 = vpop.permute.xlu0 %1083 }
 0x16e   :  { %v2130_v55 = vmul.f32 %v1089_v53, %v114_v47  ;;  %v2129_v56 = vmul.f32 %v1084_v54, %v113_v48  ;;  %5361 = vmatmul.mubr.bf16.gmra.mxu1 %v7710_v46  ;;  %1578 = vperm.xlu1 %7599, %v500_v49   ;;  %v7728_v49 = vld [vmem:[%s12590_s2 + $0x518] ss:$72 sps:$4 sm:$0xff]   ;;  %v525_v54 = vld [vmem:[%s12589_s1 + $0x6f0] sm:$0xff] }
 0x16f   :  { %1573 = vperm.xlu0 %7598, %v499_v51   ;;  %5966 = vmatpush1.bf16.msra.mxu0 %v2385_v50  ;;  %v140_v50 = vld [vmem:[%s12591_s0 + $0x3e8] sm:$0xff]  ;;  %v139_v51 = vld [vmem:[%s12591_s0 + $0x3e0] sm:$0xff] }
 0x170   :  { %v2368_v61 = vpack.c.bf16 %v2130_v55, %v2129_v56  ;;  %5368 = vmatprep.mubr.bf16.mxu1 %v7714_v52  ;;  %5967 = vmatprep.subr.bf16.mxu0 %v12593_v0  ;;  %v526_v52 = vld [vmem:[%s12589_s1 + $0x6f8] sm:$0xff]  ;;  %v7732_v55 = vld [vmem:[%s12590_s2 + $0x5ac] ss:$72 sps:$4 sm:$0xff]  }
 0x171   :  { %v1249_v1 = vpop.permute.xlu1 %1248  ;;  %v1244_v2 = vpop.permute.xlu0 %1243 }
 0x172   :  { %v2162_v3 = vmul.f32 %v1249_v1, %v146_v58  ;;  %v2161_v4 = vmul.f32 %v1244_v2, %v145_v59  ;;  %5586 = vmatmul.mubr.bf16.gmra.mxu0 %v7713_v57  ;;  %1408 = vperm.xlu1 %7599, %v466_v60   ;;  %v7731_v60 = vld [vmem:[%s12590_s2 + $0x520] ss:$72 sps:$4 sm:$0xff]  }
 0x173   :  { %1403 = vperm.xlu0 %7598, %v465_v62   ;;  %5743 = vmatpush1.bf16.msra.mxu1 %v2368_v61  ;;  %v172_v61 = vld [vmem:[%s12591_s0 + $0x4e8] sm:$0xff]  ;;  %v171_v62 = vld [vmem:[%s12591_s0 + $0x4e0] sm:$0xff] }
 0x174   :  { %v2384_v9 = vpack.c.bf16 %v2162_v3, %v2161_v4  ;;  %5593 = vmatprep.mubr.bf16.mxu0 %v7717_v63  ;;  %5744 = vmatprep.subr.bf16.mxu1 %v12593_v0  ;;  %v492_v63 = vld [vmem:[%s12589_s1 + $0x5e8] sm:$0xff]  ;;  %v491_v4 = vld [vmem:[%s12589_s1 + $0x5e0] sm:$0xff] }
 0x175   :  { %v1079_v12 = vpop.permute.xlu1 %1078  ;;  %v1074_v13 = vpop.permute.xlu0 %1073 }
 0x176   :  { %v2128_v14 = vmul.f32 %v1079_v12, %v112_v6  ;;  %v2127_v15 = vmul.f32 %v1074_v13, %v111_v7  ;;  %5369 = vmatmul.mubr.bf16.gmra.mxu1 %v7716_v5  ;;  %1568 = vperm.xlu1 %7599, %v498_v8   ;;  %v7735_v5 = vld [vmem:[%s12590_s2 + $0x5b4] ss:$72 sps:$4 sm:$0xff]  }
 0x177   :  { %1563 = vperm.xlu0 %7598, %v497_v10   ;;  %5968 = vmatpush1.bf16.msra.mxu0 %v2384_v9  ;;  %v7734_v10 = vld [vmem:[%s12590_s2 + $0x5a8] ss:$72 sps:$4 sm:$0xff]   ;;  %v138_v13 = vld [vmem:[%s12591_s0 + $0x3d8] sm:$0xff] }
 0x178   :  { %v2367_v20 = vpack.c.bf16 %v2128_v14, %v2127_v15  ;;  %5376 = vmatprep.mubr.bf16.mxu1 %v7720_v11  ;;  %5969 = vmatprep.subr.bf16.mxu0 %v12593_v0  ;;  %v137_v14 = vld [vmem:[%s12591_s0 + $0x3d0] sm:$0xff]  ;;  %v524_v15 = vld [vmem:[%s12589_s1 + $0x6e8] sm:$0xff] }
 0x179   :  { %v1239_v23 = vpop.permute.xlu1 %1238  ;;  %v1234_v24 = vpop.permute.xlu0 %1233 }
 0x17a   :  { %v2160_v25 = vmul.f32 %v1239_v23, %v144_v17  ;;  %v2159_v26 = vmul.f32 %v1234_v24, %v143_v18  ;;  %5594 = vmatmul.mubr.bf16.gmra.mxu0 %v7719_v16  ;;  %1398 = vperm.xlu1 %7599, %v464_v19   ;;  %v523_v17 = vld [vmem:[%s12589_s1 + $0x6e0] sm:$0xff] }
 0x17b   :  { %1393 = vperm.xlu0 %7598, %v463_v21   ;;  %5745 = vmatpush1.bf16.msra.mxu1 %v2367_v20  ;;  %v7738_v18 = vld [vmem:[%s12590_s2 + $0x63c] ss:$72 sps:$4 sm:$0xff]  }
 0x17c   :  { %v2383_v31 = vpack.c.bf16 %v2160_v25, %v2159_v26  ;;  %5601 = vmatprep.mubr.bf16.mxu0 %v7723_v22  ;;  %5746 = vmatprep.subr.bf16.mxu1 %v12593_v0  ;;  %v7737_v25 = vld [vmem:[%s12590_s2 + $0x5b0] ss:$72 sps:$4 sm:$0xff]  }
 0x17d   :  { %v1229_v34 = vpop.permute.xlu1 %1228  ;;  %v1224_v35 = vpop.permute.xlu0 %1223 }
 0x17e   :  { %v2158_v36 = vmul.f32 %v1229_v34, %v142_v28  ;;  %v2157_v37 = vmul.f32 %v1224_v35, %v141_v29  ;;  %5377 = vmatmul.mubr.bf16.gmra.mxu1 %v7722_v27  ;;  %1558 = vperm.xlu1 %7599, %v496_v30   ;;  %v170_v28 = vld [vmem:[%s12591_s0 + $0x4d8] sm:$0xff]  ;;  %v169_v29 = vld [vmem:[%s12591_s0 + $0x4d0] sm:$0xff] }
 0x17f   :  { %1553 = vperm.xlu0 %7598, %v495_v32   ;;  %5970 = vmatpush1.bf16.msra.mxu0 %v2383_v31  ;;  %v490_v30 = vld [vmem:[%s12589_s1 + $0x5d8] sm:$0xff]  ;;  %v489_v32 = vld [vmem:[%s12589_s1 + $0x5d0] sm:$0xff] }
 0x180   :  { %v2382_v42 = vpack.c.bf16 %v2158_v36, %v2157_v37  ;;  %5384 = vmatprep.mubr.bf16.mxu1 %v7726_v33  ;;  %5971 = vmatprep.subr.bf16.mxu0 %v12593_v0  ;;  %v7741_v33 = vld [vmem:[%s12590_s2 + $0x644] ss:$72 sps:$4 sm:$0xff]  }
 0x181   :  { %v1389_v45 = vpop.permute.xlu1 %1388  ;;  %v1384_v46 = vpop.permute.xlu0 %1383 }
 0x182   :  { %v2190_v47 = vmul.f32 %v1389_v45, %v174_v39  ;;  %v2189_v48 = vmul.f32 %v1384_v46, %v173_v40  ;;  %5602 = vmatmul.mubr.bf16.gmra.mxu0 %v7725_v38  ;;  %1548 = vperm.xlu1 %7599, %v494_v41   ;;  %v7740_v40 = vld [vmem:[%s12590_s2 + $0x638] ss:$72 sps:$4 sm:$0xff]  }
 0x183   :  { %1543 = vperm.xlu0 %7598, %v493_v43   ;;  %5747 = vmatpush2.bf16.msra.mxu1 %v2382_v42  ;;  %v136_v43 = vld [vmem:[%s12591_s0 + $0x3c8] sm:$0xff]  ;;  %v522_v45 = vld [vmem:[%s12589_s1 + $0x6d8] sm:$0xff] }
 0x184   :  { %v2398_v53 = vpack.c.bf16 %v2190_v47, %v2189_v48  ;;  %5609 = vmatprep.mubr.bf16.mxu0 %v7729_v44  ;;  %5748 = vmatprep.subr.bf16.mxu1 %v12593_v0  ;;  %v135_v44 = vld [vmem:[%s12591_s0 + $0x3c0] sm:$0xff]  ;;  %v521_v47 = vld [vmem:[%s12589_s1 + $0x6d0] sm:$0xff] }
 0x185   :  { %v1219_v56 = vpop.permute.xlu1 %1218  ;;  %v1214_v57 = vpop.permute.xlu0 %1213  ;;  %v7744_v48 = vld [vmem:[%s12590_s2 + $0x6cc] ss:$72 sps:$4 sm:$0xff]  }
 0x186   :  { %v2156_v58 = vmul.f32 %v1219_v56, %v140_v50  ;;  %v2155_v59 = vmul.f32 %v1214_v57, %v139_v51  ;;  %5385 = vmatmul.mubr.bf16.gmra.mxu1 %v7728_v49  ;;  %1708 = vperm.xlu1 %7599, %v526_v52  }
 0x187   :  { %1703 = vperm.xlu0 %7598, %v525_v54   ;;  %5972 = vmatpush2.bf16.msra.mxu0 %v2398_v53  ;;  %v9620_v1 = vpop.f32.mrf.mxu1  ;;  %v9622_v2 = vpop.f32.mrf.mxu0 }
 0x188   :  { %12595 = vst [vmem:[#allocation2_spill] sm:$0xff] %v9620_v1  ;;  %v2381_v3 = vpack.c.bf16 %v2156_v58, %v2155_v59  ;;  %5392 = vmatprep.mubr.bf16.mxu1 %v7732_v55  ;;  %5973 = vmatprep.subr.bf16.mxu0 %v12593_v0  ;;  %v7743_v55 = vld [vmem:[%s12590_s2 + $0x640] ss:$72 sps:$4 sm:$0xff]  }
 0x189   :  { %v1379_v6 = vpop.permute.xlu1 %1378  ;;  %v1374_v7 = vpop.permute.xlu0 %1373  ;;  %v168_v58 = vld [vmem:[%s12591_s0 + $0x4c8] sm:$0xff]  ;;  %v167_v59 = vld [vmem:[%s12591_s0 + $0x4c0] sm:$0xff] }
 0x18a   :  { %v2188_v8 = vmul.f32 %v1379_v6, %v172_v61  ;;  %v2187_v9 = vmul.f32 %v1374_v7, %v171_v62  ;;  %5610 = vmatmul.mubr.bf16.gmra.mxu0 %v7731_v60  ;;  %1538 = vperm.xlu1 %7599, %v492_v63   ;;  %v5187_v11 = vpop.f32.mrf.mxu1  ;;  %v5091_v12 = vpop.f32.mrf.mxu0  ;;  %v488_v60 = vld [vmem:[%s12589_s1 + $0x5c8] sm:$0xff]  ;;  %v487_v62 = vld [vmem:[%s12589_s1 + $0x5c0] sm:$0xff]  ;;  %v7747_v63 = vld [vmem:[%s12590_s2 + $0x6d4] ss:$72 sps:$4 sm:$0xff]  }
 0x18b   :  { %1533 = vperm.xlu0 %7598, %v491_v4   ;;  %5749 = vmatpush2.bf16.msra.mxu1 %v2381_v3  ;;  %v134_v12 = vld [vmem:[%s12591_s0 + $0x3b8] sm:$0xff] }
 0x18c   :  { %v2397_v16 = vpack.c.bf16 %v2188_v8, %v2187_v9  ;;  %5617 = vmatprep.mubr.bf16.mxu0 %v7735_v5  ;;  %5750 = vmatprep.subr.bf16.mxu1 %v12593_v0  ;;  %v9650_v19 = vpop.f32.mrf.mxu1  ;;  %v9652_v20 = vpop.f32.mrf.mxu0  ;;  %v7746_v9 = vld [vmem:[%s12590_s2 + $0x6c8] ss:$72 sps:$4 sm:$0xff]  }
 0x18d   :  { %12596 = vst [vmem:[#allocation3_spill] sm:$0xff] %v9650_v19  ;;  %v1209_v21 = vpop.permute.xlu1 %1208  ;;  %v1204_v22 = vpop.permute.xlu0 %1203  ;;  %v7821_v19 = vld [vmem:[%s12590_s2 + $0x24] ss:$72 sps:$4 sm:$0xff]  }
 0x18e   :  { %v2154_v23 = vmul.f32 %v1209_v21, %v138_v13  ;;  %v2153_v24 = vmul.f32 %v1204_v22, %v137_v14  ;;  %5393 = vmatmul.mubr.bf16.gmra.mxu1 %v7734_v10  ;;  %1698 = vperm.xlu1 %7599, %v524_v15   ;;  %v5190_v26 = vpop.f32.mrf.mxu1  ;;  %v5094_v27 = vpop.f32.mrf.mxu0  ;;  %v133_v13 = vld [vmem:[%s12591_s0 + $0x3b0] sm:$0xff]  ;;  %v520_v14 = vld [vmem:[%s12589_s1 + $0x6c8] sm:$0xff] }
 0x18f   :  { %1693 = vperm.xlu0 %7598, %v523_v17   ;;  %5974 = vmatpush2.bf16.msra.mxu0 %v2397_v16  ;;  %v519_v16 = vld [vmem:[%s12589_s1 + $0x6c0] sm:$0xff]  ;;  %v7749_v26 = vld [vmem:[%s12590_s2 + $0x6d0] ss:$72 sps:$4 sm:$0xff]  }
 0x190   :  { %v2380_v31 = vpack.c.bf16 %v2154_v23, %v2153_v24  ;;  %5400 = vmatprep.mubr.bf16.mxu1 %v7738_v18  ;;  %5975 = vmatprep.subr.bf16.mxu0 %v12593_v0  ;;  %v9673_v34 = vpop.f32.mrf.mxu1  ;;  %v9675_v35 = vpop.f32.mrf.mxu0  ;;  %v7750_v17 = vld [vmem:[%s12590_s2 + $0x75c] ss:$72 sps:$4 sm:$0xff]  }
 0x191   :  { %12597 = vst [vmem:[#allocation4_spill] sm:$0xff] %v9673_v34  ;;  %v1369_v36 = vpop.permute.xlu1 %1368  ;;  %v1364_v37 = vpop.permute.xlu0 %1363  ;;  %v528_v34 = vld [vmem:[%s12589_s1 + $0x708] sm:$0xff] }
 0x192   :  { %v2186_v38 = vmul.f32 %v1369_v36, %v170_v28  ;;  %v2185_v39 = vmul.f32 %v1364_v37, %v169_v29  ;;  %5618 = vmatmul.mubr.bf16.gmra.mxu0 %v7737_v25  ;;  %1528 = vperm.xlu1 %7599, %v490_v30   ;;  %v5195_v41 = vpop.f32.mrf.mxu1  ;;  %v5099_v42 = vpop.f32.mrf.mxu0  ;;  %v166_v29 = vld [vmem:[%s12591_s0 + $0x4b8] sm:$0xff]  ;;  %v165_v30 = vld [vmem:[%s12591_s0 + $0x4b0] sm:$0xff]  ;;  %v7753_v36 = vld [vmem:[%s12590_s2 + $0x764] ss:$72 sps:$4 sm:$0xff]  }
 0x193   :  { %1523 = vperm.xlu0 %7598, %v489_v32   ;;  %5751 = vmatpush2.bf16.msra.mxu1 %v2380_v31  ;;  %v486_v31 = vld [vmem:[%s12589_s1 + $0x5b8] sm:$0xff] }
 0x194   :  { %v2396_v46 = vpack.c.bf16 %v2186_v38, %v2185_v39  ;;  %5625 = vmatprep.mubr.bf16.mxu0 %v7741_v33  ;;  %5752 = vmatprep.subr.bf16.mxu1 %v12593_v0  ;;  %v9696_v49 = vpop.f32.mrf.mxu1  ;;  %v9698_v50 = vpop.f32.mrf.mxu0  ;;  %v485_v33 = vld [vmem:[%s12589_s1 + $0x5b0] sm:$0xff] }
 0x195   :  { %12598 = vst [vmem:[#allocation5_spill] sm:$0xff] %v9696_v49  ;;  %v1199_v51 = vpop.permute.xlu1 %1198  ;;  %v1194_v52 = vpop.permute.xlu0 %1193 }
 0x196   :  { %v2152_v53 = vmul.f32 %v1199_v51, %v136_v43  ;;  %v2151_v54 = vmul.f32 %v1194_v52, %v135_v44  ;;  %5401 = vmatmul.mubr.bf16.gmra.mxu1 %v7740_v40  ;;  %1688 = vperm.xlu1 %7599, %v522_v45   ;;  %v5198_v56 = vpop.f32.mrf.mxu1  ;;  %v5102_v57 = vpop.f32.mrf.mxu0  ;;  %v7752_v43 = vld [vmem:[%s12590_s2 + $0x758] ss:$72 sps:$4 sm:$0xff]   ;;  %v517_v52 = vld [vmem:[%s12589_s1 + $0x6b0] sm:$0xff] }
 0x197   :  { %1683 = vperm.xlu0 %7598, %v521_v47   ;;  %5976 = vmatpush2.bf16.msra.mxu0 %v2396_v46  ;;  %v132_v46 = vld [vmem:[%s12591_s0 + $0x3a8] sm:$0xff]  ;;  %v131_v47 = vld [vmem:[%s12591_s0 + $0x3a0] sm:$0xff] }
 0x198   :  { %v2379_v61 = vpack.c.bf16 %v2152_v53, %v2151_v54  ;;  %5408 = vmatprep.mubr.bf16.mxu1 %v7744_v48  ;;  %5977 = vmatprep.subr.bf16.mxu0 %v12593_v0  ;;  %v9719_v3 = vpop.f32.mrf.mxu1  ;;  %v9721_v4 = vpop.f32.mrf.mxu0  ;;  %v518_v48 = vld [vmem:[%s12589_s1 + $0x6b8] sm:$0xff]  ;;  %v7756_v53 = vld [vmem:[%s12590_s2 + $0x7ec] ss:$72 sps:$4 sm:$0xff]  }
 0x199   :  { %12599 = vst [vmem:[#allocation6_spill] sm:$0xff] %v9719_v3  ;;  %v1359_v5 = vpop.permute.xlu1 %1358  ;;  %v1354_v6 = vpop.permute.xlu0 %1353  ;;  %v561_v3 = vld [vmem:[%s12589_s1 + $0x810] sm:$0xff] }
 0x19a   :  { %v2184_v7 = vmul.f32 %v1359_v5, %v168_v58  ;;  %v2183_v8 = vmul.f32 %v1354_v6, %v167_v59  ;;  %5626 = vmatmul.mubr.bf16.gmra.mxu0 %v7743_v55  ;;  %1518 = vperm.xlu1 %7599, %v488_v60   ;;  %v5203_v10 = vpop.f32.mrf.mxu1  ;;  %v5107_v11 = vpop.f32.mrf.mxu0  ;;  %v7755_v60 = vld [vmem:[%s12590_s2 + $0x760] ss:$72 sps:$4 sm:$0xff]  }
 0x19b   :  { %1513 = vperm.xlu0 %7598, %v487_v62   ;;  %5753 = vmatpush2.bf16.msra.mxu1 %v2379_v61  ;;  %v163_v5 = vld [vmem:[%s12591_s0 + $0x4a0] sm:$0xff]  ;;  %v484_v6 = vld [vmem:[%s12589_s1 + $0x5a8] sm:$0xff] }
 0x19c   :  { %v2395_v15 = vpack.c.bf16 %v2184_v7, %v2183_v8  ;;  %5633 = vmatprep.mubr.bf16.mxu0 %v7747_v63  ;;  %5754 = vmatprep.subr.bf16.mxu1 %v12593_v0  ;;  %v9742_v18 = vpop.f32.mrf.mxu1  ;;  %v9744_v21 = vpop.f32.mrf.mxu0  ;;  %v164_v63 = vld [vmem:[%s12591_s0 + $0x4a8] sm:$0xff]  ;;  %v483_v8 = vld [vmem:[%s12589_s1 + $0x5a0] sm:$0xff] }
 0x19d   :  { %12600 = vst [vmem:[#allocation7_spill] sm:$0xff] %v9742_v18  ;;  %v1189_v22 = vpop.permute.xlu1 %1188  ;;  %v1184_v23 = vpop.permute.xlu0 %1183  ;;  %v7818_v18 = vld [vmem:[%s12590_s2 + $0x1c] ss:$72 sps:$4 sm:$0xff]  }
 0x19e   :  { %v2150_v24 = vmul.f32 %v1189_v22, %v134_v12  ;;  %v2149_v25 = vmul.f32 %v1184_v23, %v133_v13  ;;  %5409 = vmatmul.mubr.bf16.gmra.mxu1 %v7746_v9  ;;  %1678 = vperm.xlu1 %7599, %v520_v14   ;;  %v5206_v27 = vpop.f32.mrf.mxu1  ;;  %v5110_v28 = vpop.f32.mrf.mxu0  ;;  %v7759_v9 = vld [vmem:[%s12590_s2 + $0x7f4] ss:$72 sps:$4 sm:$0xff]  }
 0x19f   :  { %1673 = vperm.xlu0 %7598, %v519_v16   ;;  %5978 = vmatpush2.bf16.msra.mxu0 %v2395_v15  ;;  %v7758_v16 = vld [vmem:[%s12590_s2 + $0x7e8] ss:$72 sps:$4 sm:$0xff]   ;;  %v130_v23 = vld [vmem:[%s12591_s0 + $0x398] sm:$0xff]  ;;  %v515_v27 = vld [vmem:[%s12589_s1 + $0x6a0] sm:$0xff] }
 0x1a0   :  { %v2378_v32 = vpack.c.bf16 %v2150_v24, %v2149_v25  ;;  %5416 = vmatprep.mubr.bf16.mxu1 %v7750_v17  ;;  %5979 = vmatprep.subr.bf16.mxu0 %v12593_v0  ;;  %v9765_v37 = vpop.f32.mrf.mxu1  ;;  %v9767_v38 = vpop.f32.mrf.mxu0  ;;  %v129_v24 = vld [vmem:[%s12591_s0 + $0x390] sm:$0xff]  ;;  %v516_v25 = vld [vmem:[%s12589_s1 + $0x6a8] sm:$0xff]  ;;  %v7762_v28 = vld [vmem:[%s12590_s2 + $0x87c] ss:$72 sps:$4 sm:$0xff]  }
 0x1a1   :  { %12601 = vst [vmem:[#allocation8_spill] sm:$0xff] %v9765_v37  ;;  %v1349_v39 = vpop.permute.xlu1 %1348  ;;  %v1344_v40 = vpop.permute.xlu0 %1343  ;;  %v529_v37 = vld [vmem:[%s12589_s1 + $0x710] sm:$0xff] }
 0x1a2   :  { %v2182_v41 = vmul.f32 %v1349_v39, %v166_v29  ;;  %v2181_v42 = vmul.f32 %v1344_v40, %v165_v30  ;;  %5634 = vmatmul.mubr.bf16.gmra.mxu0 %v7749_v26  ;;  %1508 = vperm.xlu1 %7599, %v486_v31   ;;  %v5211_v44 = vpop.f32.mrf.mxu1  ;;  %v5115_v45 = vpop.f32.mrf.mxu0  ;;  %v7761_v39 = vld [vmem:[%s12590_s2 + $0x7f0] ss:$72 sps:$4 sm:$0xff]  }
 0x1a3   :  { %1503 = vperm.xlu0 %7598, %v485_v33   ;;  %5755 = vmatpush2.bf16.msra.mxu1 %v2378_v32  ;;  %v482_v44 = vld [vmem:[%s12589_s1 + $0x598] sm:$0xff] }
 0x1a4   :  { %v2394_v51 = vpack.c.bf16 %v2182_v41, %v2181_v42  ;;  %5641 = vmatprep.mubr.bf16.mxu0 %v7753_v36  ;;  %5756 = vmatprep.subr.bf16.mxu1 %v12593_v0  ;;  %v9788_v54 = vpop.f32.mrf.mxu1  ;;  %v9790_v55 = vpop.f32.mrf.mxu0  ;;  %v162_v42 = vld [vmem:[%s12591_s0 + $0x498] sm:$0xff] }
 0x1a5   :  { %12602 = vst [vmem:[#allocation9_spill] sm:$0xff] %v9788_v54  ;;  %v1179_v56 = vpop.permute.xlu1 %1178  ;;  %v1174_v57 = vpop.permute.xlu0 %1173  ;;  %v7815_v54 = vld [vmem:[%s12590_s2 + $0xd04] ss:$72 sps:$4 sm:$0xff]  }
 0x1a6   :  { %v2148_v58 = vmul.f32 %v1179_v56, %v132_v46  ;;  %v2147_v59 = vmul.f32 %v1174_v57, %v131_v47  ;;  %5417 = vmatmul.mubr.bf16.gmra.mxu1 %v7752_v43  ;;  %1668 = vperm.xlu1 %7599, %v518_v48   ;;  %v5214_v61 = vpop.f32.mrf.mxu1  ;;  %v5118_v62 = vpop.f32.mrf.mxu0  ;;  %v161_v43 = vld [vmem:[%s12591_s0 + $0x490] sm:$0xff]  ;;  %v7765_v47 = vld [vmem:[%s12590_s2 + $0x884] ss:$72 sps:$4 sm:$0xff]  }
 0x1a7   :  { %1663 = vperm.xlu0 %7598, %v517_v52   ;;  %5980 = vmatpush2.bf16.msra.mxu0 %v2394_v51  ;;  %v481_v46 = vld [vmem:[%s12589_s1 + $0x590] sm:$0xff]  ;;  %v128_v61 = vld [vmem:[%s12591_s0 + $0x388] sm:$0xff]  ;;  %v127_v62 = vld [vmem:[%s12591_s0 + $0x380] sm:$0xff] }
 0x1a8   :  { %v2377_v7 = vpack.c.bf16 %v2148_v58, %v2147_v59  ;;  %5424 = vmatprep.mubr.bf16.mxu1 %v7756_v53  ;;  %5981 = vmatprep.subr.bf16.mxu0 %v12593_v0  ;;  %v9811_v10 = vpop.f32.mrf.mxu1  ;;  %v9813_v11 = vpop.f32.mrf.mxu0  ;;  %v7764_v58 = vld [vmem:[%s12590_s2 + $0x878] ss:$72 sps:$4 sm:$0xff]  }
 0x1a9   :  { %12603 = vst [vmem:[#allocation10_spill] sm:$0xff] %v9811_v10  ;;  %v1339_v12 = vpop.permute.xlu1 %1338  ;;  %v1334_v13 = vpop.permute.xlu0 %1333 }
 0x1aa   :  { %v2180_v14 = vmul.f32 %v1339_v12, %v164_v63  ;;  %v2179_v15 = vmul.f32 %v1334_v13, %v163_v5  ;;  %5642 = vmatmul.mubr.bf16.gmra.mxu0 %v7755_v60  ;;  %1498 = vperm.xlu1 %7599, %v484_v6   ;;  %v5219_v17 = vpop.f32.mrf.mxu1  ;;  %v5123_v22 = vpop.f32.mrf.mxu0  ;;  %v514_v63 = vld [vmem:[%s12589_s1 + $0x698] sm:$0xff]  ;;  %v513_v6 = vld [vmem:[%s12589_s1 + $0x690] sm:$0xff] }
 0x1ab   :  { %1493 = vperm.xlu0 %7598, %v483_v8   ;;  %5757 = vmatpush2.bf16.msra.mxu1 %v2377_v7  ;;  %v7770_v7 = vld [vmem:[%s12590_s2 + $0x90c] ss:$72 sps:$4 sm:$0xff]  }
 0x1ac   :  { %v2393_v26 = vpack.c.bf16 %v2180_v14, %v2179_v15  ;;  %5649 = vmatprep.mubr.bf16.mxu0 %v7759_v9  ;;  %5758 = vmatprep.subr.bf16.mxu1 %v12593_v0  ;;  %v9834_v29 = vpop.f32.mrf.mxu1  ;;  %v9836_v30 = vpop.f32.mrf.mxu0 }
 0x1ad   :  { %12604 = vst [vmem:[#allocation11_spill] sm:$0xff] %v9834_v29  ;;  %v1169_v31 = vpop.permute.xlu1 %1168  ;;  %v1164_v32 = vpop.permute.xlu0 %1163 }
 0x1ae   :  { %v2146_v33 = vmul.f32 %v1169_v31, %v130_v23  ;;  %v2145_v36 = vmul.f32 %v1164_v32, %v129_v24  ;;  %5425 = vmatmul.mubr.bf16.gmra.mxu1 %v7758_v16  ;;  %1658 = vperm.xlu1 %7599, %v516_v25   ;;  %v5222_v40 = vpop.f32.mrf.mxu1  ;;  %v5126_v41 = vpop.f32.mrf.mxu0  ;;  %v7767_v16 = vld [vmem:[%s12590_s2 + $0x880] ss:$72 sps:$4 sm:$0xff]  }
 0x1af   :  { %1653 = vperm.xlu0 %7598, %v515_v27   ;;  %5982 = vmatpush2.bf16.msra.mxu0 %v2393_v26  ;;  %v160_v23 = vld [vmem:[%s12591_s0 + $0x488] sm:$0xff]  ;;  %v159_v26 = vld [vmem:[%s12591_s0 + $0x480] sm:$0xff] }
 0x1b0   :  { %v2376_v45 = vpack.c.bf16 %v2146_v33, %v2145_v36  ;;  %5432 = vmatprep.mubr.bf16.mxu1 %v7762_v28  ;;  %5983 = vmatprep.subr.bf16.mxu0 %v12593_v0  ;;  %v9857_v48 = vpop.f32.mrf.mxu1  ;;  %v9859_v51 = vpop.f32.mrf.mxu0  ;;  %v480_v24 = vld [vmem:[%s12589_s1 + $0x588] sm:$0xff]  ;;  %v479_v27 = vld [vmem:[%s12589_s1 + $0x580] sm:$0xff]  ;;  %v7773_v28 = vld [vmem:[%s12590_s2 + $0x914] ss:$72 sps:$4 sm:$0xff]  }
 0x1b1   :  { %12605 = vst [vmem:[#allocation12_spill] sm:$0xff] %v9857_v48  ;;  %v1329_v52 = vpop.permute.xlu1 %1328  ;;  %v1324_v53 = vpop.permute.xlu0 %1323  ;;  %v7768_v40 = vld [vmem:[%s12590_s2 + $0x908] ss:$72 sps:$4 sm:$0xff]  }
 0x1b2   :  { %v2178_v56 = vmul.f32 %v1329_v52, %v162_v42  ;;  %v2177_v57 = vmul.f32 %v1324_v53, %v161_v43  ;;  %5650 = vmatmul.mubr.bf16.gmra.mxu0 %v7761_v39  ;;  %1488 = vperm.xlu1 %7599, %v482_v44   ;;  %v5227_v59 = vpop.f32.mrf.mxu1  ;;  %v5131_v60 = vpop.f32.mrf.mxu0  ;;  %v512_v43 = vld [vmem:[%s12589_s1 + $0x688] sm:$0xff] }
 0x1b3   :  { %1483 = vperm.xlu0 %7598, %v481_v46   ;;  %5759 = vmatpush2.bf16.msra.mxu1 %v2376_v45  ;;  %v511_v45 = vld [vmem:[%s12589_s1 + $0x680] sm:$0xff]  ;;  %v542_v60 = vld [vmem:[%s12589_s1 + $0x778] sm:$0xff] }
 0x1b4   :  { %v2392_v5 = vpack.c.bf16 %v2178_v56, %v2177_v57  ;;  %5657 = vmatprep.mubr.bf16.mxu0 %v7765_v47  ;;  %5760 = vmatprep.subr.bf16.mxu1 %v12593_v0  ;;  %v9880_v8 = vpop.f32.mrf.mxu1  ;;  %v9882_v9 = vpop.f32.mrf.mxu0  ;;  %v7776_v46 = vld [vmem:[%s12590_s2 + $0x99c] ss:$72 sps:$4 sm:$0xff]  }
 0x1b5   :  { %12606 = vst [vmem:[#allocation13_spill] sm:$0xff] %v9880_v8  ;;  %v1159_v12 = vpop.permute.xlu1 %1158  ;;  %v1154_v13 = vpop.permute.xlu0 %1153 }
 0x1b6   :  { %v2144_v14 = vmul.f32 %v1159_v12, %v128_v61  ;;  %v2143_v15 = vmul.f32 %v1154_v13, %v127_v62  ;;  %5433 = vmatmul.mubr.bf16.gmra.mxu1 %v7764_v58  ;;  %1648 = vperm.xlu1 %7599, %v514_v63   ;;  %v5230_v17 = vpop.f32.mrf.mxu1  ;;  %v5134_v22 = vpop.f32.mrf.mxu0  ;;  %v7771_v58 = vld [vmem:[%s12590_s2 + $0x910] ss:$72 sps:$4 sm:$0xff]   ;;  %v7779_v61 = vld [vmem:[%s12590_s2 + $0x9a4] ss:$72 sps:$4 sm:$0xff]  }
 0x1b7   :  { %1643 = vperm.xlu0 %7598, %v513_v6   ;;  %5984 = vmatpush2.bf16.msra.mxu0 %v2392_v5  ;;  %v541_v63 = vld [vmem:[%s12589_s1 + $0x770] sm:$0xff]  ;;  %v7774_v13 = vld [vmem:[%s12590_s2 + $0x998] ss:$72 sps:$4 sm:$0xff]  }
 0x1b8   :  { %v2375_v25 = vpack.c.bf16 %v2144_v14, %v2143_v15  ;;  %5440 = vmatprep.mubr.bf16.mxu1 %v7770_v7  ;;  %5985 = vmatprep.subr.bf16.mxu0 %v12593_v0  ;;  %v9903_v31 = vpop.f32.mrf.mxu1  ;;  %v9905_v32 = vpop.f32.mrf.mxu0  ;;  %v574_v15 = vld [vmem:[%s12589_s1 + $0x878] sm:$0xff]  ;;  %v573_v22 = vld [vmem:[%s12589_s1 + $0x870] sm:$0xff] }
 0x1b9   :  { %12607 = vst [vmem:[#allocation14_spill] sm:$0xff] %v9903_v31  ;;  %v1319_v33 = vpop.permute.xlu1 %1318 }
 0x1ba   :  { %v2176_v36 = vmul.f32 %v1319_v33, %v160_v23  ;;  %v1314_v39 = vpop.permute.xlu0 %1313  ;;  %5658 = vmatmul.mubr.bf16.gmra.mxu0 %v7767_v16  ;;  %1478 = vperm.xlu1 %7599, %v480_v24   ;;  %v5235_v41 = vpop.f32.mrf.mxu1  ;;  %v7782_v16 = vld [vmem:[%s12590_s2 + $0xa2c] ss:$72 sps:$4 sm:$0xff]  }
 0x1bb   :  { %v2175_v42 = vmul.f32 %v1314_v39, %v159_v26  ;;  %1473 = vperm.xlu0 %7598, %v479_v27   ;;  %5761 = vmatpush2.bf16.msra.mxu1 %v2375_v25  ;;  %v5139_v44 = vpop.f32.mrf.mxu0  ;;  %v7777_v27 = vld [vmem:[%s12590_s2 + $0x9a0] ss:$72 sps:$4 sm:$0xff]  }
 0x1bc   :  { %5665 = vmatprep.mubr.bf16.mxu0 %v7773_v28  ;;  %v9919_v47 = vpop.f32.mrf.mxu1  ;;  %6180 = vmatprep.subr.bf16.mxu1 %v12593_v0  ;;  %v540_v33 = vld [vmem:[%s12589_s1 + $0x768] sm:$0xff] }
 0x1bd   :  { %12608 = vst [vmem:[#allocation15_spill] sm:$0xff] %v9919_v47  ;;  %v2391_v52 = vpack.c.bf16 %v2176_v36, %v2175_v42  ;;  %v9922_v53 = vpop.permute.xlu1 %1468  ;;  %v9924_v56 = vpop.f32.mrf.mxu0  ;;  %v7785_v36 = vld [vmem:[%s12590_s2 + $0xa34] ss:$72 sps:$4 sm:$0xff]  }
 0x1be   :  { %v9926_v57 = vpop.permute.xlu0 %1463  ;;  %5441 = vmatmul.mubr.bf16.gmra.mxu1 %v7768_v40  ;;  %1638 = vperm.xlu1 %7599, %v512_v43   ;;  %v5238_v59 = vpop.f32.mrf.mxu1  ;;  %v539_v40 = vld [vmem:[%s12589_s1 + $0x760] sm:$0xff] }
 0x1bf   :  { %1633 = vperm.xlu0 %7598, %v511_v45   ;;  %5986 = vmatpush2.bf16.msra.mxu0 %v2391_v52  ;;  %v5142_v62 = vpop.f32.mrf.mxu0  ;;  %v7780_v45 = vld [vmem:[%s12590_s2 + $0xa28] ss:$72 sps:$4 sm:$0xff]  }
 0x1c0   :  { %5448 = vmatprep.mubr.bf16.mxu1 %v7776_v46  ;;  %v9940_v5 = vpop.f32.mrf.mxu1  ;;  %6405 = vmatprep.subr.bf16.mxu0 %v12593_v0  ;;  %v572_v52 = vld [vmem:[%s12589_s1 + $0x868] sm:$0xff] }
 0x1c1   :  { %12609 = vst [vmem:[#allocation16_spill] sm:$0xff] %v9940_v5  ;;  %v9943_v6 = vpop.permute.xlu1 %1628  ;;  %v9945_v7 = vpop.f32.mrf.mxu0 }
 0x1c2   :  { %v9947_v12 = vpop.permute.xlu0 %1623  ;;  %5666 = vmatmul.mubr.bf16.gmra.mxu0 %v7771_v58  ;;  %1788 = vperm.xlu1 %7599, %v542_v60   ;;  %v5243_v14 = vpop.f32.mrf.mxu1  ;;  %v7788_v58 = vld [vmem:[%s12590_s2 + $0xabc] ss:$72 sps:$4 sm:$0xff]  }
 0x1c3   :  { %1783 = vperm.xlu0 %7598, %v541_v63   ;;  %5673 = vmatprep.mubr.bf16.mxu0 %v7779_v61  ;;  %v5147_v17 = vpop.f32.mrf.mxu0  ;;  %v571_v60 = vld [vmem:[%s12589_s1 + $0x860] sm:$0xff]  ;;  %v7783_v14 = vld [vmem:[%s12590_s2 + $0xa30] ss:$72 sps:$4 sm:$0xff]  }
 0x1c4   :  { %v9961_v23 = vpop.f32.mrf.mxu1  ;;  %v7791_v17 = vld [vmem:[%s12590_s2 + $0xac4] ss:$72 sps:$4 sm:$0xff]  }
 0x1c5   :  { %12610 = vst [vmem:[#allocation17_spill] sm:$0xff] %v9961_v23  ;;  %v9963_v24 = vpop.permute.xlu1 %1458  ;;  %v9965_v25 = vpop.f32.mrf.mxu0 }
 0x1c6   :  { %12611 = vst [vmem:[#allocation18_spill] sm:$0xff] %v9965_v25  ;;  %v9967_v26 = vpop.permute.xlu0 %1453  ;;  %5449 = vmatmul.mubr.bf16.gmra.mxu1 %v7774_v13  ;;  %1948 = vperm.xlu1 %7599, %v574_v15   ;;  %v5246_v28 = vpop.f32.mrf.mxu1 }
 0x1c7   :  { %1943 = vperm.xlu0 %7598, %v573_v22   ;;  %5456 = vmatprep.mubr.bf16.mxu1 %v7782_v16  ;;  %v5150_v39 = vpop.f32.mrf.mxu0  ;;  %v538_v16 = vld [vmem:[%s12589_s1 + $0x758] sm:$0xff] }
 0x1c8   :  { %v9981_v41 = vpop.f32.mrf.mxu1 }
 0x1c9   :  { %12612 = vst [vmem:[#allocation19_spill] sm:$0xff] %v9981_v41  ;;  %v9983_v42 = vpop.permute.xlu1 %1618  ;;  %v9985_v43 = vpop.f32.mrf.mxu0 }
 0x1ca   :  { %12613 = vst [vmem:[#allocation20_spill] sm:$0xff] %v9985_v43  ;;  %v9987_v44 = vpop.permute.xlu0 %1613  ;;  %5674 = vmatmul.mubr.bf16.gmra.mxu0 %v7777_v27  ;;  %1778 = vperm.xlu1 %7599, %v540_v33   ;;  %v5251_v46 = vpop.f32.mrf.mxu1  ;;  %v537_v27 = vld [vmem:[%s12589_s1 + $0x750] sm:$0xff]  ;;  %v12628_v43 = vmov 0  }
 0x1cb   :  { %1773 = vperm.xlu0 %7598, %v539_v40   ;;  %5681 = vmatprep.mubr.bf16.mxu0 %v7785_v36  ;;  %v5155_v59 = vpop.f32.mrf.mxu0  ;;  %v7786_v40 = vld [vmem:[%s12590_s2 + $0xab8] ss:$72 sps:$4 sm:$0xff]  }
 0x1cc   :  { %v10001_v61 = vpop.f32.mrf.mxu1  ;;  %v570_v46 = vld [vmem:[%s12589_s1 + $0x858] sm:$0xff]  ;;  %v569_v59 = vld [vmem:[%s12589_s1 + $0x850] sm:$0xff] }
 0x1cd   :  { %12614 = vst [vmem:[#allocation21_spill] sm:$0xff] %v10001_v61  ;;  %v10003_v62 = vpop.permute.xlu1 %1448  ;;  %v10005_v63 = vpop.f32.mrf.mxu0 }
 0x1ce   :  { %12615 = vst [vmem:[#allocation22_spill] sm:$0xff] %v10005_v63  ;;  %v10007_v13 = vpop.permute.xlu0 %1443  ;;  %5457 = vmatmul.mubr.bf16.gmra.mxu1 %v7780_v45  ;;  %1938 = vperm.xlu1 %7599, %v572_v52   ;;  %v5254_v15 = vpop.f32.mrf.mxu1  ;;  %v7794_v52 = vld [vmem:[%s12590_s2 + $0xb4c] ss:$72 sps:$4 sm:$0xff]   ;;  %v218_v63 = vld [vmem:[%s12591_s0 + $0x658] sm:$0xff] }
 0x1cf   :  { %1933 = vperm.xlu0 %7598, %v571_v60   ;;  %5464 = vmatprep.mubr.bf16.mxu1 %v7788_v58  ;;  %v5158_v22 = vpop.f32.mrf.mxu0 }
 0x1d0   :  { %v10021_v28 = vpop.f32.mrf.mxu1 }
 0x1d1   :  { %12616 = vst [vmem:[#allocation23_spill] sm:$0xff] %v10021_v28  ;;  %v10023_v33 = vpop.permute.xlu1 %1608  ;;  %v10025_v36 = vpop.f32.mrf.mxu0 }
 0x1d2   :  { %12617 = vst [vmem:[#allocation24_spill] sm:$0xff] %v10025_v36  ;;  %v10027_v39 = vpop.permute.xlu0 %1603  ;;  %5682 = vmatmul.mubr.bf16.gmra.mxu0 %v7783_v14  ;;  %1768 = vperm.xlu1 %7599, %v538_v16   ;;  %v5259_v45 = vpop.f32.mrf.mxu1 }
 0x1d3   :  { %1763 = vperm.xlu0 %7598, %v537_v27   ;;  %5689 = vmatprep.mubr.bf16.mxu0 %v7791_v17  ;;  %v5163_v58 = vpop.f32.mrf.mxu0  ;;  %v7789_v17 = vld [vmem:[%s12590_s2 + $0xac0] ss:$72 sps:$4 sm:$0xff]   ;;  %v7797_v45 = vld [vmem:[%s12590_s2 + $0xb54] ss:$72 sps:$4 sm:$0xff]  }
 0x1d4   :  { %v10041_v60 = vpop.f32.mrf.mxu1  ;;  %v536_v27 = vld [vmem:[%s12589_s1 + $0x748] sm:$0xff] }
 0x1d5   :  { %12618 = vst [vmem:[#allocation25_spill] sm:$0xff] %v10041_v60  ;;  %v10043_v14 = vpop.permute.xlu1 %1438  ;;  %v10045_v15 = vpop.f32.mrf.mxu0 }
 0x1d6   :  { %12619 = vst [vmem:[#allocation26_spill] sm:$0xff] %v10045_v15  ;;  %v10047_v16 = vpop.permute.xlu0 %1433  ;;  %5465 = vmatmul.mubr.bf16.gmra.mxu1 %v7786_v40  ;;  %1928 = vperm.xlu1 %7599, %v570_v46   ;;  %v5262_v22 = vpop.f32.mrf.mxu1  ;;  %v535_v40 = vld [vmem:[%s12589_s1 + $0x740] sm:$0xff] }
 0x1d7   :  { %1923 = vperm.xlu0 %7598, %v569_v59   ;;  %5472 = vmatprep.mubr.bf16.mxu1 %v7794_v52  ;;  %v5166_v58 = vpop.f32.mrf.mxu0  ;;  %v7792_v52 = vld [vmem:[%s12590_s2 + $0xb48] ss:$72 sps:$4 sm:$0xff]  }
 0x1d8   :  { %v10061_v46 = vpop.f32.mrf.mxu1  ;;  %v568_v58 = vld [vmem:[%s12589_s1 + $0x848] sm:$0xff] }
 0x1d9   :  { %12620 = vst [vmem:[#allocation27_spill] sm:$0xff] %v10061_v46  ;;  %v10063_v0 = vpop.permute.xlu1 %1598  ;;  %v10065_v22 = vpop.f32.mrf.mxu0  ;;  %v7800_v46 = vld [vmem:[%s12590_s2 + $0xbdc] ss:$72 sps:$4 sm:$0xff]  }
 0x1da   :  { %12621 = vst [vmem:[#allocation28_spill] sm:$0xff] %v10065_v22  ;;  %v10067_v59 = vpop.permute.xlu0 %1593  ;;  %5690 = vmatmul.mubr.bf16.gmra.mxu0 %v7789_v17  ;;  %1758 = vperm.xlu1 %7599, %v536_v27   ;;  %v5267_v60 = vpop.f32.mrf.mxu1  ;;  %v567_v17 = vld [vmem:[%s12589_s1 + $0x840] sm:$0xff] }
 0x1db   :  { %1753 = vperm.xlu0 %7598, %v535_v40   ;;  %5697 = vmatprep.mubr.bf16.mxu0 %v7797_v45  ;;  %v5171_v28 = vpop.f32.mrf.mxu0  ;;  %v7795_v45 = vld [vmem:[%s12590_s2 + $0xb50] ss:$72 sps:$4 sm:$0xff]   ;;  %v559_v22 = vld [vmem:[%s12589_s1 + $0x800] sm:$0xff] }
 0x1dc   :  { %v10081_v27 = vpop.f32.mrf.mxu1  ;;  %v534_v28 = vld [vmem:[%s12589_s1 + $0x738] sm:$0xff] }
 0x1dd   :  { %12622 = vst [vmem:[#allocation29_spill] sm:$0xff] %v10081_v27  ;;  %v10083_v61 = vpop.permute.xlu1 %1428  ;;  %v10085_v60 = vpop.f32.mrf.mxu0  ;;  %v7803_v27 = vld [vmem:[%s12590_s2 + $0xbe4] ss:$72 sps:$4 sm:$0xff]  }
 0x1de   :  { %12623 = vst [vmem:[#allocation30_spill] sm:$0xff] %v10085_v60  ;;  %v10087_v40 = vpop.permute.xlu0 %1423  ;;  %5473 = vmatmul.mubr.bf16.gmra.mxu1 %v7792_v52  ;;  %1918 = vperm.xlu1 %7599, %v568_v58   ;;  %v5270_v41 = vpop.f32.mrf.mxu1  ;;  %v533_v52 = vld [vmem:[%s12589_s1 + $0x730] sm:$0xff] }
 0x1df   :  { %1913 = vperm.xlu0 %7598, %v567_v17   ;;  %5480 = vmatprep.mubr.bf16.mxu1 %v7800_v46  ;;  %v5174_v23 = vpop.f32.mrf.mxu0  ;;  %v7798_v46 = vld [vmem:[%s12590_s2 + $0xbd8] ss:$72 sps:$4 sm:$0xff]  }
 0x1e0   :  { %v10101_v58 = vpop.f32.mrf.mxu1  ;;  %v566_v23 = vld [vmem:[%s12589_s1 + $0x838] sm:$0xff] }
 0x1e1   :  { %12624 = vst [vmem:[#allocation31_spill] sm:$0xff] %v10101_v58  ;;  %v10103_v5 = vpop.permute.xlu1 %1588  ;;  %v10105_v41 = vpop.f32.mrf.mxu0  ;;  %v7806_v58 = vld [vmem:[%s12590_s2 + $0xc6c] ss:$72 sps:$4 sm:$0xff]  }
 0x1e2   :  { %12625 = vst [vmem:[#allocation32_spill] sm:$0xff] %v10105_v41  ;;  %v10107_v17 = vpop.permute.xlu0 %1583  ;;  %5698 = vmatmul.mubr.bf16.gmra.mxu0 %v7795_v45  ;;  %1748 = vperm.xlu1 %7599, %v534_v28   ;;  %v5275_v47 = vpop.f32.mrf.mxu1  ;;  %v565_v45 = vld [vmem:[%s12589_s1 + $0x830] sm:$0xff]  ;;  %v560_v41 = vld [vmem:[%s12589_s1 + $0x808] sm:$0xff] }
 0x1e3   :  { %1743 = vperm.xlu0 %7598, %v533_v52   ;;  %5705 = vmatprep.mubr.bf16.mxu0 %v7803_v27  ;;  %v5179_v31 = vpop.f32.mrf.mxu0  ;;  %v7801_v27 = vld [vmem:[%s12590_s2 + $0xbe0] ss:$72 sps:$4 sm:$0xff]  }
 0x1e4   :  { %v10121_v28 = vpop.f32.mrf.mxu1  ;;  %v532_v31 = vld [vmem:[%s12589_s1 + $0x728] sm:$0xff] }
 0x1e5   :  { %12626 = vst [vmem:[#allocation33_spill] sm:$0xff] %v10121_v28  ;;  %v10123_v8 = vpop.permute.xlu1 %1418  ;;  %v10125_v47 = vpop.f32.mrf.mxu0  ;;  %v7809_v28 = vld [vmem:[%s12590_s2 + $0xc74] ss:$72 sps:$4 sm:$0xff]  }
 0x1e6   :  { %12627 = vst [vmem:[#allocation34_spill] sm:$0xff] %v10125_v47  ;;  %v10127_v52 = vpop.permute.xlu0 %1413  ;;  %5481 = vmatmul.mubr.bf16.gmra.mxu1 %v7798_v46  ;;  %1908 = vperm.xlu1 %7599, %v566_v23   ;;  %v5278_v48 = vpop.f32.mrf.mxu1  ;;  %v531_v46 = vld [vmem:[%s12589_s1 + $0x720] sm:$0xff] }
 0x1e7   :  { %1903 = vperm.xlu0 %7598, %v565_v45   ;;  %5488 = vmatprep.mubr.bf16.mxu1 %v7806_v58  ;;  %v5182_v29 = vpop.f32.mrf.mxu0  ;;  %v7804_v48 = vld [vmem:[%s12590_s2 + $0xc68] ss:$72 sps:$4 sm:$0xff]   ;;  %v563_v45 = vld [vmem:[%s12589_s1 + $0x820] sm:$0xff] }
 0x1e8   :  { %v564_v58 = vld [vmem:[%s12589_s1 + $0x828] sm:$0xff]  ;;  %v7812_v29 = vld [vmem:[%s12590_s2 + $0xcfc] ss:$72 sps:$4 sm:$0xff]  }
 0x1e9   :  { %v10141_v23 = vpop.permute.xlu1 %1578 }
 0x1ea   :  { %v10143_v10 = vpop.permute.xlu0 %1573  ;;  %5706 = vmatmul.mubr.bf16.gmra.mxu0 %v7801_v27  ;;  %1738 = vperm.xlu1 %7599, %v532_v31  }
 0x1eb   :  { %1733 = vperm.xlu0 %7598, %v531_v46   ;;  %5713 = vmatprep.mubr.bf16.mxu0 %v7809_v28  ;;  %v7807_v46 = vld [vmem:[%s12590_s2 + $0xc70] ss:$72 sps:$4 sm:$0xff]  }
 0x1ec   :  { %v530_v28 = vld [vmem:[%s12589_s1 + $0x718] sm:$0xff] }
 0x1ed   :  { %v10157_v27 = vpop.permute.xlu1 %1408 }
 0x1ee   :  { %v10159_v31 = vpop.permute.xlu0 %1403  ;;  %5489 = vmatmul.mubr.bf16.gmra.mxu1 %v7804_v48  ;;  %1898 = vperm.xlu1 %7599, %v564_v58  }
 0x1ef   :  { %1893 = vperm.xlu0 %7598, %v563_v45   ;;  %5496 = vmatprep.mubr.bf16.mxu1 %v7812_v29  ;;  %v7810_v45 = vld [vmem:[%s12590_s2 + $0xcf8] ss:$72 sps:$4 sm:$0xff]  }
 0x1f0   :  { %v562_v29 = vld [vmem:[%s12589_s1 + $0x818] sm:$0xff] }
 0x1f1   :  { %v10173_v48 = vpop.permute.xlu1 %1568 }
 0x1f2   :  { %v10175_v58 = vpop.permute.xlu0 %1563  ;;  %5714 = vmatmul.mubr.bf16.gmra.mxu0 %v7807_v46  ;;  %1728 = vperm.xlu1 %7599, %v530_v28   ;;  %v190_v46 = vld [vmem:[%s12591_s0 + $0x578] sm:$0xff] }
 0x1f3   :  { %1723 = vperm.xlu0 %7598, %v529_v37   ;;  %5721 = vmatprep.mubr.bf16.mxu0 %v7815_v54  ;;  %v189_v37 = vld [vmem:[%s12591_s0 + $0x570] sm:$0xff]  ;;  %v7813_v54 = vld [vmem:[%s12590_s2 + $0xd00] ss:$72 sps:$4 sm:$0xff]   ;;  %v2206_v1 = vmul.f32 %v9922_v53, %v190_v46 }
 0x1f4   :  { %v2205_v47 = vmul.f32 %v9926_v57, %v189_v37  ;;  %v188_v53 = vld [vmem:[%s12591_s0 + $0x568] sm:$0xff]  ;;  %v187_v57 = vld [vmem:[%s12591_s0 + $0x560] sm:$0xff] }
 0x1f5   :  { %v10195_v28 = vpop.permute.xlu1 %1398  ;;  %v7816_v37 = vld [vmem:[%s12590_s2 + $0x18] ss:$72 sps:$4 sm:$0xff]   ;;  %v2203_v36 = vmul.f32 %v9967_v26, %v187_v57 }
 0x1f6   :  { %v10197_v49 = vpop.permute.xlu0 %1393  ;;  %5497 = vmatmul.mubr.bf16.gmra.mxu1 %v7810_v45  ;;  %1888 = vperm.xlu1 %7599, %v562_v29   ;;  %v527_v45 = vld [vmem:[%s12589_s1 + $0x700] sm:$0xff]  ;;  %v2406_v60 = vpack.c.bf16 %v2206_v1, %v2205_v47  ;;  %v220_v1 = vld [vmem:[%s12591_s0 + $0x668] sm:$0xff] }
 0x1f7   :  { %1883 = vperm.xlu0 %7598, %v561_v3   ;;  %5762 = vmatprep.mubr.bf16.mxu1 %v7818_v18  ;;  %v222_v3 = vld [vmem:[%s12591_s0 + $0x678] sm:$0xff]  ;;  %v221_v18 = vld [vmem:[%s12591_s0 + $0x670] sm:$0xff] }
 0x1f8   :  { %v2237_v15 = vmul.f32 %v9947_v12, %v221_v18  ;;  %v185_v12 = vld [vmem:[%s12591_s0 + $0x550] sm:$0xff]  ;;  %v558_v18 = vld [vmem:[%s12589_s1 + $0x7f8] sm:$0xff] }
 0x1f9   :  { %v10219_v29 = vpop.permute.xlu1 %1558 }
 0x1fa   :  { %v10227_v46 = vpop.permute.xlu0 %1553  ;;  %5722 = vmatmul.mubr.bf16.gmra.mxu0 %v7813_v54  ;;  %1718 = vperm.xlu1 %7599, %v528_v34   ;;  %v7824_v54 = vld [vmem:[%s12590_s2 + $0xac] ss:$72 sps:$4 sm:$0xff]   ;;  %v2238_v34 = vmul.f32 %v9943_v6, %v222_v3  ;;  %v186_v6 = vld [vmem:[%s12591_s0 + $0x558] sm:$0xff]  ;;  %v7819_v3 = vld [vmem:[%s12590_s2 + $0x20] ss:$72 sps:$4 sm:$0xff]  }
 0x1fb   :  { %1713 = vperm.xlu0 %7598, %v527_v45   ;;  %5987 = vmatprep.mubr.bf16.mxu0 %v7821_v19  ;;  %v2204_v45 = vmul.f32 %v9963_v24, %v188_v53  ;;  %v219_v19 = vld [vmem:[%s12591_s0 + $0x660] sm:$0xff]  ;;  %v2236_v53 = vmul.f32 %v9983_v42, %v220_v1  ;;  %v2202_v25 = vmul.f32 %v10003_v62, %v186_v6 }
 0x1fc   :  { %v2235_v57 = vmul.f32 %v9987_v44, %v219_v19  ;;  %v2201_v42 = vmul.f32 %v10007_v13, %v185_v12  ;;  %v557_v44 = vld [vmem:[%s12589_s1 + $0x7f0] sm:$0xff]  ;;  %v183_v62 = vld [vmem:[%s12591_s0 + $0x540] sm:$0xff] }
 0x1fd   :  { %v10251_v47 = vpop.permute.xlu1 %1548  ;;  %v7827_v19 = vld [vmem:[%s12590_s2 + $0xb4] ss:$72 sps:$4 sm:$0xff]  }
 0x1fe   :  { %v10259_v24 = vpop.permute.xlu0 %1543  ;;  %v5314_v26 = vpop.f32.mrf.mxu1  ;;  %5763 = vmatmul.mubr.bf16.vlgmr.msra.gmra.mxu1 %v7816_v37  ;;  %1878 = vperm.xlu1 %7599, %v560_v41   ;;  %v217_v41 = vld [vmem:[%s12591_s0 + $0x650] sm:$0xff] }
 0x1ff   :  { %6181 = vmatpush1.bf16.msra.mxu1 %v2406_v60  ;;  %1873 = vperm.xlu0 %7598, %v559_v22   ;;  %v2422_v22 = vpack.c.bf16 %v2238_v34, %v2237_v15  ;;  %v2405_v60 = vpack.c.bf16 %v2204_v45, %v2203_v36  ;;  %v5315_v13 = vadd.f32 %v5314_v26, %v9622_v2  ;;  %v7822_v34 = vld [vmem:[%s12590_s2 + $0xa8] ss:$72 sps:$4 sm:$0xff]   ;;  %v590_v2 = vld [vmem:[%s12589_s1 + $0x8f8] sm:$0xff] }
 0x200   :  { %v5316_v37 = vpop.f32.mrf.mxu1  ;;  %6182 = vmatprep.subr.bf16.mxu1 %v12628_v43  ;;  %5770 = vmatprep.mubr.bf16.mxu1 %v7824_v54  ;;  %v184_v54 = vld [vmem:[%s12591_s0 + $0x548] sm:$0xff]  ;;  %v10299_v45 = vmul.f32 %v10023_v33, %v218_v63  ;;  %v10302_v6 = vmul.f32 %v10027_v39, %v217_v41  ;;  %v2421_v26 = vpack.c.bf16 %v2236_v53, %v2235_v57 }
 0x201   :  { %v10278_v1 = vpop.permute.xlu1 %1708  ;;  %v2404_v33 = vpack.c.bf16 %v2202_v25, %v2201_v42  ;;  %v2200_v39 = vmul.f32 %v10043_v14, %v184_v54  ;;  %v2199_v41 = vmul.f32 %v10047_v16, %v183_v62  ;;  %v215_v37 = vld [vmem:[%s12591_s0 + $0x640] sm:$0xff]  ;;  %v182_v14 = vld [vmem:[%s12591_s0 + $0x538] sm:$0xff]  ;;  %v181_v16 = vld [vmem:[%s12591_s0 + $0x530] sm:$0xff] }
 0x202   :  { %v10293_v36 = vpop.permute.xlu0 %1703  ;;  %v5317_v15 = vpop.f32.mrf.mxu1  ;;  %5988 = vmatmul.mubr.bf16.vlgmr.msra.gmra.mxu0 %v7819_v3  ;;  %1868 = vperm.xlu1 %7599, %v558_v18   ;;  %v216_v3 = vld [vmem:[%s12591_s0 + $0x648] sm:$0xff]  ;;  %v7830_v25 = vld [vmem:[%s12590_s2 + $0x13c] ss:$72 sps:$4 sm:$0xff]   ;;  %v2420_v54 = vpack.c.bf16 %v10299_v45, %v10302_v6 }
 0x203   :  { %v5539_v12 = vpop.f32.mrf.mxu0  ;;  %6183 = vmatpush1.bf16.msra.mxu1 %v2405_v60  ;;  %6406 = vmatpush1.bf16.msra.mxu0 %v2422_v22  ;;  %v589_v22 = vld [vmem:[%s12589_s1 + $0x8f0] sm:$0xff]  ;;  %v5318_v60 = vadd.f32 %v5317_v15, %v9652_v20  ;;  %v2232_v20 = vmul.f32 %v10063_v0, %v216_v3  ;;  %v2231_v15 = vmul.f32 %v10067_v59, %v215_v37 }
 0x204   :  { %v10310_v18 = vadd.f32 %v5539_v12, %v5315_v13  ;;  %1863 = vperm.xlu0 %7598, %v557_v44   ;;  %v5319_v63 = vpop.f32.mrf.mxu1  ;;  %6184 = vmatprep.subr.bf16.mxu1 %v12628_v43  ;;  %v556_v13 = vld [vmem:[%s12589_s1 + $0x7e8] sm:$0xff]  ;;  %v213_v12 = vld [vmem:[%s12591_s0 + $0x630] sm:$0xff]  ;;  %v2197_v0 = vmul.f32 %v10087_v40, %v181_v16  ;;  %v179_v40 = vld [vmem:[%s12591_s0 + $0x520] sm:$0xff] }
 0x205   :  { %v5541_v53 = vpop.f32.mrf.mxu0  ;;  %6407 = vmatprep.subr.bf16.mxu0 %v12628_v43  ;;  %v10319_v57 = vpop.permute.xlu1 %1538  ;;  %5995 = vmatprep.mubr.bf16.mxu0 %v7827_v19  ;;  %v7825_v19 = vld [vmem:[%s12590_s2 + $0xb0] ss:$72 sps:$4 sm:$0xff]   ;;  %v555_v63 = vld [vmem:[%s12589_s1 + $0x7e0] sm:$0xff]  ;;  %v2419_v16 = vpack.c.bf16 %v2232_v20, %v2231_v15 }
 0x206   :  { %v10334_v42 = vpop.permute.xlu0 %1533  ;;  %v5322_v44 = vpop.f32.mrf.mxu1  ;;  %5771 = vmatmul.mubr.bf16.gmra.mxu1 %v7822_v34  ;;  %2028 = vperm.xlu1 %7599, %v590_v2   ;;  %v214_v34 = vld [vmem:[%s12591_s0 + $0x638] sm:$0xff]  ;;  %v2403_v2 = vpack.c.bf16 %v2200_v39, %v2199_v41  ;;  %v587_v15 = vld [vmem:[%s12589_s1 + $0x8e0] sm:$0xff] }
 0x207   :  { %v5542_v62 = vpop.f32.mrf.mxu0  ;;  %6185 = vmatpush1.bf16.msra.mxu1 %v2404_v33  ;;  %6408 = vmatpush1.bf16.msra.mxu0 %v2421_v26  ;;  %v2198_v26 = vmul.f32 %v10083_v61, %v182_v14  ;;  %v7833_v33 = vld [vmem:[%s12590_s2 + $0x144] ss:$72 sps:$4 sm:$0xff]   ;;  %v5323_v39 = vadd.f32 %v5322_v44, %v9675_v35  ;;  %v7828_v53 = vld [vmem:[%s12590_s2 + $0x138] ss:$72 sps:$4 sm:$0xff]  }
 0x208   :  { %v10352_v45 = vadd.f32 %v5542_v62, %v5318_v60  ;;  %2023 = vperm.xlu0 %7598, %v589_v22   ;;  %v5324_v6 = vpop.f32.mrf.mxu1  ;;  %6186 = vmatprep.subr.bf16.mxu1 %v12628_v43  ;;  %v180_v61 = vld [vmem:[%s12591_s0 + $0x528] sm:$0xff]  ;;  %v10379_v22 = vmul.f32 %v10103_v5, %v214_v34  ;;  %v211_v62 = vld [vmem:[%s12591_s0 + $0x620] sm:$0xff]  ;;  %v177_v34 = vld [vmem:[%s12591_s0 + $0x510] sm:$0xff] }
 0x209   :  { %v5544_v59 = vpop.f32.mrf.mxu0  ;;  %6409 = vmatprep.subr.bf16.mxu0 %v12628_v43  ;;  %v10358_v3 = vpop.permute.xlu1 %1698  ;;  %5778 = vmatprep.mubr.bf16.mxu1 %v7830_v25  ;;  %v10382_v25 = vmul.f32 %v10107_v17, %v213_v12  ;;  %v588_v35 = vld [vmem:[%s12589_s1 + $0x8e8] sm:$0xff]  ;;  %v2402_v17 = vpack.c.bf16 %v2198_v26, %v2197_v0 }
 0x20a   :  { %v10373_v41 = vpop.permute.xlu0 %1693  ;;  %v5325_v37 = vpop.f32.mrf.mxu1  ;;  %5996 = vmatmul.mubr.bf16.gmra.mxu0 %v7825_v19  ;;  %1858 = vperm.xlu1 %7599, %v556_v13   ;;  %v212_v60 = vld [vmem:[%s12591_s0 + $0x628] sm:$0xff]  ;;  %v2196_v19 = vmul.f32 %v10123_v8, %v180_v61  ;;  %v210_v61 = vld [vmem:[%s12591_s0 + $0x618] sm:$0xff] }
 0x20b   :  { %v5547_v14 = vpop.f32.mrf.mxu0  ;;  %6187 = vmatpush1.bf16.msra.mxu1 %v2403_v2  ;;  %6410 = vmatpush1.bf16.msra.mxu0 %v2420_v54  ;;  %v2195_v54 = vmul.f32 %v10127_v52, %v179_v40  ;;  %v7836_v8 = vld [vmem:[%s12590_s2 + $0x1cc] ss:$72 sps:$4 sm:$0xff]   ;;  %v178_v52 = vld [vmem:[%s12591_s0 + $0x518] sm:$0xff]  ;;  %v5326_v12 = vadd.f32 %v5325_v37, %v9698_v50  ;;  %v7831_v26 = vld [vmem:[%s12590_s2 + $0x140] ss:$72 sps:$4 sm:$0xff]   ;;  %v2418_v0 = vpack.c.bf16 %v10379_v22, %v10382_v25 }
 0x20c   :  { %v10390_v44 = vadd.f32 %v5547_v14, %v5323_v39  ;;  %1853 = vperm.xlu0 %7598, %v555_v63   ;;  %v5327_v5 = vpop.f32.mrf.mxu1  ;;  %6188 = vmatprep.subr.bf16.mxu1 %v12628_v43  ;;  %v554_v63 = vld [vmem:[%s12589_s1 + $0x7d8] sm:$0xff]  ;;  %v2228_v50 = vmul.f32 %v10141_v23, %v212_v60  ;;  %v209_v40 = vld [vmem:[%s12591_s0 + $0x610] sm:$0xff]  ;;  %v2194_v22 = vmul.f32 %v10157_v27, %v178_v52  ;;  %v176_v27 = vld [vmem:[%s12591_s0 + $0x508] sm:$0xff] }
 0x20d   :  { %v5549_v13 = vpop.f32.mrf.mxu0  ;;  %6411 = vmatprep.subr.bf16.mxu0 %v12628_v43  ;;  %v10399_v20 = vpop.permute.xlu1 %1528  ;;  %6003 = vmatprep.mubr.bf16.mxu0 %v7833_v33  ;;  %v2227_v33 = vmul.f32 %v10143_v10, %v211_v62  ;;  %v2193_v23 = vmul.f32 %v10159_v31, %v177_v34  ;;  %v553_v14 = vld [vmem:[%s12589_s1 + $0x7d0] sm:$0xff]  ;;  %v175_v31 = vld [vmem:[%s12591_s0 + $0x500] sm:$0xff]  ;;  %v2192_v52 = vmul.f32 %v10195_v28, %v176_v27 }
 0x20e   :  { %v10414_v6 = vpop.permute.xlu0 %1523  ;;  %v5330_v2 = vpop.f32.mrf.mxu1  ;;  %5779 = vmatmul.mubr.bf16.gmra.mxu1 %v7828_v53  ;;  %2018 = vperm.xlu1 %7599, %v588_v35   ;;  %v2401_v53 = vpack.c.bf16 %v2196_v19, %v2195_v54  ;;  %v7839_v35 = vld [vmem:[%s12590_s2 + $0x1d4] ss:$72 sps:$4 sm:$0xff]   ;;  %v10459_v19 = vmul.f32 %v10173_v48, %v210_v61  ;;  %v10462_v54 = vmul.f32 %v10175_v58, %v209_v40  ;;  %v7837_v61 = vld [vmem:[%s12590_s2 + $0x1d0] ss:$72 sps:$4 sm:$0xff]  }
 0x20f   :  { %v5550_v59 = vpop.f32.mrf.mxu0  ;;  %6189 = vmatpush1.bf16.msra.mxu1 %v2402_v17  ;;  %6412 = vmatpush1.bf16.msra.mxu0 %v2419_v16  ;;  %v5331_v16 = vadd.f32 %v5330_v2, %v9721_v4  ;;  %v7834_v17 = vld [vmem:[%s12590_s2 + $0x1c8] ss:$72 sps:$4 sm:$0xff]   ;;  %v586_v4 = vld [vmem:[%s12589_s1 + $0x8d8] sm:$0xff]  ;;  %v2417_v13 = vpack.c.bf16 %v2228_v50, %v2227_v33  ;;  %v2400_v58 = vpack.c.bf16 %v2194_v22, %v2193_v23 }
 0x210   :  { %v10432_v39 = vadd.f32 %v5550_v59, %v5326_v12  ;;  %2013 = vperm.xlu0 %7598, %v587_v15   ;;  %v5332_v37 = vpop.f32.mrf.mxu1  ;;  %6190 = vmatprep.subr.bf16.mxu1 %v12628_v43  ;;  %v208_v15 = vld [vmem:[%s12591_s0 + $0x608] sm:$0xff]  ;;  %v2191_v34 = vmul.f32 %v10197_v49, %v175_v31  ;;  %v207_v12 = vld [vmem:[%s12591_s0 + $0x600] sm:$0xff]  ;;  %v206_v49 = vld [vmem:[%s12591_s0 + $0x5f8] sm:$0xff]  ;;  %v2416_v40 = vpack.c.bf16 %v10459_v19, %v10462_v54 }
 0x211   :  { %v5552_v10 = vpop.f32.mrf.mxu0  ;;  %6413 = vmatprep.subr.bf16.mxu0 %v12628_v43  ;;  %v10438_v25 = vpop.permute.xlu1 %1688  ;;  %5786 = vmatprep.mubr.bf16.mxu1 %v7836_v8  ;;  %v7842_v28 = vld [vmem:[%s12590_s2 + $0x25c] ss:$72 sps:$4 sm:$0xff]   ;;  %v205_v59 = vld [vmem:[%s12591_s0 + $0x5f0] sm:$0xff]  ;;  %v2223_v22 = vmul.f32 %v10227_v46, %v207_v12  ;;  %v2222_v31 = vmul.f32 %v10251_v47, %v206_v49  ;;  %v204_v47 = vld [vmem:[%s12591_s0 + $0x5e8] sm:$0xff] }
 0x212   :  { %v10453_v60 = vpop.permute.xlu0 %1683  ;;  %v5333_v5 = vpop.f32.mrf.mxu1  ;;  %6004 = vmatmul.mubr.bf16.gmra.mxu0 %v7831_v26  ;;  %1848 = vperm.xlu1 %7599, %v554_v63   ;;  %v238_v23 = vld [vmem:[%s12591_s0 + $0x6f8] sm:$0xff]  ;;  %v237_v10 = vld [vmem:[%s12591_s0 + $0x6f0] sm:$0xff]  ;;  %v2399_v27 = vpack.c.bf16 %v2192_v52, %v2191_v34  ;;  %v236_v52 = vld [vmem:[%s12591_s0 + $0x6e8] sm:$0xff]  ;;  %v2220_v12 = vmul.f32 %v10319_v57, %v204_v47 }
 0x213   :  { %v5555_v62 = vpop.f32.mrf.mxu0  ;;  %6191 = vmatpush1.bf16.msra.mxu1 %v2401_v53  ;;  %6414 = vmatpush1.bf16.msra.mxu0 %v2418_v0  ;;  %v585_v0 = vld [vmem:[%s12589_s1 + $0x8d0] sm:$0xff]  ;;  %v5334_v63 = vadd.f32 %v5333_v5, %v9744_v21  ;;  %v552_v53 = vld [vmem:[%s12589_s1 + $0x7c8] sm:$0xff]  ;;  %v2224_v21 = vmul.f32 %v10219_v29, %v208_v15  ;;  %v2221_v29 = vmul.f32 %v10259_v24, %v205_v59  ;;  %v551_v5 = vld [vmem:[%s12589_s1 + $0x7c0] sm:$0xff] }
 0x214   :  { %v10470_v8 = vadd.f32 %v5555_v62, %v5331_v16  ;;  %1843 = vperm.xlu0 %7598, %v553_v14   ;;  %v5335_v48 = vpop.f32.mrf.mxu1  ;;  %6192 = vmatprep.subr.bf16.mxu1 %v12628_v43  ;;  %v203_v24 = vld [vmem:[%s12591_s0 + $0x5e0] sm:$0xff]  ;;  %v10542_v15 = vmul.f32 %v10293_v36, %v237_v10  ;;  %v7848_v57 = vld [vmem:[%s12590_s2 + $0x2ec] ss:$72 sps:$4 sm:$0xff]   ;;  %v234_v10 = vld [vmem:[%s12591_s0 + $0x6d8] sm:$0xff] }
 0x215   :  { %v5557_v2 = vpop.f32.mrf.mxu0  ;;  %6415 = vmatprep.subr.bf16.mxu0 %v12628_v43  ;;  %v10479_v26 = vpop.permute.xlu1 %1518  ;;  %6011 = vmatprep.mubr.bf16.mxu0 %v7839_v35  ;;  %v2414_v36 = vpack.c.bf16 %v2222_v31, %v2221_v29  ;;  %v583_v59 = vld [vmem:[%s12589_s1 + $0x8c0] sm:$0xff]  ;;  %v7851_v47 = vld [vmem:[%s12590_s2 + $0x2f4] ss:$72 sps:$4 sm:$0xff]  }
 0x216   :  { %v10494_v50 = vpop.permute.xlu0 %1513  ;;  %v5338_v33 = vpop.f32.mrf.mxu1  ;;  %5787 = vmatmul.mubr.bf16.gmra.mxu1 %v7834_v17  ;;  %2008 = vperm.xlu1 %7599, %v586_v4   ;;  %v7845_v17 = vld [vmem:[%s12590_s2 + $0x264] ss:$72 sps:$4 sm:$0xff]   ;;  %v7840_v4 = vld [vmem:[%s12590_s2 + $0x258] ss:$72 sps:$4 sm:$0xff]   ;;  %v2219_v2 = vmul.f32 %v10334_v42, %v203_v24 }
 0x217   :  { %v5558_v37 = vpop.f32.mrf.mxu0  ;;  %6193 = vmatpush1.bf16.msra.mxu1 %v2400_v58  ;;  %6416 = vmatpush1.bf16.msra.mxu0 %v2417_v13  ;;  %v5339_v19 = vadd.f32 %v5338_v33, %v9767_v38  ;;  %v10539_v13 = vmul.f32 %v10278_v1, %v238_v23  ;;  %v584_v38 = vld [vmem:[%s12589_s1 + $0x8c8] sm:$0xff]  ;;  %v2415_v58 = vpack.c.bf16 %v2224_v21, %v2223_v22  ;;  %v202_v42 = vld [vmem:[%s12591_s0 + $0x5d8] sm:$0xff] }
 0x218   :  { %v10512_v14 = vadd.f32 %v5558_v37, %v5334_v63  ;;  %2003 = vperm.xlu0 %7598, %v585_v0   ;;  %v5340_v35 = vpop.f32.mrf.mxu1  ;;  %6194 = vmatprep.subr.bf16.mxu1 %v12628_v43  ;;  %v235_v0 = vld [vmem:[%s12591_s0 + $0x6e0] sm:$0xff]  ;;  %v201_v63 = vld [vmem:[%s12591_s0 + $0x5d0] sm:$0xff]  ;;  %v550_v22 = vld [vmem:[%s12589_s1 + $0x7b8] sm:$0xff]  ;;  %v2413_v29 = vpack.c.bf16 %v2220_v12, %v2219_v2 }
 0x219   :  { %v5560_v46 = vpop.f32.mrf.mxu0  ;;  %6417 = vmatprep.subr.bf16.mxu0 %v12628_v43  ;;  %v10518_v16 = vpop.permute.xlu1 %1678  ;;  %5794 = vmatprep.mubr.bf16.mxu1 %v7842_v28  ;;  %v7843_v37 = vld [vmem:[%s12590_s2 + $0x260] ss:$72 sps:$4 sm:$0xff]   ;;  %v2251_v23 = vmul.f32 %v10373_v41, %v235_v0  ;;  %v233_v35 = vld [vmem:[%s12591_s0 + $0x6d0] sm:$0xff] }
 0x21a   :  { %v10533_v54 = vpop.permute.xlu0 %1673  ;;  %v5341_v62 = vpop.f32.mrf.mxu1  ;;  %6012 = vmatmul.mubr.bf16.gmra.mxu0 %v7837_v61  ;;  %1838 = vperm.xlu1 %7599, %v552_v53   ;;  %v2430_v53 = vpack.c.bf16 %v10539_v13, %v10542_v15  ;;  %v2218_v46 = vmul.f32 %v10399_v20, %v202_v42  ;;  %v200_v20 = vld [vmem:[%s12591_s0 + $0x5c8] sm:$0xff]  ;;  %v10619_v13 = vmul.f32 %v10438_v25, %v234_v10  ;;  %v231_v12 = vld [vmem:[%s12591_s0 + $0x6c0] sm:$0xff] }
 0x21b   :  { %v5563_v48 = vpop.f32.mrf.mxu0  ;;  %6195 = vmatpush1.bf16.msra.mxu1 %v2399_v27  ;;  %6418 = vmatpush1.bf16.msra.mxu0 %v2416_v40  ;;  %v5342_v33 = vadd.f32 %v5341_v62, %v9790_v55  ;;  %v2252_v55 = vmul.f32 %v10358_v3, %v236_v52  ;;  %v2217_v3 = vmul.f32 %v10414_v6, %v201_v63  ;;  %v199_v6 = vld [vmem:[%s12591_s0 + $0x5c0] sm:$0xff] }
 0x21c   :  { %v10550_v34 = vadd.f32 %v5563_v48, %v5339_v19  ;;  %1833 = vperm.xlu0 %7598, %v551_v5   ;;  %v5343_v1 = vpop.f32.mrf.mxu1  ;;  %6196 = vmatprep.subr.bf16.mxu1 %v12628_v43  ;;  %v10622_v15 = vmul.f32 %v10453_v60, %v233_v35 }
 0x21d   :  { %v5565_v28 = vpop.f32.mrf.mxu0  ;;  %6419 = vmatprep.subr.bf16.mxu0 %v12628_v43  ;;  %v10559_v49 = vpop.permute.xlu1 %1508  ;;  %6019 = vmatprep.mubr.bf16.mxu0 %v7845_v17  ;;  %v549_v17 = vld [vmem:[%s12589_s1 + $0x7b0] sm:$0xff]  ;;  %v2412_v60 = vpack.c.bf16 %v2218_v46, %v2217_v3  ;;  %v2216_v1 = vmul.f32 %v10479_v26, %v200_v20  ;;  %v198_v26 = vld [vmem:[%s12591_s0 + $0x5b8] sm:$0xff]  ;;  %v547_v46 = vld [vmem:[%s12589_s1 + $0x7a0] sm:$0xff] }
 0x21e   :  { %v10574_v61 = vpop.permute.xlu0 %1503  ;;  %v5346_v40 = vpop.f32.mrf.mxu1  ;;  %5795 = vmatmul.mubr.bf16.gmra.mxu1 %v7840_v4  ;;  %1998 = vperm.xlu1 %7599, %v584_v38   ;;  %v7846_v4 = vld [vmem:[%s12590_s2 + $0x2e8] ss:$72 sps:$4 sm:$0xff]   ;;  %v2429_v38 = vpack.c.bf16 %v2252_v55, %v2251_v23  ;;  %v7857_v3 = vld [vmem:[%s12590_s2 + $0x384] ss:$72 sps:$4 sm:$0xff]   ;;  %v7852_v20 = vld [vmem:[%s12590_s2 + $0x378] ss:$72 sps:$4 sm:$0xff]  }
 0x21f   :  { %v5566_v21 = vpop.f32.mrf.mxu0  ;;  %6197 = vmatpush2.bf16.msra.mxu1 %v2414_v36  ;;  %6420 = vmatpush1.bf16.msra.mxu0 %v2415_v58  ;;  %v5347_v24 = vadd.f32 %v5346_v40, %v9813_v11  ;;  %v582_v11 = vld [vmem:[%s12589_s1 + $0x8b8] sm:$0xff]  ;;  %v232_v58 = vld [vmem:[%s12591_s0 + $0x6c8] sm:$0xff]  ;;  %v2215_v36 = vmul.f32 %v10494_v50, %v199_v6  ;;  %v581_v28 = vld [vmem:[%s12589_s1 + $0x8b0] sm:$0xff]  ;;  %v2428_v40 = vpack.c.bf16 %v10619_v13, %v10622_v15 }
 0x220   :  { %v10592_v27 = vadd.f32 %v5566_v21, %v5342_v33  ;;  %1993 = vperm.xlu0 %7598, %v583_v59   ;;  %v5348_v31 = vpop.f32.mrf.mxu1  ;;  %6198 = vmatprep.subr.bf16.mxu1 %v12628_v43  ;;  %v7854_v59 = vld [vmem:[%s12590_s2 + $0x37c] ss:$72 sps:$4 sm:$0xff]   ;;  %v197_v50 = vld [vmem:[%s12591_s0 + $0x5b0] sm:$0xff]  ;;  %v2247_v21 = vmul.f32 %v10533_v54, %v231_v12  ;;  %v228_v13 = vld [vmem:[%s12591_s0 + $0x6a8] sm:$0xff] }
 0x221   :  { %v5568_v41 = vpop.f32.mrf.mxu0  ;;  %6421 = vmatprep.subr.bf16.mxu0 %v12628_v43  ;;  %v10598_v5 = vpop.permute.xlu1 %1668  ;;  %5802 = vmatprep.mubr.bf16.mxu1 %v7848_v57  ;;  %v7849_v33 = vld [vmem:[%s12590_s2 + $0x2f0] ss:$72 sps:$4 sm:$0xff]   ;;  %v2411_v35 = vpack.c.bf16 %v2216_v1, %v2215_v36  ;;  %v2214_v31 = vmul.f32 %v10559_v49, %v198_v26  ;;  %v195_v49 = vld [vmem:[%s12591_s0 + $0x5a0] sm:$0xff]  ;;  %v7860_v1 = vld [vmem:[%s12590_s2 + $0x40c] ss:$72 sps:$4 sm:$0xff]  }
 0x222   :  { %v10613_v19 = vpop.permute.xlu0 %1663  ;;  %v5349_v62 = vpop.f32.mrf.mxu1  ;;  %6020 = vmatmul.mubr.bf16.gmra.mxu0 %v7843_v37  ;;  %1828 = vperm.xlu1 %7599, %v550_v22   ;;  %v230_v22 = vld [vmem:[%s12591_s0 + $0x6b8] sm:$0xff]  ;;  %v229_v55 = vld [vmem:[%s12591_s0 + $0x6b0] sm:$0xff]  ;;  %v196_v41 = vld [vmem:[%s12591_s0 + $0x5a8] sm:$0xff] }
 0x223   :  { %v5571_v48 = vpop.f32.mrf.mxu0  ;;  %6199 = vmatpush2.bf16.msra.mxu1 %v2413_v29  ;;  %6422 = vmatpush2.bf16.msra.mxu0 %v2430_v53  ;;  %v5350_v57 = vadd.f32 %v5349_v62, %v9836_v30  ;;  %v548_v53 = vld [vmem:[%s12589_s1 + $0x7a8] sm:$0xff]  ;;  %v2248_v30 = vmul.f32 %v10518_v16, %v232_v58  ;;  %v2213_v16 = vmul.f32 %v10574_v61, %v197_v50  ;;  %v194_v12 = vld [vmem:[%s12591_s0 + $0x598] sm:$0xff] }
 0x224   :  { %v10630_v52 = vadd.f32 %v5571_v48, %v5347_v24  ;;  %1823 = vperm.xlu0 %7598, %v549_v17   ;;  %v5351_v25 = vpop.f32.mrf.mxu1  ;;  %6200 = vmatprep.subr.bf16.mxu1 %v12628_v43  ;;  %v2246_v6 = vmul.f32 %v10598_v5, %v230_v22  ;;  %v2245_v24 = vmul.f32 %v10613_v19, %v229_v55  ;;  %v545_v22 = vld [vmem:[%s12589_s1 + $0x790] sm:$0xff] }
 0x225   :  { %v5573_v2 = vpop.f32.mrf.mxu0  ;;  %6423 = vmatprep.subr.bf16.mxu0 %v12628_v43  ;;  %v1499_v0 = vpop.permute.xlu1 %1498  ;;  %6027 = vmatprep.mubr.bf16.mxu0 %v7851_v47  ;;  %v2410_v5 = vpack.c.bf16 %v2214_v31, %v2213_v16  ;;  %v7863_v55 = vld [vmem:[%s12590_s2 + $0x414] ss:$72 sps:$4 sm:$0xff]  }
 0x226   :  { %12629 = vst [vmem:[#allocation35_spill] sm:$0xff] %v10630_v52  ;;  %v1494_v42 = vpop.permute.xlu0 %1493  ;;  %v5354_v63 = vpop.f32.mrf.mxu1  ;;  %5803 = vmatmul.mubr.bf16.gmra.mxu1 %v7846_v4  ;;  %1988 = vperm.xlu1 %7599, %v582_v11   ;;  %v580_v4 = vld [vmem:[%s12589_s1 + $0x8a8] sm:$0xff]  ;;  %v2212_v19 = vmul.f32 %v1499_v0, %v196_v41  ;;  %v193_v0 = vld [vmem:[%s12591_s0 + $0x590] sm:$0xff]  ;;  %v2426_v26 = vpack.c.bf16 %v2246_v6, %v2245_v24 }
 0x227   :  { %v5574_v37 = vpop.f32.mrf.mxu0  ;;  %6201 = vmatpush2.bf16.msra.mxu1 %v2412_v60  ;;  %6424 = vmatpush2.bf16.msra.mxu0 %v2429_v38  ;;  %v5355_v61 = vadd.f32 %v5354_v63, %v9859_v51  ;;  %v2427_v51 = vpack.c.bf16 %v2248_v30, %v2247_v21  ;;  %v2211_v11 = vmul.f32 %v1494_v42, %v195_v49  ;;  %v227_v38 = vld [vmem:[%s12591_s0 + $0x6a0] sm:$0xff]  ;;  %v225_v16 = vld [vmem:[%s12591_s0 + $0x690] sm:$0xff] }
 0x228   :  { %v10668_v23 = vadd.f32 %v5574_v37, %v5350_v57  ;;  %1983 = vperm.xlu0 %7598, %v581_v28   ;;  %v5356_v10 = vpop.f32.mrf.mxu1  ;;  %6202 = vmatprep.subr.bf16.mxu1 %v12628_v43  ;;  %v579_v60 = vld [vmem:[%s12589_s1 + $0x8a0] sm:$0xff] }
 0x229   :  { %v5576_v54 = vpop.f32.mrf.mxu0  ;;  %6425 = vmatprep.subr.bf16.mxu0 %v12628_v43  ;;  %v1659_v29 = vpop.permute.xlu1 %1658  ;;  %5810 = vmatprep.mubr.bf16.mxu1 %v7854_v59  ;;  %v7855_v59 = vld [vmem:[%s12590_s2 + $0x380] ss:$72 sps:$4 sm:$0xff]  }
 0x22a   :  { %12630 = vst [vmem:[#allocation36_spill] sm:$0xff] %v10668_v23  ;;  %v1654_v17 = vpop.permute.xlu0 %1653  ;;  %v5357_v47 = vpop.f32.mrf.mxu1  ;;  %6028 = vmatmul.mubr.bf16.gmra.mxu0 %v7849_v33  ;;  %1818 = vperm.xlu1 %7599, %v548_v53   ;;  %v2244_v57 = vmul.f32 %v1659_v29, %v228_v13  ;;  %v7858_v29 = vld [vmem:[%s12590_s2 + $0x408] ss:$72 sps:$4 sm:$0xff]  }
 0x22b   :  { %v5579_v62 = vpop.f32.mrf.mxu0  ;;  %6203 = vmatpush2.bf16.msra.mxu1 %v2411_v35  ;;  %6426 = vmatpush2.bf16.msra.mxu0 %v2428_v40  ;;  %v5358_v36 = vadd.f32 %v5357_v47, %v9882_v9  ;;  %v546_v9 = vld [vmem:[%s12589_s1 + $0x798] sm:$0xff]  ;;  %v2243_v42 = vmul.f32 %v1654_v17, %v227_v38  ;;  %v2409_v40 = vpack.c.bf16 %v2212_v19, %v2211_v11  ;;  %v191_v17 = vld [vmem:[%s12591_s0 + $0x580] sm:$0xff] }
 0x22c   :  { %v10698_v15 = vadd.f32 %v5579_v62, %v5355_v61  ;;  %1813 = vperm.xlu0 %7598, %v547_v46   ;;  %v5359_v48 = vpop.f32.mrf.mxu1  ;;  %6204 = vmatprep.subr.bf16.mxu1 %v12628_v43  ;;  %v226_v35 = vld [vmem:[%s12591_s0 + $0x698] sm:$0xff] }
 0x22d   :  { %v5581_v58 = vpop.f32.mrf.mxu0  ;;  %6427 = vmatprep.subr.bf16.mxu0 %v12628_v43  ;;  %v1489_v25 = vpop.permute.xlu1 %1488  ;;  %6035 = vmatprep.mubr.bf16.mxu0 %v7857_v3  ;;  %v578_v3 = vld [vmem:[%s12589_s1 + $0x898] sm:$0xff]  ;;  %v2425_v41 = vpack.c.bf16 %v2244_v57, %v2243_v42 }
 0x22e   :  { %12631 = vst [vmem:[#allocation37_spill] sm:$0xff] %v10698_v15  ;;  %v1484_v2 = vpop.permute.xlu0 %1483  ;;  %v5362_v28 = vpop.f32.mrf.mxu1  ;;  %5811 = vmatmul.mubr.bf16.gmra.mxu1 %v7852_v20  ;;  %1978 = vperm.xlu1 %7599, %v580_v4   ;;  %v2210_v37 = vmul.f32 %v1489_v25, %v194_v12  ;;  %v577_v4 = vld [vmem:[%s12589_s1 + $0x890] sm:$0xff]  ;;  %v224_v25 = vld [vmem:[%s12591_s0 + $0x688] sm:$0xff] }
 0x22f   :  { %v5582_v50 = vpop.f32.mrf.mxu0  ;;  %6205 = vmatpush2.bf16.msra.mxu1 %v2410_v5  ;;  %6428 = vmatpush2.bf16.msra.mxu0 %v2427_v51  ;;  %v2209_v53 = vmul.f32 %v1484_v2, %v193_v0  ;;  %v5363_v10 = vadd.f32 %v5362_v28, %v9905_v32  ;;  %v192_v32 = vld [vmem:[%s12591_s0 + $0x588] sm:$0xff]  ;;  %v7866_v51 = vld [vmem:[%s12590_s2 + $0x49c] ss:$72 sps:$4 sm:$0xff]   ;;  %v7861_v11 = vld [vmem:[%s12590_s2 + $0x410] ss:$72 sps:$4 sm:$0xff]  }
 0x230   :  { %v10724_v63 = vadd.f32 %v5582_v50, %v5358_v36  ;;  %1973 = vperm.xlu0 %7598, %v579_v60   ;;  %v5364_v33 = vpop.f32.mrf.mxu1  ;;  %6206 = vmatprep.subr.bf16.mxu1 %v12628_v43  ;;  %v223_v36 = vld [vmem:[%s12591_s0 + $0x680] sm:$0xff] }
 0x231   :  { %v5584_v30 = vpop.f32.mrf.mxu0  ;;  %6429 = vmatprep.subr.bf16.mxu0 %v12628_v43  ;;  %v1649_v21 = vpop.permute.xlu1 %1648  ;;  %5818 = vmatprep.mubr.bf16.mxu1 %v7860_v1  ;;  %v2408_v47 = vpack.c.bf16 %v2210_v37, %v2209_v53  ;;  %v7864_v33 = vld [vmem:[%s12590_s2 + $0x498] ss:$72 sps:$4 sm:$0xff]   ;;  %v576_v53 = vld [vmem:[%s12589_s1 + $0x888] sm:$0xff] }
 0x232   :  { %12632 = vst [vmem:[#allocation38_spill] sm:$0xff] %v10724_v63  ;;  %v1644_v31 = vpop.permute.xlu0 %1643  ;;  %v5365_v54 = vpop.f32.mrf.mxu1  ;;  %6036 = vmatmul.mubr.bf16.gmra.mxu0 %v7855_v59  ;;  %1808 = vperm.xlu1 %7599, %v546_v9   ;;  %v2242_v20 = vmul.f32 %v1649_v21, %v226_v35  ;;  %v543_v59 = vld [vmem:[%s12589_s1 + $0x780] sm:$0xff] }
 0x233   :  { %v5587_v46 = vpop.f32.mrf.mxu0  ;;  %6207 = vmatpush2.bf16.msra.mxu1 %v2409_v40  ;;  %6430 = vmatpush2.bf16.msra.mxu0 %v2426_v26  ;;  %v2241_v6 = vmul.f32 %v1644_v31, %v225_v16  ;;  %v5366_v13 = vadd.f32 %v5365_v54, %v9924_v56  ;;  %v544_v56 = vld [vmem:[%s12589_s1 + $0x788] sm:$0xff]  ;;  %v575_v35 = vld [vmem:[%s12589_s1 + $0x880] sm:$0xff] }
 0x234   :  { %v10750_v49 = vadd.f32 %v5587_v46, %v5363_v10  ;;  %1803 = vperm.xlu0 %7598, %v545_v22   ;;  %v5367_v61 = vpop.f32.mrf.mxu1  ;;  %6208 = vmatprep.subr.bf16.mxu1 %v12628_v43  ;;  %v7869_v26 = vld [vmem:[%s12590_s2 + $0x4a4] ss:$72 sps:$4 sm:$0xff]   ;;  %v7867_v46 = vld [vmem:[%s12590_s2 + $0x4a0] ss:$72 sps:$4 sm:$0xff]  }
 0x235   :  { %v5589_v24 = vpop.f32.mrf.mxu0  ;;  %6431 = vmatprep.subr.bf16.mxu0 %v12628_v43  ;;  %v1479_v62 = vpop.permute.xlu1 %1478  ;;  %6043 = vmatprep.mubr.bf16.mxu0 %v7863_v55  ;;  %v2424_v12 = vpack.c.bf16 %v2242_v20, %v2241_v6  ;;  %v12636_v31 = vld [vmem:[#allocation18_spill] sm:$0xff]  ;;  %v12638_v20 = vld [vmem:[#allocation20_spill] sm:$0xff] }
 0x236   :  { %12633 = vst [vmem:[#allocation39_spill] sm:$0xff] %v10750_v49  ;;  %v2208_v48 = vmul.f32 %v1479_v62, %v192_v32  ;;  %v1474_v5 = vpop.permute.xlu0 %1473  ;;  %v5370_v19 = vpop.f32.mrf.mxu1  ;;  %5819 = vmatmul.mubr.bf16.gmra.mxu1 %v7858_v29  ;;  %1968 = vperm.xlu1 %7599, %v578_v3   ;;  %v7875_v3 = vld [vmem:[%s12590_s2 + $0x534] ss:$72 sps:$4 sm:$0xff]  }
 0x237   :  { %v2207_v38 = vmul.f32 %v1474_v5, %v191_v17  ;;  %v5590_v58 = vpop.f32.mrf.mxu0  ;;  %6209 = vmatpush2.bf16.msra.mxu1 %v2408_v47  ;;  %6432 = vmatpush2.bf16.msra.mxu0 %v2425_v41  ;;  %v5371_v50 = vadd.f32 %v5370_v19, %v9945_v7  ;;  %v7872_v7 = vld [vmem:[%s12590_s2 + $0x52c] ss:$72 sps:$4 sm:$0xff]  }
 0x238   :  { %v10773_v60 = vadd.f32 %v5590_v58, %v5366_v13  ;;  %1963 = vperm.xlu0 %7598, %v577_v4   ;;  %v5372_v1 = vpop.f32.mrf.mxu1  ;;  %6433 = vmatprep.subr.bf16.mxu0 %v12628_v43  ;;  %v7870_v4 = vld [vmem:[%s12590_s2 + $0x528] ss:$72 sps:$4 sm:$0xff]   ;;  %v7878_v13 = vld [vmem:[%s12590_s2 + $0x5bc] ss:$72 sps:$4 sm:$0xff]  }
 0x239   :  { %v2407_v2 = vpack.c.bf16 %v2208_v48, %v2207_v38  ;;  %v5592_v0 = vpop.f32.mrf.mxu0  ;;  %v1639_v28 = vpop.permute.xlu1 %1638  ;;  %6210 = vmatprep.subr.bf16.mxu1 %v12628_v43  ;;  %5826 = vmatprep.mubr.bf16.mxu1 %v7866_v51 }
 0x23a   :  { %12634 = vst [vmem:[#allocation40_spill] sm:$0xff] %v10773_v60  ;;  %v2240_v9 = vmul.f32 %v1639_v28, %v224_v25  ;;  %v1634_v57 = vpop.permute.xlu0 %1633  ;;  %v5373_v42 = vpop.f32.mrf.mxu1  ;;  %6044 = vmatmul.mubr.bf16.gmra.mxu0 %v7861_v11  ;;  %1798 = vperm.xlu1 %7599, %v544_v56   ;;  %v12640_v11 = vld [vmem:[#allocation22_spill] sm:$0xff]  ;;  %v7873_v25 = vld [vmem:[%s12590_s2 + $0x530] ss:$72 sps:$4 sm:$0xff]  }
 0x23b   :  { %v2239_v40 = vmul.f32 %v1634_v57, %v223_v36  ;;  %v5595_v37 = vpop.f32.mrf.mxu0  ;;  %6434 = vmatpush2.bf16.msra.mxu0 %v2424_v12  ;;  %6211 = vmatpush2.bf16.msra.mxu1 %v2407_v2  ;;  %v5374_v16 = vadd.f32 %v5373_v42, %v12636_v31  ;;  %v7881_v36 = vld [vmem:[%s12590_s2 + $0x5c4] ss:$72 sps:$4 sm:$0xff]  }
 0x23c   :  { %v10796_v30 = vadd.f32 %v5595_v37, %v5371_v50  ;;  %1793 = vperm.xlu0 %7598, %v543_v59   ;;  %v5375_v21 = vpop.f32.mrf.mxu1  ;;  %6435 = vmatprep.subr.bf16.mxu0 %v12628_v43  ;;  %v12642_v59 = vld [vmem:[#allocation24_spill] sm:$0xff] }
 0x23d   :  { %v2423_v22 = vpack.c.bf16 %v2240_v9, %v2239_v40  ;;  %v5597_v55 = vpop.f32.mrf.mxu0  ;;  %v10799_v10 = vpop.permute.xlu1 %1788  ;;  %6051 = vmatprep.mubr.bf16.mxu0 %v7869_v26  ;;  %6630 = vmatprep.subr.bf16.mxu1 %v12628_v43  ;;  %v7876_v9 = vld [vmem:[%s12590_s2 + $0x5b8] ss:$72 sps:$4 sm:$0xff]   ;;  %v7884_v42 = vld [vmem:[%s12590_s2 + $0x64c] ss:$72 sps:$4 sm:$0xff]  }
 0x23e   :  { %12635 = vst [vmem:[#allocation41_spill] sm:$0xff] %v10796_v30  ;;  %v10806_v54 = vpop.permute.xlu0 %1783  ;;  %v5378_v29 = vpop.f32.mrf.mxu1  ;;  %5827 = vmatmul.mubr.bf16.gmra.mxu1 %v7864_v33  ;;  %1958 = vperm.xlu1 %7599, %v576_v53   ;;  %v12644_v21 = vld [vmem:[#allocation26_spill] sm:$0xff] }
 0x23f   :  { %v5598_v32 = vpop.f32.mrf.mxu0  ;;  %6436 = vmatpush2.bf16.msra.mxu0 %v2423_v22  ;;  %5834 = vmatprep.mubr.bf16.mxu1 %v7872_v7  ;;  %v5379_v6 = vadd.f32 %v5378_v29, %v12638_v20  ;;  %v7882_v20 = vld [vmem:[%s12590_s2 + $0x648] ss:$72 sps:$4 sm:$0xff]  }
 0x240   :  { %v10814_v41 = vadd.f32 %v5598_v32, %v5374_v16  ;;  %1953 = vperm.xlu0 %7598, %v575_v35   ;;  %v5380_v61 = vpop.f32.mrf.mxu1  ;;  %6855 = vmatprep.subr.bf16.mxu0 %v12628_v43  ;;  %v7879_v35 = vld [vmem:[%s12590_s2 + $0x5c0] ss:$72 sps:$4 sm:$0xff]   ;;  %v7887_v16 = vld [vmem:[%s12590_s2 + $0x654] ss:$72 sps:$4 sm:$0xff]  }
 0x241   :  { %v5600_v17 = vpop.f32.mrf.mxu0  ;;  %v10817_v47 = vpop.permute.xlu1 %1948 }
 0x242   :  { %12637 = vst [vmem:[#allocation18_spill] sm:$0xff] %v10814_v41  ;;  %v10820_v24 = vpop.permute.xlu0 %1943  ;;  %v5381_v62 = vpop.f32.mrf.mxu1  ;;  %6052 = vmatmul.mubr.bf16.gmra.mxu0 %v7867_v46 }
 0x243   :  { %v5603_v51 = vpop.f32.mrf.mxu0  ;;  %6059 = vmatprep.mubr.bf16.mxu0 %v7875_v3  ;;  %v5382_v38 = vadd.f32 %v5381_v62, %v12640_v11  ;;  %v12646_v3 = vld [vmem:[#allocation28_spill] sm:$0xff]  ;;  %v12648_v11 = vld [vmem:[#allocation30_spill] sm:$0xff] }
 0x244   :  { %v10828_v48 = vadd.f32 %v5603_v51, %v5379_v6  ;;  %v5383_v5 = vpop.f32.mrf.mxu1 }
 0x245   :  { %v5605_v19 = vpop.f32.mrf.mxu0  ;;  %v10834_v56 = vpop.permute.xlu1 %1778 }
 0x246   :  { %12639 = vst [vmem:[#allocation20_spill] sm:$0xff] %v10828_v48  ;;  %v5386_v58 = vpop.f32.mrf.mxu1  ;;  %5835 = vmatmul.mubr.bf16.gmra.mxu1 %v7870_v4  ;;  %v10839_v12 = vpop.permute.xlu0 %1773  ;;  %v7890_v4 = vld [vmem:[%s12590_s2 + $0x6dc] ss:$72 sps:$4 sm:$0xff]  }
 0x247   :  { %v5606_v1 = vpop.f32.mrf.mxu0  ;;  %5842 = vmatprep.mubr.bf16.mxu1 %v7878_v13  ;;  %v5387_v26 = vadd.f32 %v5386_v58, %v12642_v59 }
 0x248   :  { %v10841_v2 = vadd.f32 %v5606_v1, %v5382_v38  ;;  %v5388_v0 = vpop.f32.mrf.mxu1 }
 0x249   :  { %v5608_v28 = vpop.f32.mrf.mxu0  ;;  %v10852_v37 = vpop.permute.xlu1 %1938 }
 0x24a   :  { %12641 = vst [vmem:[#allocation22_spill] sm:$0xff] %v10841_v2  ;;  %v5389_v50 = vpop.f32.mrf.mxu1  ;;  %6060 = vmatmul.mubr.bf16.gmra.mxu0 %v7873_v25  ;;  %v10854_v7 = vpop.permute.xlu0 %1933  ;;  %v7885_v25 = vld [vmem:[%s12590_s2 + $0x650] ss:$72 sps:$4 sm:$0xff]  }
 0x24b   :  { %v5611_v57 = vpop.f32.mrf.mxu0  ;;  %6067 = vmatprep.mubr.bf16.mxu0 %v7881_v36  ;;  %v5390_v22 = vadd.f32 %v5389_v50, %v12644_v21  ;;  %v7893_v36 = vld [vmem:[%s12590_s2 + $0x6e4] ss:$72 sps:$4 sm:$0xff]  }
 0x24c   :  { %v10850_v33 = vadd.f32 %v5611_v57, %v5387_v26  ;;  %v5391_v40 = vpop.f32.mrf.mxu1  ;;  %v7896_v21 = vld [vmem:[%s12590_s2 + $0x76c] ss:$72 sps:$4 sm:$0xff]  }
 0x24d   :  { %v5613_v53 = vpop.f32.mrf.mxu0  ;;  %v10869_v6 = vpop.permute.xlu1 %1768  ;;  %v7888_v40 = vld [vmem:[%s12590_s2 + $0x6d8] ss:$72 sps:$4 sm:$0xff]  }
 0x24e   :  { %12643 = vst [vmem:[#allocation24_spill] sm:$0xff] %v10850_v33  ;;  %v5394_v55 = vpop.f32.mrf.mxu1  ;;  %5843 = vmatmul.mubr.bf16.gmra.mxu1 %v7876_v9  ;;  %v10874_v51 = vpop.permute.xlu0 %1763  ;;  %v12650_v9 = vld [vmem:[#allocation32_spill] sm:$0xff] }
 0x24f   :  { %v5614_v31 = vpop.f32.mrf.mxu0  ;;  %5850 = vmatprep.mubr.bf16.mxu1 %v7884_v42  ;;  %v5395_v61 = vadd.f32 %v5394_v55, %v12646_v3 }
 0x250   :  { %v10863_v29 = vadd.f32 %v5614_v31, %v5390_v22  ;;  %v5396_v46 = vpop.f32.mrf.mxu1  ;;  %v12652_v31 = vld [vmem:[#allocation34_spill] sm:$0xff] }
 0x251   :  { %v5616_v32 = vpop.f32.mrf.mxu0  ;;  %v10887_v59 = vpop.permute.xlu1 %1928 }
 0x252   :  { %12645 = vst [vmem:[#allocation26_spill] sm:$0xff] %v10863_v29  ;;  %v5397_v17 = vpop.f32.mrf.mxu1  ;;  %6068 = vmatmul.mubr.bf16.gmra.mxu0 %v7879_v35  ;;  %v10889_v50 = vpop.permute.xlu0 %1923  ;;  %v7891_v32 = vld [vmem:[%s12590_s2 + $0x6e0] ss:$72 sps:$4 sm:$0xff]  }
 0x253   :  { %v5619_v62 = vpop.f32.mrf.mxu0  ;;  %6075 = vmatprep.mubr.bf16.mxu0 %v7887_v16  ;;  %v5398_v38 = vadd.f32 %v5397_v17, %v12648_v11  ;;  %v7899_v17 = vld [vmem:[%s12590_s2 + $0x774] ss:$72 sps:$4 sm:$0xff]  }
 0x254   :  { %v10876_v13 = vadd.f32 %v5619_v62, %v5395_v61  ;;  %v5399_v5 = vpop.f32.mrf.mxu1 }
 0x255   :  { %v5621_v19 = vpop.f32.mrf.mxu0  ;;  %v10904_v3 = vpop.permute.xlu1 %1758 }
 0x256   :  { %12647 = vst [vmem:[#allocation28_spill] sm:$0xff] %v10876_v13  ;;  %v5402_v58 = vpop.f32.mrf.mxu1  ;;  %5851 = vmatmul.mubr.bf16.gmra.mxu1 %v7882_v20  ;;  %v10909_v20 = vpop.permute.xlu0 %1753  ;;  %v12654_v19 = vld [vmem:[#allocation2_spill] sm:$0xff] }
 0x257   :  { %v5622_v1 = vpop.f32.mrf.mxu0  ;;  %5858 = vmatprep.mubr.bf16.mxu1 %v7890_v4  ;;  %v5403_v57 = vadd.f32 %v5402_v58, %v12650_v9  ;;  %v7894_v58 = vld [vmem:[%s12590_s2 + $0x768] ss:$72 sps:$4 sm:$0xff]  }
 0x258   :  { %v10885_v0 = vadd.f32 %v5622_v1, %v5398_v38  ;;  %v5404_v28 = vpop.f32.mrf.mxu1  ;;  %v7902_v1 = vld [vmem:[%s12590_s2 + $0x7fc] ss:$72 sps:$4 sm:$0xff]  }
 0x259   :  { %v5624_v26 = vpop.f32.mrf.mxu0 }
 0x25a   :  { %12649 = vst [vmem:[#allocation30_spill] sm:$0xff] %v10885_v0  ;;  %v5405_v42 = vpop.f32.mrf.mxu1  ;;  %6076 = vmatmul.mubr.bf16.gmra.mxu0 %v7885_v25  ;;  %v10922_v26 = vpop.permute.xlu1 %1918 }
 0x25b   :  { %v5627_v53 = vpop.f32.mrf.mxu0  ;;  %6083 = vmatprep.mubr.bf16.mxu0 %v7893_v36  ;;  %v5406_v16 = vadd.f32 %v5405_v42, %v12652_v31  ;;  %v12656_v42 = vld [vmem:[#allocation3_spill] sm:$0xff] }
 0x25c   :  { %v10898_v22 = vadd.f32 %v5627_v53, %v5403_v57  ;;  %v5407_v55 = vpop.f32.mrf.mxu1  ;;  %v10924_v57 = vpop.permute.xlu0 %1913 }
 0x25d   :  { %v5629_v35 = vpop.f32.mrf.mxu0 }
 0x25e   :  { %12651 = vst [vmem:[#allocation32_spill] sm:$0xff] %v10898_v22  ;;  %v5410_v46 = vpop.f32.mrf.mxu1  ;;  %5859 = vmatmul.mubr.bf16.gmra.mxu1 %v7888_v40  ;;  %v7905_v35 = vld [vmem:[%s12590_s2 + $0x804] ss:$72 sps:$4 sm:$0xff]  }
 0x25f   :  { %v5630_v61 = vpop.f32.mrf.mxu0  ;;  %5866 = vmatprep.mubr.bf16.mxu1 %v7896_v21  ;;  %v5411_v11 = vadd.f32 %v5410_v46, %v12654_v19  ;;  %v7897_v21 = vld [vmem:[%s12590_s2 + $0x770] ss:$72 sps:$4 sm:$0xff]  }
 0x260   :  { %v10911_v62 = vadd.f32 %v5630_v61, %v5406_v16  ;;  %v5412_v4 = vpop.f32.mrf.mxu1 }
 0x261   :  { %v5632_v5 = vpop.f32.mrf.mxu0  ;;  %v7900_v4 = vld [vmem:[%s12590_s2 + $0x7f8] ss:$72 sps:$4 sm:$0xff]  }
 0x262   :  { %12653 = vst [vmem:[#allocation34_spill] sm:$0xff] %v10911_v62  ;;  %v5413_v38 = vpop.f32.mrf.mxu1  ;;  %6084 = vmatmul.mubr.bf16.gmra.mxu0 %v7891_v32  ;;  %v12658_v32 = vld [vmem:[#allocation4_spill] sm:$0xff]  ;;  %v10939_v5 = vpop.permute.xlu1 %1748 }
 0x263   :  { %v5635_v25 = vpop.f32.mrf.mxu0  ;;  %6091 = vmatprep.mubr.bf16.mxu0 %v7899_v17  ;;  %v5414_v40 = vadd.f32 %v5413_v38, %v12656_v42  ;;  %v10944_v38 = vpop.permute.xlu0 %1743 }
 0x264   :  { %v10920_v36 = vadd.f32 %v5635_v25, %v5411_v11  ;;  %v5415_v28 = vpop.f32.mrf.mxu1  ;;  %v7908_v11 = vld [vmem:[%s12590_s2 + $0x88c] ss:$72 sps:$4 sm:$0xff]  }
 0x265   :  { %v5637_v9 = vpop.f32.mrf.mxu0  ;;  %v12660_v28 = vld [vmem:[#allocation5_spill] sm:$0xff] }
 0x266   :  { %12655 = vst [vmem:[#allocation2_spill] sm:$0xff] %v10920_v36  ;;  %v5418_v53 = vpop.f32.mrf.mxu1  ;;  %5867 = vmatmul.mubr.bf16.gmra.mxu1 %v7894_v58 }
 0x267   :  { %v5638_v55 = vpop.f32.mrf.mxu0  ;;  %5874 = vmatprep.mubr.bf16.mxu1 %v7902_v1  ;;  %v5419_v61 = vadd.f32 %v5418_v53, %v12658_v32  ;;  %v10959_v32 = vpop.permute.xlu0 %1903 }
 0x268   :  { %v10933_v31 = vadd.f32 %v5638_v55, %v5414_v40  ;;  %v5420_v16 = vpop.f32.mrf.mxu1  ;;  %v7903_v40 = vld [vmem:[%s12590_s2 + $0x800] ss:$72 sps:$4 sm:$0xff]  }
 0x269   :  { %v5640_v46 = vpop.f32.mrf.mxu0  ;;  %v10957_v16 = vpop.permute.xlu1 %1908 }
 0x26a   :  { %12657 = vst [vmem:[#allocation3_spill] sm:$0xff] %v10933_v31  ;;  %v5421_v17 = vpop.f32.mrf.mxu1  ;;  %6092 = vmatmul.mubr.bf16.gmra.mxu0 %v7897_v21  ;;  %v7911_v21 = vld [vmem:[%s12590_s2 + $0x894] ss:$72 sps:$4 sm:$0xff]  }
 0x26b   :  { %v5643_v19 = vpop.f32.mrf.mxu0  ;;  %6099 = vmatprep.mubr.bf16.mxu0 %v7905_v35  ;;  %v5422_v9 = vadd.f32 %v5421_v17, %v12660_v28 }
 0x26c   :  { %v10946_v58 = vadd.f32 %v5643_v19, %v5419_v61  ;;  %v5423_v25 = vpop.f32.mrf.mxu1  ;;  %v12662_v61 = vld [vmem:[#allocation6_spill] sm:$0xff]  ;;  %v7906_v19 = vld [vmem:[%s12590_s2 + $0x888] ss:$72 sps:$4 sm:$0xff]  }
 0x26d   :  { %v5645_v1 = vpop.f32.mrf.mxu0  ;;  %v7914_v25 = vld [vmem:[%s12590_s2 + $0x91c] ss:$72 sps:$4 sm:$0xff]  }
 0x26e   :  { %12659 = vst [vmem:[#allocation4_spill] sm:$0xff] %v10946_v58  ;;  %v5426_v42 = vpop.f32.mrf.mxu1  ;;  %5875 = vmatmul.mubr.bf16.gmra.mxu1 %v7900_v4 }
 0x26f   :  { %v5646_v53 = vpop.f32.mrf.mxu0  ;;  %5882 = vmatprep.mubr.bf16.mxu1 %v7908_v11  ;;  %v5427_v17 = vadd.f32 %v5426_v42, %v12662_v61  ;;  %v7909_v42 = vld [vmem:[%s12590_s2 + $0x890] ss:$72 sps:$4 sm:$0xff]  }
 0x270   :  { %v10955_v55 = vadd.f32 %v5646_v53, %v5422_v9  ;;  %v5428_v35 = vpop.f32.mrf.mxu1  ;;  %v12664_v53 = vld [vmem:[#allocation7_spill] sm:$0xff] }
 0x271   :  { %v5648_v46 = vpop.f32.mrf.mxu0 }
 0x272   :  { %12661 = vst [vmem:[#allocation5_spill] sm:$0xff] %v10955_v55  ;;  %v5429_v4 = vpop.f32.mrf.mxu1  ;;  %6100 = vmatmul.mubr.bf16.gmra.mxu0 %v7903_v40  ;;  %v10974_v40 = vpop.permute.xlu1 %1738 }
 0x273   :  { %v5651_v11 = vpop.f32.mrf.mxu0  ;;  %6107 = vmatprep.mubr.bf16.mxu0 %v7911_v21  ;;  %v5430_v35 = vadd.f32 %v5429_v4, %v12664_v53  ;;  %v7917_v21 = vld [vmem:[%s12590_s2 + $0x924] ss:$72 sps:$4 sm:$0xff]  }
 0x274   :  { %v10968_v1 = vadd.f32 %v5651_v11, %v5427_v17  ;;  %v5431_v28 = vpop.f32.mrf.mxu1  ;;  %v10979_v17 = vpop.permute.xlu0 %1733 }
 0x275   :  { %v5653_v9 = vpop.f32.mrf.mxu0 }
 0x276   :  { %12663 = vst [vmem:[#allocation6_spill] sm:$0xff] %v10968_v1  ;;  %v5434_v46 = vpop.f32.mrf.mxu1  ;;  %5883 = vmatmul.mubr.bf16.gmra.mxu1 %v7906_v19  ;;  %v12666_v9 = vld [vmem:[#allocation8_spill] sm:$0xff]  ;;  %v7912_v1 = vld [vmem:[%s12590_s2 + $0x918] ss:$72 sps:$4 sm:$0xff]  }
 0x277   :  { %v5654_v61 = vpop.f32.mrf.mxu0  ;;  %5890 = vmatprep.mubr.bf16.mxu1 %v7914_v25  ;;  %v5435_v19 = vadd.f32 %v5434_v46, %v12666_v9  ;;  %v7920_v25 = vld [vmem:[%s12590_s2 + $0x9ac] ss:$72 sps:$4 sm:$0xff]   ;;  %v12668_v46 = vld [vmem:[#allocation9_spill] sm:$0xff] }
 0x278   :  { %v10981_v11 = vadd.f32 %v5654_v61, %v5430_v35  ;;  %v5436_v28 = vpop.f32.mrf.mxu1  ;;  %v10992_v61 = vpop.permute.xlu1 %1898 }
 0x279   :  { %v5656_v4 = vpop.f32.mrf.mxu0 }
 0x27a   :  { %12665 = vst [vmem:[#allocation7_spill] sm:$0xff] %v10981_v11  ;;  %v5437_v53 = vpop.f32.mrf.mxu1  ;;  %6108 = vmatmul.mubr.bf16.gmra.mxu0 %v7909_v42  ;;  %v10994_v4 = vpop.permute.xlu0 %1893 }
 0x27b   :  { %v5659_v55 = vpop.f32.mrf.mxu0  ;;  %6115 = vmatprep.mubr.bf16.mxu0 %v7917_v21  ;;  %v5438_v42 = vadd.f32 %v5437_v53, %v12668_v46  ;;  %v7915_v21 = vld [vmem:[%s12590_s2 + $0x920] ss:$72 sps:$4 sm:$0xff]  }
 0x27c   :  { %v10990_v58 = vadd.f32 %v5659_v55, %v5435_v19  ;;  %v5439_v35 = vpop.f32.mrf.mxu1  ;;  %v7923_v55 = vld [vmem:[%s12590_s2 + $0x9b4] ss:$72 sps:$4 sm:$0xff]   ;;  %v11009_v53 = vpop.permute.xlu1 %1728 }
 0x27d   :  { %v5661_v28 = vpop.f32.mrf.mxu0 }
 0x27e   :  { %12667 = vst [vmem:[#allocation8_spill] sm:$0xff] %v10990_v58  ;;  %v5442_v9 = vpop.f32.mrf.mxu1  ;;  %5891 = vmatmul.mubr.bf16.gmra.mxu1 %v7912_v1  ;;  %v12670_v58 = vld [vmem:[#allocation10_spill] sm:$0xff]  ;;  %v7918_v1 = vld [vmem:[%s12590_s2 + $0x9a8] ss:$72 sps:$4 sm:$0xff]  }
 0x27f   :  { %v5662_v11 = vpop.f32.mrf.mxu0  ;;  %5898 = vmatprep.mubr.bf16.mxu1 %v7920_v25  ;;  %v5443_v31 = vadd.f32 %v5442_v9, %v12670_v58  ;;  %v7926_v25 = vld [vmem:[%s12590_s2 + $0xa3c] ss:$72 sps:$4 sm:$0xff]   ;;  %v12672_v9 = vld [vmem:[#allocation11_spill] sm:$0xff] }
 0x280   :  { %v11003_v19 = vadd.f32 %v5662_v11, %v5438_v42  ;;  %v5444_v35 = vpop.f32.mrf.mxu1  ;;  %v11014_v11 = vpop.permute.xlu0 %1723 }
 0x281   :  { %v5664_v28 = vpop.f32.mrf.mxu0 }
 0x282   :  { %12669 = vst [vmem:[#allocation9_spill] sm:$0xff] %v11003_v19  ;;  %v5445_v36 = vpop.f32.mrf.mxu1  ;;  %6116 = vmatmul.mubr.bf16.gmra.mxu0 %v7915_v21  ;;  %v7921_v19 = vld [vmem:[%s12590_s2 + $0x9b0] ss:$72 sps:$4 sm:$0xff]  }
 0x283   :  { %v5667_v46 = vpop.f32.mrf.mxu0  ;;  %6123 = vmatprep.mubr.bf16.mxu0 %v7923_v55  ;;  %v5446_v21 = vadd.f32 %v5445_v36, %v12672_v9  ;;  %v7929_v55 = vld [vmem:[%s12590_s2 + $0xa44] ss:$72 sps:$4 sm:$0xff]   ;;  %v12674_v36 = vld [vmem:[#allocation12_spill] sm:$0xff] }
 0x284   :  { %v11016_v42 = vadd.f32 %v5667_v46, %v5443_v31  ;;  %v5447_v35 = vpop.f32.mrf.mxu1  ;;  %v11027_v46 = vpop.permute.xlu1 %1888 }
 0x285   :  { %v5669_v58 = vpop.f32.mrf.mxu0 }
 0x286   :  { %12671 = vst [vmem:[#allocation10_spill] sm:$0xff] %v11016_v42  ;;  %v5450_v28 = vpop.f32.mrf.mxu1  ;;  %5899 = vmatmul.mubr.bf16.gmra.mxu1 %v7918_v1  ;;  %v11029_v58 = vpop.permute.xlu0 %1883 }
 0x287   :  { %v5670_v62 = vpop.f32.mrf.mxu0  ;;  %5906 = vmatprep.mubr.bf16.mxu1 %v7926_v25  ;;  %v5451_v1 = vadd.f32 %v5450_v28, %v12674_v36  ;;  %v7924_v25 = vld [vmem:[%s12590_s2 + $0xa38] ss:$72 sps:$4 sm:$0xff]  }
 0x288   :  { %v11025_v22 = vadd.f32 %v5670_v62, %v5446_v21  ;;  %v5452_v31 = vpop.f32.mrf.mxu1  ;;  %v7932_v62 = vld [vmem:[%s12590_s2 + $0xacc] ss:$72 sps:$4 sm:$0xff]   ;;  %v11044_v28 = vpop.permute.xlu1 %1718 }
 0x289   :  { %v5672_v35 = vpop.f32.mrf.mxu0 }
 0x28a   :  { %12673 = vst [vmem:[#allocation11_spill] sm:$0xff] %v11025_v22  ;;  %v5453_v9 = vpop.f32.mrf.mxu1  ;;  %6124 = vmatmul.mubr.bf16.gmra.mxu0 %v7921_v19  ;;  %v12676_v22 = vld [vmem:[#allocation13_spill] sm:$0xff]  ;;  %v7927_v19 = vld [vmem:[%s12590_s2 + $0xa40] ss:$72 sps:$4 sm:$0xff]  }
 0x28b   :  { %v5675_v42 = vpop.f32.mrf.mxu0  ;;  %6131 = vmatprep.mubr.bf16.mxu0 %v7929_v55  ;;  %v5454_v0 = vadd.f32 %v5453_v9, %v12676_v22  ;;  %v7935_v55 = vld [vmem:[%s12590_s2 + $0xad4] ss:$72 sps:$4 sm:$0xff]   ;;  %v12678_v9 = vld [vmem:[#allocation14_spill] sm:$0xff] }
 0x28c   :  { %v11038_v21 = vadd.f32 %v5675_v42, %v5451_v1  ;;  %v5455_v31 = vpop.f32.mrf.mxu1  ;;  %v11049_v42 = vpop.permute.xlu0 %1713 }
 0x28d   :  { %v5677_v35 = vpop.f32.mrf.mxu0 }
 0x28e   :  { %12675 = vst [vmem:[#allocation12_spill] sm:$0xff] %v11038_v21  ;;  %v5458_v13 = vpop.f32.mrf.mxu1  ;;  %5907 = vmatmul.mubr.bf16.gmra.mxu1 %v7924_v25  ;;  %v7930_v21 = vld [vmem:[%s12590_s2 + $0xac8] ss:$72 sps:$4 sm:$0xff]  }
 0x28f   :  { %v5678_v36 = vpop.f32.mrf.mxu0  ;;  %5914 = vmatprep.mubr.bf16.mxu1 %v7932_v62  ;;  %v5459_v25 = vadd.f32 %v5458_v13, %v12678_v9  ;;  %v7938_v62 = vld [vmem:[%s12590_s2 + $0xb5c] ss:$72 sps:$4 sm:$0xff]   ;;  %v12680_v13 = vld [vmem:[#allocation15_spill] sm:$0xff] }
 0x290   :  { %v11051_v1 = vadd.f32 %v5678_v36, %v5454_v0  ;;  %v5460_v31 = vpop.f32.mrf.mxu1  ;;  %v11062_v36 = vpop.permute.xlu1 %1878 }
 0x291   :  { %v5680_v22 = vpop.f32.mrf.mxu0 }
 0x292   :  { %12677 = vst [vmem:[#allocation13_spill] sm:$0xff] %v11051_v1  ;;  %v5461_v35 = vpop.f32.mrf.mxu1  ;;  %6132 = vmatmul.mubr.bf16.gmra.mxu0 %v7927_v19  ;;  %v11064_v22 = vpop.permute.xlu0 %1873 }
 0x293   :  { %v5683_v29 = vpop.f32.mrf.mxu0  ;;  %6139 = vmatprep.mubr.bf16.mxu0 %v7935_v55  ;;  %v5462_v19 = vadd.f32 %v5461_v35, %v12680_v13  ;;  %v7933_v55 = vld [vmem:[%s12590_s2 + $0xad0] ss:$72 sps:$4 sm:$0xff]  }
 0x294   :  { %v11060_v33 = vadd.f32 %v5683_v29, %v5459_v25  ;;  %v5463_v0 = vpop.f32.mrf.mxu1  ;;  %v7941_v29 = vld [vmem:[%s12590_s2 + $0xb64] ss:$72 sps:$4 sm:$0xff]   ;;  %v11079_v35 = vpop.permute.xlu1 %1868 }
 0x295   :  { %v5685_v31 = vpop.f32.mrf.mxu0 }
 0x296   :  { %12679 = vst [vmem:[#allocation14_spill] sm:$0xff] %v11060_v33  ;;  %v5466_v9 = vpop.f32.mrf.mxu1  ;;  %5915 = vmatmul.mubr.bf16.gmra.mxu1 %v7930_v21  ;;  %v12682_v33 = vld [vmem:[#allocation16_spill] sm:$0xff]  ;;  %v7936_v21 = vld [vmem:[%s12590_s2 + $0xb58] ss:$72 sps:$4 sm:$0xff]  }
 0x297   :  { %v5686_v1 = vpop.f32.mrf.mxu0  ;;  %5922 = vmatprep.mubr.bf16.mxu1 %v7938_v62  ;;  %v5467_v2 = vadd.f32 %v5466_v9, %v12682_v33  ;;  %v7944_v62 = vld [vmem:[%s12590_s2 + $0xbec] ss:$72 sps:$4 sm:$0xff]   ;;  %v12684_v9 = vld [vmem:[#allocation17_spill] sm:$0xff] }
 0x298   :  { %v11073_v25 = vadd.f32 %v5686_v1, %v5462_v19  ;;  %v5468_v0 = vpop.f32.mrf.mxu1  ;;  %v11084_v1 = vpop.permute.xlu0 %1863 }
 0x299   :  { %v5688_v31 = vpop.f32.mrf.mxu0 }
 0x29a   :  { %12681 = vst [vmem:[#allocation15_spill] sm:$0xff] %v11073_v25  ;;  %v5469_v48 = vpop.f32.mrf.mxu1  ;;  %6140 = vmatmul.mubr.bf16.gmra.mxu0 %v7933_v55  ;;  %v7939_v25 = vld [vmem:[%s12590_s2 + $0xb60] ss:$72 sps:$4 sm:$0xff]  }
 0x29b   :  { %v5691_v13 = vpop.f32.mrf.mxu0  ;;  %6147 = vmatprep.mubr.bf16.mxu0 %v7941_v29  ;;  %v5470_v55 = vadd.f32 %v5469_v48, %v12684_v9  ;;  %v7947_v29 = vld [vmem:[%s12590_s2 + $0xbf4] ss:$72 sps:$4 sm:$0xff]   ;;  %v12686_v48 = vld [vmem:[#allocation19_spill] sm:$0xff] }
 0x29c   :  { %v11086_v19 = vadd.f32 %v5691_v13, %v5467_v2  ;;  %v5471_v0 = vpop.f32.mrf.mxu1  ;;  %v11097_v13 = vpop.permute.xlu1 %2028 }
 0x29d   :  { %v5693_v33 = vpop.f32.mrf.mxu0 }
 0x29e   :  { %12683 = vst [vmem:[#allocation16_spill] sm:$0xff] %v11086_v19  ;;  %v5474_v31 = vpop.f32.mrf.mxu1  ;;  %5923 = vmatmul.mubr.bf16.gmra.mxu1 %v7936_v21  ;;  %v11099_v33 = vpop.permute.xlu0 %2023 }
 0x29f   :  { %v5694_v41 = vpop.f32.mrf.mxu0  ;;  %5930 = vmatprep.mubr.bf16.mxu1 %v7944_v62  ;;  %v5475_v21 = vadd.f32 %v5474_v31, %v12686_v48  ;;  %v7942_v62 = vld [vmem:[%s12590_s2 + $0xbe8] ss:$72 sps:$4 sm:$0xff]  }
 0x2a0   :  { %v11095_v30 = vadd.f32 %v5694_v41, %v5470_v55  ;;  %v5476_v2 = vpop.f32.mrf.mxu1  ;;  %v7950_v41 = vld [vmem:[%s12590_s2 + $0xc7c] ss:$72 sps:$4 sm:$0xff]   ;;  %v11114_v31 = vpop.permute.xlu1 %1858 }
 0x2a1   :  { %v5696_v0 = vpop.f32.mrf.mxu0 }
 0x2a2   :  { %12685 = vst [vmem:[#allocation17_spill] sm:$0xff] %v11095_v30  ;;  %v5477_v9 = vpop.f32.mrf.mxu1  ;;  %6148 = vmatmul.mubr.bf16.gmra.mxu0 %v7939_v25  ;;  %v12688_v30 = vld [vmem:[#allocation21_spill] sm:$0xff] }
 0x2a3   :  { %v5699_v19 = vpop.f32.mrf.mxu0  ;;  %6155 = vmatprep.mubr.bf16.mxu0 %v7947_v29  ;;  %v5478_v60 = vadd.f32 %v5477_v9, %v12688_v30  ;;  %v7945_v25 = vld [vmem:[%s12590_s2 + $0xbf0] ss:$72 sps:$4 sm:$0xff]   ;;  %v7953_v29 = vld [vmem:[%s12590_s2 + $0xc84] ss:$72 sps:$4 sm:$0xff]  }
 0x2a4   :  { %v11108_v55 = vadd.f32 %v5699_v19, %v5475_v21  ;;  %v5479_v2 = vpop.f32.mrf.mxu1  ;;  %v11119_v19 = vpop.permute.xlu0 %1853  ;;  %v12691_v9 = vld [vmem:[#allocation23_spill] sm:$0xff] }
 0x2a5   :  { %v5701_v0 = vpop.f32.mrf.mxu0  ;;  %12689 = vst [vmem:[#allocation21_spill] sm:$0xff] %v11119_v19  ;;  %v283_v19 = vld [vmem:[%s12591_s0 + $0x860] sm:$0xff] }
 0x2a6   :  { %12687 = vst [vmem:[#allocation19_spill] sm:$0xff] %v11108_v55  ;;  %v5482_v49 = vpop.f32.mrf.mxu1  ;;  %5931 = vmatmul.mubr.bf16.gmra.mxu1 %v7942_v62  ;;  %v7948_v55 = vld [vmem:[%s12590_s2 + $0xc78] ss:$72 sps:$4 sm:$0xff]  }
 0x2a7   :  { %v5702_v48 = vpop.f32.mrf.mxu0  ;;  %5938 = vmatprep.mubr.bf16.mxu1 %v7950_v41  ;;  %v5483_v62 = vadd.f32 %v5482_v49, %v12691_v9  ;;  %v7956_v41 = vld [vmem:[%s12590_s2 + $0xd0c] ss:$72 sps:$4 sm:$0xff]   ;;  %v12695_v49 = vld [vmem:[#allocation25_spill] sm:$0xff] }
 0x2a8   :  { %v11121_v21 = vadd.f32 %v5702_v48, %v5478_v60  ;;  %v5484_v2 = vpop.f32.mrf.mxu1  ;;  %v11132_v48 = vpop.permute.xlu1 %2018 }
 0x2a9   :  { %v5704_v30 = vpop.f32.mrf.mxu0  ;;  %12693 = vst [vmem:[#allocation43_spill] sm:$0xff] %v11132_v48 }
 0x2aa   :  { %12690 = vst [vmem:[#allocation42_spill] sm:$0xff] %v11121_v21  ;;  %v5485_v0 = vpop.f32.mrf.mxu1  ;;  %6156 = vmatmul.mubr.bf16.gmra.mxu0 %v7945_v25  ;;  %v11134_v30 = vpop.permute.xlu0 %2013 }
 0x2ab   :  { %v5707_v63 = vpop.f32.mrf.mxu0  ;;  %6163 = vmatprep.mubr.bf16.mxu0 %v7953_v29  ;;  %12694 = vst [vmem:[#allocation44_spill] sm:$0xff] %v11134_v30  ;;  %v5486_v25 = vadd.f32 %v5485_v0, %v12695_v49  ;;  %v7951_v29 = vld [vmem:[%s12590_s2 + $0xc80] ss:$72 sps:$4 sm:$0xff]  }
 0x2ac   :  { %v11130_v15 = vadd.f32 %v5707_v63, %v5483_v62  ;;  %v5487_v60 = vpop.f32.mrf.mxu1  ;;  %v7959_v63 = vld [vmem:[%s12590_s2 + $0xd14] ss:$72 sps:$4 sm:$0xff]   ;;  %v11149_v0 = vpop.permute.xlu1 %1848  ;;  %v284_v30 = vld [vmem:[%s12591_s0 + $0x868] sm:$0xff] }
 0x2ad   :  { %v5709_v2 = vpop.f32.mrf.mxu0 }
 0x2ae   :  { %12692 = vst [vmem:[#allocation23_spill] sm:$0xff] %v11130_v15  ;;  %v5490_v9 = vpop.f32.mrf.mxu1  ;;  %5939 = vmatmul.mubr.bf16.gmra.mxu1 %v7948_v55  ;;  %v12697_v15 = vld [vmem:[#allocation27_spill] sm:$0xff] }
 0x2af   :  { %v5710_v21 = vpop.f32.mrf.mxu0  ;;  %5946 = vmatprep.mubr.bf16.mxu1 %v7956_v41  ;;  %v5491_v23 = vadd.f32 %v5490_v9, %v12697_v15  ;;  %v7954_v55 = vld [vmem:[%s12590_s2 + $0xd08] ss:$72 sps:$4 sm:$0xff]   ;;  %12698 = vst [vmem:[#allocation27_spill] sm:$0xff] %v11149_v0  ;;  %v7962_v41 = vld [vmem:[%s12590_s2 + $0x2c] ss:$72 sps:$4 sm:$0xff]   ;;  %v254_v15 = vld [vmem:[%s12591_s0 + $0x778] sm:$0xff] }
 0x2b0   :  { %v11143_v62 = vadd.f32 %v5710_v21, %v5486_v25  ;;  %v5492_v60 = vpop.f32.mrf.mxu1  ;;  %v11154_v21 = vpop.permute.xlu0 %1843  ;;  %v253_v9 = vld [vmem:[%s12591_s0 + $0x770] sm:$0xff] }
 0x2b1   :  { %v5712_v2 = vpop.f32.mrf.mxu0  ;;  %12699 = vst [vmem:[#allocation45_spill] sm:$0xff] %v11154_v21  ;;  %v7957_v21 = vld [vmem:[%s12590_s2 + $0xd10] ss:$72 sps:$4 sm:$0xff]  }
 0x2b2   :  { %12696 = vst [vmem:[#allocation25_spill] sm:$0xff] %v11143_v62  ;;  %v5493_v52 = vpop.f32.mrf.mxu1  ;;  %6164 = vmatmul.mubr.bf16.gmra.mxu0 %v7951_v29  ;;  %v12701_v2 = vld [vmem:[#allocation29_spill] sm:$0xff] }
 0x2b3   :  { %v5715_v49 = vpop.f32.mrf.mxu0  ;;  %6171 = vmatprep.mubr.bf16.mxu0 %v7959_v63  ;;  %v5494_v63 = vadd.f32 %v5493_v52, %v12701_v2  ;;  %v286_v52 = vld [vmem:[%s12591_s0 + $0x878] sm:$0xff] }
 0x2b4   :  { %v11156_v25 = vadd.f32 %v5715_v49, %v5491_v23  ;;  %v5495_v60 = vpop.f32.mrf.mxu1  ;;  %v7965_v49 = vld [vmem:[%s12590_s2 + $0x34] ss:$72 sps:$4 sm:$0xff]  }
 0x2b5   :  { %v5717_v29 = vpop.f32.mrf.mxu0  ;;  %v2270_v60 = vmul.f32 %v10799_v10, %v254_v15  ;;  %v252_v10 = vld [vmem:[%s12591_s0 + $0x768] sm:$0xff]  ;;  %v11189_v15 = vpop.permute.xlu0 %2003 }
 0x2b6   :  { %12700 = vst [vmem:[#allocation46_spill] sm:$0xff] %v11156_v25  ;;  %v5498_v62 = vpop.f32.mrf.mxu1  ;;  %5947 = vmatmul.mubr.bf16.gmra.mxu1 %v7954_v55  ;;  %v2269_v25 = vmul.f32 %v10806_v54, %v253_v9  ;;  %v285_v55 = vld [vmem:[%s12591_s0 + $0x870] sm:$0xff]  ;;  %v251_v54 = vld [vmem:[%s12591_s0 + $0x760] sm:$0xff]  ;;  %12704 = vst [vmem:[#allocation48_spill] sm:$0xff] %v11189_v15  ;;  %v2268_v48 = vmul.f32 %v10834_v56, %v252_v10 }
 0x2b7   :  { %v5718_v23 = vpop.f32.mrf.mxu0  ;;  %6212 = vmatprep.mubr.bf16.mxu1 %v7962_v41  ;;  %v11181_v41 = vpop.permute.xlu1 %2008  ;;  %v12705_v9 = vld [vmem:[#allocation31_spill] sm:$0xff]  ;;  %v7963_v56 = vld [vmem:[%s12590_s2 + $0x30] ss:$72 sps:$4 sm:$0xff]  }
 0x2b8   :  { %v11173_v0 = vadd.f32 %v5718_v23, %v5494_v63  ;;  %v5500_v29 = vpop.f32.mrf.mxu1  ;;  %12703 = vst [vmem:[#allocation47_spill] sm:$0xff] %v11181_v41  ;;  %v5499_v63 = vadd.f32 %v5498_v62, %v12705_v9  ;;  %v2438_v41 = vpack.c.bf16 %v2270_v60, %v2269_v25  ;;  %v2301_v9 = vmul.f32 %v10820_v24, %v285_v55  ;;  %v250_v25 = vld [vmem:[%s12591_s0 + $0x758] sm:$0xff] }
 0x2b9   :  { %v5720_v2 = vpop.f32.mrf.mxu0  ;;  %v7960_v29 = vld [vmem:[%s12590_s2 + $0x28] ss:$72 sps:$4 sm:$0xff]  }
 0x2ba   :  { %12702 = vst [vmem:[#allocation29_spill] sm:$0xff] %v11173_v0  ;;  %v5501_v23 = vpop.f32.mrf.mxu1  ;;  %6172 = vmatmul.mubr.bf16.gmra.mxu0 %v7957_v21  ;;  %v7968_v2 = vld [vmem:[%s12590_s2 + $0xbc] ss:$72 sps:$4 sm:$0xff]   ;;  %v2302_v21 = vmul.f32 %v10817_v47, %v286_v52 }
 0x2bb   :  { %v5723_v0 = vpop.f32.mrf.mxu0  ;;  %6437 = vmatprep.mubr.bf16.mxu0 %v7965_v49  ;;  %v2267_v49 = vmul.f32 %v10839_v12, %v251_v54  ;;  %v12706_v47 = vld [vmem:[#allocation33_spill] sm:$0xff]  ;;  %v2300_v12 = vmul.f32 %v10852_v37, %v284_v30  ;;  %v11221_v55 = vpop.permute.xlu1 %1838 }
 0x2bc   :  { %v11201_v15 = vadd.f32 %v5723_v0, %v5499_v63  ;;  %v5503_v62 = vpop.f32.mrf.mxu1  ;;  %v249_v0 = vld [vmem:[%s12591_s0 + $0x750] sm:$0xff]  ;;  %v5502_v52 = vadd.f32 %v5501_v23, %v12706_v47  ;;  %v2299_v63 = vmul.f32 %v10854_v7, %v283_v19  ;;  %v2454_v37 = vpack.c.bf16 %v2302_v21, %v2301_v9  ;;  %v248_v19 = vld [vmem:[%s12591_s0 + $0x748] sm:$0xff] }
 0x2bd   :  { %v5725_v60 = vpop.f32.mrf.mxu0  ;;  %v2266_v62 = vmul.f32 %v10869_v6, %v250_v25  ;;  %v2265_v23 = vmul.f32 %v10874_v51, %v249_v0  ;;  %v2437_v30 = vpack.c.bf16 %v2268_v48, %v2267_v49  ;;  %v281_v7 = vld [vmem:[%s12591_s0 + $0x850] sm:$0xff]  ;;  %v7971_v51 = vld [vmem:[%s12590_s2 + $0xc4] ss:$72 sps:$4 sm:$0xff]  }
 0x2be   :  { %v5764_v24 = vpop.f32.mrf.mxu1  ;;  %6213 = vmatmul.mubr.bf16.vlgmr.msra.gmra.mxu1 %v7960_v29  ;;  %v11227_v29 = vpop.permute.xlu0 %1833  ;;  %v247_v48 = vld [vmem:[%s12591_s0 + $0x740] sm:$0xff]  ;;  %v2453_v49 = vpack.c.bf16 %v2300_v12, %v2299_v63  ;;  %v280_v0 = vld [vmem:[%s12591_s0 + $0x848] sm:$0xff]  ;;  %v2297_v12 = vmul.f32 %v10889_v50, %v281_v7 }
 0x2bf   :  { %v5726_v10 = vpop.f32.mrf.mxu0  ;;  %v5765_v54 = vadd.f32 %v5764_v24, %v10310_v18  ;;  %6631 = vmatpush1.bf16.msra.mxu1 %v2438_v41  ;;  %6220 = vmatprep.mubr.bf16.mxu1 %v7968_v2  ;;  %v282_v18 = vld [vmem:[%s12591_s0 + $0x858] sm:$0xff]  ;;  %v2436_v25 = vpack.c.bf16 %v2266_v62, %v2265_v23  ;;  %v2263_v63 = vmul.f32 %v10909_v20, %v247_v48  ;;  %v11271_v23 = vpop.permute.xlu1 %1998  ;;  %v7969_v20 = vld [vmem:[%s12590_s2 + $0xc0] ss:$72 sps:$4 sm:$0xff]  }
 0x2c0   :  { %v11229_v60 = vadd.f32 %v5726_v10, %v5502_v52  ;;  %v5766_v47 = vpop.f32.mrf.mxu1  ;;  %6632 = vmatprep.subr.bf16.mxu1 %v12628_v43  ;;  %v7966_v2 = vld [vmem:[%s12590_s2 + $0xb8] ss:$72 sps:$4 sm:$0xff]   ;;  %v2264_v10 = vmul.f32 %v10904_v3, %v248_v19 }
 0x2c1   :  { %v5728_v6 = vpop.f32.mrf.mxu0  ;;  %v279_v52 = vld [vmem:[%s12591_s0 + $0x840] sm:$0xff]  ;;  %v246_v62 = vld [vmem:[%s12591_s0 + $0x738] sm:$0xff] }
 0x2c2   :  { %v5767_v41 = vpop.f32.mrf.mxu1  ;;  %6438 = vmatmul.mubr.bf16.vlgmr.msra.gmra.mxu0 %v7963_v56  ;;  %v11276_v50 = vpop.permute.xlu0 %1993  ;;  %v2262_v6 = vmul.f32 %v10939_v5, %v246_v62 }
 0x2c3   :  { %v5768_v21 = vadd.f32 %v5767_v41, %v10352_v45  ;;  %v5989_v9 = vpop.f32.mrf.mxu0  ;;  %6633 = vmatpush1.bf16.msra.mxu1 %v2437_v30  ;;  %6856 = vmatpush1.bf16.msra.mxu0 %v2454_v37  ;;  %v2298_v45 = vmul.f32 %v10887_v59, %v282_v18  ;;  %v7974_v59 = vld [vmem:[%s12590_s2 + $0x14c] ss:$72 sps:$4 sm:$0xff]   ;;  %v2296_v37 = vmul.f32 %v10922_v26, %v280_v0 }
 0x2c4   :  { %v11257_v24 = vadd.f32 %v5989_v9, %v5765_v54  ;;  %v5769_v56 = vpop.f32.mrf.mxu1  ;;  %6634 = vmatprep.subr.bf16.mxu1 %v12628_v43  ;;  %6857 = vmatprep.subr.bf16.mxu0 %v12628_v43  ;;  %v245_v54 = vld [vmem:[%s12591_s0 + $0x730] sm:$0xff]  ;;  %v2295_v30 = vmul.f32 %v10924_v57, %v279_v52  ;;  %v2435_v26 = vpack.c.bf16 %v2264_v10, %v2263_v63  ;;  %v275_v10 = vld [vmem:[%s12591_s0 + $0x820] sm:$0xff] }
 0x2c5   :  { %v5991_v47 = vpop.f32.mrf.mxu0  ;;  %6445 = vmatprep.mubr.bf16.mxu0 %v7971_v51  ;;  %v2261_v51 = vmul.f32 %v10944_v38, %v245_v54  ;;  %v2452_v41 = vpack.c.bf16 %v2298_v45, %v2297_v12  ;;  %v277_v57 = vld [vmem:[%s12591_s0 + $0x830] sm:$0xff]  ;;  %v276_v12 = vld [vmem:[%s12591_s0 + $0x828] sm:$0xff] }
 0x2c6   :  { %v5772_v3 = vpop.f32.mrf.mxu1  ;;  %6221 = vmatmul.mubr.bf16.gmra.mxu1 %v7966_v2  ;;  %v7977_v38 = vld [vmem:[%s12590_s2 + $0x154] ss:$72 sps:$4 sm:$0xff]   ;;  %v244_v2 = vld [vmem:[%s12591_s0 + $0x728] sm:$0xff]  ;;  %v2451_v56 = vpack.c.bf16 %v2296_v37, %v2295_v30  ;;  %v11317_v63 = vpop.permute.xlu0 %1823  ;;  %v2293_v47 = vmul.f32 %v10959_v32, %v277_v57  ;;  %v7975_v32 = vld [vmem:[%s12590_s2 + $0x150] ss:$72 sps:$4 sm:$0xff]  }
 0x2c7   :  { %v5773_v18 = vadd.f32 %v5772_v3, %v10390_v44  ;;  %v5992_v7 = vpop.f32.mrf.mxu0  ;;  %6635 = vmatpush1.bf16.msra.mxu1 %v2436_v25  ;;  %6858 = vmatpush1.bf16.msra.mxu0 %v2453_v49  ;;  %v278_v44 = vld [vmem:[%s12591_s0 + $0x838] sm:$0xff]  ;;  %v7972_v49 = vld [vmem:[%s12590_s2 + $0x148] ss:$72 sps:$4 sm:$0xff]   ;;  %v11308_v25 = vpop.permute.xlu1 %1828  ;;  %v2434_v45 = vpack.c.bf16 %v2262_v6, %v2261_v51  ;;  %v7983_v57 = vld [vmem:[%s12590_s2 + $0x1e4] ss:$72 sps:$4 sm:$0xff]  }
 0x2c8   :  { %v11286_v19 = vadd.f32 %v5992_v7, %v5768_v21  ;;  %v5774_v48 = vpop.f32.mrf.mxu1  ;;  %6636 = vmatprep.subr.bf16.mxu1 %v12628_v43  ;;  %6859 = vmatprep.subr.bf16.mxu0 %v12628_v43  ;;  %v243_v21 = vld [vmem:[%s12591_s0 + $0x720] sm:$0xff]  ;;  %v241_v37 = vld [vmem:[%s12591_s0 + $0x710] sm:$0xff] }
 0x2c9   :  { %v5994_v5 = vpop.f32.mrf.mxu0  ;;  %6228 = vmatprep.mubr.bf16.mxu1 %v7974_v59  ;;  %v2260_v59 = vmul.f32 %v10974_v40, %v244_v2  ;;  %v2259_v3 = vmul.f32 %v10979_v17, %v243_v21  ;;  %v2292_v40 = vmul.f32 %v10992_v61, %v276_v12  ;;  %v2291_v17 = vmul.f32 %v10994_v4, %v275_v10  ;;  %v273_v4 = vld [vmem:[%s12591_s0 + $0x810] sm:$0xff]  ;;  %v271_v12 = vld [vmem:[%s12591_s0 + $0x800] sm:$0xff] }
 0x2ca   :  { %v5775_v9 = vpop.f32.mrf.mxu1  ;;  %6446 = vmatmul.mubr.bf16.gmra.mxu0 %v7969_v20  ;;  %v242_v20 = vld [vmem:[%s12591_s0 + $0x718] sm:$0xff]  ;;  %v2257_v48 = vmul.f32 %v11014_v11, %v241_v37  ;;  %v240_v5 = vld [vmem:[%s12591_s0 + $0x708] sm:$0xff]  ;;  %v11365_v2 = vpop.permute.xlu0 %1983 }
 0x2cb   :  { %v5776_v0 = vadd.f32 %v5775_v9, %v10432_v39  ;;  %v5997_v52 = vpop.f32.mrf.mxu0  ;;  %6637 = vmatpush1.bf16.msra.mxu1 %v2435_v26  ;;  %6860 = vmatpush1.bf16.msra.mxu0 %v2452_v41  ;;  %v2294_v39 = vmul.f32 %v10957_v16, %v278_v44  ;;  %v7980_v16 = vld [vmem:[%s12590_s2 + $0x1dc] ss:$72 sps:$4 sm:$0xff]   ;;  %v2258_v51 = vmul.f32 %v11009_v53, %v242_v20  ;;  %v11354_v53 = vpop.permute.xlu1 %1988  ;;  %v7978_v9 = vld [vmem:[%s12590_s2 + $0x1d8] ss:$72 sps:$4 sm:$0xff]   ;;  %v269_v20 = vld [vmem:[%s12591_s0 + $0x7f0] sm:$0xff] }
 0x2cc   :  { %v11319_v62 = vadd.f32 %v5997_v52, %v5773_v18  ;;  %v5777_v54 = vpop.f32.mrf.mxu1  ;;  %6638 = vmatprep.subr.bf16.mxu1 %v12628_v43  ;;  %6861 = vmatprep.subr.bf16.mxu0 %v12628_v43  ;;  %v2433_v61 = vpack.c.bf16 %v2260_v59, %v2259_v3  ;;  %v2449_v52 = vpack.c.bf16 %v2292_v40, %v2291_v17  ;;  %v270_v3 = vld [vmem:[%s12591_s0 + $0x7f8] sm:$0xff] }
 0x2cd   :  { %v5999_v30 = vpop.f32.mrf.mxu0  ;;  %6453 = vmatprep.mubr.bf16.mxu0 %v7977_v38  ;;  %v2450_v44 = vpack.c.bf16 %v2294_v39, %v2293_v47  ;;  %v239_v38 = vld [vmem:[%s12591_s0 + $0x700] sm:$0xff]  ;;  %v2289_v39 = vmul.f32 %v11029_v58, %v273_v4  ;;  %v2256_v47 = vmul.f32 %v11044_v28, %v240_v5  ;;  %v2286_v40 = vmul.f32 %v11079_v35, %v270_v3  ;;  %v301_v35 = vld [vmem:[%s12591_s0 + $0x8f0] sm:$0xff] }
 0x2ce   :  { %v5780_v18 = vpop.f32.mrf.mxu1  ;;  %6229 = vmatmul.mubr.bf16.gmra.mxu1 %v7972_v49  ;;  %v2255_v59 = vmul.f32 %v11049_v42, %v239_v38  ;;  %v7981_v58 = vld [vmem:[%s12590_s2 + $0x1e0] ss:$72 sps:$4 sm:$0xff]   ;;  %v2287_v42 = vmul.f32 %v11064_v22, %v271_v12  ;;  %v2285_v17 = vmul.f32 %v11084_v1, %v269_v20  ;;  %v266_v12 = vld [vmem:[%s12591_s0 + $0x7d8] sm:$0xff]  ;;  %v12709_v20 = vld [vmem:[#allocation44_spill] sm:$0xff] }
 0x2cf   :  { %v5781_v7 = vadd.f32 %v5780_v18, %v10470_v8  ;;  %v6000_v6 = vpop.f32.mrf.mxu0  ;;  %6639 = vmatpush1.bf16.msra.mxu1 %v2434_v45  ;;  %6862 = vmatpush1.bf16.msra.mxu0 %v2451_v56  ;;  %v274_v8 = vld [vmem:[%s12591_s0 + $0x818] sm:$0xff]  ;;  %v2432_v56 = vpack.c.bf16 %v2258_v51, %v2257_v48  ;;  %v272_v45 = vld [vmem:[%s12591_s0 + $0x808] sm:$0xff] }
 0x2d0   :  { %v11344_v41 = vadd.f32 %v6000_v6, %v5776_v0  ;;  %v5782_v26 = vpop.f32.mrf.mxu1  ;;  %6640 = vmatprep.subr.bf16.mxu1 %v12628_v43  ;;  %6863 = vmatprep.subr.bf16.mxu0 %v12628_v43  ;;  %v2288_v28 = vmul.f32 %v11062_v36, %v272_v45  ;;  %v2431_v22 = vpack.c.bf16 %v2256_v47, %v2255_v59  ;;  %v7989_v48 = vld [vmem:[%s12590_s2 + $0x274] ss:$72 sps:$4 sm:$0xff]   ;;  %v300_v38 = vld [vmem:[%s12591_s0 + $0x8e8] sm:$0xff]  ;;  %v7987_v47 = vld [vmem:[%s12590_s2 + $0x270] ss:$72 sps:$4 sm:$0xff]  }
 0x2d1   :  { %v6002_v11 = vpop.f32.mrf.mxu0  ;;  %6236 = vmatprep.mubr.bf16.mxu1 %v7980_v16  ;;  %v11399_v16 = vpop.permute.xlu1 %1818  ;;  %v268_v26 = vld [vmem:[%s12591_s0 + $0x7e8] sm:$0xff]  ;;  %v2446_v5 = vpack.c.bf16 %v2286_v40, %v2285_v17 }
 0x2d2   :  { %v5783_v21 = vpop.f32.mrf.mxu1  ;;  %6454 = vmatmul.mubr.bf16.gmra.mxu0 %v7975_v32  ;;  %v12708_v59 = vld [vmem:[#allocation43_spill] sm:$0xff] }
 0x2d3   :  { %v5784_v49 = vadd.f32 %v5783_v21, %v10512_v14  ;;  %v6005_v0 = vpop.f32.mrf.mxu0  ;;  %6641 = vmatpush1.bf16.msra.mxu1 %v2433_v61  ;;  %6864 = vmatpush1.bf16.msra.mxu0 %v2450_v44  ;;  %v2290_v14 = vmul.f32 %v11027_v46, %v274_v8  ;;  %v7986_v46 = vld [vmem:[%s12590_s2 + $0x26c] ss:$72 sps:$4 sm:$0xff]   ;;  %v267_v44 = vld [vmem:[%s12591_s0 + $0x7e0] sm:$0xff]  ;;  %v7984_v8 = vld [vmem:[%s12590_s2 + $0x268] ss:$72 sps:$4 sm:$0xff]   ;;  %v2316_v3 = vmul.f32 %v12708_v59, %v300_v38 }
 0x2d4   :  { %v11377_v10 = vadd.f32 %v6005_v0, %v5781_v7  ;;  %v5785_v54 = vpop.f32.mrf.mxu1  ;;  %6642 = vmatprep.subr.bf16.mxu1 %v12628_v43  ;;  %6865 = vmatprep.subr.bf16.mxu0 %v12628_v43  ;;  %v11404_v7 = vpop.permute.xlu0 %1813  ;;  %v299_v21 = vld [vmem:[%s12591_s0 + $0x8e0] sm:$0xff]  ;;  %v2317_v0 = vmul.f32 %v11099_v33, %v301_v35 }
 0x2d5   :  { %v6007_v37 = vpop.f32.mrf.mxu0  ;;  %6461 = vmatprep.mubr.bf16.mxu0 %v7983_v57  ;;  %v2448_v36 = vpack.c.bf16 %v2290_v14, %v2289_v39  ;;  %v2447_v57 = vpack.c.bf16 %v2288_v28, %v2287_v42  ;;  %v265_v54 = vld [vmem:[%s12591_s0 + $0x7d0] sm:$0xff]  ;;  %v11449_v14 = vpop.permute.xlu1 %1978  ;;  %v12711_v28 = vld [vmem:[#allocation27_spill] sm:$0xff] }
 0x2d6   :  { %v5788_v30 = vpop.f32.mrf.mxu1  ;;  %6237 = vmatmul.mubr.bf16.gmra.mxu1 %v7978_v9  ;;  %v2315_v37 = vmul.f32 %v12709_v20, %v299_v21  ;;  %v2282_v42 = vmul.f32 %v12711_v28, %v266_v12  ;;  %v296_v21 = vld [vmem:[%s12591_s0 + $0x8c8] sm:$0xff]  ;;  %v12715_v12 = vld [vmem:[#allocation48_spill] sm:$0xff] }
 0x2d7   :  { %v5789_v18 = vadd.f32 %v5788_v30, %v10550_v34  ;;  %v6008_v32 = vpop.f32.mrf.mxu0  ;;  %6643 = vmatpush1.bf16.msra.mxu1 %v2432_v56  ;;  %6866 = vmatpush1.bf16.msra.mxu0 %v2449_v52  ;;  %v302_v34 = vld [vmem:[%s12591_s0 + $0x8f8] sm:$0xff]  ;;  %v2284_v52 = vmul.f32 %v11114_v31, %v268_v26  ;;  %v263_v26 = vld [vmem:[%s12591_s0 + $0x7c0] sm:$0xff] }
 0x2d8   :  { %v11406_v6 = vadd.f32 %v6008_v32, %v5784_v49  ;;  %v5790_v51 = vpop.f32.mrf.mxu1  ;;  %6644 = vmatprep.subr.bf16.mxu1 %v12628_v43  ;;  %6867 = vmatprep.subr.bf16.mxu0 %v12628_v43  ;;  %v12707_v56 = vld [vmem:[#allocation21_spill] sm:$0xff]  ;;  %v11454_v33 = vpop.permute.xlu0 %1973 }
 0x2d9   :  { %v6010_v1 = vpop.f32.mrf.mxu0  ;;  %6244 = vmatprep.mubr.bf16.mxu1 %v7986_v46  ;;  %v2283_v45 = vmul.f32 %v12707_v56, %v267_v44  ;;  %v12710_v46 = vld [vmem:[#allocation35_spill] sm:$0xff] }
 0x2da   :  { %v5791_v61 = vpop.f32.mrf.mxu1  ;;  %6462 = vmatmul.mubr.bf16.gmra.mxu0 %v7981_v58  ;;  %v7995_v1 = vld [vmem:[%s12590_s2 + $0x304] ss:$72 sps:$4 sm:$0xff]  }
 0x2db   :  { %v5792_v4 = vadd.f32 %v5791_v61, %v10592_v27  ;;  %v6013_v11 = vpop.f32.mrf.mxu0  ;;  %6645 = vmatpush1.bf16.msra.mxu1 %v2431_v22  ;;  %6868 = vmatpush1.bf16.msra.mxu0 %v2448_v36  ;;  %v2318_v27 = vmul.f32 %v11097_v13, %v302_v34  ;;  %v7992_v13 = vld [vmem:[%s12590_s2 + $0x2fc] ss:$72 sps:$4 sm:$0xff]   ;;  %v2445_v36 = vpack.c.bf16 %v2284_v52, %v2283_v45  ;;  %v297_v34 = vld [vmem:[%s12591_s0 + $0x8d0] sm:$0xff]  ;;  %v7990_v61 = vld [vmem:[%s12590_s2 + $0x2f8] ss:$72 sps:$4 sm:$0xff]  }
 0x2dc   :  { %v11435_v9 = vadd.f32 %v6013_v11, %v5789_v18  ;;  %v5793_v49 = vpop.f32.mrf.mxu1  ;;  %6646 = vmatprep.subr.bf16.mxu1 %v12628_v43  ;;  %6869 = vmatprep.subr.bf16.mxu0 %v12628_v43  ;;  %v12712_v18 = vld [vmem:[#allocation45_spill] sm:$0xff]  ;;  %v12714_v56 = vld [vmem:[#allocation47_spill] sm:$0xff] }
 0x2dd   :  { %v6015_v39 = vpop.f32.mrf.mxu0  ;;  %6469 = vmatprep.mubr.bf16.mxu0 %v7989_v48  ;;  %v2281_v32 = vmul.f32 %v12712_v18, %v265_v54  ;;  %v2462_v51 = vpack.c.bf16 %v2318_v27, %v2317_v0  ;;  %v298_v22 = vld [vmem:[%s12591_s0 + $0x8d8] sm:$0xff]  ;;  %v264_v48 = vld [vmem:[%s12591_s0 + $0x7c8] sm:$0xff]  ;;  %v295_v49 = vld [vmem:[%s12591_s0 + $0x8c0] sm:$0xff]  ;;  %v11495_v27 = vpop.permute.xlu0 %1803  ;;  %v2313_v54 = vmul.f32 %v12715_v12, %v297_v34 }
 0x2de   :  { %v5796_v31 = vpop.f32.mrf.mxu1  ;;  %6245 = vmatmul.mubr.bf16.gmra.mxu1 %v7984_v8  ;;  %v11486_v8 = vpop.permute.xlu1 %1808  ;;  %v2314_v45 = vmul.f32 %v12714_v56, %v298_v22  ;;  %v2280_v39 = vmul.f32 %v11221_v55, %v264_v48  ;;  %v7993_v55 = vld [vmem:[%s12590_s2 + $0x300] ss:$72 sps:$4 sm:$0xff]   ;;  %v258_v12 = vld [vmem:[%s12591_s0 + $0x798] sm:$0xff] }
 0x2df   :  { %v5797_v30 = vadd.f32 %v5796_v31, %v12710_v46  ;;  %v6016_v58 = vpop.f32.mrf.mxu0  ;;  %6647 = vmatpush2.bf16.msra.mxu1 %v2446_v5  ;;  %6870 = vmatpush1.bf16.msra.mxu0 %v2447_v57  ;;  %v2461_v5 = vpack.c.bf16 %v2316_v3, %v2315_v37  ;;  %v2444_v38 = vpack.c.bf16 %v2282_v42, %v2281_v32  ;;  %v262_v31 = vld [vmem:[%s12591_s0 + $0x7b8] sm:$0xff]  ;;  %v7998_v3 = vld [vmem:[%s12590_s2 + $0x38c] ss:$72 sps:$4 sm:$0xff]   ;;  %v259_v34 = vld [vmem:[%s12591_s0 + $0x7a0] sm:$0xff] }
 0x2e0   :  { %v11464_v40 = vadd.f32 %v6016_v58, %v5792_v4  ;;  %v5798_v17 = vpop.f32.mrf.mxu1  ;;  %6648 = vmatprep.subr.bf16.mxu1 %v12628_v43  ;;  %6871 = vmatprep.subr.bf16.mxu0 %v12628_v43  ;;  %v12713_v4 = vld [vmem:[#allocation36_spill] sm:$0xff]  ;;  %v2311_v37 = vmul.f32 %v11276_v50, %v295_v49  ;;  %v12716_v46 = vld [vmem:[#allocation37_spill] sm:$0xff]  ;;  %v2278_v28 = vmul.f32 %v11308_v25, %v262_v31  ;;  %v260_v22 = vld [vmem:[%s12591_s0 + $0x7a8] sm:$0xff] }
 0x2e1   :  { %v6018_v35 = vpop.f32.mrf.mxu0  ;;  %6252 = vmatprep.mubr.bf16.mxu1 %v7992_v13  ;;  %v2279_v13 = vmul.f32 %v11227_v29, %v263_v26  ;;  %v2312_v29 = vmul.f32 %v11271_v23, %v296_v21  ;;  %v2460_v17 = vpack.c.bf16 %v2314_v45, %v2313_v54  ;;  %v294_v50 = vld [vmem:[%s12591_s0 + $0x8b8] sm:$0xff]  ;;  %v7996_v48 = vld [vmem:[%s12590_s2 + $0x388] ss:$72 sps:$4 sm:$0xff]   ;;  %v12717_v26 = vld [vmem:[#allocation38_spill] sm:$0xff]  ;;  %v2276_v56 = vmul.f32 %v11399_v16, %v260_v22 }
 0x2e2   :  { %v5799_v44 = vpop.f32.mrf.mxu1  ;;  %6470 = vmatmul.mubr.bf16.gmra.mxu0 %v7987_v47  ;;  %v261_v47 = vld [vmem:[%s12591_s0 + $0x7b0] sm:$0xff]  ;;  %v11532_v25 = vpop.permute.xlu1 %1968  ;;  %v2310_v49 = vmul.f32 %v11354_v53, %v294_v50  ;;  %v2275_v45 = vmul.f32 %v11404_v7, %v259_v34  ;;  %v8004_v53 = vld [vmem:[%s12590_s2 + $0x41c] ss:$72 sps:$4 sm:$0xff]  }
 0x2e3   :  { %v5800_v11 = vadd.f32 %v5799_v44, %v12713_v4  ;;  %v6021_v57 = vpop.f32.mrf.mxu0  ;;  %6649 = vmatpush2.bf16.msra.mxu1 %v2445_v36  ;;  %6872 = vmatpush2.bf16.msra.mxu0 %v2462_v51  ;;  %v2277_v42 = vmul.f32 %v11317_v63, %v261_v47  ;;  %v2443_v23 = vpack.c.bf16 %v2280_v39, %v2279_v13  ;;  %v293_v51 = vld [vmem:[%s12591_s0 + $0x8b0] sm:$0xff]  ;;  %v11543_v35 = vpop.permute.xlu0 %1963  ;;  %v12718_v47 = vld [vmem:[#allocation39_spill] sm:$0xff] }
 0x2e4   :  { %v11497_v0 = vadd.f32 %v6021_v57, %v5797_v30  ;;  %v5801_v52 = vpop.f32.mrf.mxu1  ;;  %6650 = vmatprep.subr.bf16.mxu1 %v12628_v43  ;;  %6873 = vmatprep.subr.bf16.mxu0 %v12628_v43  ;;  %v8001_v36 = vld [vmem:[%s12590_s2 + $0x394] ss:$72 sps:$4 sm:$0xff]   ;;  %v2459_v4 = vpack.c.bf16 %v2312_v29, %v2311_v37  ;;  %v292_v57 = vld [vmem:[%s12591_s0 + $0x8a8] sm:$0xff] }
 0x2e5   :  { %v6023_v59 = vpop.f32.mrf.mxu0  ;;  %6477 = vmatprep.mubr.bf16.mxu0 %v7995_v1  ;;  %v2309_v52 = vmul.f32 %v11365_v2, %v293_v51  ;;  %v257_v54 = vld [vmem:[%s12591_s0 + $0x790] sm:$0xff]  ;;  %v2308_v16 = vmul.f32 %v11449_v14, %v292_v57  ;;  %v288_v57 = vld [vmem:[%s12591_s0 + $0x888] sm:$0xff] }
 0x2e6   :  { %v5804_v20 = vpop.f32.mrf.mxu1  ;;  %6253 = vmatmul.mubr.bf16.gmra.mxu1 %v7990_v61  ;;  %v7999_v2 = vld [vmem:[%s12590_s2 + $0x390] ss:$72 sps:$4 sm:$0xff]   ;;  %v1799_v31 = vpop.permute.xlu1 %1798 }
 0x2e7   :  { %v5805_v30 = vadd.f32 %v5804_v20, %v12716_v46  ;;  %v6024_v58 = vpop.f32.mrf.mxu0  ;;  %6651 = vmatpush2.bf16.msra.mxu1 %v2444_v38  ;;  %6874 = vmatpush2.bf16.msra.mxu0 %v2461_v5  ;;  %v291_v5 = vld [vmem:[%s12591_s0 + $0x8a0] sm:$0xff]  ;;  %v2274_v20 = vmul.f32 %v11486_v8, %v258_v12  ;;  %v1794_v29 = vpop.permute.xlu0 %1793  ;;  %v2458_v14 = vpack.c.bf16 %v2310_v49, %v2309_v52  ;;  %v289_v8 = vld [vmem:[%s12591_s0 + $0x890] sm:$0xff]  ;;  %v12720_v49 = vld [vmem:[#allocation41_spill] sm:$0xff] }
 0x2e8   :  { %v11522_v18 = vadd.f32 %v6024_v58, %v5800_v11  ;;  %v5806_v32 = vpop.f32.mrf.mxu1  ;;  %6652 = vmatprep.subr.bf16.mxu1 %v12628_v43  ;;  %6875 = vmatprep.subr.bf16.mxu0 %v12628_v43  ;;  %v2442_v11 = vpack.c.bf16 %v2278_v28, %v2277_v42  ;;  %v2307_v7 = vmul.f32 %v11454_v33, %v291_v5  ;;  %v256_v28 = vld [vmem:[%s12591_s0 + $0x788] sm:$0xff]  ;;  %v255_v42 = vld [vmem:[%s12591_s0 + $0x780] sm:$0xff] }
 0x2e9   :  { %v6026_v63 = vpop.f32.mrf.mxu0  ;;  %6260 = vmatprep.mubr.bf16.mxu1 %v7998_v3  ;;  %v2441_v33 = vpack.c.bf16 %v2276_v56, %v2275_v45 }
 0x2ea   :  { %v5807_v1 = vpop.f32.mrf.mxu1  ;;  %6478 = vmatmul.mubr.bf16.gmra.mxu0 %v7993_v55  ;;  %v2273_v55 = vmul.f32 %v11495_v27, %v257_v54  ;;  %v8007_v27 = vld [vmem:[%s12590_s2 + $0x424] ss:$72 sps:$4 sm:$0xff]   ;;  %v2457_v63 = vpack.c.bf16 %v2308_v16, %v2307_v7  ;;  %v8013_v54 = vld [vmem:[%s12590_s2 + $0x4b4] ss:$72 sps:$4 sm:$0xff]  }
 0x2eb   :  { %v5808_v44 = vadd.f32 %v5807_v1, %v12717_v26  ;;  %v6029_v61 = vpop.f32.mrf.mxu0  ;;  %6653 = vmatpush2.bf16.msra.mxu1 %v2443_v23  ;;  %6876 = vmatpush2.bf16.msra.mxu0 %v2460_v17  ;;  %v8002_v17 = vld [vmem:[%s12590_s2 + $0x418] ss:$72 sps:$4 sm:$0xff]   ;;  %v12719_v23 = vld [vmem:[#allocation40_spill] sm:$0xff]  ;;  %v2272_v26 = vmul.f32 %v1799_v31, %v256_v28  ;;  %v1954_v5 = vpop.permute.xlu0 %1953  ;;  %v8019_v28 = vld [vmem:[%s12590_s2 + $0x544] ss:$72 sps:$4 sm:$0xff]  }
 0x2ec   :  { %v11555_v38 = vadd.f32 %v6029_v61, %v5805_v30  ;;  %v5809_v21 = vpop.f32.mrf.mxu1  ;;  %6654 = vmatprep.subr.bf16.mxu1 %v12628_v43  ;;  %6877 = vmatprep.subr.bf16.mxu0 %v12628_v43  ;;  %v290_v30 = vld [vmem:[%s12591_s0 + $0x898] sm:$0xff]  ;;  %v1959_v61 = vpop.permute.xlu1 %1958  ;;  %v8008_v31 = vld [vmem:[%s12590_s2 + $0x4a8] ss:$72 sps:$4 sm:$0xff]  }
 0x2ed   :  { %v6031_v39 = vpop.f32.mrf.mxu0  ;;  %6485 = vmatprep.mubr.bf16.mxu0 %v8001_v36  ;;  %v2440_v36 = vpack.c.bf16 %v2274_v20, %v2273_v55  ;;  %v2306_v1 = vmul.f32 %v11532_v25, %v290_v30  ;;  %v287_v25 = vld [vmem:[%s12591_s0 + $0x880] sm:$0xff]  ;;  %v8011_v30 = vld [vmem:[%s12590_s2 + $0x4b0] ss:$72 sps:$4 sm:$0xff]  }
 0x2ee   :  { %v5812_v13 = vpop.f32.mrf.mxu1  ;;  %6261 = vmatmul.mubr.bf16.gmra.mxu1 %v7996_v48  ;;  %v2305_v48 = vmul.f32 %v11543_v35, %v289_v8  ;;  %v8005_v35 = vld [vmem:[%s12590_s2 + $0x420] ss:$72 sps:$4 sm:$0xff]   ;;  %v8016_v20 = vld [vmem:[%s12590_s2 + $0x53c] ss:$72 sps:$4 sm:$0xff]   ;;  %v12722_v8 = vld [vmem:[#allocation20_spill] sm:$0xff] }
 0x2ef   :  { %v5813_v59 = vadd.f32 %v5812_v13, %v12718_v47  ;;  %v6032_v3 = vpop.f32.mrf.mxu0  ;;  %6655 = vmatpush2.bf16.msra.mxu1 %v2442_v11  ;;  %6878 = vmatpush2.bf16.msra.mxu0 %v2459_v4  ;;  %v8010_v11 = vld [vmem:[%s12590_s2 + $0x4ac] ss:$72 sps:$4 sm:$0xff]   ;;  %v2304_v13 = vmul.f32 %v1959_v61, %v288_v57  ;;  %v12721_v47 = vld [vmem:[#allocation18_spill] sm:$0xff] }
 0x2f0   :  { %v11580_v37 = vadd.f32 %v6032_v3, %v5808_v44  ;;  %v5814_v46 = vpop.f32.mrf.mxu1  ;;  %6656 = vmatprep.subr.bf16.mxu1 %v12628_v43  ;;  %6879 = vmatprep.subr.bf16.mxu0 %v12628_v43  ;;  %v2271_v44 = vmul.f32 %v1794_v29, %v255_v42  ;;  %v2456_v39 = vpack.c.bf16 %v2306_v1, %v2305_v48  ;;  %v12724_v61 = vld [vmem:[#allocation24_spill] sm:$0xff] }
 0x2f1   :  { %v6034_v58 = vpop.f32.mrf.mxu0  ;;  %6268 = vmatprep.mubr.bf16.mxu1 %v8004_v53  ;;  %v8025_v57 = vld [vmem:[%s12590_s2 + $0x5d4] ss:$72 sps:$4 sm:$0xff]  }
 0x2f2   :  { %v5815_v32 = vpop.f32.mrf.mxu1  ;;  %6486 = vmatmul.mubr.bf16.gmra.mxu0 %v7999_v2  ;;  %v2439_v53 = vpack.c.bf16 %v2272_v26, %v2271_v44  ;;  %v2303_v2 = vmul.f32 %v1954_v5, %v287_v25  ;;  %v8017_v44 = vld [vmem:[%s12590_s2 + $0x540] ss:$72 sps:$4 sm:$0xff]  }
 0x2f3   :  { %v5816_v50 = vadd.f32 %v5815_v32, %v12719_v23  ;;  %v6037_v51 = vpop.f32.mrf.mxu0  ;;  %6657 = vmatpush2.bf16.msra.mxu1 %v2441_v33  ;;  %6880 = vmatpush2.bf16.msra.mxu0 %v2458_v14  ;;  %v8014_v23 = vld [vmem:[%s12590_s2 + $0x538] ss:$72 sps:$4 sm:$0xff]  }
 0x2f4   :  { %v11603_v22 = vadd.f32 %v6037_v51, %v5813_v59  ;;  %v5817_v34 = vpop.f32.mrf.mxu1  ;;  %6658 = vmatprep.subr.bf16.mxu1 %v12628_v43  ;;  %6881 = vmatprep.subr.bf16.mxu0 %v12628_v43  ;;  %v2455_v46 = vpack.c.bf16 %v2304_v13, %v2303_v2 }
 0x2f5   :  { %v6039_v4 = vpop.f32.mrf.mxu0  ;;  %6493 = vmatprep.mubr.bf16.mxu0 %v8007_v27 }
 0x2f6   :  { %v5820_v21 = vpop.f32.mrf.mxu1  ;;  %6269 = vmatmul.mubr.bf16.gmra.mxu1 %v8002_v17 }
 0x2f7   :  { %v5821_v52 = vadd.f32 %v5820_v21, %v12720_v49  ;;  %v6040_v56 = vpop.f32.mrf.mxu0  ;;  %6659 = vmatpush2.bf16.msra.mxu1 %v2440_v36  ;;  %6882 = vmatpush2.bf16.msra.mxu0 %v2457_v63  ;;  %v8022_v36 = vld [vmem:[%s12590_s2 + $0x5cc] ss:$72 sps:$4 sm:$0xff]   ;;  %v8020_v49 = vld [vmem:[%s12590_s2 + $0x5c8] ss:$72 sps:$4 sm:$0xff]  }
 0x2f8   :  { %v11622_v45 = vadd.f32 %v6040_v56, %v5816_v50  ;;  %v5822_v12 = vpop.f32.mrf.mxu1  ;;  %6660 = vmatprep.subr.bf16.mxu1 %v12628_v43  ;;  %6883 = vmatprep.subr.bf16.mxu0 %v12628_v43  ;;  %v12723_v50 = vld [vmem:[#allocation22_spill] sm:$0xff] }
 0x2f9   :  { %v6042_v16 = vpop.f32.mrf.mxu0  ;;  %6276 = vmatprep.mubr.bf16.mxu1 %v8010_v11 }
 0x2fa   :  { %v5823_v7 = vpop.f32.mrf.mxu1  ;;  %6494 = vmatmul.mubr.bf16.gmra.mxu0 %v8005_v35  ;;  %v8023_v16 = vld [vmem:[%s12590_s2 + $0x5d0] ss:$72 sps:$4 sm:$0xff]  }
 0x2fb   :  { %v5824_v59 = vadd.f32 %v5823_v7, %v12721_v47  ;;  %v6045_v3 = vpop.f32.mrf.mxu0  ;;  %6661 = vmatpush2.bf16.msra.mxu1 %v2439_v53  ;;  %6884 = vmatpush2.bf16.msra.mxu0 %v2456_v39  ;;  %v12726_v7 = vld [vmem:[#allocation28_spill] sm:$0xff] }
 0x2fc   :  { %v11636_v55 = vadd.f32 %v6045_v3, %v5821_v52  ;;  %v5825_v29 = vpop.f32.mrf.mxu1  ;;  %6885 = vmatprep.subr.bf16.mxu0 %v12628_v43  ;;  %6501 = vmatprep.mubr.bf16.mxu0 %v8013_v54  ;;  %v12725_v52 = vld [vmem:[#allocation26_spill] sm:$0xff] }
 0x2fd   :  { %v6047_v14 = vpop.f32.mrf.mxu0  ;;  %v8028_v54 = vld [vmem:[%s12590_s2 + $0x65c] ss:$72 sps:$4 sm:$0xff]  }
 0x2fe   :  { %v5828_v33 = vpop.f32.mrf.mxu1  ;;  %6277 = vmatmul.mubr.bf16.gmra.mxu1 %v8008_v31  ;;  %v8026_v14 = vld [vmem:[%s12590_s2 + $0x658] ss:$72 sps:$4 sm:$0xff]  }
 0x2ff   :  { %v5829_v58 = vadd.f32 %v5828_v33, %v12722_v8  ;;  %v6048_v27 = vpop.f32.mrf.mxu0  ;;  %6886 = vmatpush2.bf16.msra.mxu0 %v2455_v46  ;;  %6284 = vmatprep.mubr.bf16.mxu1 %v8016_v20  ;;  %v12727_v33 = vld [vmem:[#allocation30_spill] sm:$0xff] }
 0x300   :  { %v11646_v42 = vadd.f32 %v6048_v27, %v5824_v59  ;;  %v5830_v43 = vpop.f32.mrf.mxu1  ;;  %v8031_v59 = vld [vmem:[%s12590_s2 + $0x664] ss:$72 sps:$4 sm:$0xff]  }
 0x301   :  { %v6050_v32 = vpop.f32.mrf.mxu0 }
 0x302   :  { %v5831_v17 = vpop.f32.mrf.mxu1  ;;  %6502 = vmatmul.mubr.bf16.gmra.mxu0 %v8011_v30 }
 0x303   :  { %v5832_v51 = vadd.f32 %v5831_v17, %v12723_v50  ;;  %v6053_v63 = vpop.f32.mrf.mxu0  ;;  %6509 = vmatprep.mubr.bf16.mxu0 %v8019_v28  ;;  %v8029_v17 = vld [vmem:[%s12590_s2 + $0x660] ss:$72 sps:$4 sm:$0xff]  }
 0x304   :  { %v11655_v34 = vadd.f32 %v6053_v63, %v5829_v58  ;;  %v5833_v1 = vpop.f32.mrf.mxu1  ;;  %v8034_v58 = vld [vmem:[%s12590_s2 + $0x6ec] ss:$72 sps:$4 sm:$0xff]  }
 0x305   :  { %v6055_v48 = vpop.f32.mrf.mxu0  ;;  %v8037_v63 = vld [vmem:[%s12590_s2 + $0x6f4] ss:$72 sps:$4 sm:$0xff]  }
 0x306   :  { %v5836_v26 = vpop.f32.mrf.mxu1  ;;  %6285 = vmatmul.mubr.bf16.gmra.mxu1 %v8014_v23  ;;  %v12728_v23 = vld [vmem:[#allocation32_spill] sm:$0xff] }
 0x307   :  { %v5837_v4 = vadd.f32 %v5836_v26, %v12724_v61  ;;  %v6056_v11 = vpop.f32.mrf.mxu0  ;;  %6292 = vmatprep.mubr.bf16.mxu1 %v8022_v36  ;;  %v12729_v61 = vld [vmem:[#allocation34_spill] sm:$0xff] }
 0x308   :  { %v11664_v5 = vadd.f32 %v6056_v11, %v5832_v51  ;;  %v5838_v25 = vpop.f32.mrf.mxu1 }
 0x309   :  { %v6058_v21 = vpop.f32.mrf.mxu0 }
 0x30a   :  { %v5839_v35 = vpop.f32.mrf.mxu1  ;;  %6510 = vmatmul.mubr.bf16.gmra.mxu0 %v8017_v44  ;;  %v8032_v44 = vld [vmem:[%s12590_s2 + $0x6e8] ss:$72 sps:$4 sm:$0xff]  }
 0x30b   :  { %v5840_v56 = vadd.f32 %v5839_v35, %v12725_v52  ;;  %v6061_v12 = vpop.f32.mrf.mxu0  ;;  %6517 = vmatprep.mubr.bf16.mxu0 %v8025_v57  ;;  %v8040_v57 = vld [vmem:[%s12590_s2 + $0x77c] ss:$72 sps:$4 sm:$0xff]   ;;  %v8035_v52 = vld [vmem:[%s12590_s2 + $0x6f0] ss:$72 sps:$4 sm:$0xff]  }
 0x30c   :  { %v11673_v39 = vadd.f32 %v6061_v12, %v5837_v4  ;;  %v5841_v53 = vpop.f32.mrf.mxu1 }
 0x30d   :  { %v6063_v13 = vpop.f32.mrf.mxu0  ;;  %v8043_v53 = vld [vmem:[%s12590_s2 + $0x784] ss:$72 sps:$4 sm:$0xff]  }
 0x30e   :  { %v5844_v2 = vpop.f32.mrf.mxu1  ;;  %6293 = vmatmul.mubr.bf16.gmra.mxu1 %v8020_v49 }
 0x30f   :  { %v5845_v31 = vadd.f32 %v5844_v2, %v12726_v7  ;;  %v6064_v47 = vpop.f32.mrf.mxu0  ;;  %6300 = vmatprep.mubr.bf16.mxu1 %v8028_v54 }
 0x310   :  { %v11682_v3 = vadd.f32 %v6064_v47, %v5840_v56  ;;  %v5846_v20 = vpop.f32.mrf.mxu1  ;;  %v12730_v56 = vld [vmem:[#allocation2_spill] sm:$0xff]  ;;  %v12731_v47 = vld [vmem:[#allocation3_spill] sm:$0xff] }
 0x311   :  { %v6066_v29 = vpop.f32.mrf.mxu0 }
 0x312   :  { %v5847_v46 = vpop.f32.mrf.mxu1  ;;  %6518 = vmatmul.mubr.bf16.gmra.mxu0 %v8023_v16  ;;  %v8046_v29 = vld [vmem:[%s12590_s2 + $0x80c] ss:$72 sps:$4 sm:$0xff]  }
 0x313   :  { %v5848_v30 = vadd.f32 %v5847_v46, %v12727_v33  ;;  %v6069_v8 = vpop.f32.mrf.mxu0  ;;  %6525 = vmatprep.mubr.bf16.mxu0 %v8031_v59 }
 0x314   :  { %v11691_v27 = vadd.f32 %v6069_v8, %v5845_v31  ;;  %v5849_v28 = vpop.f32.mrf.mxu1  ;;  %v8038_v31 = vld [vmem:[%s12590_s2 + $0x778] ss:$72 sps:$4 sm:$0xff]  }
 0x315   :  { %v6071_v43 = vpop.f32.mrf.mxu0  ;;  %v8041_v8 = vld [vmem:[%s12590_s2 + $0x780] ss:$72 sps:$4 sm:$0xff]  }
 0x316   :  { %v5852_v32 = vpop.f32.mrf.mxu1  ;;  %6301 = vmatmul.mubr.bf16.gmra.mxu1 %v8026_v14 }
 0x317   :  { %v5853_v50 = vadd.f32 %v5852_v32, %v12728_v23  ;;  %v6072_v51 = vpop.f32.mrf.mxu0  ;;  %6308 = vmatprep.mubr.bf16.mxu1 %v8034_v58  ;;  %v12732_v58 = vld [vmem:[#allocation4_spill] sm:$0xff] }
 0x318   :  { %v11700_v36 = vadd.f32 %v6072_v51, %v5848_v30  ;;  %v5854_v1 = vpop.f32.mrf.mxu1  ;;  %v8049_v32 = vld [vmem:[%s12590_s2 + $0x814] ss:$72 sps:$4 sm:$0xff]  }
 0x319   :  { %v6074_v48 = vpop.f32.mrf.mxu0  ;;  %v12733_v1 = vld [vmem:[#allocation5_spill] sm:$0xff] }
 0x31a   :  { %v5855_v26 = vpop.f32.mrf.mxu1  ;;  %6526 = vmatmul.mubr.bf16.gmra.mxu0 %v8029_v17 }
 0x31b   :  { %v5856_v4 = vadd.f32 %v5855_v26, %v12729_v61  ;;  %v6077_v11 = vpop.f32.mrf.mxu0  ;;  %6533 = vmatprep.mubr.bf16.mxu0 %v8037_v63  ;;  %v8044_v63 = vld [vmem:[%s12590_s2 + $0x808] ss:$72 sps:$4 sm:$0xff]  }
 0x31c   :  { %v11709_v25 = vadd.f32 %v6077_v11, %v5853_v50  ;;  %v5857_v21 = vpop.f32.mrf.mxu1 }
 0x31d   :  { %v6079_v35 = vpop.f32.mrf.mxu0  ;;  %v8047_v21 = vld [vmem:[%s12590_s2 + $0x810] ss:$72 sps:$4 sm:$0xff]  }
 0x31e   :  { %v5860_v49 = vpop.f32.mrf.mxu1  ;;  %6309 = vmatmul.mubr.bf16.gmra.mxu1 %v8032_v44  ;;  %v8052_v44 = vld [vmem:[%s12590_s2 + $0x89c] ss:$72 sps:$4 sm:$0xff]  }
 0x31f   :  { %v5861_v12 = vadd.f32 %v5860_v49, %v12730_v56  ;;  %v6080_v54 = vpop.f32.mrf.mxu0  ;;  %6316 = vmatprep.mubr.bf16.mxu1 %v8040_v57  ;;  %v12734_v35 = vld [vmem:[#allocation6_spill] sm:$0xff] }
 0x320   :  { %v11718_v13 = vadd.f32 %v6080_v54, %v5856_v4  ;;  %v5862_v2 = vpop.f32.mrf.mxu1  ;;  %v8055_v56 = vld [vmem:[%s12590_s2 + $0x8a4] ss:$72 sps:$4 sm:$0xff]  }
 0x321   :  { %v6082_v16 = vpop.f32.mrf.mxu0 }
 0x322   :  { %v5863_v7 = vpop.f32.mrf.mxu1  ;;  %6534 = vmatmul.mubr.bf16.gmra.mxu0 %v8035_v52  ;;  %v8050_v16 = vld [vmem:[%s12590_s2 + $0x898] ss:$72 sps:$4 sm:$0xff]  }
 0x323   :  { %v5864_v59 = vadd.f32 %v5863_v7, %v12731_v47  ;;  %v6085_v20 = vpop.f32.mrf.mxu0  ;;  %6541 = vmatprep.mubr.bf16.mxu0 %v8043_v53  ;;  %v12735_v7 = vld [vmem:[#allocation7_spill] sm:$0xff] }
 0x324   :  { %v11727_v46 = vadd.f32 %v6085_v20, %v5861_v12  ;;  %v5865_v14 = vpop.f32.mrf.mxu1 }
 0x325   :  { %v6087_v33 = vpop.f32.mrf.mxu0 }
 0x326   :  { %v5868_v30 = vpop.f32.mrf.mxu1  ;;  %6317 = vmatmul.mubr.bf16.gmra.mxu1 %v8038_v31 }
 0x327   :  { %v5869_v28 = vadd.f32 %v5868_v30, %v12732_v58  ;;  %v6088_v43 = vpop.f32.mrf.mxu0  ;;  %6324 = vmatprep.mubr.bf16.mxu1 %v8046_v29  ;;  %v8053_v30 = vld [vmem:[%s12590_s2 + $0x8a0] ss:$72 sps:$4 sm:$0xff]  }
 0x328   :  { %v11736_v17 = vadd.f32 %v6088_v43, %v5864_v59  ;;  %v5870_v23 = vpop.f32.mrf.mxu1  ;;  %v8058_v59 = vld [vmem:[%s12590_s2 + $0x92c] ss:$72 sps:$4 sm:$0xff]  }
 0x329   :  { %v6090_v50 = vpop.f32.mrf.mxu0  ;;  %v8061_v43 = vld [vmem:[%s12590_s2 + $0x934] ss:$72 sps:$4 sm:$0xff]  }
 0x32a   :  { %v5871_v51 = vpop.f32.mrf.mxu1  ;;  %6542 = vmatmul.mubr.bf16.gmra.mxu0 %v8041_v8  ;;  %v12736_v8 = vld [vmem:[#allocation8_spill] sm:$0xff] }
 0x32b   :  { %v5872_v48 = vadd.f32 %v5871_v51, %v12733_v1  ;;  %v6093_v26 = vpop.f32.mrf.mxu0  ;;  %6549 = vmatprep.mubr.bf16.mxu0 %v8049_v32  ;;  %v12737_v1 = vld [vmem:[#allocation9_spill] sm:$0xff] }
 0x32c   :  { %v11745_v61 = vadd.f32 %v6093_v26, %v5869_v28  ;;  %v5873_v4 = vpop.f32.mrf.mxu1 }
 0x32d   :  { %v6095_v11 = vpop.f32.mrf.mxu0 }
 0x32e   :  { %v5876_v57 = vpop.f32.mrf.mxu1  ;;  %6325 = vmatmul.mubr.bf16.gmra.mxu1 %v8044_v63  ;;  %v8056_v63 = vld [vmem:[%s12590_s2 + $0x928] ss:$72 sps:$4 sm:$0xff]  }
 0x32f   :  { %v5877_v49 = vadd.f32 %v5876_v57, %v12734_v35  ;;  %v6096_v52 = vpop.f32.mrf.mxu0  ;;  %6332 = vmatprep.mubr.bf16.mxu1 %v8052_v44  ;;  %v8064_v44 = vld [vmem:[%s12590_s2 + $0x9bc] ss:$72 sps:$4 sm:$0xff]   ;;  %v8059_v35 = vld [vmem:[%s12590_s2 + $0x930] ss:$72 sps:$4 sm:$0xff]  }
 0x330   :  { %v11754_v12 = vadd.f32 %v6096_v52, %v5872_v48  ;;  %v5878_v54 = vpop.f32.mrf.mxu1 }
 0x331   :  { %v6098_v53 = vpop.f32.mrf.mxu0  ;;  %v8067_v54 = vld [vmem:[%s12590_s2 + $0x9c4] ss:$72 sps:$4 sm:$0xff]  }
 0x332   :  { %v5879_v2 = vpop.f32.mrf.mxu1  ;;  %6550 = vmatmul.mubr.bf16.gmra.mxu0 %v8047_v21 }
 0x333   :  { %v5880_v31 = vadd.f32 %v5879_v2, %v12735_v7  ;;  %v6101_v47 = vpop.f32.mrf.mxu0  ;;  %6557 = vmatprep.mubr.bf16.mxu0 %v8055_v56 }
 0x334   :  { %v11763_v20 = vadd.f32 %v6101_v47, %v5877_v49  ;;  %v5881_v29 = vpop.f32.mrf.mxu1  ;;  %v12738_v49 = vld [vmem:[#allocation10_spill] sm:$0xff]  ;;  %v12739_v47 = vld [vmem:[#allocation11_spill] sm:$0xff] }
 0x335   :  { %v6103_v14 = vpop.f32.mrf.mxu0 }
 0x336   :  { %v5884_v33 = vpop.f32.mrf.mxu1  ;;  %6333 = vmatmul.mubr.bf16.gmra.mxu1 %v8050_v16  ;;  %v8070_v14 = vld [vmem:[%s12590_s2 + $0xa4c] ss:$72 sps:$4 sm:$0xff]  }
 0x337   :  { %v5885_v58 = vadd.f32 %v5884_v33, %v12736_v8  ;;  %v6104_v28 = vpop.f32.mrf.mxu0  ;;  %6340 = vmatprep.mubr.bf16.mxu1 %v8058_v59 }
 0x338   :  { %v11772_v32 = vadd.f32 %v6104_v28, %v5880_v31  ;;  %v5886_v23 = vpop.f32.mrf.mxu1  ;;  %v8062_v31 = vld [vmem:[%s12590_s2 + $0x9b8] ss:$72 sps:$4 sm:$0xff]  }
 0x339   :  { %v6106_v50 = vpop.f32.mrf.mxu0  ;;  %v8065_v28 = vld [vmem:[%s12590_s2 + $0x9c0] ss:$72 sps:$4 sm:$0xff]  }
 0x33a   :  { %v5887_v51 = vpop.f32.mrf.mxu1  ;;  %6558 = vmatmul.mubr.bf16.gmra.mxu0 %v8053_v30 }
 0x33b   :  { %v5888_v48 = vadd.f32 %v5887_v51, %v12737_v1  ;;  %v6109_v26 = vpop.f32.mrf.mxu0  ;;  %6565 = vmatprep.mubr.bf16.mxu0 %v8061_v43  ;;  %v12740_v43 = vld [vmem:[#allocation12_spill] sm:$0xff] }
 0x33c   :  { %v11781_v4 = vadd.f32 %v6109_v26, %v5885_v58  ;;  %v5889_v11 = vpop.f32.mrf.mxu1  ;;  %v8073_v51 = vld [vmem:[%s12590_s2 + $0xa54] ss:$72 sps:$4 sm:$0xff]  }
 0x33d   :  { %v6111_v57 = vpop.f32.mrf.mxu0  ;;  %v12741_v11 = vld [vmem:[#allocation13_spill] sm:$0xff] }
 0x33e   :  { %v5892_v21 = vpop.f32.mrf.mxu1  ;;  %6341 = vmatmul.mubr.bf16.gmra.mxu1 %v8056_v63 }
 0x33f   :  { %v5893_v52 = vadd.f32 %v5892_v21, %v12738_v49  ;;  %v6112_v56 = vpop.f32.mrf.mxu0  ;;  %6348 = vmatprep.mubr.bf16.mxu1 %v8064_v44  ;;  %v8068_v44 = vld [vmem:[%s12590_s2 + $0xa48] ss:$72 sps:$4 sm:$0xff]  }
 0x340   :  { %v11790_v53 = vadd.f32 %v6112_v56, %v5888_v48  ;;  %v5894_v2 = vpop.f32.mrf.mxu1 }
 0x341   :  { %v6114_v16 = vpop.f32.mrf.mxu0  ;;  %v8071_v2 = vld [vmem:[%s12590_s2 + $0xa50] ss:$72 sps:$4 sm:$0xff]  }
 0x342   :  { %v5895_v7 = vpop.f32.mrf.mxu1  ;;  %6566 = vmatmul.mubr.bf16.gmra.mxu0 %v8059_v35  ;;  %v8076_v35 = vld [vmem:[%s12590_s2 + $0xadc] ss:$72 sps:$4 sm:$0xff]  }
 0x343   :  { %v5896_v59 = vadd.f32 %v5895_v7, %v12739_v47  ;;  %v6117_v29 = vpop.f32.mrf.mxu0  ;;  %6573 = vmatprep.mubr.bf16.mxu0 %v8067_v54  ;;  %v12742_v16 = vld [vmem:[#allocation14_spill] sm:$0xff] }
 0x344   :  { %v11799_v33 = vadd.f32 %v6117_v29, %v5893_v52  ;;  %v5897_v30 = vpop.f32.mrf.mxu1  ;;  %v8079_v47 = vld [vmem:[%s12590_s2 + $0xae4] ss:$72 sps:$4 sm:$0xff]  }
 0x345   :  { %v6119_v8 = vpop.f32.mrf.mxu0 }
 0x346   :  { %v5900_v58 = vpop.f32.mrf.mxu1  ;;  %6349 = vmatmul.mubr.bf16.gmra.mxu1 %v8062_v31  ;;  %v8074_v8 = vld [vmem:[%s12590_s2 + $0xad8] ss:$72 sps:$4 sm:$0xff]  }
 0x347   :  { %v5901_v23 = vadd.f32 %v5900_v58, %v12740_v43  ;;  %v6120_v50 = vpop.f32.mrf.mxu0  ;;  %6356 = vmatprep.mubr.bf16.mxu1 %v8070_v14  ;;  %v12743_v58 = vld [vmem:[#allocation15_spill] sm:$0xff] }
 0x348   :  { %v11808_v63 = vadd.f32 %v6120_v50, %v5896_v59  ;;  %v5902_v1 = vpop.f32.mrf.mxu1 }
 0x349   :  { %v6122_v48 = vpop.f32.mrf.mxu0 }
 0x34a   :  { %v5903_v26 = vpop.f32.mrf.mxu1  ;;  %6574 = vmatmul.mubr.bf16.gmra.mxu0 %v8065_v28 }
 0x34b   :  { %v5904_v57 = vadd.f32 %v5903_v26, %v12741_v11  ;;  %v6125_v21 = vpop.f32.mrf.mxu0  ;;  %6581 = vmatprep.mubr.bf16.mxu0 %v8073_v51  ;;  %v8077_v26 = vld [vmem:[%s12590_s2 + $0xae0] ss:$72 sps:$4 sm:$0xff]  }
 0x34c   :  { %v11817_v49 = vadd.f32 %v6125_v21, %v5901_v23  ;;  %v5905_v52 = vpop.f32.mrf.mxu1  ;;  %v8082_v23 = vld [vmem:[%s12590_s2 + $0xb6c] ss:$72 sps:$4 sm:$0xff]  }
 0x34d   :  { %v6127_v56 = vpop.f32.mrf.mxu0  ;;  %v8085_v21 = vld [vmem:[%s12590_s2 + $0xb74] ss:$72 sps:$4 sm:$0xff]  }
 0x34e   :  { %v5908_v54 = vpop.f32.mrf.mxu1  ;;  %6357 = vmatmul.mubr.bf16.gmra.mxu1 %v8068_v44  ;;  %v12744_v44 = vld [vmem:[#allocation16_spill] sm:$0xff] }
 0x34f   :  { %v5909_v7 = vadd.f32 %v5908_v54, %v12742_v16  ;;  %v6128_v31 = vpop.f32.mrf.mxu0  ;;  %6364 = vmatprep.mubr.bf16.mxu1 %v8076_v35  ;;  %v12745_v16 = vld [vmem:[#allocation17_spill] sm:$0xff] }
 0x350   :  { %v11826_v59 = vadd.f32 %v6128_v31, %v5904_v57  ;;  %v5910_v29 = vpop.f32.mrf.mxu1 }
 0x351   :  { %v6130_v14 = vpop.f32.mrf.mxu0 }
 0x352   :  { %v5911_v30 = vpop.f32.mrf.mxu1  ;;  %6582 = vmatmul.mubr.bf16.gmra.mxu0 %v8071_v2  ;;  %v8080_v2 = vld [vmem:[%s12590_s2 + $0xb68] ss:$72 sps:$4 sm:$0xff]  }
 0x353   :  { %v5912_v28 = vadd.f32 %v5911_v30, %v12743_v58  ;;  %v6133_v43 = vpop.f32.mrf.mxu0  ;;  %6589 = vmatprep.mubr.bf16.mxu0 %v8079_v47  ;;  %v8088_v47 = vld [vmem:[%s12590_s2 + $0xbfc] ss:$72 sps:$4 sm:$0xff]   ;;  %v8083_v58 = vld [vmem:[%s12590_s2 + $0xb70] ss:$72 sps:$4 sm:$0xff]  }
 0x354   :  { %v11835_v50 = vadd.f32 %v6133_v43, %v5909_v7  ;;  %v5913_v51 = vpop.f32.mrf.mxu1 }
 0x355   :  { %v6135_v1 = vpop.f32.mrf.mxu0  ;;  %v8091_v51 = vld [vmem:[%s12590_s2 + $0xc04] ss:$72 sps:$4 sm:$0xff]  }
 0x356   :  { %v5916_v48 = vpop.f32.mrf.mxu1  ;;  %6365 = vmatmul.mubr.bf16.gmra.mxu1 %v8074_v8 }
 0x357   :  { %v5917_v11 = vadd.f32 %v5916_v48, %v12744_v44  ;;  %v6136_v57 = vpop.f32.mrf.mxu0  ;;  %6372 = vmatprep.mubr.bf16.mxu1 %v8082_v23 }
 0x358   :  { %v11844_v35 = vadd.f32 %v6136_v57, %v5912_v28  ;;  %v5918_v52 = vpop.f32.mrf.mxu1  ;;  %v12746_v28 = vld [vmem:[#allocation19_spill] sm:$0xff]  ;;  %v12747_v57 = vld [vmem:[#allocation42_spill] sm:$0xff] }
 0x359   :  { %v6138_v56 = vpop.f32.mrf.mxu0 }
 0x35a   :  { %v5919_v54 = vpop.f32.mrf.mxu1  ;;  %6590 = vmatmul.mubr.bf16.gmra.mxu0 %v8077_v26  ;;  %v8094_v56 = vld [vmem:[%s12590_s2 + $0xc8c] ss:$72 sps:$4 sm:$0xff]  }
 0x35b   :  { %v5920_v7 = vadd.f32 %v5919_v54, %v12745_v16  ;;  %v6141_v31 = vpop.f32.mrf.mxu0  ;;  %6597 = vmatprep.mubr.bf16.mxu0 %v8085_v21 }
 0x35c   :  { %v11853_v29 = vadd.f32 %v6141_v31, %v5917_v11  ;;  %v5921_v14 = vpop.f32.mrf.mxu1  ;;  %v8086_v11 = vld [vmem:[%s12590_s2 + $0xbf8] ss:$72 sps:$4 sm:$0xff]  }
 0x35d   :  { %v6143_v30 = vpop.f32.mrf.mxu0  ;;  %v8089_v31 = vld [vmem:[%s12590_s2 + $0xc00] ss:$72 sps:$4 sm:$0xff]  }
 0x35e   :  { %v5924_v8 = vpop.f32.mrf.mxu1  ;;  %6373 = vmatmul.mubr.bf16.gmra.mxu1 %v8080_v2 }
 0x35f   :  { %v5925_v43 = vadd.f32 %v5924_v8, %v12746_v28  ;;  %v6144_v23 = vpop.f32.mrf.mxu0  ;;  %6380 = vmatprep.mubr.bf16.mxu1 %v8088_v47  ;;  %v12748_v47 = vld [vmem:[#allocation23_spill] sm:$0xff]  ;;  %v8097_v8 = vld [vmem:[%s12590_s2 + $0xc94] ss:$72 sps:$4 sm:$0xff]  }
 0x360   :  { %v11862_v1 = vadd.f32 %v6144_v23, %v5920_v7  ;;  %v5926_v48 = vpop.f32.mrf.mxu1 }
 0x361   :  { %v6146_v26 = vpop.f32.mrf.mxu0  ;;  %v12749_v48 = vld [vmem:[#allocation25_spill] sm:$0xff] }
 0x362   :  { %v5927_v44 = vpop.f32.mrf.mxu1  ;;  %6598 = vmatmul.mubr.bf16.gmra.mxu0 %v8083_v58 }
 0x363   :  { %v5928_v21 = vadd.f32 %v5927_v44, %v12747_v57  ;;  %v6149_v52 = vpop.f32.mrf.mxu0  ;;  %6605 = vmatprep.mubr.bf16.mxu0 %v8091_v51  ;;  %v8092_v51 = vld [vmem:[%s12590_s2 + $0xc88] ss:$72 sps:$4 sm:$0xff]  }
 0x364   :  { %v11871_v54 = vadd.f32 %v6149_v52, %v5925_v43  ;;  %v5929_v2 = vpop.f32.mrf.mxu1 }
 0x365   :  { %v6151_v16 = vpop.f32.mrf.mxu0  ;;  %v8095_v2 = vld [vmem:[%s12590_s2 + $0xc90] ss:$72 sps:$4 sm:$0xff]  }
 0x366   :  { %v5932_v7 = vpop.f32.mrf.mxu1  ;;  %6381 = vmatmul.mubr.bf16.gmra.mxu1 %v8086_v11  ;;  %v8100_v11 = vld [vmem:[%s12590_s2 + $0xd1c] ss:$72 sps:$4 sm:$0xff]  }
 0x367   :  { %v5933_v14 = vadd.f32 %v5932_v7, %v12748_v47  ;;  %v6152_v30 = vpop.f32.mrf.mxu0  ;;  %6388 = vmatprep.mubr.bf16.mxu1 %v8094_v56  ;;  %v12750_v16 = vld [vmem:[#allocation46_spill] sm:$0xff] }
 0x368   :  { %v11880_v58 = vadd.f32 %v6152_v30, %v5928_v21  ;;  %v5934_v28 = vpop.f32.mrf.mxu1  ;;  %v8103_v47 = vld [vmem:[%s12590_s2 + $0xd24] ss:$72 sps:$4 sm:$0xff]  }
 0x369   :  { %v6154_v43 = vpop.f32.mrf.mxu0 }
 0x36a   :  { %v5935_v23 = vpop.f32.mrf.mxu1  ;;  %6606 = vmatmul.mubr.bf16.gmra.mxu0 %v8089_v31  ;;  %v8098_v43 = vld [vmem:[%s12590_s2 + $0xd18] ss:$72 sps:$4 sm:$0xff]  }
 0x36b   :  { %v5936_v26 = vadd.f32 %v5935_v23, %v12749_v48  ;;  %v6157_v44 = vpop.f32.mrf.mxu0  ;;  %6613 = vmatprep.mubr.bf16.mxu0 %v8097_v8  ;;  %v12751_v23 = vld [vmem:[#allocation29_spill] sm:$0xff] }
 0x36c   :  { %v11889_v57 = vadd.f32 %v6157_v44, %v5933_v14  ;;  %v5937_v21 = vpop.f32.mrf.mxu1  ;;  %v8106_v44 = vld [vmem:[%s12590_s2 + $0x3c] ss:$72 sps:$4 sm:$0xff]  }
 0x36d   :  { %v6159_v52 = vpop.f32.mrf.mxu0 }
 0x36e   :  { %v5940_v56 = vpop.f32.mrf.mxu1  ;;  %6389 = vmatmul.mubr.bf16.gmra.mxu1 %v8092_v51 }
 0x36f   :  { %v5941_v7 = vadd.f32 %v5940_v56, %v12750_v16  ;;  %v6160_v31 = vpop.f32.mrf.mxu0  ;;  %6396 = vmatprep.mubr.bf16.mxu1 %v8100_v11  ;;  %v8101_v56 = vld [vmem:[%s12590_s2 + $0xd20] ss:$72 sps:$4 sm:$0xff]  }
 0x370   :  { %v11898_v30 = vadd.f32 %v6160_v31, %v5936_v26  ;;  %v5942_v14 = vpop.f32.mrf.mxu1  ;;  %v8109_v31 = vld [vmem:[%s12590_s2 + $0x44] ss:$72 sps:$4 sm:$0xff]  }
 0x371   :  { %v6162_v8 = vpop.f32.mrf.mxu0 }
 0x372   :  { %v5943_v28 = vpop.f32.mrf.mxu1  ;;  %6614 = vmatmul.mubr.bf16.gmra.mxu0 %v8095_v2 }
 0x373   :  { %v5944_v51 = vadd.f32 %v5943_v28, %v12751_v23  ;;  %v6165_v48 = vpop.f32.mrf.mxu0  ;;  %6621 = vmatprep.mubr.bf16.mxu0 %v8103_v47  ;;  %v8104_v28 = vld [vmem:[%s12590_s2 + $0x38] ss:$72 sps:$4 sm:$0xff]  }
 0x374   :  { %v11907_v11 = vadd.f32 %v6165_v48, %v5941_v7  ;;  %v5945_v26 = vpop.f32.mrf.mxu1 }
 0x375   :  { %v6167_v21 = vpop.f32.mrf.mxu0 }
 0x376   :  { %v5948_v52 = vpop.f32.mrf.mxu1  ;;  %6397 = vmatmul.mubr.bf16.gmra.mxu1 %v8098_v43  ;;  %v8107_v21 = vld [vmem:[%s12590_s2 + $0x40] ss:$72 sps:$4 sm:$0xff]  }
 0x377   :  { %v5949_v2 = vadd.f32 %v5948_v52, %v11201_v15  ;;  %v6168_v16 = vpop.f32.mrf.mxu0  ;;  %6662 = vmatprep.mubr.bf16.mxu1 %v8106_v44  ;;  %v8112_v15 = vld [vmem:[%s12590_s2 + $0xcc] ss:$72 sps:$4 sm:$0xff]  }
 0x378   :  { %v11916_v47 = vadd.f32 %v6168_v16, %v5944_v51  ;;  %v5950_v7 = vpop.f32.mrf.mxu1 }
 0x379   :  { %v6170_v14 = vpop.f32.mrf.mxu0 }
 0x37a   :  { %v5951_v8 = vpop.f32.mrf.mxu1  ;;  %6622 = vmatmul.mubr.bf16.gmra.mxu0 %v8101_v56  ;;  %v8110_v14 = vld [vmem:[%s12590_s2 + $0xc8] ss:$72 sps:$4 sm:$0xff]  }
 0x37b   :  { %v5952_v43 = vadd.f32 %v5951_v8, %v11229_v60  ;;  %v6173_v23 = vpop.f32.mrf.mxu0  ;;  %6887 = vmatprep.mubr.bf16.mxu0 %v8109_v31  ;;  %v8115_v60 = vld [vmem:[%s12590_s2 + $0xd4] ss:$72 sps:$4 sm:$0xff]  }
 0x37c   :  { %v11925_v48 = vadd.f32 %v6173_v23, %v5949_v2  ;;  %v5953_v51 = vpop.f32.mrf.mxu1 }
 0x37d   :  { %v6175_v44 = vpop.f32.mrf.mxu0 }
 0x37e   :  { %v6214_v26 = vpop.f32.mrf.mxu1  ;;  %6663 = vmatmul.mubr.bf16.vlgmr.msra.gmra.mxu1 %v8104_v28  ;;  %v8113_v44 = vld [vmem:[%s12590_s2 + $0xd0] ss:$72 sps:$4 sm:$0xff]  }
 0x37f   :  { %v6176_v52 = vpop.f32.mrf.mxu0  ;;  %v6215_v56 = vadd.f32 %v6214_v26, %v11257_v24  ;;  %6670 = vmatprep.mubr.bf16.mxu1 %v8112_v15  ;;  %v8118_v24 = vld [vmem:[%s12590_s2 + $0x15c] ss:$72 sps:$4 sm:$0xff]  }
 0x380   :  { %v11934_v16 = vadd.f32 %v6176_v52, %v5952_v43  ;;  %v6216_v2 = vpop.f32.mrf.mxu1 }
 0x381   :  { %v6178_v31 = vpop.f32.mrf.mxu0 }
 0x382   :  { %v6217_v7 = vpop.f32.mrf.mxu1  ;;  %6888 = vmatmul.mubr.bf16.vlgmr.msra.gmra.mxu0 %v8107_v21  ;;  %v8116_v31 = vld [vmem:[%s12590_s2 + $0x158] ss:$72 sps:$4 sm:$0xff]  }
 0x383   :  { %v6218_v8 = vadd.f32 %v6217_v7, %v11286_v19  ;;  %v6439_v28 = vpop.f32.mrf.mxu0  ;;  %6895 = vmatprep.mubr.bf16.mxu0 %v8115_v60  ;;  %v8121_v19 = vld [vmem:[%s12590_s2 + $0x164] ss:$72 sps:$4 sm:$0xff]  }
 0x384   :  { %v11943_v23 = vadd.f32 %v6439_v28, %v6215_v56  ;;  %v6219_v43 = vpop.f32.mrf.mxu1 }
 0x385   :  { %v6441_v15 = vpop.f32.mrf.mxu0 }
 0x386   :  { %v6222_v51 = vpop.f32.mrf.mxu1  ;;  %6671 = vmatmul.mubr.bf16.gmra.mxu1 %v8110_v14  ;;  %v8119_v15 = vld [vmem:[%s12590_s2 + $0x160] ss:$72 sps:$4 sm:$0xff]  }
 0x387   :  { %v6223_v26 = vadd.f32 %v6222_v51, %v11319_v62  ;;  %v6442_v21 = vpop.f32.mrf.mxu0  ;;  %6678 = vmatprep.mubr.bf16.mxu1 %v8118_v24  ;;  %v8124_v62 = vld [vmem:[%s12590_s2 + $0x1ec] ss:$72 sps:$4 sm:$0xff]  }
 0x388   :  { %v11952_v52 = vadd.f32 %v6442_v21, %v6218_v8  ;;  %v6224_v56 = vpop.f32.mrf.mxu1 }
 0x389   :  { %v6444_v60 = vpop.f32.mrf.mxu0 }
 0x38a   :  { %v6225_v2 = vpop.f32.mrf.mxu1  ;;  %6896 = vmatmul.mubr.bf16.gmra.mxu0 %v8113_v44  ;;  %v8122_v60 = vld [vmem:[%s12590_s2 + $0x1e8] ss:$72 sps:$4 sm:$0xff]  }
 0x38b   :  { %v6226_v7 = vadd.f32 %v6225_v2, %v11344_v41  ;;  %v6447_v14 = vpop.f32.mrf.mxu0  ;;  %6903 = vmatprep.mubr.bf16.mxu0 %v8121_v19  ;;  %v8127_v41 = vld [vmem:[%s12590_s2 + $0x1f4] ss:$72 sps:$4 sm:$0xff]  }
 0x38c   :  { %v11961_v28 = vadd.f32 %v6447_v14, %v6223_v26  ;;  %v6227_v8 = vpop.f32.mrf.mxu1 }
 0x38d   :  { %v6449_v24 = vpop.f32.mrf.mxu0 }
 0x38e   :  { %v6230_v43 = vpop.f32.mrf.mxu1  ;;  %6679 = vmatmul.mubr.bf16.gmra.mxu1 %v8116_v31  ;;  %v8125_v24 = vld [vmem:[%s12590_s2 + $0x1f0] ss:$72 sps:$4 sm:$0xff]  }
 0x38f   :  { %v6231_v51 = vadd.f32 %v6230_v43, %v11377_v10  ;;  %v6450_v44 = vpop.f32.mrf.mxu0  ;;  %6686 = vmatprep.mubr.bf16.mxu1 %v8124_v62  ;;  %v8130_v10 = vld [vmem:[%s12590_s2 + $0x27c] ss:$72 sps:$4 sm:$0xff]  }
 0x390   :  { %v11970_v21 = vadd.f32 %v6450_v44, %v6226_v7  ;;  %v6232_v26 = vpop.f32.mrf.mxu1 }
 0x391   :  { %v6452_v19 = vpop.f32.mrf.mxu0 }
 0x392   :  { %v6233_v56 = vpop.f32.mrf.mxu1  ;;  %6904 = vmatmul.mubr.bf16.gmra.mxu0 %v8119_v15  ;;  %v8128_v19 = vld [vmem:[%s12590_s2 + $0x278] ss:$72 sps:$4 sm:$0xff]  }
 0x393   :  { %v6234_v2 = vadd.f32 %v6233_v56, %v11406_v6  ;;  %v6455_v31 = vpop.f32.mrf.mxu0  ;;  %6911 = vmatprep.mubr.bf16.mxu0 %v8127_v41  ;;  %v8133_v6 = vld [vmem:[%s12590_s2 + $0x284] ss:$72 sps:$4 sm:$0xff]  }
 0x394   :  { %v11979_v14 = vadd.f32 %v6455_v31, %v6231_v51  ;;  %v6235_v7 = vpop.f32.mrf.mxu1 }
 0x395   :  { %v6457_v62 = vpop.f32.mrf.mxu0 }
 0x396   :  { %v6238_v8 = vpop.f32.mrf.mxu1  ;;  %6687 = vmatmul.mubr.bf16.gmra.mxu1 %v8122_v60  ;;  %v8131_v62 = vld [vmem:[%s12590_s2 + $0x280] ss:$72 sps:$4 sm:$0xff]  }
 0x397   :  { %v6239_v43 = vadd.f32 %v6238_v8, %v11435_v9  ;;  %v6458_v15 = vpop.f32.mrf.mxu0  ;;  %6694 = vmatprep.mubr.bf16.mxu1 %v8130_v10  ;;  %v8136_v9 = vld [vmem:[%s12590_s2 + $0x30c] ss:$72 sps:$4 sm:$0xff]  }
 0x398   :  { %v11988_v44 = vadd.f32 %v6458_v15, %v6234_v2  ;;  %v6240_v51 = vpop.f32.mrf.mxu1 }
 0x399   :  { %v6460_v41 = vpop.f32.mrf.mxu0 }
 0x39a   :  { %v6241_v26 = vpop.f32.mrf.mxu1  ;;  %6912 = vmatmul.mubr.bf16.gmra.mxu0 %v8125_v24  ;;  %v8134_v41 = vld [vmem:[%s12590_s2 + $0x308] ss:$72 sps:$4 sm:$0xff]  }
 0x39b   :  { %v6242_v56 = vadd.f32 %v6241_v26, %v11464_v40  ;;  %v6463_v60 = vpop.f32.mrf.mxu0  ;;  %6919 = vmatprep.mubr.bf16.mxu0 %v8133_v6  ;;  %v8139_v40 = vld [vmem:[%s12590_s2 + $0x314] ss:$72 sps:$4 sm:$0xff]  }
 0x39c   :  { %v11997_v31 = vadd.f32 %v6463_v60, %v6239_v43  ;;  %v6243_v2 = vpop.f32.mrf.mxu1 }
 0x39d   :  { %v6465_v10 = vpop.f32.mrf.mxu0 }
 0x39e   :  { %v6246_v7 = vpop.f32.mrf.mxu1  ;;  %6695 = vmatmul.mubr.bf16.gmra.mxu1 %v8128_v19  ;;  %v8137_v10 = vld [vmem:[%s12590_s2 + $0x310] ss:$72 sps:$4 sm:$0xff]  }
 0x39f   :  { %v6247_v8 = vadd.f32 %v6246_v7, %v11497_v0  ;;  %v6466_v24 = vpop.f32.mrf.mxu0  ;;  %6702 = vmatprep.mubr.bf16.mxu1 %v8136_v9  ;;  %v8142_v0 = vld [vmem:[%s12590_s2 + $0x39c] ss:$72 sps:$4 sm:$0xff]  }
 0x3a0   :  { %v12006_v15 = vadd.f32 %v6466_v24, %v6242_v56  ;;  %v6248_v43 = vpop.f32.mrf.mxu1 }
 0x3a1   :  { %v6468_v6 = vpop.f32.mrf.mxu0 }
 0x3a2   :  { %v6249_v51 = vpop.f32.mrf.mxu1  ;;  %6920 = vmatmul.mubr.bf16.gmra.mxu0 %v8131_v62  ;;  %v8140_v6 = vld [vmem:[%s12590_s2 + $0x398] ss:$72 sps:$4 sm:$0xff]  }
 0x3a3   :  { %v6250_v26 = vadd.f32 %v6249_v51, %v11522_v18  ;;  %v6471_v19 = vpop.f32.mrf.mxu0  ;;  %6927 = vmatprep.mubr.bf16.mxu0 %v8139_v40  ;;  %v8145_v18 = vld [vmem:[%s12590_s2 + $0x3a4] ss:$72 sps:$4 sm:$0xff]  }
 0x3a4   :  { %v12015_v60 = vadd.f32 %v6471_v19, %v6247_v8  ;;  %v6251_v56 = vpop.f32.mrf.mxu1 }
 0x3a5   :  { %v6473_v9 = vpop.f32.mrf.mxu0 }
 0x3a6   :  { %v6254_v2 = vpop.f32.mrf.mxu1  ;;  %6703 = vmatmul.mubr.bf16.gmra.mxu1 %v8134_v41  ;;  %v8143_v9 = vld [vmem:[%s12590_s2 + $0x3a0] ss:$72 sps:$4 sm:$0xff]  }
 0x3a7   :  { %v6255_v7 = vadd.f32 %v6254_v2, %v11555_v38  ;;  %v6474_v62 = vpop.f32.mrf.mxu0  ;;  %6710 = vmatprep.mubr.bf16.mxu1 %v8142_v0  ;;  %v8148_v38 = vld [vmem:[%s12590_s2 + $0x42c] ss:$72 sps:$4 sm:$0xff]  }
 0x3a8   :  { %v12024_v24 = vadd.f32 %v6474_v62, %v6250_v26  ;;  %v6256_v8 = vpop.f32.mrf.mxu1 }
 0x3a9   :  { %v6476_v40 = vpop.f32.mrf.mxu0 }
 0x3aa   :  { %v6257_v43 = vpop.f32.mrf.mxu1  ;;  %6928 = vmatmul.mubr.bf16.gmra.mxu0 %v8137_v10  ;;  %v8146_v40 = vld [vmem:[%s12590_s2 + $0x428] ss:$72 sps:$4 sm:$0xff]  }
 0x3ab   :  { %v6258_v51 = vadd.f32 %v6257_v43, %v11580_v37  ;;  %v6479_v41 = vpop.f32.mrf.mxu0  ;;  %6935 = vmatprep.mubr.bf16.mxu0 %v8145_v18  ;;  %v8151_v37 = vld [vmem:[%s12590_s2 + $0x434] ss:$72 sps:$4 sm:$0xff]  }
 0x3ac   :  { %v12033_v19 = vadd.f32 %v6479_v41, %v6255_v7  ;;  %v6259_v26 = vpop.f32.mrf.mxu1 }
 0x3ad   :  { %v6481_v0 = vpop.f32.mrf.mxu0 }
 0x3ae   :  { %v6262_v56 = vpop.f32.mrf.mxu1  ;;  %6711 = vmatmul.mubr.bf16.gmra.mxu1 %v8140_v6  ;;  %v8149_v0 = vld [vmem:[%s12590_s2 + $0x430] ss:$72 sps:$4 sm:$0xff]  }
 0x3af   :  { %v6263_v2 = vadd.f32 %v6262_v56, %v11603_v22  ;;  %v6482_v10 = vpop.f32.mrf.mxu0  ;;  %6718 = vmatprep.mubr.bf16.mxu1 %v8148_v38  ;;  %v8154_v22 = vld [vmem:[%s12590_s2 + $0x4bc] ss:$72 sps:$4 sm:$0xff]  }
 0x3b0   :  { %v12042_v62 = vadd.f32 %v6482_v10, %v6258_v51  ;;  %v6264_v7 = vpop.f32.mrf.mxu1 }
 0x3b1   :  { %v6484_v18 = vpop.f32.mrf.mxu0 }
 0x3b2   :  { %v6265_v8 = vpop.f32.mrf.mxu1  ;;  %6936 = vmatmul.mubr.bf16.gmra.mxu0 %v8143_v9  ;;  %v8152_v18 = vld [vmem:[%s12590_s2 + $0x4b8] ss:$72 sps:$4 sm:$0xff]  }
 0x3b3   :  { %v6266_v43 = vadd.f32 %v6265_v8, %v11622_v45  ;;  %v6487_v6 = vpop.f32.mrf.mxu0  ;;  %6943 = vmatprep.mubr.bf16.mxu0 %v8151_v37  ;;  %v8157_v45 = vld [vmem:[%s12590_s2 + $0x4c4] ss:$72 sps:$4 sm:$0xff]  }
 0x3b4   :  { %v12051_v41 = vadd.f32 %v6487_v6, %v6263_v2  ;;  %v6267_v51 = vpop.f32.mrf.mxu1 }
 0x3b5   :  { %v6489_v38 = vpop.f32.mrf.mxu0 }
 0x3b6   :  { %v6270_v26 = vpop.f32.mrf.mxu1  ;;  %6719 = vmatmul.mubr.bf16.gmra.mxu1 %v8146_v40  ;;  %v8155_v38 = vld [vmem:[%s12590_s2 + $0x4c0] ss:$72 sps:$4 sm:$0xff]  }
 0x3b7   :  { %v6271_v56 = vadd.f32 %v6270_v26, %v11636_v55  ;;  %v6490_v9 = vpop.f32.mrf.mxu0  ;;  %6726 = vmatprep.mubr.bf16.mxu1 %v8154_v22  ;;  %v8160_v55 = vld [vmem:[%s12590_s2 + $0x54c] ss:$72 sps:$4 sm:$0xff]  }
 0x3b8   :  { %v12060_v10 = vadd.f32 %v6490_v9, %v6266_v43  ;;  %v6272_v2 = vpop.f32.mrf.mxu1 }
 0x3b9   :  { %v6492_v37 = vpop.f32.mrf.mxu0 }
 0x3ba   :  { %v6273_v7 = vpop.f32.mrf.mxu1  ;;  %6944 = vmatmul.mubr.bf16.gmra.mxu0 %v8149_v0  ;;  %v8158_v37 = vld [vmem:[%s12590_s2 + $0x548] ss:$72 sps:$4 sm:$0xff]  }
 0x3bb   :  { %v6274_v8 = vadd.f32 %v6273_v7, %v11646_v42  ;;  %v6495_v40 = vpop.f32.mrf.mxu0  ;;  %6951 = vmatprep.mubr.bf16.mxu0 %v8157_v45  ;;  %v8163_v42 = vld [vmem:[%s12590_s2 + $0x554] ss:$72 sps:$4 sm:$0xff]  }
 0x3bc   :  { %v12069_v6 = vadd.f32 %v6495_v40, %v6271_v56  ;;  %v6275_v43 = vpop.f32.mrf.mxu1 }
 0x3bd   :  { %v6497_v22 = vpop.f32.mrf.mxu0 }
 0x3be   :  { %v6278_v51 = vpop.f32.mrf.mxu1  ;;  %6727 = vmatmul.mubr.bf16.gmra.mxu1 %v8152_v18  ;;  %v8161_v22 = vld [vmem:[%s12590_s2 + $0x550] ss:$72 sps:$4 sm:$0xff]  }
 0x3bf   :  { %v6279_v26 = vadd.f32 %v6278_v51, %v11655_v34  ;;  %v6498_v0 = vpop.f32.mrf.mxu0  ;;  %6734 = vmatprep.mubr.bf16.mxu1 %v8160_v55  ;;  %v8166_v34 = vld [vmem:[%s12590_s2 + $0x5dc] ss:$72 sps:$4 sm:$0xff]  }
 0x3c0   :  { %v12078_v9 = vadd.f32 %v6498_v0, %v6274_v8  ;;  %v6280_v56 = vpop.f32.mrf.mxu1 }
 0x3c1   :  { %v6500_v45 = vpop.f32.mrf.mxu0 }
 0x3c2   :  { %v6281_v2 = vpop.f32.mrf.mxu1  ;;  %6952 = vmatmul.mubr.bf16.gmra.mxu0 %v8155_v38  ;;  %v8164_v45 = vld [vmem:[%s12590_s2 + $0x5d8] ss:$72 sps:$4 sm:$0xff]  }
 0x3c3   :  { %v6282_v7 = vadd.f32 %v6281_v2, %v11664_v5  ;;  %v6503_v18 = vpop.f32.mrf.mxu0  ;;  %6959 = vmatprep.mubr.bf16.mxu0 %v8163_v42  ;;  %v8169_v5 = vld [vmem:[%s12590_s2 + $0x5e4] ss:$72 sps:$4 sm:$0xff]  }
 0x3c4   :  { %v12087_v40 = vadd.f32 %v6503_v18, %v6279_v26  ;;  %v6283_v8 = vpop.f32.mrf.mxu1 }
 0x3c5   :  { %v6505_v55 = vpop.f32.mrf.mxu0 }
 0x3c6   :  { %v6286_v43 = vpop.f32.mrf.mxu1  ;;  %6735 = vmatmul.mubr.bf16.gmra.mxu1 %v8158_v37  ;;  %v8167_v55 = vld [vmem:[%s12590_s2 + $0x5e0] ss:$72 sps:$4 sm:$0xff]  }
 0x3c7   :  { %v6287_v51 = vadd.f32 %v6286_v43, %v11673_v39  ;;  %v6506_v38 = vpop.f32.mrf.mxu0  ;;  %6742 = vmatprep.mubr.bf16.mxu1 %v8166_v34  ;;  %v8172_v39 = vld [vmem:[%s12590_s2 + $0x66c] ss:$72 sps:$4 sm:$0xff]  }
 0x3c8   :  { %v12096_v0 = vadd.f32 %v6506_v38, %v6282_v7  ;;  %v6288_v26 = vpop.f32.mrf.mxu1 }
 0x3c9   :  { %v6508_v42 = vpop.f32.mrf.mxu0 }
 0x3ca   :  { %v6289_v56 = vpop.f32.mrf.mxu1  ;;  %6960 = vmatmul.mubr.bf16.gmra.mxu0 %v8161_v22  ;;  %v8170_v42 = vld [vmem:[%s12590_s2 + $0x668] ss:$72 sps:$4 sm:$0xff]  }
 0x3cb   :  { %v6290_v2 = vadd.f32 %v6289_v56, %v11682_v3  ;;  %v6511_v37 = vpop.f32.mrf.mxu0  ;;  %6967 = vmatprep.mubr.bf16.mxu0 %v8169_v5  ;;  %v8175_v3 = vld [vmem:[%s12590_s2 + $0x674] ss:$72 sps:$4 sm:$0xff]  }
 0x3cc   :  { %v12105_v18 = vadd.f32 %v6511_v37, %v6287_v51  ;;  %v6291_v7 = vpop.f32.mrf.mxu1 }
 0x3cd   :  { %v6513_v34 = vpop.f32.mrf.mxu0 }
 0x3ce   :  { %v6294_v8 = vpop.f32.mrf.mxu1  ;;  %6743 = vmatmul.mubr.bf16.gmra.mxu1 %v8164_v45  ;;  %v8173_v34 = vld [vmem:[%s12590_s2 + $0x670] ss:$72 sps:$4 sm:$0xff]  }
 0x3cf   :  { %v6295_v43 = vadd.f32 %v6294_v8, %v11691_v27  ;;  %v6514_v22 = vpop.f32.mrf.mxu0  ;;  %6750 = vmatprep.mubr.bf16.mxu1 %v8172_v39  ;;  %v8178_v27 = vld [vmem:[%s12590_s2 + $0x6fc] ss:$72 sps:$4 sm:$0xff]  }
 0x3d0   :  { %v12114_v38 = vadd.f32 %v6514_v22, %v6290_v2  ;;  %v6296_v51 = vpop.f32.mrf.mxu1 }
 0x3d1   :  { %v6516_v5 = vpop.f32.mrf.mxu0 }
 0x3d2   :  { %v6297_v26 = vpop.f32.mrf.mxu1  ;;  %6968 = vmatmul.mubr.bf16.gmra.mxu0 %v8167_v55  ;;  %v8176_v5 = vld [vmem:[%s12590_s2 + $0x6f8] ss:$72 sps:$4 sm:$0xff]  }
 0x3d3   :  { %v6298_v56 = vadd.f32 %v6297_v26, %v11700_v36  ;;  %v6519_v45 = vpop.f32.mrf.mxu0  ;;  %6975 = vmatprep.mubr.bf16.mxu0 %v8175_v3  ;;  %v8181_v36 = vld [vmem:[%s12590_s2 + $0x704] ss:$72 sps:$4 sm:$0xff]  }
 0x3d4   :  { %v12123_v37 = vadd.f32 %v6519_v45, %v6295_v43  ;;  %v6299_v2 = vpop.f32.mrf.mxu1 }
 0x3d5   :  { %v6521_v39 = vpop.f32.mrf.mxu0 }
 0x3d6   :  { %v6302_v7 = vpop.f32.mrf.mxu1  ;;  %6751 = vmatmul.mubr.bf16.gmra.mxu1 %v8170_v42  ;;  %v8179_v39 = vld [vmem:[%s12590_s2 + $0x700] ss:$72 sps:$4 sm:$0xff]  }
 0x3d7   :  { %v6303_v8 = vadd.f32 %v6302_v7, %v11709_v25  ;;  %v6522_v55 = vpop.f32.mrf.mxu0  ;;  %6758 = vmatprep.mubr.bf16.mxu1 %v8178_v27  ;;  %v8184_v25 = vld [vmem:[%s12590_s2 + $0x78c] ss:$72 sps:$4 sm:$0xff]  }
 0x3d8   :  { %v12132_v22 = vadd.f32 %v6522_v55, %v6298_v56  ;;  %v6304_v43 = vpop.f32.mrf.mxu1 }
 0x3d9   :  { %v6524_v3 = vpop.f32.mrf.mxu0 }
 0x3da   :  { %v6305_v51 = vpop.f32.mrf.mxu1  ;;  %6976 = vmatmul.mubr.bf16.gmra.mxu0 %v8173_v34  ;;  %v8182_v3 = vld [vmem:[%s12590_s2 + $0x788] ss:$72 sps:$4 sm:$0xff]  }
 0x3db   :  { %v6306_v26 = vadd.f32 %v6305_v51, %v11718_v13  ;;  %v6527_v42 = vpop.f32.mrf.mxu0  ;;  %6983 = vmatprep.mubr.bf16.mxu0 %v8181_v36  ;;  %v8187_v13 = vld [vmem:[%s12590_s2 + $0x794] ss:$72 sps:$4 sm:$0xff]  }
 0x3dc   :  { %v12141_v45 = vadd.f32 %v6527_v42, %v6303_v8  ;;  %v6307_v56 = vpop.f32.mrf.mxu1 }
 0x3dd   :  { %v6529_v27 = vpop.f32.mrf.mxu0 }
 0x3de   :  { %v6310_v2 = vpop.f32.mrf.mxu1  ;;  %6759 = vmatmul.mubr.bf16.gmra.mxu1 %v8176_v5  ;;  %v8185_v27 = vld [vmem:[%s12590_s2 + $0x790] ss:$72 sps:$4 sm:$0xff]  }
 0x3df   :  { %v6311_v7 = vadd.f32 %v6310_v2, %v11727_v46  ;;  %v6530_v34 = vpop.f32.mrf.mxu0  ;;  %6766 = vmatprep.mubr.bf16.mxu1 %v8184_v25  ;;  %v8190_v46 = vld [vmem:[%s12590_s2 + $0x81c] ss:$72 sps:$4 sm:$0xff]  }
 0x3e0   :  { %v12150_v55 = vadd.f32 %v6530_v34, %v6306_v26  ;;  %v6312_v8 = vpop.f32.mrf.mxu1 }
 0x3e1   :  { %v6532_v36 = vpop.f32.mrf.mxu0 }
 0x3e2   :  { %v6313_v43 = vpop.f32.mrf.mxu1  ;;  %6984 = vmatmul.mubr.bf16.gmra.mxu0 %v8179_v39  ;;  %v8188_v36 = vld [vmem:[%s12590_s2 + $0x818] ss:$72 sps:$4 sm:$0xff]  }
 0x3e3   :  { %v6314_v51 = vadd.f32 %v6313_v43, %v11736_v17  ;;  %v6535_v5 = vpop.f32.mrf.mxu0  ;;  %6991 = vmatprep.mubr.bf16.mxu0 %v8187_v13  ;;  %v8193_v17 = vld [vmem:[%s12590_s2 + $0x824] ss:$72 sps:$4 sm:$0xff]  }
 0x3e4   :  { %v12159_v42 = vadd.f32 %v6535_v5, %v6311_v7  ;;  %v6315_v26 = vpop.f32.mrf.mxu1 }
 0x3e5   :  { %v6537_v25 = vpop.f32.mrf.mxu0 }
 0x3e6   :  { %v6318_v56 = vpop.f32.mrf.mxu1  ;;  %6767 = vmatmul.mubr.bf16.gmra.mxu1 %v8182_v3  ;;  %v8191_v25 = vld [vmem:[%s12590_s2 + $0x820] ss:$72 sps:$4 sm:$0xff]  }
 0x3e7   :  { %v6319_v2 = vadd.f32 %v6318_v56, %v11745_v61  ;;  %v6538_v39 = vpop.f32.mrf.mxu0  ;;  %6774 = vmatprep.mubr.bf16.mxu1 %v8190_v46  ;;  %v8196_v61 = vld [vmem:[%s12590_s2 + $0x8ac] ss:$72 sps:$4 sm:$0xff]  }
 0x3e8   :  { %v12168_v34 = vadd.f32 %v6538_v39, %v6314_v51  ;;  %v6320_v7 = vpop.f32.mrf.mxu1 }
 0x3e9   :  { %v6540_v13 = vpop.f32.mrf.mxu0 }
 0x3ea   :  { %v6321_v8 = vpop.f32.mrf.mxu1  ;;  %6992 = vmatmul.mubr.bf16.gmra.mxu0 %v8185_v27  ;;  %v8194_v13 = vld [vmem:[%s12590_s2 + $0x8a8] ss:$72 sps:$4 sm:$0xff]  }
 0x3eb   :  { %v6322_v43 = vadd.f32 %v6321_v8, %v11754_v12  ;;  %v6543_v3 = vpop.f32.mrf.mxu0  ;;  %6999 = vmatprep.mubr.bf16.mxu0 %v8193_v17  ;;  %v8199_v12 = vld [vmem:[%s12590_s2 + $0x8b4] ss:$72 sps:$4 sm:$0xff]  }
 0x3ec   :  { %v12177_v5 = vadd.f32 %v6543_v3, %v6319_v2  ;;  %v6323_v51 = vpop.f32.mrf.mxu1 }
 0x3ed   :  { %v6545_v46 = vpop.f32.mrf.mxu0 }
 0x3ee   :  { %v6326_v26 = vpop.f32.mrf.mxu1  ;;  %6775 = vmatmul.mubr.bf16.gmra.mxu1 %v8188_v36  ;;  %v8197_v46 = vld [vmem:[%s12590_s2 + $0x8b0] ss:$72 sps:$4 sm:$0xff]  }
 0x3ef   :  { %v6327_v56 = vadd.f32 %v6326_v26, %v11763_v20  ;;  %v6546_v27 = vpop.f32.mrf.mxu0  ;;  %6782 = vmatprep.mubr.bf16.mxu1 %v8196_v61  ;;  %v8202_v20 = vld [vmem:[%s12590_s2 + $0x93c] ss:$72 sps:$4 sm:$0xff]  }
 0x3f0   :  { %v12186_v39 = vadd.f32 %v6546_v27, %v6322_v43  ;;  %v6328_v2 = vpop.f32.mrf.mxu1 }
 0x3f1   :  { %v6548_v17 = vpop.f32.mrf.mxu0 }
 0x3f2   :  { %v6329_v7 = vpop.f32.mrf.mxu1  ;;  %7000 = vmatmul.mubr.bf16.gmra.mxu0 %v8191_v25  ;;  %v8200_v17 = vld [vmem:[%s12590_s2 + $0x938] ss:$72 sps:$4 sm:$0xff]  }
 0x3f3   :  { %v6330_v8 = vadd.f32 %v6329_v7, %v11772_v32  ;;  %v6551_v36 = vpop.f32.mrf.mxu0  ;;  %7007 = vmatprep.mubr.bf16.mxu0 %v8199_v12  ;;  %v8205_v32 = vld [vmem:[%s12590_s2 + $0x944] ss:$72 sps:$4 sm:$0xff]  }
 0x3f4   :  { %v12195_v3 = vadd.f32 %v6551_v36, %v6327_v56  ;;  %v6331_v43 = vpop.f32.mrf.mxu1 }
 0x3f5   :  { %v6553_v61 = vpop.f32.mrf.mxu0 }
 0x3f6   :  { %v6334_v51 = vpop.f32.mrf.mxu1  ;;  %6783 = vmatmul.mubr.bf16.gmra.mxu1 %v8194_v13  ;;  %v8203_v61 = vld [vmem:[%s12590_s2 + $0x940] ss:$72 sps:$4 sm:$0xff]  }
 0x3f7   :  { %v6335_v26 = vadd.f32 %v6334_v51, %v11781_v4  ;;  %v6554_v25 = vpop.f32.mrf.mxu0  ;;  %6790 = vmatprep.mubr.bf16.mxu1 %v8202_v20  ;;  %v8208_v4 = vld [vmem:[%s12590_s2 + $0x9cc] ss:$72 sps:$4 sm:$0xff]  }
 0x3f8   :  { %v12204_v27 = vadd.f32 %v6554_v25, %v6330_v8  ;;  %v6336_v56 = vpop.f32.mrf.mxu1 }
 0x3f9   :  { %v6556_v12 = vpop.f32.mrf.mxu0 }
 0x3fa   :  { %v6337_v2 = vpop.f32.mrf.mxu1  ;;  %7008 = vmatmul.mubr.bf16.gmra.mxu0 %v8197_v46  ;;  %v8206_v12 = vld [vmem:[%s12590_s2 + $0x9c8] ss:$72 sps:$4 sm:$0xff]  }
 0x3fb   :  { %v6338_v7 = vadd.f32 %v6337_v2, %v11790_v53  ;;  %v6559_v13 = vpop.f32.mrf.mxu0  ;;  %7015 = vmatprep.mubr.bf16.mxu0 %v8205_v32  ;;  %v8211_v53 = vld [vmem:[%s12590_s2 + $0x9d4] ss:$72 sps:$4 sm:$0xff]  }
 0x3fc   :  { %v12213_v36 = vadd.f32 %v6559_v13, %v6335_v26  ;;  %v6339_v8 = vpop.f32.mrf.mxu1 }
 0x3fd   :  { %v6561_v20 = vpop.f32.mrf.mxu0 }
 0x3fe   :  { %v6342_v43 = vpop.f32.mrf.mxu1  ;;  %6791 = vmatmul.mubr.bf16.gmra.mxu1 %v8200_v17  ;;  %v8209_v20 = vld [vmem:[%s12590_s2 + $0x9d0] ss:$72 sps:$4 sm:$0xff]  }
 0x3ff   :  { %v6343_v51 = vadd.f32 %v6342_v43, %v11799_v33  ;;  %v6562_v46 = vpop.f32.mrf.mxu0  ;;  %6798 = vmatprep.mubr.bf16.mxu1 %v8208_v4  ;;  %v8214_v33 = vld [vmem:[%s12590_s2 + $0xa5c] ss:$72 sps:$4 sm:$0xff]  }
 0x400   :  { %v12222_v25 = vadd.f32 %v6562_v46, %v6338_v7  ;;  %v6344_v26 = vpop.f32.mrf.mxu1 }
 0x401   :  { %v6564_v32 = vpop.f32.mrf.mxu0 }
 0x402   :  { %v6345_v56 = vpop.f32.mrf.mxu1  ;;  %7016 = vmatmul.mubr.bf16.gmra.mxu0 %v8203_v61  ;;  %v8212_v32 = vld [vmem:[%s12590_s2 + $0xa58] ss:$72 sps:$4 sm:$0xff]  }
 0x403   :  { %v6346_v2 = vadd.f32 %v6345_v56, %v11808_v63  ;;  %v6567_v17 = vpop.f32.mrf.mxu0  ;;  %7023 = vmatprep.mubr.bf16.mxu0 %v8211_v53  ;;  %v8217_v63 = vld [vmem:[%s12590_s2 + $0xa64] ss:$72 sps:$4 sm:$0xff]  }
 0x404   :  { %v12231_v13 = vadd.f32 %v6567_v17, %v6343_v51  ;;  %v6347_v7 = vpop.f32.mrf.mxu1 }
 0x405   :  { %v6569_v4 = vpop.f32.mrf.mxu0 }
 0x406   :  { %v6350_v8 = vpop.f32.mrf.mxu1  ;;  %6799 = vmatmul.mubr.bf16.gmra.mxu1 %v8206_v12  ;;  %v8215_v4 = vld [vmem:[%s12590_s2 + $0xa60] ss:$72 sps:$4 sm:$0xff]  }
 0x407   :  { %v6351_v43 = vadd.f32 %v6350_v8, %v11817_v49  ;;  %v6570_v61 = vpop.f32.mrf.mxu0  ;;  %6806 = vmatprep.mubr.bf16.mxu1 %v8214_v33  ;;  %v8220_v49 = vld [vmem:[%s12590_s2 + $0xaec] ss:$72 sps:$4 sm:$0xff]  }
 0x408   :  { %v12240_v46 = vadd.f32 %v6570_v61, %v6346_v2  ;;  %v6352_v51 = vpop.f32.mrf.mxu1 }
 0x409   :  { %v6572_v53 = vpop.f32.mrf.mxu0 }
 0x40a   :  { %v6353_v26 = vpop.f32.mrf.mxu1  ;;  %7024 = vmatmul.mubr.bf16.gmra.mxu0 %v8209_v20  ;;  %v8218_v53 = vld [vmem:[%s12590_s2 + $0xae8] ss:$72 sps:$4 sm:$0xff]  }
 0x40b   :  { %v6354_v56 = vadd.f32 %v6353_v26, %v11826_v59  ;;  %v6575_v12 = vpop.f32.mrf.mxu0  ;;  %7031 = vmatprep.mubr.bf16.mxu0 %v8217_v63  ;;  %v8223_v59 = vld [vmem:[%s12590_s2 + $0xaf4] ss:$72 sps:$4 sm:$0xff]  }
 0x40c   :  { %v12249_v17 = vadd.f32 %v6575_v12, %v6351_v43  ;;  %v6355_v2 = vpop.f32.mrf.mxu1 }
 0x40d   :  { %v6577_v33 = vpop.f32.mrf.mxu0 }
 0x40e   :  { %v6358_v7 = vpop.f32.mrf.mxu1  ;;  %6807 = vmatmul.mubr.bf16.gmra.mxu1 %v8212_v32  ;;  %v8221_v33 = vld [vmem:[%s12590_s2 + $0xaf0] ss:$72 sps:$4 sm:$0xff]  }
 0x40f   :  { %v6359_v8 = vadd.f32 %v6358_v7, %v11835_v50  ;;  %v6578_v20 = vpop.f32.mrf.mxu0  ;;  %6814 = vmatprep.mubr.bf16.mxu1 %v8220_v49  ;;  %v8226_v50 = vld [vmem:[%s12590_s2 + $0xb7c] ss:$72 sps:$4 sm:$0xff]  }
 0x410   :  { %v12258_v61 = vadd.f32 %v6578_v20, %v6354_v56  ;;  %v6360_v43 = vpop.f32.mrf.mxu1 }
 0x411   :  { %v6580_v63 = vpop.f32.mrf.mxu0 }
 0x412   :  { %v6361_v51 = vpop.f32.mrf.mxu1  ;;  %7032 = vmatmul.mubr.bf16.gmra.mxu0 %v8215_v4  ;;  %v8224_v63 = vld [vmem:[%s12590_s2 + $0xb78] ss:$72 sps:$4 sm:$0xff]  }
 0x413   :  { %v6362_v26 = vadd.f32 %v6361_v51, %v11844_v35  ;;  %v6583_v32 = vpop.f32.mrf.mxu0  ;;  %7039 = vmatprep.mubr.bf16.mxu0 %v8223_v59  ;;  %v8229_v35 = vld [vmem:[%s12590_s2 + $0xb84] ss:$72 sps:$4 sm:$0xff]  }
 0x414   :  { %v12267_v12 = vadd.f32 %v6583_v32, %v6359_v8  ;;  %v6363_v56 = vpop.f32.mrf.mxu1 }
 0x415   :  { %v6585_v49 = vpop.f32.mrf.mxu0 }
 0x416   :  { %v6366_v2 = vpop.f32.mrf.mxu1  ;;  %6815 = vmatmul.mubr.bf16.gmra.mxu1 %v8218_v53  ;;  %v8227_v49 = vld [vmem:[%s12590_s2 + $0xb80] ss:$72 sps:$4 sm:$0xff]  }
 0x417   :  { %v6367_v7 = vadd.f32 %v6366_v2, %v11853_v29  ;;  %v6586_v4 = vpop.f32.mrf.mxu0  ;;  %6822 = vmatprep.mubr.bf16.mxu1 %v8226_v50  ;;  %v8232_v29 = vld [vmem:[%s12590_s2 + $0xc0c] ss:$72 sps:$4 sm:$0xff]  }
 0x418   :  { %v12276_v20 = vadd.f32 %v6586_v4, %v6362_v26  ;;  %v6368_v8 = vpop.f32.mrf.mxu1 }
 0x419   :  { %v6588_v59 = vpop.f32.mrf.mxu0 }
 0x41a   :  { %v6369_v43 = vpop.f32.mrf.mxu1  ;;  %7040 = vmatmul.mubr.bf16.gmra.mxu0 %v8221_v33  ;;  %v8230_v59 = vld [vmem:[%s12590_s2 + $0xc08] ss:$72 sps:$4 sm:$0xff]  }
 0x41b   :  { %v6370_v51 = vadd.f32 %v6369_v43, %v11862_v1  ;;  %v6591_v53 = vpop.f32.mrf.mxu0  ;;  %7047 = vmatprep.mubr.bf16.mxu0 %v8229_v35  ;;  %v8235_v1 = vld [vmem:[%s12590_s2 + $0xc14] ss:$72 sps:$4 sm:$0xff]  }
 0x41c   :  { %v12285_v32 = vadd.f32 %v6591_v53, %v6367_v7  ;;  %v6371_v26 = vpop.f32.mrf.mxu1 }
 0x41d   :  { %v6593_v50 = vpop.f32.mrf.mxu0 }
 0x41e   :  { %v6374_v56 = vpop.f32.mrf.mxu1  ;;  %6823 = vmatmul.mubr.bf16.gmra.mxu1 %v8224_v63  ;;  %v8233_v50 = vld [vmem:[%s12590_s2 + $0xc10] ss:$72 sps:$4 sm:$0xff]  }
 0x41f   :  { %v6375_v2 = vadd.f32 %v6374_v56, %v11871_v54  ;;  %v6594_v33 = vpop.f32.mrf.mxu0  ;;  %6830 = vmatprep.mubr.bf16.mxu1 %v8232_v29  ;;  %v8238_v54 = vld [vmem:[%s12590_s2 + $0xc9c] ss:$72 sps:$4 sm:$0xff]  }
 0x420   :  { %v12294_v4 = vadd.f32 %v6594_v33, %v6370_v51  ;;  %v6376_v7 = vpop.f32.mrf.mxu1 }
 0x421   :  { %v6596_v35 = vpop.f32.mrf.mxu0 }
 0x422   :  { %v6377_v8 = vpop.f32.mrf.mxu1  ;;  %7048 = vmatmul.mubr.bf16.gmra.mxu0 %v8227_v49  ;;  %v8236_v35 = vld [vmem:[%s12590_s2 + $0xc98] ss:$72 sps:$4 sm:$0xff]  }
 0x423   :  { %v6378_v43 = vadd.f32 %v6377_v8, %v11880_v58  ;;  %v6599_v63 = vpop.f32.mrf.mxu0  ;;  %7055 = vmatprep.mubr.bf16.mxu0 %v8235_v1  ;;  %v8241_v58 = vld [vmem:[%s12590_s2 + $0xca4] ss:$72 sps:$4 sm:$0xff]  }
 0x424   :  { %v12303_v53 = vadd.f32 %v6599_v63, %v6375_v2  ;;  %v6379_v51 = vpop.f32.mrf.mxu1 }
 0x425   :  { %v6601_v29 = vpop.f32.mrf.mxu0 }
 0x426   :  { %v6382_v26 = vpop.f32.mrf.mxu1  ;;  %6831 = vmatmul.mubr.bf16.gmra.mxu1 %v8230_v59  ;;  %v8239_v29 = vld [vmem:[%s12590_s2 + $0xca0] ss:$72 sps:$4 sm:$0xff]  }
 0x427   :  { %v6383_v56 = vadd.f32 %v6382_v26, %v11889_v57  ;;  %v6602_v49 = vpop.f32.mrf.mxu0  ;;  %6838 = vmatprep.mubr.bf16.mxu1 %v8238_v54  ;;  %v8244_v57 = vld [vmem:[%s12590_s2 + $0xd2c] ss:$72 sps:$4 sm:$0xff]  }
 0x428   :  { %v12312_v33 = vadd.f32 %v6602_v49, %v6378_v43  ;;  %v6384_v2 = vpop.f32.mrf.mxu1 }
 0x429   :  { %v6604_v1 = vpop.f32.mrf.mxu0 }
 0x42a   :  { %v6385_v7 = vpop.f32.mrf.mxu1  ;;  %7056 = vmatmul.mubr.bf16.gmra.mxu0 %v8233_v50  ;;  %v8242_v1 = vld [vmem:[%s12590_s2 + $0xd28] ss:$72 sps:$4 sm:$0xff]  }
 0x42b   :  { %v6386_v8 = vadd.f32 %v6385_v7, %v11898_v30  ;;  %v6607_v59 = vpop.f32.mrf.mxu0  ;;  %7063 = vmatprep.mubr.bf16.mxu0 %v8241_v58  ;;  %v8247_v30 = vld [vmem:[%s12590_s2 + $0xd34] ss:$72 sps:$4 sm:$0xff]  }
 0x42c   :  { %v12321_v63 = vadd.f32 %v6607_v59, %v6383_v56  ;;  %v6387_v43 = vpop.f32.mrf.mxu1 }
 0x42d   :  { %v6609_v54 = vpop.f32.mrf.mxu0 }
 0x42e   :  { %v6390_v51 = vpop.f32.mrf.mxu1  ;;  %6839 = vmatmul.mubr.bf16.gmra.mxu1 %v8236_v35 }
 0x42f   :  { %v6391_v26 = vadd.f32 %v6390_v51, %v11907_v11  ;;  %v6610_v50 = vpop.f32.mrf.mxu0  ;;  %6846 = vmatprep.mubr.bf16.mxu1 %v8244_v57 }
 0x430   :  { %v12330_v49 = vadd.f32 %v6610_v50, %v6386_v8  ;;  %v6392_v56 = vpop.f32.mrf.mxu1  ;;  %v8245_v8 = vld [vmem:[%s12590_s2 + $0xd30] ss:$72 sps:$4 sm:$0xff]  }
 0x431   :  { %v6612_v58 = vpop.f32.mrf.mxu0 }
 0x432   :  { %v6393_v2 = vpop.f32.mrf.mxu1  ;;  %7064 = vmatmul.mubr.bf16.gmra.mxu0 %v8239_v29 }
 0x433   :  { %v6394_v7 = vadd.f32 %v6393_v2, %v11916_v47  ;;  %v6615_v35 = vpop.f32.mrf.mxu0  ;;  %7071 = vmatprep.mubr.bf16.mxu0 %v8247_v30 }
 0x434   :  { %v12336_v11 = vadd.f32 %v6615_v35, %v6391_v26  ;;  %v6395_v59 = vpop.f32.mrf.mxu1 }
 0x435   :  { %v6617_v57 = vpop.f32.mrf.mxu0 }
 0x436   :  { %12752 = vst [vmem:[#allocation31_spill] sm:$0xff] %v12336_v11  ;;  %v6398_v43 = vpop.f32.mrf.mxu1  ;;  %6847 = vmatmul.mubr.bf16.gmra.mxu1 %v8242_v1 }
 0x437   :  { %v6399_v54 = vadd.f32 %v6398_v43, %v11925_v48  ;;  %v6618_v51 = vpop.f32.mrf.mxu0 }
 0x438   :  { %v12342_v29 = vadd.f32 %v6618_v51, %v6394_v7  ;;  %v6400_v50 = vpop.f32.mrf.mxu1 }
 0x439   :  { %v6620_v56 = vpop.f32.mrf.mxu0 }
 0x43a   :  { %v6401_v47 = vpop.f32.mrf.mxu1  ;;  %7072 = vmatmul.mubr.bf16.gmra.mxu0 %v8245_v8 }
 0x43b   :  { %v6402_v26 = vadd.f32 %v6401_v47, %v11934_v16  ;;  %v6623_v30 = vpop.f32.mrf.mxu0 }
 0x43c   :  { %v12345_v58 = vadd.f32 %v6623_v30, %v6399_v54  ;;  %v6403_v2 = vpop.f32.mrf.mxu1 }
 0x43d   :  { %v6625_v1 = vpop.f32.mrf.mxu0 }
 0x43e   :  { %v6664_v35 = vpop.f32.mrf.mxu1 }
 0x43f   :  { %v6626_v59 = vpop.f32.mrf.mxu0  ;;  %v6665_v7 = vadd.f32 %v6664_v35, %v11943_v23 }
 0x440   :  { %v12347_v57 = vadd.f32 %v6626_v59, %v6402_v26  ;;  %v6666_v11 = vpop.f32.mrf.mxu1 }
 0x441   :  { %v6628_v48 = vpop.f32.mrf.mxu0 }
 0x442   :  { %v6667_v43 = vpop.f32.mrf.mxu1 }
 0x443   :  { %v6889_v51 = vpop.f32.mrf.mxu0  ;;  %v6668_v16 = vadd.f32 %v6667_v43, %v11952_v52 }
 0x444   :  { %v6890_v50 = vadd.f32 %v6889_v51, %v6665_v7  ;;  %v6669_v8 = vpop.f32.mrf.mxu1 }
 0x445   :  { %v6891_v56 = vpop.f32.mrf.mxu0 }
 0x446   :  { %7081 = vst.msk [vmem:[%s12592_s3] sm:$0xff] %vm7080_vm0, %v6890_v50  ;;  %v6672_v54 = vpop.f32.mrf.mxu1 }
 0x447   :  { %v6892_v47 = vpop.f32.mrf.mxu0  ;;  %v6673_v23 = vadd.f32 %v6672_v54, %v11961_v28 }
 0x448   :  { %v6893_v26 = vadd.f32 %v6892_v47, %v6668_v16  ;;  %v6674_v11 = vpop.f32.mrf.mxu1 }
 0x449   :  { %v6894_v30 = vpop.f32.mrf.mxu0 }
 0x44a   :  { %7082 = vst.msk [vmem:[%s12592_s3 + $0x8] sm:$0xff] %vm7080_vm0, %v6893_v26  ;;  %v6675_v2 = vpop.f32.mrf.mxu1 }
 0x44b   :  { %v6897_v1 = vpop.f32.mrf.mxu0  ;;  %v6676_v48 = vadd.f32 %v6675_v2, %v11970_v21 }
 0x44c   :  { %v6898_v52 = vadd.f32 %v6897_v1, %v6673_v23  ;;  %v6677_v35 = vpop.f32.mrf.mxu1 }
 0x44d   :  { %v6899_v59 = vpop.f32.mrf.mxu0 }
 0x44e   :  { %7083 = vst.msk [vmem:[%s12592_s3 + $0x10] sm:$0xff] %vm7080_vm0, %v6898_v52  ;;  %v6680_v7 = vpop.f32.mrf.mxu1 }
 0x44f   :  { %v6900_v43 = vpop.f32.mrf.mxu0  ;;  %v6681_v8 = vadd.f32 %v6680_v7, %v11979_v14 }
 0x450   :  { %v6901_v28 = vadd.f32 %v6900_v43, %v6676_v48  ;;  %v6682_v51 = vpop.f32.mrf.mxu1 }
 0x451   :  { %v6902_v50 = vpop.f32.mrf.mxu0 }
 0x452   :  { %7084 = vst.msk [vmem:[%s12592_s3 + $0x18] sm:$0xff] %vm7080_vm0, %v6901_v28  ;;  %v6683_v56 = vpop.f32.mrf.mxu1 }
 0x453   :  { %v6905_v16 = vpop.f32.mrf.mxu0  ;;  %v6684_v26 = vadd.f32 %v6683_v56, %v11988_v44 }
 0x454   :  { %v6906_v21 = vadd.f32 %v6905_v16, %v6681_v8  ;;  %v6685_v54 = vpop.f32.mrf.mxu1 }
 0x455   :  { %v6907_v47 = vpop.f32.mrf.mxu0 }
 0x456   :  { %7085 = vst.msk [vmem:[%s12592_s3 + $0x20] sm:$0xff] %vm7080_vm0, %v6906_v21  ;;  %v6688_v11 = vpop.f32.mrf.mxu1 }
 0x457   :  { %v6908_v30 = vpop.f32.mrf.mxu0  ;;  %v6689_v1 = vadd.f32 %v6688_v11, %v11997_v31 }
 0x458   :  { %v6909_v14 = vadd.f32 %v6908_v30, %v6684_v26  ;;  %v6690_v23 = vpop.f32.mrf.mxu1 }
 0x459   :  { %v6910_v2 = vpop.f32.mrf.mxu0 }
 0x45a   :  { %7086 = vst.msk [vmem:[%s12592_s3 + $0x28] sm:$0xff] %vm7080_vm0, %v6909_v14  ;;  %v6691_v52 = vpop.f32.mrf.mxu1 }
 0x45b   :  { %v6913_v35 = vpop.f32.mrf.mxu0  ;;  %v6692_v7 = vadd.f32 %v6691_v52, %v12006_v15 }
 0x45c   :  { %v6914_v44 = vadd.f32 %v6913_v35, %v6689_v1  ;;  %v6693_v59 = vpop.f32.mrf.mxu1 }
 0x45d   :  { %v6915_v48 = vpop.f32.mrf.mxu0 }
 0x45e   :  { %7087 = vst.msk [vmem:[%s12592_s3 + $0x30] sm:$0xff] %vm7080_vm0, %v6914_v44  ;;  %v6696_v43 = vpop.f32.mrf.mxu1 }
 0x45f   :  { %v6916_v28 = vpop.f32.mrf.mxu0  ;;  %v6697_v8 = vadd.f32 %v6696_v43, %v12015_v60 }
 0x460   :  { %v6917_v31 = vadd.f32 %v6916_v28, %v6692_v7  ;;  %v6698_v51 = vpop.f32.mrf.mxu1 }
 0x461   :  { %v6918_v50 = vpop.f32.mrf.mxu0 }
 0x462   :  { %7088 = vst.msk [vmem:[%s12592_s3 + $0x38] sm:$0xff] %vm7080_vm0, %v6917_v31  ;;  %v6699_v56 = vpop.f32.mrf.mxu1 }
 0x463   :  { %v6921_v16 = vpop.f32.mrf.mxu0  ;;  %v6700_v47 = vadd.f32 %v6699_v56, %v12024_v24 }
 0x464   :  { %v6922_v15 = vadd.f32 %v6921_v16, %v6697_v8  ;;  %v6701_v21 = vpop.f32.mrf.mxu1 }
 0x465   :  { %v6923_v54 = vpop.f32.mrf.mxu0 }
 0x466   :  { %7089 = vst.msk [vmem:[%s12592_s3 + $0x40] sm:$0xff] %vm7080_vm0, %v6922_v15  ;;  %v6704_v26 = vpop.f32.mrf.mxu1 }
 0x467   :  { %v6924_v11 = vpop.f32.mrf.mxu0  ;;  %v6705_v23 = vadd.f32 %v6704_v26, %v12033_v19 }
 0x468   :  { %v6925_v60 = vadd.f32 %v6924_v11, %v6700_v47  ;;  %v6706_v30 = vpop.f32.mrf.mxu1 }
 0x469   :  { %v6926_v14 = vpop.f32.mrf.mxu0 }
 0x46a   :  { %7090 = vst.msk [vmem:[%s12592_s3 + $0x48] sm:$0xff] %vm7080_vm0, %v6925_v60  ;;  %v6707_v2 = vpop.f32.mrf.mxu1 }
 0x46b   :  { %v6929_v1 = vpop.f32.mrf.mxu0  ;;  %v6708_v44 = vadd.f32 %v6707_v2, %v12042_v62 }
 0x46c   :  { %v6930_v24 = vadd.f32 %v6929_v1, %v6705_v23  ;;  %v6709_v52 = vpop.f32.mrf.mxu1 }
 0x46d   :  { %v6931_v35 = vpop.f32.mrf.mxu0 }
 0x46e   :  { %7091 = vst.msk [vmem:[%s12592_s3 + $0x50] sm:$0xff] %vm7080_vm0, %v6930_v24  ;;  %v6712_v59 = vpop.f32.mrf.mxu1 }
 0x46f   :  { %v6932_v48 = vpop.f32.mrf.mxu0  ;;  %v6713_v28 = vadd.f32 %v6712_v59, %v12051_v41 }
 0x470   :  { %v6933_v19 = vadd.f32 %v6932_v48, %v6708_v44  ;;  %v6714_v7 = vpop.f32.mrf.mxu1 }
 0x471   :  { %v6934_v43 = vpop.f32.mrf.mxu0 }
 0x472   :  { %7092 = vst.msk [vmem:[%s12592_s3 + $0x58] sm:$0xff] %vm7080_vm0, %v6933_v19  ;;  %v6715_v31 = vpop.f32.mrf.mxu1 }
 0x473   :  { %v6937_v51 = vpop.f32.mrf.mxu0  ;;  %v6716_v56 = vadd.f32 %v6715_v31, %v12060_v10 }
 0x474   :  { %v6938_v62 = vadd.f32 %v6937_v51, %v6713_v28  ;;  %v6717_v50 = vpop.f32.mrf.mxu1 }
 0x475   :  { %v6939_v8 = vpop.f32.mrf.mxu0 }
 0x476   :  { %7093 = vst.msk [vmem:[%s12592_s3 + $0x60] sm:$0xff] %vm7080_vm0, %v6938_v62  ;;  %v6720_v16 = vpop.f32.mrf.mxu1 }
 0x477   :  { %v6940_v15 = vpop.f32.mrf.mxu0  ;;  %v6721_v47 = vadd.f32 %v6720_v16, %v12069_v6 }
 0x478   :  { %v6941_v41 = vadd.f32 %v6940_v15, %v6716_v56  ;;  %v6722_v21 = vpop.f32.mrf.mxu1 }
 0x479   :  { %v6942_v54 = vpop.f32.mrf.mxu0 }
 0x47a   :  { %7094 = vst.msk [vmem:[%s12592_s3 + $0x68] sm:$0xff] %vm7080_vm0, %v6941_v41  ;;  %v6723_v26 = vpop.f32.mrf.mxu1 }
 0x47b   :  { %v6945_v11 = vpop.f32.mrf.mxu0  ;;  %v6724_v14 = vadd.f32 %v6723_v26, %v12078_v9 }
 0x47c   :  { %v6946_v10 = vadd.f32 %v6945_v11, %v6721_v47  ;;  %v6725_v60 = vpop.f32.mrf.mxu1 }
 0x47d   :  { %v6947_v30 = vpop.f32.mrf.mxu0 }
 0x47e   :  { %7095 = vst.msk [vmem:[%s12592_s3 + $0x70] sm:$0xff] %vm7080_vm0, %v6946_v10  ;;  %v6728_v23 = vpop.f32.mrf.mxu1 }
 0x47f   :  { %v6948_v2 = vpop.f32.mrf.mxu0  ;;  %v6729_v52 = vadd.f32 %v6728_v23, %v12087_v40 }
 0x480   :  { %v6949_v6 = vadd.f32 %v6948_v2, %v6724_v14  ;;  %v6730_v1 = vpop.f32.mrf.mxu1 }
 0x481   :  { %v6950_v24 = vpop.f32.mrf.mxu0 }
 0x482   :  { %7096 = vst.msk [vmem:[%s12592_s3 + $0x78] sm:$0xff] %vm7080_vm0, %v6949_v6  ;;  %v6731_v35 = vpop.f32.mrf.mxu1 }
 0x483   :  { %v6953_v44 = vpop.f32.mrf.mxu0  ;;  %v6732_v19 = vadd.f32 %v6731_v35, %v12096_v0 }
 0x484   :  { %v6954_v9 = vadd.f32 %v6953_v44, %v6729_v52  ;;  %v6733_v59 = vpop.f32.mrf.mxu1 }
 0x485   :  { %v6955_v48 = vpop.f32.mrf.mxu0 }
 0x486   :  { %7097 = vst.msk [vmem:[%s12592_s3 + $0x80] sm:$0xff] %vm7080_vm0, %v6954_v9  ;;  %v6736_v7 = vpop.f32.mrf.mxu1 }
 0x487   :  { %v6956_v43 = vpop.f32.mrf.mxu0  ;;  %v6737_v51 = vadd.f32 %v6736_v7, %v12105_v18 }
 0x488   :  { %v6957_v40 = vadd.f32 %v6956_v43, %v6732_v19  ;;  %v6738_v28 = vpop.f32.mrf.mxu1 }
 0x489   :  { %v6958_v31 = vpop.f32.mrf.mxu0 }
 0x48a   :  { %7098 = vst.msk [vmem:[%s12592_s3 + $0x88] sm:$0xff] %vm7080_vm0, %v6957_v40  ;;  %v6739_v62 = vpop.f32.mrf.mxu1 }
 0x48b   :  { %v6961_v50 = vpop.f32.mrf.mxu0  ;;  %v6740_v16 = vadd.f32 %v6739_v62, %v12114_v38 }
 0x48c   :  { %v6962_v0 = vadd.f32 %v6961_v50, %v6737_v51  ;;  %v6741_v8 = vpop.f32.mrf.mxu1 }
 0x48d   :  { %v6963_v56 = vpop.f32.mrf.mxu0 }
 0x48e   :  { %7099 = vst.msk [vmem:[%s12592_s3 + $0x90] sm:$0xff] %vm7080_vm0, %v6962_v0  ;;  %v6744_v15 = vpop.f32.mrf.mxu1 }
 0x48f   :  { %v6964_v41 = vpop.f32.mrf.mxu0  ;;  %v6745_v47 = vadd.f32 %v6744_v15, %v12123_v37 }
 0x490   :  { %v6965_v18 = vadd.f32 %v6964_v41, %v6740_v16  ;;  %v6746_v21 = vpop.f32.mrf.mxu1 }
 0x491   :  { %v6966_v54 = vpop.f32.mrf.mxu0 }
 0x492   :  { %7100 = vst.msk [vmem:[%s12592_s3 + $0x98] sm:$0xff] %vm7080_vm0, %v6965_v18  ;;  %v6747_v26 = vpop.f32.mrf.mxu1 }
 0x493   :  { %v6969_v11 = vpop.f32.mrf.mxu0  ;;  %v6748_v30 = vadd.f32 %v6747_v26, %v12132_v22 }
 0x494   :  { %v6970_v38 = vadd.f32 %v6969_v11, %v6745_v47  ;;  %v6749_v10 = vpop.f32.mrf.mxu1 }
 0x495   :  { %v6971_v60 = vpop.f32.mrf.mxu0 }
 0x496   :  { %7101 = vst.msk [vmem:[%s12592_s3 + $0xa0] sm:$0xff] %vm7080_vm0, %v6970_v38  ;;  %v6752_v14 = vpop.f32.mrf.mxu1 }
 0x497   :  { %v6972_v23 = vpop.f32.mrf.mxu0  ;;  %v6753_v1 = vadd.f32 %v6752_v14, %v12141_v45 }
 0x498   :  { %v6973_v37 = vadd.f32 %v6972_v23, %v6748_v30  ;;  %v6754_v2 = vpop.f32.mrf.mxu1 }
 0x499   :  { %v6974_v6 = vpop.f32.mrf.mxu0 }
 0x49a   :  { %7102 = vst.msk [vmem:[%s12592_s3 + $0xa8] sm:$0xff] %vm7080_vm0, %v6973_v37  ;;  %v6755_v24 = vpop.f32.mrf.mxu1 }
 0x49b   :  { %v6977_v52 = vpop.f32.mrf.mxu0  ;;  %v6756_v9 = vadd.f32 %v6755_v24, %v12150_v55 }
 0x49c   :  { %v6978_v22 = vadd.f32 %v6977_v52, %v6753_v1  ;;  %v6757_v35 = vpop.f32.mrf.mxu1 }
 0x49d   :  { %v6979_v44 = vpop.f32.mrf.mxu0 }
 0x49e   :  { %7103 = vst.msk [vmem:[%s12592_s3 + $0xb0] sm:$0xff] %vm7080_vm0, %v6978_v22  ;;  %v6760_v59 = vpop.f32.mrf.mxu1 }
 0x49f   :  { %v6980_v48 = vpop.f32.mrf.mxu0  ;;  %v6761_v43 = vadd.f32 %v6760_v59, %v12159_v42 }
 0x4a0   :  { %v6981_v45 = vadd.f32 %v6980_v48, %v6756_v9  ;;  %v6762_v19 = vpop.f32.mrf.mxu1 }
 0x4a1   :  { %v6982_v7 = vpop.f32.mrf.mxu0 }
 0x4a2   :  { %7104 = vst.msk [vmem:[%s12592_s3 + $0xb8] sm:$0xff] %vm7080_vm0, %v6981_v45  ;;  %v6763_v40 = vpop.f32.mrf.mxu1 }
 0x4a3   :  { %v6985_v28 = vpop.f32.mrf.mxu0  ;;  %v6764_v62 = vadd.f32 %v6763_v40, %v12168_v34 }
 0x4a4   :  { %v6986_v55 = vadd.f32 %v6985_v28, %v6761_v43  ;;  %v6765_v31 = vpop.f32.mrf.mxu1 }
 0x4a5   :  { %v6987_v51 = vpop.f32.mrf.mxu0 }
 0x4a6   :  { %7105 = vst.msk [vmem:[%s12592_s3 + $0xc0] sm:$0xff] %vm7080_vm0, %v6986_v55  ;;  %v6768_v50 = vpop.f32.mrf.mxu1 }
 0x4a7   :  { %v6988_v0 = vpop.f32.mrf.mxu0  ;;  %v6769_v16 = vadd.f32 %v6768_v50, %v12177_v5 }
 0x4a8   :  { %v6989_v42 = vadd.f32 %v6988_v0, %v6764_v62  ;;  %v6770_v8 = vpop.f32.mrf.mxu1 }
 0x4a9   :  { %v6990_v56 = vpop.f32.mrf.mxu0 }
 0x4aa   :  { %7106 = vst.msk [vmem:[%s12592_s3 + $0xc8] sm:$0xff] %vm7080_vm0, %v6989_v42  ;;  %v6771_v15 = vpop.f32.mrf.mxu1 }
 0x4ab   :  { %v6993_v41 = vpop.f32.mrf.mxu0  ;;  %v6772_v54 = vadd.f32 %v6771_v15, %v12186_v39 }
 0x4ac   :  { %v6994_v34 = vadd.f32 %v6993_v41, %v6769_v16  ;;  %v6773_v18 = vpop.f32.mrf.mxu1 }
 0x4ad   :  { %v6995_v21 = vpop.f32.mrf.mxu0 }
 0x4ae   :  { %7107 = vst.msk [vmem:[%s12592_s3 + $0xd0] sm:$0xff] %vm7080_vm0, %v6994_v34  ;;  %v6776_v47 = vpop.f32.mrf.mxu1 }
 0x4af   :  { %v6996_v26 = vpop.f32.mrf.mxu0  ;;  %v6777_v10 = vadd.f32 %v6776_v47, %v12195_v3 }
 0x4b0   :  { %v6997_v5 = vadd.f32 %v6996_v26, %v6772_v54  ;;  %v6778_v11 = vpop.f32.mrf.mxu1 }
 0x4b1   :  { %v6998_v38 = vpop.f32.mrf.mxu0 }
 0x4b2   :  { %7108 = vst.msk [vmem:[%s12592_s3 + $0xd8] sm:$0xff] %vm7080_vm0, %v6997_v5  ;;  %v6779_v60 = vpop.f32.mrf.mxu1 }
 0x4b3   :  { %v7001_v30 = vpop.f32.mrf.mxu0  ;;  %v6780_v37 = vadd.f32 %v6779_v60, %v12204_v27 }
 0x4b4   :  { %v7002_v39 = vadd.f32 %v7001_v30, %v6777_v10  ;;  %v6781_v14 = vpop.f32.mrf.mxu1 }
 0x4b5   :  { %v7003_v23 = vpop.f32.mrf.mxu0 }
 0x4b6   :  { %7109 = vst.msk [vmem:[%s12592_s3 + $0xe0] sm:$0xff] %vm7080_vm0, %v7002_v39  ;;  %v6784_v2 = vpop.f32.mrf.mxu1 }
 0x4b7   :  { %v7004_v6 = vpop.f32.mrf.mxu0  ;;  %v6785_v52 = vadd.f32 %v6784_v2, %v12213_v36 }
 0x4b8   :  { %v7005_v3 = vadd.f32 %v7004_v6, %v6780_v37  ;;  %v6786_v1 = vpop.f32.mrf.mxu1 }
 0x4b9   :  { %v7006_v24 = vpop.f32.mrf.mxu0 }
 0x4ba   :  { %7110 = vst.msk [vmem:[%s12592_s3 + $0xe8] sm:$0xff] %vm7080_vm0, %v7005_v3  ;;  %v6787_v22 = vpop.f32.mrf.mxu1 }
 0x4bb   :  { %v7009_v35 = vpop.f32.mrf.mxu0  ;;  %v6788_v59 = vadd.f32 %v6787_v22, %v12222_v25 }
 0x4bc   :  { %v7010_v27 = vadd.f32 %v7009_v35, %v6785_v52  ;;  %v6789_v44 = vpop.f32.mrf.mxu1 }
 0x4bd   :  { %v7011_v9 = vpop.f32.mrf.mxu0 }
 0x4be   :  { %7111 = vst.msk [vmem:[%s12592_s3 + $0xf0] sm:$0xff] %vm7080_vm0, %v7010_v27  ;;  %v6792_v48 = vpop.f32.mrf.mxu1 }
 0x4bf   :  { %v7012_v45 = vpop.f32.mrf.mxu0  ;;  %v6793_v43 = vadd.f32 %v6792_v48, %v12231_v13 }
 0x4c0   :  { %v7013_v36 = vadd.f32 %v7012_v45, %v6788_v59  ;;  %v6794_v19 = vpop.f32.mrf.mxu1 }
 0x4c1   :  { %v7014_v7 = vpop.f32.mrf.mxu0 }
 0x4c2   :  { %7112 = vst.msk [vmem:[%s12592_s3 + $0xf8] sm:$0xff] %vm7080_vm0, %v7013_v36  ;;  %v6795_v40 = vpop.f32.mrf.mxu1 }
 0x4c3   :  { %v7017_v28 = vpop.f32.mrf.mxu0  ;;  %v6796_v51 = vadd.f32 %v6795_v40, %v12240_v46 }
 0x4c4   :  { %v7018_v25 = vadd.f32 %v7017_v28, %v6793_v43  ;;  %v6797_v55 = vpop.f32.mrf.mxu1 }
 0x4c5   :  { %v7019_v31 = vpop.f32.mrf.mxu0 }
 0x4c6   :  { %7113 = vst.msk [vmem:[%s12592_s3 + $0x100] sm:$0xff] %vm7080_vm0, %v7018_v25  ;;  %v6800_v62 = vpop.f32.mrf.mxu1 }
 0x4c7   :  { %v7020_v50 = vpop.f32.mrf.mxu0  ;;  %v6801_v8 = vadd.f32 %v6800_v62, %v12249_v17 }
 0x4c8   :  { %v7021_v13 = vadd.f32 %v7020_v50, %v6796_v51  ;;  %v6802_v0 = vpop.f32.mrf.mxu1 }
 0x4c9   :  { %v7022_v42 = vpop.f32.mrf.mxu0 }
 0x4ca   :  { %7114 = vst.msk [vmem:[%s12592_s3 + $0x108] sm:$0xff] %vm7080_vm0, %v7021_v13  ;;  %v6803_v56 = vpop.f32.mrf.mxu1 }
 0x4cb   :  { %v7025_v16 = vpop.f32.mrf.mxu0  ;;  %v6804_v34 = vadd.f32 %v6803_v56, %v12258_v61 }
 0x4cc   :  { %v7026_v46 = vadd.f32 %v7025_v16, %v6801_v8  ;;  %v6805_v15 = vpop.f32.mrf.mxu1  ;;  %v12753_v8 = vld [vmem:[#allocation31_spill] sm:$0xff] }
 0x4cd   :  { %v7027_v41 = vpop.f32.mrf.mxu0 }
 0x4ce   :  { %7115 = vst.msk [vmem:[%s12592_s3 + $0x110] sm:$0xff] %vm7080_vm0, %v7026_v46  ;;  %v6808_v18 = vpop.f32.mrf.mxu1 }
 0x4cf   :  { %v7028_v21 = vpop.f32.mrf.mxu0  ;;  %v6809_v26 = vadd.f32 %v6808_v18, %v12267_v12 }
 0x4d0   :  { %v7029_v17 = vadd.f32 %v7028_v21, %v6804_v34  ;;  %v6810_v54 = vpop.f32.mrf.mxu1 }
 0x4d1   :  { %v7030_v47 = vpop.f32.mrf.mxu0 }
 0x4d2   :  { %7116 = vst.msk [vmem:[%s12592_s3 + $0x118] sm:$0xff] %vm7080_vm0, %v7029_v17  ;;  %v6811_v5 = vpop.f32.mrf.mxu1 }
 0x4d3   :  { %v7033_v11 = vpop.f32.mrf.mxu0  ;;  %v6812_v60 = vadd.f32 %v6811_v5, %v12276_v20 }
 0x4d4   :  { %v7034_v61 = vadd.f32 %v7033_v11, %v6809_v26  ;;  %v6813_v38 = vpop.f32.mrf.mxu1 }
 0x4d5   :  { %v7035_v10 = vpop.f32.mrf.mxu0 }
 0x4d6   :  { %7117 = vst.msk [vmem:[%s12592_s3 + $0x120] sm:$0xff] %vm7080_vm0, %v7034_v61  ;;  %v6816_v30 = vpop.f32.mrf.mxu1 }
 0x4d7   :  { %v7036_v39 = vpop.f32.mrf.mxu0  ;;  %v6817_v37 = vadd.f32 %v6816_v30, %v12285_v32 }
 0x4d8   :  { %v7037_v12 = vadd.f32 %v7036_v39, %v6812_v60  ;;  %v6818_v14 = vpop.f32.mrf.mxu1 }
 0x4d9   :  { %v7038_v23 = vpop.f32.mrf.mxu0 }
 0x4da   :  { %7118 = vst.msk [vmem:[%s12592_s3 + $0x128] sm:$0xff] %vm7080_vm0, %v7037_v12  ;;  %v6819_v2 = vpop.f32.mrf.mxu1 }
 0x4db   :  { %v7041_v6 = vpop.f32.mrf.mxu0  ;;  %v6820_v24 = vadd.f32 %v6819_v2, %v12294_v4 }
 0x4dc   :  { %v7042_v20 = vadd.f32 %v7041_v6, %v6817_v37  ;;  %v6821_v3 = vpop.f32.mrf.mxu1 }
 0x4dd   :  { %v7043_v1 = vpop.f32.mrf.mxu0 }
 0x4de   :  { %7119 = vst.msk [vmem:[%s12592_s3 + $0x130] sm:$0xff] %vm7080_vm0, %v7042_v20  ;;  %v6824_v52 = vpop.f32.mrf.mxu1 }
 0x4df   :  { %v7044_v22 = vpop.f32.mrf.mxu0  ;;  %v6825_v44 = vadd.f32 %v6824_v52, %v12303_v53 }
 0x4e0   :  { %v7045_v32 = vadd.f32 %v7044_v22, %v6820_v24  ;;  %v6826_v35 = vpop.f32.mrf.mxu1 }
 0x4e1   :  { %v7046_v27 = vpop.f32.mrf.mxu0 }
 0x4e2   :  { %7120 = vst.msk [vmem:[%s12592_s3 + $0x138] sm:$0xff] %vm7080_vm0, %v7045_v32  ;;  %v6827_v9 = vpop.f32.mrf.mxu1 }
 0x4e3   :  { %v7049_v59 = vpop.f32.mrf.mxu0  ;;  %v6828_v36 = vadd.f32 %v6827_v9, %v12312_v33 }
 0x4e4   :  { %v7050_v4 = vadd.f32 %v7049_v59, %v6825_v44  ;;  %v6829_v48 = vpop.f32.mrf.mxu1 }
 0x4e5   :  { %v7051_v45 = vpop.f32.mrf.mxu0 }
 0x4e6   :  { %7121 = vst.msk [vmem:[%s12592_s3 + $0x140] sm:$0xff] %vm7080_vm0, %v7050_v4  ;;  %v6832_v19 = vpop.f32.mrf.mxu1 }
 0x4e7   :  { %v7052_v7 = vpop.f32.mrf.mxu0  ;;  %v6833_v28 = vadd.f32 %v6832_v19, %v12321_v63 }
 0x4e8   :  { %v7053_v53 = vadd.f32 %v7052_v7, %v6828_v36  ;;  %v6834_v43 = vpop.f32.mrf.mxu1 }
 0x4e9   :  { %v7054_v40 = vpop.f32.mrf.mxu0 }
 0x4ea   :  { %7122 = vst.msk [vmem:[%s12592_s3 + $0x148] sm:$0xff] %vm7080_vm0, %v7053_v53  ;;  %v6835_v25 = vpop.f32.mrf.mxu1 }
 0x4eb   :  { %v7057_v55 = vpop.f32.mrf.mxu0  ;;  %v6836_v62 = vadd.f32 %v6835_v25, %v12330_v49 }
 0x4ec   :  { %v7058_v33 = vadd.f32 %v7057_v55, %v6833_v28  ;;  %v6837_v31 = vpop.f32.mrf.mxu1 }
 0x4ed   :  { %v7059_v51 = vpop.f32.mrf.mxu0 }
 0x4ee   :  { %7123 = vst.msk [vmem:[%s12592_s3 + $0x150] sm:$0xff] %vm7080_vm0, %v7058_v33  ;;  %v6840_v50 = vpop.f32.mrf.mxu1 }
 0x4ef   :  { %v7060_v13 = vpop.f32.mrf.mxu0  ;;  %v6841_v56 = vadd.f32 %v6840_v50, %v12753_v8 }
 0x4f0   :  { %v7061_v63 = vadd.f32 %v7060_v13, %v6836_v62  ;;  %v6842_v0 = vpop.f32.mrf.mxu1 }
 0x4f1   :  { %v7062_v42 = vpop.f32.mrf.mxu0 }
 0x4f2   :  { %7124 = vst.msk [vmem:[%s12592_s3 + $0x158] sm:$0xff] %vm7080_vm0, %v7061_v63  ;;  %v6843_v16 = vpop.f32.mrf.mxu1 }
 0x4f3   :  { %v7065_v46 = vpop.f32.mrf.mxu0  ;;  %v6844_v34 = vadd.f32 %v6843_v16, %v12342_v29 }
 0x4f4   :  { %v7066_v49 = vadd.f32 %v7065_v46, %v6841_v56  ;;  %v6845_v15 = vpop.f32.mrf.mxu1 }
 0x4f5   :  { %v7067_v41 = vpop.f32.mrf.mxu0 }
 0x4f6   :  { %7125 = vst.msk [vmem:[%s12592_s3 + $0x160] sm:$0xff] %vm7080_vm0, %v7066_v49  ;;  %v6848_v18 = vpop.f32.mrf.mxu1 }
 0x4f7   :  { %v7068_v21 = vpop.f32.mrf.mxu0  ;;  %v6849_v26 = vadd.f32 %v6848_v18, %v12345_v58 }
 0x4f8   :  { %v7069_v17 = vadd.f32 %v7068_v21, %v6844_v34  ;;  %v6850_v54 = vpop.f32.mrf.mxu1 }
 0x4f9   :  { %v7070_v47 = vpop.f32.mrf.mxu0 }
 0x4fa   :  { %7126 = vst.msk [vmem:[%s12592_s3 + $0x168] sm:$0xff] %vm7080_vm0, %v7069_v17  ;;  %v6851_v5 = vpop.f32.mrf.mxu1 }
 0x4fb   :  { %v7073_v11 = vpop.f32.mrf.mxu0  ;;  %v6852_v10 = vadd.f32 %v6851_v5, %v12347_v57 }
 0x4fc   :  { %v7074_v29 = vadd.f32 %v7073_v11, %v6849_v26  ;;  %v6853_v61 = vpop.f32.mrf.mxu1 }
 0x4fd   :  { %v7075_v38 = vpop.f32.mrf.mxu0 }
 0x4fe   :  { %7127 = vst.msk [vmem:[%s12592_s3 + $0x170] sm:$0xff] %vm7080_vm0, %v7074_v29 }
 0x4ff   :  { %v7076_v60 = vpop.f32.mrf.mxu0 }
 0x500   :  { %v7077_v30 = vadd.f32 %v7076_v60, %v6852_v10 }
 0x501   :  { %v7078_v58 = vpop.f32.mrf.mxu0 }
 0x502   :  { %7128 = vst.msk [vmem:[%s12592_s3 + $0x178] sm:$0xff] %vm7080_vm0, %v7077_v30 }

</bundles_post_ra>
